<compile_context>
chip_gen: v7x
topology: tpu7x:2x2x1
jax: 0.10.0
libtpu: 0.0.40
codegen_flags: <defaults>
</compile_context>

<pallas_src>
import math

import jax
import jax.numpy as jnp
from jax.experimental import pallas as pl
from jax.experimental.pallas import tpu as pltpu  # noqa: F401

# ---------------- model dimensions ----------------
B, S = 2, 8          # batch, sequence length
H = 32               # hidden_size
NH = 4               # num_attention_heads
D = H // NH          # attention_head_size = 8
I = 64               # intermediate_size
L = 2                # num_hidden_layers
LN_EPS = 1e-12       # HF BertLayerNorm default eps


# ---------------- in-kernel helpers (traced, not separate kernels) ----------------
def _layernorm(x, gamma, beta):
    mu = jnp.mean(x, axis=-1, keepdims=True)
    xc = x - mu
    var = jnp.mean(xc * xc, axis=-1, keepdims=True)
    return xc * jax.lax.rsqrt(var + LN_EPS) * gamma + beta


def _gelu(x):
    # TODO(synk): HF default 'gelu' is the exact erf form; tanh approximation
    # used here (~1e-3 deviation) since erf lowering in Mosaic is not guaranteed.
    c = math.sqrt(2.0 / math.pi)
    return 0.5 * x * (1.0 + jnp.tanh(c * (x + 0.044715 * x * x * x)))


# ---------------- the fused encoder kernel ----------------
def _encoder_kernel(x_ref, mask_ref, dpk_ref, dpv_ref,
                    wqkv_ref, bqkv_ref, wo_ref, bo_ref, ln1g_ref, ln1b_ref,
                    wi_ref, bi_ref, wo2_ref, bo2_ref, ln2g_ref, ln2b_ref,
                    hid_ref):
    """Whole BertGraphEncoder forward, fully VMEM-resident.

    x      : (B*S, H)          mask : (B, 1, S) additive
    dpk/dpv: (L*B, S, S, D)    relation embeddings, gathered in glue
    weights: stacked with leading layer dim L
    hid    : (L, B*S, H)       per-layer hidden states (output)
    """
    h = x_ref[...]                                    # (B*S, H) f32
    scale = 1.0 / math.sqrt(D)

    for l in range(L):                                # static unroll, L=2
        wo_l = wo_ref[l]                              # (H, H)

        # --- fused Q/K/V projection: one (B*S,H)@(H,3H) MXU push ---
        qkv = jnp.dot(h, wqkv_ref[l],
                      preferred_element_type=jnp.float32) + bqkv_ref[l]

        # --- graph self-attention; output projection accumulated per head ---
        attn_rows = []
        for b in range(B):                            # static unroll, B=2
            dpk_b = dpk_ref[l * B + b]                # (S, S, D)
            dpv_b = dpv_ref[l * B + b]
            mask_b = mask_ref[b]                      # (1, S)
            r0 = b * S
            acc = None                                # (S, H) running output-proj
            for hh in range(NH):                      # static unroll, NH=4
                c0 = hh * D
                q_bh = qkv[r0:r0 + S, c0:c0 + D]                    # (S, D)
                k_bh = qkv[r0:r0 + S, H + c0:H + c0 + D]
                v_bh = qkv[r0:r0 + S, 2 * H + c0:2 * H + c0 + D]

                # scores[i,j] = q[i,:]·k[j,:] / sqrt(D)            (MXU)
                scores = jax.lax.dot_general(
                    q_bh, k_bh, (((1,), (1,)), ((), ())),
                    preferred_element_type=jnp.float32) * scale
                # rel_k[i,j] = q[i,:]·dpk[i,j,:]     (i-batched MXU matmul)
                rel_k = jax.lax.dot_general(
                    q_bh[:, None, :], dpk_b, (((2,), (2,)), ((0,), (0,))),
                    preferred_element_type=jnp.float32)            # (S,1,S)
                scores = scores + rel_k.reshape(S, S) + mask_b

                # softmax over j (EUP exp + approx reciprocal)
                m = jnp.max(scores, axis=-1, keepdims=True)
                e = jnp.exp(scores - m)
                probs = e * pl.reciprocal(
                    jnp.sum(e, axis=-1, keepdims=True), approx=True)

                # ctx[i,d] = sum_j probs[i,j] v[j,d]               (MXU)
                ctx = jnp.dot(probs, v_bh, preferred_element_type=jnp.float32)
                # rel_v[i,d] = sum_j probs[i,j] dpv[i,j,d] (i-batched MXU)
                rel_v = jax.lax.dot_general(
                    probs[:, None, :], dpv_b, (((2,), (1,)), ((0,), (0,))),
                    preferred_element_type=jnp.float32)            # (S,1,D)
                ctx = ctx + rel_v.reshape(S, D)

                # per-head slice of BertSelfOutput dense:
                # sum_h ctx_h @ Wo[h*D:(h+1)*D, :] == concat_h(ctx_h) @ Wo
                term = jnp.dot(ctx, wo_l[c0:c0 + D, :],
                               preferred_element_type=jnp.float32)
                acc = term if acc is None else acc + term
            attn_rows.append(acc)
        attn_out = jnp.concatenate(attn_rows, axis=0) + bo_ref[l]   # (B*S, H)

        # --- BertSelfOutput: LayerNorm(dense(ctx) + residual) ---
        h1 = _layernorm(attn_out + h, ln1g_ref[l], ln1b_ref[l])

        # --- BertIntermediate (GELU) + BertOutput ---
        inter = _gelu(jnp.dot(h1, wi_ref[l],
                              preferred_element_type=jnp.float32) + bi_ref[l])
        ffn = jnp.dot(inter, wo2_ref[l],
                      preferred_element_type=jnp.float32) + bo2_ref[l]
        h = _layernorm(ffn + h1, ln2g_ref[l], ln2b_ref[l])

        hid_ref[l] = h.astype(hid_ref.dtype)


# ---------------- parameter init (deterministic, synthetic) ----------------
def _xavier_uniform(key, shape):
    fan_in, fan_out = shape[0], shape[1]
    a = math.sqrt(6.0 / (fan_in + fan_out))
    return jax.random.uniform(key, shape, jnp.float32, -a, a)


def init_layer_params(key):
    ks = jax.random.split(key, 20)
    std = 0.02
    p = {}
    p['wq'] = jax.random.normal(ks[0], (H, H), jnp.float32) * std
    p['bq'] = jnp.zeros((H,), jnp.float32)
    p['wk'] = jax.random.normal(ks[1], (H, H), jnp.float32) * std
    p['bk'] = jnp.zeros((H,), jnp.float32)
    p['wv'] = jax.random.normal(ks[2], (H, H), jnp.float32) * std
    p['bv'] = jnp.zeros((H,), jnp.float32)
    # graph relation embeddings (input_unlabel_graph -> 3 entries), row 0 zeroed
    emb_k = _xavier_uniform(ks[3], (3, D))
    emb_v = _xavier_uniform(ks[4], (3, D))
    p['emb_k'] = emb_k.at[0].set(0.0)
    p['emb_v'] = emb_v.at[0].set(0.0)
    # BertSelfOutput
    p['wo'] = jax.random.normal(ks[5], (H, H), jnp.float32) * std
    p['bo'] = jnp.zeros((H,), jnp.float32)
    p['ln1_g'] = jnp.ones((H,), jnp.float32)
    p['ln1_b'] = jnp.zeros((H,), jnp.float32)
    # BertIntermediate / BertOutput
    p['wi'] = jax.random.normal(ks[6], (H, I), jnp.float32) * std
    p['bi'] = jnp.zeros((I,), jnp.float32)
    p['wo2'] = jax.random.normal(ks[7], (I, H), jnp.float32) * std
    p['bo2'] = jnp.zeros((H,), jnp.float32)
    p['ln2_g'] = jnp.ones((H,), jnp.float32)
    p['ln2_b'] = jnp.zeros((H,), jnp.float32)
    return p


# ---------------- encoder forward (thin glue around ONE pallas_call) ----------------
def encoder_forward(layer_params, hidden_states, attention_mask, graph_arc):
    """Mirrors BertGraphEncoder.forward with output_hidden_states=True,
    output_attentions=False, head_mask=[None]*L, encoder_hidden_states=None."""
    x2d = hidden_states.reshape(B * S, H)
    mask = attention_mask.reshape(B, 1, S).astype(jnp.float32)

    cat = jnp.concatenate
    # stack per-layer weights so the whole encoder is one kernel argument set
    wqkv = jnp.stack([cat([p['wq'], p['wk'], p['wv']], axis=1) for p in layer_params])
    bqkv = jnp.stack([cat([p['bq'], p['bk'], p['bv']])[None, :] for p in layer_params])
    wo = jnp.stack([p['wo'] for p in layer_params])
    bo = jnp.stack([p['bo'][None, :] for p in layer_params])
    ln1g = jnp.stack([p['ln1_g'][None, :] for p in layer_params])
    ln1b = jnp.stack([p['ln1_b'][None, :] for p in layer_params])
    wi = jnp.stack([p['wi'] for p in layer_params])
    bi = jnp.stack([p['bi'][None, :] for p in layer_params])
    wo2 = jnp.stack([p['wo2'] for p in layer_params])
    bo2 = jnp.stack([p['bo2'][None, :] for p in layer_params])
    ln2g = jnp.stack([p['ln2_g'][None, :] for p in layer_params])
    ln2b = jnp.stack([p['ln2_b'][None, :] for p in layer_params])

    # dp_relation_{k,v} nn.Embedding gather stays in XLA glue (tiny int lookup);
    # the gathered dense tensors feed the kernel.
    dpk = jnp.stack([p['emb_k'][graph_arc] for p in layer_params]).reshape(L * B, S, S, D)
    dpv = jnp.stack([p['emb_v'][graph_arc] for p in layer_params]).reshape(L * B, S, S, D)

    hid = pl.pallas_call(
        _encoder_kernel,
        out_shape=jax.ShapeDtypeStruct((L, B * S, H), jnp.float32),
        # No grid / no BlockSpecs: every operand is mapped whole into VMEM
        # (~90 KB total, far under any generation's VMEM), so there is nothing
        # to pipeline and no per-grid-step overhead.
    )(x2d, mask, dpk, dpv, wqkv, bqkv, wo, bo, ln1g, ln1b,
      wi, bi, wo2, bo2, ln2g, ln2b)

    per_layer = tuple(hid[l].reshape(B, S, H) for l in range(L))
    all_hidden_states = (hidden_states,) + per_layer
    return per_layer[-1], all_hidden_states


if __name__ == "__main__":
    root = jax.random.PRNGKey(0)
    k_h, k_arc, *k_layers = jax.random.split(root, 2 + L)

    layer_params = [init_layer_params(k) for k in k_layers]

    hidden_states = jax.random.normal(k_h, (B, S, H), jnp.float32)

    # additive attention mask (B,1,1,S): last two tokens of batch 1 padded
    valid = jnp.ones((B, S), jnp.float32).at[1, S - 2:].set(0.0)
    attention_mask = (1.0 - valid)[:, None, None, :] * -10000.0

    # unlabeled dependency graph arcs in {0,1,2}
    graph_arc = jax.random.randint(k_arc, (B, S, S), 0, 3, dtype=jnp.int32)

    out, all_hidden = encoder_forward(layer_params, hidden_states,
                                      attention_mask, graph_arc)
    jax.block_until_ready(out)
    assert out.shape == (B, S, H)
    assert len(all_hidden) == L + 1
    print("KERNEL_OK")
</pallas_src>

<mosaic_0001>
module attributes {stable_mosaic.version = 11 : i64} {
  func.func @_encoder_kernel(%arg0: memref<16x32xf32, #tpu.memory_space<vmem>>, %arg1: memref<2x1x8xf32, #tpu.memory_space<vmem>>, %arg2: memref<4x8x8x8xf32, #tpu.memory_space<vmem>>, %arg3: memref<4x8x8x8xf32, #tpu.memory_space<vmem>>, %arg4: memref<2x32x96xf32, #tpu.memory_space<vmem>>, %arg5: memref<2x1x96xf32, #tpu.memory_space<vmem>>, %arg6: memref<2x32x32xf32, #tpu.memory_space<vmem>>, %arg7: memref<2x1x32xf32, #tpu.memory_space<vmem>>, %arg8: memref<2x1x32xf32, #tpu.memory_space<vmem>>, %arg9: memref<2x1x32xf32, #tpu.memory_space<vmem>>, %arg10: memref<2x32x64xf32, #tpu.memory_space<vmem>>, %arg11: memref<2x1x64xf32, #tpu.memory_space<vmem>>, %arg12: memref<2x64x32xf32, #tpu.memory_space<vmem>>, %arg13: memref<2x1x32xf32, #tpu.memory_space<vmem>>, %arg14: memref<2x1x32xf32, #tpu.memory_space<vmem>>, %arg15: memref<2x1x32xf32, #tpu.memory_space<vmem>>, %arg16: memref<2x16x32xf32, #tpu.memory_space<vmem>>) attributes {dimension_semantics = [], scalar_prefetch = 0 : i64, scratch_operands = 0 : i64, tpu.core_type = #tpu.core_type<tc>} {
    %c0 = arith.constant 0 : index
    %c0_0 = arith.constant 0 : index
    %0 = vector.load %arg0[%c0, %c0_0] : memref<16x32xf32, #tpu.memory_space<vmem>>, vector<16x32xf32>
    %c0_1 = arith.constant 0 : index
    %c0_2 = arith.constant 0 : index
    %c0_3 = arith.constant 0 : index
    %1 = vector.load %arg6[%c0_1, %c0_2, %c0_3] : memref<2x32x32xf32, #tpu.memory_space<vmem>>, vector<1x32x32xf32>
    %2 = vector.shape_cast %1 : vector<1x32x32xf32> to vector<32x32xf32>
    %c0_4 = arith.constant 0 : index
    %c0_5 = arith.constant 0 : index
    %c0_6 = arith.constant 0 : index
    %3 = vector.load %arg4[%c0_4, %c0_5, %c0_6] : memref<2x32x96xf32, #tpu.memory_space<vmem>>, vector<1x32x96xf32>
    %4 = vector.shape_cast %3 : vector<1x32x96xf32> to vector<32x96xf32>
    %cst = arith.constant dense<0.000000e+00> : vector<16x96xf32>
    %5 = tpu.matmul %0, %4, %cst {dimension_numbers = #tpu.dot_dimension_numbers<[1], [0], [0], [1], [0, 0, 1, 1], [], []>} : vector<16x32xf32>, vector<32x96xf32>, vector<16x96xf32> -> vector<16x96xf32>
    %c0_7 = arith.constant 0 : index
    %c0_8 = arith.constant 0 : index
    %c0_9 = arith.constant 0 : index
    %6 = vector.load %arg5[%c0_7, %c0_8, %c0_9] : memref<2x1x96xf32, #tpu.memory_space<vmem>>, vector<1x1x96xf32>
    %7 = vector.shape_cast %6 : vector<1x1x96xf32> to vector<1x96xf32>
    %8 = vector.broadcast %7 : vector<1x96xf32> to vector<16x96xf32>
    %9 = arith.addf %5, %8 : vector<16x96xf32>
    %c0_10 = arith.constant 0 : index
    %c0_11 = arith.constant 0 : index
    %c0_12 = arith.constant 0 : index
    %c0_13 = arith.constant 0 : index
    %10 = vector.load %arg2[%c0_10, %c0_11, %c0_12, %c0_13] : memref<4x8x8x8xf32, #tpu.memory_space<vmem>>, vector<1x8x8x8xf32>
    %11 = vector.shape_cast %10 : vector<1x8x8x8xf32> to vector<8x8x8xf32>
    %c0_14 = arith.constant 0 : index
    %c0_15 = arith.constant 0 : index
    %c0_16 = arith.constant 0 : index
    %c0_17 = arith.constant 0 : index
    %12 = vector.load %arg3[%c0_14, %c0_15, %c0_16, %c0_17] : memref<4x8x8x8xf32, #tpu.memory_space<vmem>>, vector<1x8x8x8xf32>
    %13 = vector.shape_cast %12 : vector<1x8x8x8xf32> to vector<8x8x8xf32>
    %c0_18 = arith.constant 0 : index
    %c0_19 = arith.constant 0 : index
    %c0_20 = arith.constant 0 : index
    %14 = vector.load %arg1[%c0_18, %c0_19, %c0_20] : memref<2x1x8xf32, #tpu.memory_space<vmem>>, vector<1x1x8xf32>
    %15 = vector.shape_cast %14 : vector<1x1x8xf32> to vector<1x8xf32>
    %16 = vector.extract_strided_slice %9 {offsets = [0, 0], sizes = [8, 8], strides = [1, 1]} : vector<16x96xf32> to vector<8x8xf32>
    %17 = vector.extract_strided_slice %9 {offsets = [0, 32], sizes = [8, 8], strides = [1, 1]} : vector<16x96xf32> to vector<8x8xf32>
    %18 = vector.extract_strided_slice %9 {offsets = [0, 64], sizes = [8, 8], strides = [1, 1]} : vector<16x96xf32> to vector<8x8xf32>
    %cst_21 = arith.constant dense<0.000000e+00> : vector<8x8xf32>
    %19 = tpu.matmul %16, %17, %cst_21 {dimension_numbers = #tpu.dot_dimension_numbers<[1], [1], [0], [0], [0, 0, 1, 0], [], []>} : vector<8x8xf32>, vector<8x8xf32>, vector<8x8xf32> -> vector<8x8xf32>
    %cst_22 = arith.constant 0.353553385 : f32
    %20 = vector.broadcast %cst_22 : f32 to vector<8x8xf32>
    %21 = arith.mulf %19, %20 : vector<8x8xf32>
    %22 = vector.shape_cast %16 : vector<8x8xf32> to vector<8x1x8xf32>
    %cst_23 = arith.constant dense<0.000000e+00> : vector<8x1x8xf32>
    %23 = tpu.matmul %22, %11, %cst_23 {dimension_numbers = #tpu.dot_dimension_numbers<[2], [2], [1], [1], [0, 0, 0, 1, 1, 1], [0], [0]>} : vector<8x1x8xf32>, vector<8x8x8xf32>, vector<8x1x8xf32> -> vector<8x1x8xf32>
    %24 = vector.shape_cast %23 : vector<8x1x8xf32> to vector<8x8xf32>
    %25 = arith.addf %21, %24 : vector<8x8xf32>
    %26 = vector.broadcast %15 : vector<1x8xf32> to vector<8x8xf32>
    %27 = arith.addf %25, %26 : vector<8x8xf32>
    %cst_24 = arith.constant dense<0xFF800000> : vector<8xf32>
    %28 = vector.multi_reduction <maximumf>, %27, %cst_24 [1] : vector<8x8xf32> to vector<8xf32>
    %29 = vector.shape_cast %28 : vector<8xf32> to vector<8x1xf32>
    %30 = vector.broadcast %29 : vector<8x1xf32> to vector<8x8xf32>
    %31 = arith.subf %27, %30 : vector<8x8xf32>
    %32 = math.exp %31 : vector<8x8xf32>
    %cst_25 = arith.constant dense<0.000000e+00> : vector<8xf32>
    %33 = vector.multi_reduction <add>, %32, %cst_25 [1] : vector<8x8xf32> to vector<8xf32>
    %34 = vector.shape_cast %33 : vector<8xf32> to vector<8x1xf32>
    %35 = tpu.reciprocal %34 {approx = true} : vector<8x1xf32> -> vector<8x1xf32>
    %36 = vector.broadcast %35 : vector<8x1xf32> to vector<8x8xf32>
    %37 = arith.mulf %32, %36 : vector<8x8xf32>
    %cst_26 = arith.constant dense<0.000000e+00> : vector<8x8xf32>
    %38 = tpu.matmul %37, %18, %cst_26 {dimension_numbers = #tpu.dot_dimension_numbers<[1], [0], [0], [1], [0, 0, 1, 1], [], []>} : vector<8x8xf32>, vector<8x8xf32>, vector<8x8xf32> -> vector<8x8xf32>
    %39 = vector.shape_cast %37 : vector<8x8xf32> to vector<8x1x8xf32>
    %cst_27 = arith.constant dense<0.000000e+00> : vector<8x1x8xf32>
    %40 = tpu.matmul %39, %13, %cst_27 {dimension_numbers = #tpu.dot_dimension_numbers<[2], [1], [1], [2], [0, 0, 0, 1, 1, 2], [0], [0]>} : vector<8x1x8xf32>, vector<8x8x8xf32>, vector<8x1x8xf32> -> vector<8x1x8xf32>
    %41 = vector.shape_cast %40 : vector<8x1x8xf32> to vector<8x8xf32>
    %42 = arith.addf %38, %41 : vector<8x8xf32>
    %43 = vector.extract_strided_slice %2 {offsets = [0, 0], sizes = [8, 32], strides = [1, 1]} : vector<32x32xf32> to vector<8x32xf32>
    %cst_28 = arith.constant dense<0.000000e+00> : vector<8x32xf32>
    %44 = tpu.matmul %42, %43, %cst_28 {dimension_numbers = #tpu.dot_dimension_numbers<[1], [0], [0], [1], [0, 0, 1, 1], [], []>} : vector<8x8xf32>, vector<8x32xf32>, vector<8x32xf32> -> vector<8x32xf32>
    %45 = vector.extract_strided_slice %9 {offsets = [0, 8], sizes = [8, 8], strides = [1, 1]} : vector<16x96xf32> to vector<8x8xf32>
    %46 = vector.extract_strided_slice %9 {offsets = [0, 40], sizes = [8, 8], strides = [1, 1]} : vector<16x96xf32> to vector<8x8xf32>
    %47 = vector.extract_strided_slice %9 {offsets = [0, 72], sizes = [8, 8], strides = [1, 1]} : vector<16x96xf32> to vector<8x8xf32>
    %cst_29 = arith.constant dense<0.000000e+00> : vector<8x8xf32>
    %48 = tpu.matmul %45, %46, %cst_29 {dimension_numbers = #tpu.dot_dimension_numbers<[1], [1], [0], [0], [0, 0, 1, 0], [], []>} : vector<8x8xf32>, vector<8x8xf32>, vector<8x8xf32> -> vector<8x8xf32>
    %cst_30 = arith.constant 0.353553385 : f32
    %49 = vector.broadcast %cst_30 : f32 to vector<8x8xf32>
    %50 = arith.mulf %48, %49 : vector<8x8xf32>
    %51 = vector.shape_cast %45 : vector<8x8xf32> to vector<8x1x8xf32>
    %cst_31 = arith.constant dense<0.000000e+00> : vector<8x1x8xf32>
    %52 = tpu.matmul %51, %11, %cst_31 {dimension_numbers = #tpu.dot_dimension_numbers<[2], [2], [1], [1], [0, 0, 0, 1, 1, 1], [0], [0]>} : vector<8x1x8xf32>, vector<8x8x8xf32>, vector<8x1x8xf32> -> vector<8x1x8xf32>
    %53 = vector.shape_cast %52 : vector<8x1x8xf32> to vector<8x8xf32>
    %54 = arith.addf %50, %53 : vector<8x8xf32>
    %55 = vector.broadcast %15 : vector<1x8xf32> to vector<8x8xf32>
    %56 = arith.addf %54, %55 : vector<8x8xf32>
    %cst_32 = arith.constant dense<0xFF800000> : vector<8xf32>
    %57 = vector.multi_reduction <maximumf>, %56, %cst_32 [1] : vector<8x8xf32> to vector<8xf32>
    %58 = vector.shape_cast %57 : vector<8xf32> to vector<8x1xf32>
    %59 = vector.broadcast %58 : vector<8x1xf32> to vector<8x8xf32>
    %60 = arith.subf %56, %59 : vector<8x8xf32>
    %61 = math.exp %60 : vector<8x8xf32>
    %cst_33 = arith.constant dense<0.000000e+00> : vector<8xf32>
    %62 = vector.multi_reduction <add>, %61, %cst_33 [1] : vector<8x8xf32> to vector<8xf32>
    %63 = vector.shape_cast %62 : vector<8xf32> to vector<8x1xf32>
    %64 = tpu.reciprocal %63 {approx = true} : vector<8x1xf32> -> vector<8x1xf32>
    %65 = vector.broadcast %64 : vector<8x1xf32> to vector<8x8xf32>
    %66 = arith.mulf %61, %65 : vector<8x8xf32>
    %cst_34 = arith.constant dense<0.000000e+00> : vector<8x8xf32>
    %67 = tpu.matmul %66, %47, %cst_34 {dimension_numbers = #tpu.dot_dimension_numbers<[1], [0], [0], [1], [0, 0, 1, 1], [], []>} : vector<8x8xf32>, vector<8x8xf32>, vector<8x8xf32> -> vector<8x8xf32>
    %68 = vector.shape_cast %66 : vector<8x8xf32> to vector<8x1x8xf32>
    %cst_35 = arith.constant dense<0.000000e+00> : vector<8x1x8xf32>
    %69 = tpu.matmul %68, %13, %cst_35 {dimension_numbers = #tpu.dot_dimension_numbers<[2], [1], [1], [2], [0, 0, 0, 1, 1, 2], [0], [0]>} : vector<8x1x8xf32>, vector<8x8x8xf32>, vector<8x1x8xf32> -> vector<8x1x8xf32>
    %70 = vector.shape_cast %69 : vector<8x1x8xf32> to vector<8x8xf32>
    %71 = arith.addf %67, %70 : vector<8x8xf32>
    %72 = vector.extract_strided_slice %2 {offsets = [8, 0], sizes = [8, 32], strides = [1, 1]} : vector<32x32xf32> to vector<8x32xf32>
    %cst_36 = arith.constant dense<0.000000e+00> : vector<8x32xf32>
    %73 = tpu.matmul %71, %72, %cst_36 {dimension_numbers = #tpu.dot_dimension_numbers<[1], [0], [0], [1], [0, 0, 1, 1], [], []>} : vector<8x8xf32>, vector<8x32xf32>, vector<8x32xf32> -> vector<8x32xf32>
    %74 = arith.addf %44, %73 : vector<8x32xf32>
    %75 = vector.extract_strided_slice %9 {offsets = [0, 16], sizes = [8, 8], strides = [1, 1]} : vector<16x96xf32> to vector<8x8xf32>
    %76 = vector.extract_strided_slice %9 {offsets = [0, 48], sizes = [8, 8], strides = [1, 1]} : vector<16x96xf32> to vector<8x8xf32>
    %77 = vector.extract_strided_slice %9 {offsets = [0, 80], sizes = [8, 8], strides = [1, 1]} : vector<16x96xf32> to vector<8x8xf32>
    %cst_37 = arith.constant dense<0.000000e+00> : vector<8x8xf32>
    %78 = tpu.matmul %75, %76, %cst_37 {dimension_numbers = #tpu.dot_dimension_numbers<[1], [1], [0], [0], [0, 0, 1, 0], [], []>} : vector<8x8xf32>, vector<8x8xf32>, vector<8x8xf32> -> vector<8x8xf32>
    %cst_38 = arith.constant 0.353553385 : f32
    %79 = vector.broadcast %cst_38 : f32 to vector<8x8xf32>
    %80 = arith.mulf %78, %79 : vector<8x8xf32>
    %81 = vector.shape_cast %75 : vector<8x8xf32> to vector<8x1x8xf32>
    %cst_39 = arith.constant dense<0.000000e+00> : vector<8x1x8xf32>
    %82 = tpu.matmul %81, %11, %cst_39 {dimension_numbers = #tpu.dot_dimension_numbers<[2], [2], [1], [1], [0, 0, 0, 1, 1, 1], [0], [0]>} : vector<8x1x8xf32>, vector<8x8x8xf32>, vector<8x1x8xf32> -> vector<8x1x8xf32>
    %83 = vector.shape_cast %82 : vector<8x1x8xf32> to vector<8x8xf32>
    %84 = arith.addf %80, %83 : vector<8x8xf32>
    %85 = vector.broadcast %15 : vector<1x8xf32> to vector<8x8xf32>
    %86 = arith.addf %84, %85 : vector<8x8xf32>
    %cst_40 = arith.constant dense<0xFF800000> : vector<8xf32>
    %87 = vector.multi_reduction <maximumf>, %86, %cst_40 [1] : vector<8x8xf32> to vector<8xf32>
    %88 = vector.shape_cast %87 : vector<8xf32> to vector<8x1xf32>
    %89 = vector.broadcast %88 : vector<8x1xf32> to vector<8x8xf32>
    %90 = arith.subf %86, %89 : vector<8x8xf32>
    %91 = math.exp %90 : vector<8x8xf32>
    %cst_41 = arith.constant dense<0.000000e+00> : vector<8xf32>
    %92 = vector.multi_reduction <add>, %91, %cst_41 [1] : vector<8x8xf32> to vector<8xf32>
    %93 = vector.shape_cast %92 : vector<8xf32> to vector<8x1xf32>
    %94 = tpu.reciprocal %93 {approx = true} : vector<8x1xf32> -> vector<8x1xf32>
    %95 = vector.broadcast %94 : vector<8x1xf32> to vector<8x8xf32>
    %96 = arith.mulf %91, %95 : vector<8x8xf32>
    %cst_42 = arith.constant dense<0.000000e+00> : vector<8x8xf32>
    %97 = tpu.matmul %96, %77, %cst_42 {dimension_numbers = #tpu.dot_dimension_numbers<[1], [0], [0], [1], [0, 0, 1, 1], [], []>} : vector<8x8xf32>, vector<8x8xf32>, vector<8x8xf32> -> vector<8x8xf32>
    %98 = vector.shape_cast %96 : vector<8x8xf32> to vector<8x1x8xf32>
    %cst_43 = arith.constant dense<0.000000e+00> : vector<8x1x8xf32>
    %99 = tpu.matmul %98, %13, %cst_43 {dimension_numbers = #tpu.dot_dimension_numbers<[2], [1], [1], [2], [0, 0, 0, 1, 1, 2], [0], [0]>} : vector<8x1x8xf32>, vector<8x8x8xf32>, vector<8x1x8xf32> -> vector<8x1x8xf32>
    %100 = vector.shape_cast %99 : vector<8x1x8xf32> to vector<8x8xf32>
    %101 = arith.addf %97, %100 : vector<8x8xf32>
    %102 = vector.extract_strided_slice %2 {offsets = [16, 0], sizes = [8, 32], strides = [1, 1]} : vector<32x32xf32> to vector<8x32xf32>
    %cst_44 = arith.constant dense<0.000000e+00> : vector<8x32xf32>
    %103 = tpu.matmul %101, %102, %cst_44 {dimension_numbers = #tpu.dot_dimension_numbers<[1], [0], [0], [1], [0, 0, 1, 1], [], []>} : vector<8x8xf32>, vector<8x32xf32>, vector<8x32xf32> -> vector<8x32xf32>
    %104 = arith.addf %74, %103 : vector<8x32xf32>
    %105 = vector.extract_strided_slice %9 {offsets = [0, 24], sizes = [8, 8], strides = [1, 1]} : vector<16x96xf32> to vector<8x8xf32>
    %106 = vector.extract_strided_slice %9 {offsets = [0, 56], sizes = [8, 8], strides = [1, 1]} : vector<16x96xf32> to vector<8x8xf32>
    %107 = vector.extract_strided_slice %9 {offsets = [0, 88], sizes = [8, 8], strides = [1, 1]} : vector<16x96xf32> to vector<8x8xf32>
    %cst_45 = arith.constant dense<0.000000e+00> : vector<8x8xf32>
    %108 = tpu.matmul %105, %106, %cst_45 {dimension_numbers = #tpu.dot_dimension_numbers<[1], [1], [0], [0], [0, 0, 1, 0], [], []>} : vector<8x8xf32>, vector<8x8xf32>, vector<8x8xf32> -> vector<8x8xf32>
    %cst_46 = arith.constant 0.353553385 : f32
    %109 = vector.broadcast %cst_46 : f32 to vector<8x8xf32>
    %110 = arith.mulf %108, %109 : vector<8x8xf32>
    %111 = vector.shape_cast %105 : vector<8x8xf32> to vector<8x1x8xf32>
    %cst_47 = arith.constant dense<0.000000e+00> : vector<8x1x8xf32>
    %112 = tpu.matmul %111, %11, %cst_47 {dimension_numbers = #tpu.dot_dimension_numbers<[2], [2], [1], [1], [0, 0, 0, 1, 1, 1], [0], [0]>} : vector<8x1x8xf32>, vector<8x8x8xf32>, vector<8x1x8xf32> -> vector<8x1x8xf32>
    %113 = vector.shape_cast %112 : vector<8x1x8xf32> to vector<8x8xf32>
    %114 = arith.addf %110, %113 : vector<8x8xf32>
    %115 = vector.broadcast %15 : vector<1x8xf32> to vector<8x8xf32>
    %116 = arith.addf %114, %115 : vector<8x8xf32>
    %cst_48 = arith.constant dense<0xFF800000> : vector<8xf32>
    %117 = vector.multi_reduction <maximumf>, %116, %cst_48 [1] : vector<8x8xf32> to vector<8xf32>
    %118 = vector.shape_cast %117 : vector<8xf32> to vector<8x1xf32>
    %119 = vector.broadcast %118 : vector<8x1xf32> to vector<8x8xf32>
    %120 = arith.subf %116, %119 : vector<8x8xf32>
    %121 = math.exp %120 : vector<8x8xf32>
    %cst_49 = arith.constant dense<0.000000e+00> : vector<8xf32>
    %122 = vector.multi_reduction <add>, %121, %cst_49 [1] : vector<8x8xf32> to vector<8xf32>
    %123 = vector.shape_cast %122 : vector<8xf32> to vector<8x1xf32>
    %124 = tpu.reciprocal %123 {approx = true} : vector<8x1xf32> -> vector<8x1xf32>
    %125 = vector.broadcast %124 : vector<8x1xf32> to vector<8x8xf32>
    %126 = arith.mulf %121, %125 : vector<8x8xf32>
    %cst_50 = arith.constant dense<0.000000e+00> : vector<8x8xf32>
    %127 = tpu.matmul %126, %107, %cst_50 {dimension_numbers = #tpu.dot_dimension_numbers<[1], [0], [0], [1], [0, 0, 1, 1], [], []>} : vector<8x8xf32>, vector<8x8xf32>, vector<8x8xf32> -> vector<8x8xf32>
    %128 = vector.shape_cast %126 : vector<8x8xf32> to vector<8x1x8xf32>
    %cst_51 = arith.constant dense<0.000000e+00> : vector<8x1x8xf32>
    %129 = tpu.matmul %128, %13, %cst_51 {dimension_numbers = #tpu.dot_dimension_numbers<[2], [1], [1], [2], [0, 0, 0, 1, 1, 2], [0], [0]>} : vector<8x1x8xf32>, vector<8x8x8xf32>, vector<8x1x8xf32> -> vector<8x1x8xf32>
    %130 = vector.shape_cast %129 : vector<8x1x8xf32> to vector<8x8xf32>
    %131 = arith.addf %127, %130 : vector<8x8xf32>
    %132 = vector.extract_strided_slice %2 {offsets = [24, 0], sizes = [8, 32], strides = [1, 1]} : vector<32x32xf32> to vector<8x32xf32>
    %cst_52 = arith.constant dense<0.000000e+00> : vector<8x32xf32>
    %133 = tpu.matmul %131, %132, %cst_52 {dimension_numbers = #tpu.dot_dimension_numbers<[1], [0], [0], [1], [0, 0, 1, 1], [], []>} : vector<8x8xf32>, vector<8x32xf32>, vector<8x32xf32> -> vector<8x32xf32>
    %134 = arith.addf %104, %133 : vector<8x32xf32>
    %c1 = arith.constant 1 : index
    %c0_53 = arith.constant 0 : index
    %c0_54 = arith.constant 0 : index
    %c0_55 = arith.constant 0 : index
    %135 = vector.load %arg2[%c1, %c0_53, %c0_54, %c0_55] : memref<4x8x8x8xf32, #tpu.memory_space<vmem>>, vector<1x8x8x8xf32>
    %136 = vector.shape_cast %135 : vector<1x8x8x8xf32> to vector<8x8x8xf32>
    %c1_56 = arith.constant 1 : index
    %c0_57 = arith.constant 0 : index
    %c0_58 = arith.constant 0 : index
    %c0_59 = arith.constant 0 : index
    %137 = vector.load %arg3[%c1_56, %c0_57, %c0_58, %c0_59] : memref<4x8x8x8xf32, #tpu.memory_space<vmem>>, vector<1x8x8x8xf32>
    %138 = vector.shape_cast %137 : vector<1x8x8x8xf32> to vector<8x8x8xf32>
    %c1_60 = arith.constant 1 : index
    %c0_61 = arith.constant 0 : index
    %c0_62 = arith.constant 0 : index
    %139 = vector.load %arg1[%c1_60, %c0_61, %c0_62] : memref<2x1x8xf32, #tpu.memory_space<vmem>>, vector<1x1x8xf32>
    %140 = vector.shape_cast %139 : vector<1x1x8xf32> to vector<1x8xf32>
    %141 = vector.extract_strided_slice %9 {offsets = [8, 0], sizes = [8, 8], strides = [1, 1]} : vector<16x96xf32> to vector<8x8xf32>
    %142 = vector.extract_strided_slice %9 {offsets = [8, 32], sizes = [8, 8], strides = [1, 1]} : vector<16x96xf32> to vector<8x8xf32>
    %143 = vector.extract_strided_slice %9 {offsets = [8, 64], sizes = [8, 8], strides = [1, 1]} : vector<16x96xf32> to vector<8x8xf32>
    %cst_63 = arith.constant dense<0.000000e+00> : vector<8x8xf32>
    %144 = tpu.matmul %141, %142, %cst_63 {dimension_numbers = #tpu.dot_dimension_numbers<[1], [1], [0], [0], [0, 0, 1, 0], [], []>} : vector<8x8xf32>, vector<8x8xf32>, vector<8x8xf32> -> vector<8x8xf32>
    %cst_64 = arith.constant 0.353553385 : f32
    %145 = vector.broadcast %cst_64 : f32 to vector<8x8xf32>
    %146 = arith.mulf %144, %145 : vector<8x8xf32>
    %147 = vector.shape_cast %141 : vector<8x8xf32> to vector<8x1x8xf32>
    %cst_65 = arith.constant dense<0.000000e+00> : vector<8x1x8xf32>
    %148 = tpu.matmul %147, %136, %cst_65 {dimension_numbers = #tpu.dot_dimension_numbers<[2], [2], [1], [1], [0, 0, 0, 1, 1, 1], [0], [0]>} : vector<8x1x8xf32>, vector<8x8x8xf32>, vector<8x1x8xf32> -> vector<8x1x8xf32>
    %149 = vector.shape_cast %148 : vector<8x1x8xf32> to vector<8x8xf32>
    %150 = arith.addf %146, %149 : vector<8x8xf32>
    %151 = vector.broadcast %140 : vector<1x8xf32> to vector<8x8xf32>
    %152 = arith.addf %150, %151 : vector<8x8xf32>
    %cst_66 = arith.constant dense<0xFF800000> : vector<8xf32>
    %153 = vector.multi_reduction <maximumf>, %152, %cst_66 [1] : vector<8x8xf32> to vector<8xf32>
    %154 = vector.shape_cast %153 : vector<8xf32> to vector<8x1xf32>
    %155 = vector.broadcast %154 : vector<8x1xf32> to vector<8x8xf32>
    %156 = arith.subf %152, %155 : vector<8x8xf32>
    %157 = math.exp %156 : vector<8x8xf32>
    %cst_67 = arith.constant dense<0.000000e+00> : vector<8xf32>
    %158 = vector.multi_reduction <add>, %157, %cst_67 [1] : vector<8x8xf32> to vector<8xf32>
    %159 = vector.shape_cast %158 : vector<8xf32> to vector<8x1xf32>
    %160 = tpu.reciprocal %159 {approx = true} : vector<8x1xf32> -> vector<8x1xf32>
    %161 = vector.broadcast %160 : vector<8x1xf32> to vector<8x8xf32>
    %162 = arith.mulf %157, %161 : vector<8x8xf32>
    %cst_68 = arith.constant dense<0.000000e+00> : vector<8x8xf32>
    %163 = tpu.matmul %162, %143, %cst_68 {dimension_numbers = #tpu.dot_dimension_numbers<[1], [0], [0], [1], [0, 0, 1, 1], [], []>} : vector<8x8xf32>, vector<8x8xf32>, vector<8x8xf32> -> vector<8x8xf32>
    %164 = vector.shape_cast %162 : vector<8x8xf32> to vector<8x1x8xf32>
    %cst_69 = arith.constant dense<0.000000e+00> : vector<8x1x8xf32>
    %165 = tpu.matmul %164, %138, %cst_69 {dimension_numbers = #tpu.dot_dimension_numbers<[2], [1], [1], [2], [0, 0, 0, 1, 1, 2], [0], [0]>} : vector<8x1x8xf32>, vector<8x8x8xf32>, vector<8x1x8xf32> -> vector<8x1x8xf32>
    %166 = vector.shape_cast %165 : vector<8x1x8xf32> to vector<8x8xf32>
    %167 = arith.addf %163, %166 : vector<8x8xf32>
    %168 = vector.extract_strided_slice %2 {offsets = [0, 0], sizes = [8, 32], strides = [1, 1]} : vector<32x32xf32> to vector<8x32xf32>
    %cst_70 = arith.constant dense<0.000000e+00> : vector<8x32xf32>
    %169 = tpu.matmul %167, %168, %cst_70 {dimension_numbers = #tpu.dot_dimension_numbers<[1], [0], [0], [1], [0, 0, 1, 1], [], []>} : vector<8x8xf32>, vector<8x32xf32>, vector<8x32xf32> -> vector<8x32xf32>
    %170 = vector.extract_strided_slice %9 {offsets = [8, 8], sizes = [8, 8], strides = [1, 1]} : vector<16x96xf32> to vector<8x8xf32>
    %171 = vector.extract_strided_slice %9 {offsets = [8, 40], sizes = [8, 8], strides = [1, 1]} : vector<16x96xf32> to vector<8x8xf32>
    %172 = vector.extract_strided_slice %9 {offsets = [8, 72], sizes = [8, 8], strides = [1, 1]} : vector<16x96xf32> to vector<8x8xf32>
    %cst_71 = arith.constant dense<0.000000e+00> : vector<8x8xf32>
    %173 = tpu.matmul %170, %171, %cst_71 {dimension_numbers = #tpu.dot_dimension_numbers<[1], [1], [0], [0], [0, 0, 1, 0], [], []>} : vector<8x8xf32>, vector<8x8xf32>, vector<8x8xf32> -> vector<8x8xf32>
    %cst_72 = arith.constant 0.353553385 : f32
    %174 = vector.broadcast %cst_72 : f32 to vector<8x8xf32>
    %175 = arith.mulf %173, %174 : vector<8x8xf32>
    %176 = vector.shape_cast %170 : vector<8x8xf32> to vector<8x1x8xf32>
    %cst_73 = arith.constant dense<0.000000e+00> : vector<8x1x8xf32>
    %177 = tpu.matmul %176, %136, %cst_73 {dimension_numbers = #tpu.dot_dimension_numbers<[2], [2], [1], [1], [0, 0, 0, 1, 1, 1], [0], [0]>} : vector<8x1x8xf32>, vector<8x8x8xf32>, vector<8x1x8xf32> -> vector<8x1x8xf32>
    %178 = vector.shape_cast %177 : vector<8x1x8xf32> to vector<8x8xf32>
    %179 = arith.addf %175, %178 : vector<8x8xf32>
    %180 = vector.broadcast %140 : vector<1x8xf32> to vector<8x8xf32>
    %181 = arith.addf %179, %180 : vector<8x8xf32>
    %cst_74 = arith.constant dense<0xFF800000> : vector<8xf32>
    %182 = vector.multi_reduction <maximumf>, %181, %cst_74 [1] : vector<8x8xf32> to vector<8xf32>
    %183 = vector.shape_cast %182 : vector<8xf32> to vector<8x1xf32>
    %184 = vector.broadcast %183 : vector<8x1xf32> to vector<8x8xf32>
    %185 = arith.subf %181, %184 : vector<8x8xf32>
    %186 = math.exp %185 : vector<8x8xf32>
    %cst_75 = arith.constant dense<0.000000e+00> : vector<8xf32>
    %187 = vector.multi_reduction <add>, %186, %cst_75 [1] : vector<8x8xf32> to vector<8xf32>
    %188 = vector.shape_cast %187 : vector<8xf32> to vector<8x1xf32>
    %189 = tpu.reciprocal %188 {approx = true} : vector<8x1xf32> -> vector<8x1xf32>
    %190 = vector.broadcast %189 : vector<8x1xf32> to vector<8x8xf32>
    %191 = arith.mulf %186, %190 : vector<8x8xf32>
    %cst_76 = arith.constant dense<0.000000e+00> : vector<8x8xf32>
    %192 = tpu.matmul %191, %172, %cst_76 {dimension_numbers = #tpu.dot_dimension_numbers<[1], [0], [0], [1], [0, 0, 1, 1], [], []>} : vector<8x8xf32>, vector<8x8xf32>, vector<8x8xf32> -> vector<8x8xf32>
    %193 = vector.shape_cast %191 : vector<8x8xf32> to vector<8x1x8xf32>
    %cst_77 = arith.constant dense<0.000000e+00> : vector<8x1x8xf32>
    %194 = tpu.matmul %193, %138, %cst_77 {dimension_numbers = #tpu.dot_dimension_numbers<[2], [1], [1], [2], [0, 0, 0, 1, 1, 2], [0], [0]>} : vector<8x1x8xf32>, vector<8x8x8xf32>, vector<8x1x8xf32> -> vector<8x1x8xf32>
    %195 = vector.shape_cast %194 : vector<8x1x8xf32> to vector<8x8xf32>
    %196 = arith.addf %192, %195 : vector<8x8xf32>
    %197 = vector.extract_strided_slice %2 {offsets = [8, 0], sizes = [8, 32], strides = [1, 1]} : vector<32x32xf32> to vector<8x32xf32>
    %cst_78 = arith.constant dense<0.000000e+00> : vector<8x32xf32>
    %198 = tpu.matmul %196, %197, %cst_78 {dimension_numbers = #tpu.dot_dimension_numbers<[1], [0], [0], [1], [0, 0, 1, 1], [], []>} : vector<8x8xf32>, vector<8x32xf32>, vector<8x32xf32> -> vector<8x32xf32>
    %199 = arith.addf %169, %198 : vector<8x32xf32>
    %200 = vector.extract_strided_slice %9 {offsets = [8, 16], sizes = [8, 8], strides = [1, 1]} : vector<16x96xf32> to vector<8x8xf32>
    %201 = vector.extract_strided_slice %9 {offsets = [8, 48], sizes = [8, 8], strides = [1, 1]} : vector<16x96xf32> to vector<8x8xf32>
    %202 = vector.extract_strided_slice %9 {offsets = [8, 80], sizes = [8, 8], strides = [1, 1]} : vector<16x96xf32> to vector<8x8xf32>
    %cst_79 = arith.constant dense<0.000000e+00> : vector<8x8xf32>
    %203 = tpu.matmul %200, %201, %cst_79 {dimension_numbers = #tpu.dot_dimension_numbers<[1], [1], [0], [0], [0, 0, 1, 0], [], []>} : vector<8x8xf32>, vector<8x8xf32>, vector<8x8xf32> -> vector<8x8xf32>
    %cst_80 = arith.constant 0.353553385 : f32
    %204 = vector.broadcast %cst_80 : f32 to vector<8x8xf32>
    %205 = arith.mulf %203, %204 : vector<8x8xf32>
    %206 = vector.shape_cast %200 : vector<8x8xf32> to vector<8x1x8xf32>
    %cst_81 = arith.constant dense<0.000000e+00> : vector<8x1x8xf32>
    %207 = tpu.matmul %206, %136, %cst_81 {dimension_numbers = #tpu.dot_dimension_numbers<[2], [2], [1], [1], [0, 0, 0, 1, 1, 1], [0], [0]>} : vector<8x1x8xf32>, vector<8x8x8xf32>, vector<8x1x8xf32> -> vector<8x1x8xf32>
    %208 = vector.shape_cast %207 : vector<8x1x8xf32> to vector<8x8xf32>
    %209 = arith.addf %205, %208 : vector<8x8xf32>
    %210 = vector.broadcast %140 : vector<1x8xf32> to vector<8x8xf32>
    %211 = arith.addf %209, %210 : vector<8x8xf32>
    %cst_82 = arith.constant dense<0xFF800000> : vector<8xf32>
    %212 = vector.multi_reduction <maximumf>, %211, %cst_82 [1] : vector<8x8xf32> to vector<8xf32>
    %213 = vector.shape_cast %212 : vector<8xf32> to vector<8x1xf32>
    %214 = vector.broadcast %213 : vector<8x1xf32> to vector<8x8xf32>
    %215 = arith.subf %211, %214 : vector<8x8xf32>
    %216 = math.exp %215 : vector<8x8xf32>
    %cst_83 = arith.constant dense<0.000000e+00> : vector<8xf32>
    %217 = vector.multi_reduction <add>, %216, %cst_83 [1] : vector<8x8xf32> to vector<8xf32>
    %218 = vector.shape_cast %217 : vector<8xf32> to vector<8x1xf32>
    %219 = tpu.reciprocal %218 {approx = true} : vector<8x1xf32> -> vector<8x1xf32>
    %220 = vector.broadcast %219 : vector<8x1xf32> to vector<8x8xf32>
    %221 = arith.mulf %216, %220 : vector<8x8xf32>
    %cst_84 = arith.constant dense<0.000000e+00> : vector<8x8xf32>
    %222 = tpu.matmul %221, %202, %cst_84 {dimension_numbers = #tpu.dot_dimension_numbers<[1], [0], [0], [1], [0, 0, 1, 1], [], []>} : vector<8x8xf32>, vector<8x8xf32>, vector<8x8xf32> -> vector<8x8xf32>
    %223 = vector.shape_cast %221 : vector<8x8xf32> to vector<8x1x8xf32>
    %cst_85 = arith.constant dense<0.000000e+00> : vector<8x1x8xf32>
    %224 = tpu.matmul %223, %138, %cst_85 {dimension_numbers = #tpu.dot_dimension_numbers<[2], [1], [1], [2], [0, 0, 0, 1, 1, 2], [0], [0]>} : vector<8x1x8xf32>, vector<8x8x8xf32>, vector<8x1x8xf32> -> vector<8x1x8xf32>
    %225 = vector.shape_cast %224 : vector<8x1x8xf32> to vector<8x8xf32>
    %226 = arith.addf %222, %225 : vector<8x8xf32>
    %227 = vector.extract_strided_slice %2 {offsets = [16, 0], sizes = [8, 32], strides = [1, 1]} : vector<32x32xf32> to vector<8x32xf32>
    %cst_86 = arith.constant dense<0.000000e+00> : vector<8x32xf32>
    %228 = tpu.matmul %226, %227, %cst_86 {dimension_numbers = #tpu.dot_dimension_numbers<[1], [0], [0], [1], [0, 0, 1, 1], [], []>} : vector<8x8xf32>, vector<8x32xf32>, vector<8x32xf32> -> vector<8x32xf32>
    %229 = arith.addf %199, %228 : vector<8x32xf32>
    %230 = vector.extract_strided_slice %9 {offsets = [8, 24], sizes = [8, 8], strides = [1, 1]} : vector<16x96xf32> to vector<8x8xf32>
    %231 = vector.extract_strided_slice %9 {offsets = [8, 56], sizes = [8, 8], strides = [1, 1]} : vector<16x96xf32> to vector<8x8xf32>
    %232 = vector.extract_strided_slice %9 {offsets = [8, 88], sizes = [8, 8], strides = [1, 1]} : vector<16x96xf32> to vector<8x8xf32>
    %cst_87 = arith.constant dense<0.000000e+00> : vector<8x8xf32>
    %233 = tpu.matmul %230, %231, %cst_87 {dimension_numbers = #tpu.dot_dimension_numbers<[1], [1], [0], [0], [0, 0, 1, 0], [], []>} : vector<8x8xf32>, vector<8x8xf32>, vector<8x8xf32> -> vector<8x8xf32>
    %cst_88 = arith.constant 0.353553385 : f32
    %234 = vector.broadcast %cst_88 : f32 to vector<8x8xf32>
    %235 = arith.mulf %233, %234 : vector<8x8xf32>
    %236 = vector.shape_cast %230 : vector<8x8xf32> to vector<8x1x8xf32>
    %cst_89 = arith.constant dense<0.000000e+00> : vector<8x1x8xf32>
    %237 = tpu.matmul %236, %136, %cst_89 {dimension_numbers = #tpu.dot_dimension_numbers<[2], [2], [1], [1], [0, 0, 0, 1, 1, 1], [0], [0]>} : vector<8x1x8xf32>, vector<8x8x8xf32>, vector<8x1x8xf32> -> vector<8x1x8xf32>
    %238 = vector.shape_cast %237 : vector<8x1x8xf32> to vector<8x8xf32>
    %239 = arith.addf %235, %238 : vector<8x8xf32>
    %240 = vector.broadcast %140 : vector<1x8xf32> to vector<8x8xf32>
    %241 = arith.addf %239, %240 : vector<8x8xf32>
    %cst_90 = arith.constant dense<0xFF800000> : vector<8xf32>
    %242 = vector.multi_reduction <maximumf>, %241, %cst_90 [1] : vector<8x8xf32> to vector<8xf32>
    %243 = vector.shape_cast %242 : vector<8xf32> to vector<8x1xf32>
    %244 = vector.broadcast %243 : vector<8x1xf32> to vector<8x8xf32>
    %245 = arith.subf %241, %244 : vector<8x8xf32>
    %246 = math.exp %245 : vector<8x8xf32>
    %cst_91 = arith.constant dense<0.000000e+00> : vector<8xf32>
    %247 = vector.multi_reduction <add>, %246, %cst_91 [1] : vector<8x8xf32> to vector<8xf32>
    %248 = vector.shape_cast %247 : vector<8xf32> to vector<8x1xf32>
    %249 = tpu.reciprocal %248 {approx = true} : vector<8x1xf32> -> vector<8x1xf32>
    %250 = vector.broadcast %249 : vector<8x1xf32> to vector<8x8xf32>
    %251 = arith.mulf %246, %250 : vector<8x8xf32>
    %cst_92 = arith.constant dense<0.000000e+00> : vector<8x8xf32>
    %252 = tpu.matmul %251, %232, %cst_92 {dimension_numbers = #tpu.dot_dimension_numbers<[1], [0], [0], [1], [0, 0, 1, 1], [], []>} : vector<8x8xf32>, vector<8x8xf32>, vector<8x8xf32> -> vector<8x8xf32>
    %253 = vector.shape_cast %251 : vector<8x8xf32> to vector<8x1x8xf32>
    %cst_93 = arith.constant dense<0.000000e+00> : vector<8x1x8xf32>
    %254 = tpu.matmul %253, %138, %cst_93 {dimension_numbers = #tpu.dot_dimension_numbers<[2], [1], [1], [2], [0, 0, 0, 1, 1, 2], [0], [0]>} : vector<8x1x8xf32>, vector<8x8x8xf32>, vector<8x1x8xf32> -> vector<8x1x8xf32>
    %255 = vector.shape_cast %254 : vector<8x1x8xf32> to vector<8x8xf32>
    %256 = arith.addf %252, %255 : vector<8x8xf32>
    %257 = vector.extract_strided_slice %2 {offsets = [24, 0], sizes = [8, 32], strides = [1, 1]} : vector<32x32xf32> to vector<8x32xf32>
    %cst_94 = arith.constant dense<0.000000e+00> : vector<8x32xf32>
    %258 = tpu.matmul %256, %257, %cst_94 {dimension_numbers = #tpu.dot_dimension_numbers<[1], [0], [0], [1], [0, 0, 1, 1], [], []>} : vector<8x8xf32>, vector<8x32xf32>, vector<8x32xf32> -> vector<8x32xf32>
    %259 = arith.addf %229, %258 : vector<8x32xf32>
    %260 = tpu.concatenate %134, %259 in 0 : vector<8x32xf32>, vector<8x32xf32> -> vector<16x32xf32>
    %c0_95 = arith.constant 0 : index
    %c0_96 = arith.constant 0 : index
    %c0_97 = arith.constant 0 : index
    %261 = vector.load %arg7[%c0_95, %c0_96, %c0_97] : memref<2x1x32xf32, #tpu.memory_space<vmem>>, vector<1x1x32xf32>
    %262 = vector.shape_cast %261 : vector<1x1x32xf32> to vector<1x32xf32>
    %263 = vector.broadcast %262 : vector<1x32xf32> to vector<16x32xf32>
    %264 = arith.addf %260, %263 : vector<16x32xf32>
    %265 = arith.addf %264, %0 : vector<16x32xf32>
    %c0_98 = arith.constant 0 : index
    %c0_99 = arith.constant 0 : index
    %c0_100 = arith.constant 0 : index
    %266 = vector.load %arg8[%c0_98, %c0_99, %c0_100] : memref<2x1x32xf32, #tpu.memory_space<vmem>>, vector<1x1x32xf32>
    %267 = vector.shape_cast %266 : vector<1x1x32xf32> to vector<1x32xf32>
    %c0_101 = arith.constant 0 : index
    %c0_102 = arith.constant 0 : index
    %c0_103 = arith.constant 0 : index
    %268 = vector.load %arg9[%c0_101, %c0_102, %c0_103] : memref<2x1x32xf32, #tpu.memory_space<vmem>>, vector<1x1x32xf32>
    %269 = vector.shape_cast %268 : vector<1x1x32xf32> to vector<1x32xf32>
    %cst_104 = arith.constant dense<0.000000e+00> : vector<16xf32>
    %270 = vector.multi_reduction <add>, %265, %cst_104 [1] : vector<16x32xf32> to vector<16xf32>
    %271 = vector.shape_cast %270 : vector<16xf32> to vector<16x1xf32>
    %cst_105 = arith.constant 3.200000e+01 : f32
    %272 = vector.broadcast %cst_105 : f32 to vector<16x1xf32>
    %273 = arith.divf %271, %272 : vector<16x1xf32>
    %274 = vector.broadcast %273 : vector<16x1xf32> to vector<16x32xf32>
    %275 = arith.subf %265, %274 : vector<16x32xf32>
    %276 = arith.mulf %275, %275 : vector<16x32xf32>
    %cst_106 = arith.constant dense<0.000000e+00> : vector<16xf32>
    %277 = vector.multi_reduction <add>, %276, %cst_106 [1] : vector<16x32xf32> to vector<16xf32>
    %278 = vector.shape_cast %277 : vector<16xf32> to vector<16x1xf32>
    %cst_107 = arith.constant 3.200000e+01 : f32
    %279 = vector.broadcast %cst_107 : f32 to vector<16x1xf32>
    %280 = arith.divf %278, %279 : vector<16x1xf32>
    %cst_108 = arith.constant 9.99999996E-13 : f32
    %281 = vector.broadcast %cst_108 : f32 to vector<16x1xf32>
    %282 = arith.addf %280, %281 : vector<16x1xf32>
    %283 = math.rsqrt %282 : vector<16x1xf32>
    %284 = vector.broadcast %283 : vector<16x1xf32> to vector<16x32xf32>
    %285 = arith.mulf %275, %284 : vector<16x32xf32>
    %286 = vector.broadcast %267 : vector<1x32xf32> to vector<16x32xf32>
    %287 = arith.mulf %285, %286 : vector<16x32xf32>
    %288 = vector.broadcast %269 : vector<1x32xf32> to vector<16x32xf32>
    %289 = arith.addf %287, %288 : vector<16x32xf32>
    %c0_109 = arith.constant 0 : index
    %c0_110 = arith.constant 0 : index
    %c0_111 = arith.constant 0 : index
    %290 = vector.load %arg10[%c0_109, %c0_110, %c0_111] : memref<2x32x64xf32, #tpu.memory_space<vmem>>, vector<1x32x64xf32>
    %291 = vector.shape_cast %290 : vector<1x32x64xf32> to vector<32x64xf32>
    %cst_112 = arith.constant dense<0.000000e+00> : vector<16x64xf32>
    %292 = tpu.matmul %289, %291, %cst_112 {dimension_numbers = #tpu.dot_dimension_numbers<[1], [0], [0], [1], [0, 0, 1, 1], [], []>} : vector<16x32xf32>, vector<32x64xf32>, vector<16x64xf32> -> vector<16x64xf32>
    %c0_113 = arith.constant 0 : index
    %c0_114 = arith.constant 0 : index
    %c0_115 = arith.constant 0 : index
    %293 = vector.load %arg11[%c0_113, %c0_114, %c0_115] : memref<2x1x64xf32, #tpu.memory_space<vmem>>, vector<1x1x64xf32>
    %294 = vector.shape_cast %293 : vector<1x1x64xf32> to vector<1x64xf32>
    %295 = vector.broadcast %294 : vector<1x64xf32> to vector<16x64xf32>
    %296 = arith.addf %292, %295 : vector<16x64xf32>
    %cst_116 = arith.constant 5.000000e-01 : f32
    %297 = vector.broadcast %cst_116 : f32 to vector<16x64xf32>
    %298 = arith.mulf %297, %296 : vector<16x64xf32>
    %cst_117 = arith.constant 4.471500e-02 : f32
    %299 = vector.broadcast %cst_117 : f32 to vector<16x64xf32>
    %300 = arith.mulf %299, %296 : vector<16x64xf32>
    %301 = arith.mulf %300, %296 : vector<16x64xf32>
    %302 = arith.mulf %301, %296 : vector<16x64xf32>
    %303 = arith.addf %296, %302 : vector<16x64xf32>
    %cst_118 = arith.constant 0.797884583 : f32
    %304 = vector.broadcast %cst_118 : f32 to vector<16x64xf32>
    %305 = arith.mulf %304, %303 : vector<16x64xf32>
    %306 = math.tanh %305 : vector<16x64xf32>
    %cst_119 = arith.constant 1.000000e+00 : f32
    %307 = vector.broadcast %cst_119 : f32 to vector<16x64xf32>
    %308 = arith.addf %307, %306 : vector<16x64xf32>
    %309 = arith.mulf %298, %308 : vector<16x64xf32>
    %c0_120 = arith.constant 0 : index
    %c0_121 = arith.constant 0 : index
    %c0_122 = arith.constant 0 : index
    %310 = vector.load %arg12[%c0_120, %c0_121, %c0_122] : memref<2x64x32xf32, #tpu.memory_space<vmem>>, vector<1x64x32xf32>
    %311 = vector.shape_cast %310 : vector<1x64x32xf32> to vector<64x32xf32>
    %cst_123 = arith.constant dense<0.000000e+00> : vector<16x32xf32>
    %312 = tpu.matmul %309, %311, %cst_123 {dimension_numbers = #tpu.dot_dimension_numbers<[1], [0], [0], [1], [0, 0, 1, 1], [], []>} : vector<16x64xf32>, vector<64x32xf32>, vector<16x32xf32> -> vector<16x32xf32>
    %c0_124 = arith.constant 0 : index
    %c0_125 = arith.constant 0 : index
    %c0_126 = arith.constant 0 : index
    %313 = vector.load %arg13[%c0_124, %c0_125, %c0_126] : memref<2x1x32xf32, #tpu.memory_space<vmem>>, vector<1x1x32xf32>
    %314 = vector.shape_cast %313 : vector<1x1x32xf32> to vector<1x32xf32>
    %315 = vector.broadcast %314 : vector<1x32xf32> to vector<16x32xf32>
    %316 = arith.addf %312, %315 : vector<16x32xf32>
    %317 = arith.addf %316, %289 : vector<16x32xf32>
    %c0_127 = arith.constant 0 : index
    %c0_128 = arith.constant 0 : index
    %c0_129 = arith.constant 0 : index
    %318 = vector.load %arg14[%c0_127, %c0_128, %c0_129] : memref<2x1x32xf32, #tpu.memory_space<vmem>>, vector<1x1x32xf32>
    %319 = vector.shape_cast %318 : vector<1x1x32xf32> to vector<1x32xf32>
    %c0_130 = arith.constant 0 : index
    %c0_131 = arith.constant 0 : index
    %c0_132 = arith.constant 0 : index
    %320 = vector.load %arg15[%c0_130, %c0_131, %c0_132] : memref<2x1x32xf32, #tpu.memory_space<vmem>>, vector<1x1x32xf32>
    %321 = vector.shape_cast %320 : vector<1x1x32xf32> to vector<1x32xf32>
    %cst_133 = arith.constant dense<0.000000e+00> : vector<16xf32>
    %322 = vector.multi_reduction <add>, %317, %cst_133 [1] : vector<16x32xf32> to vector<16xf32>
    %323 = vector.shape_cast %322 : vector<16xf32> to vector<16x1xf32>
    %cst_134 = arith.constant 3.200000e+01 : f32
    %324 = vector.broadcast %cst_134 : f32 to vector<16x1xf32>
    %325 = arith.divf %323, %324 : vector<16x1xf32>
    %326 = vector.broadcast %325 : vector<16x1xf32> to vector<16x32xf32>
    %327 = arith.subf %317, %326 : vector<16x32xf32>
    %328 = arith.mulf %327, %327 : vector<16x32xf32>
    %cst_135 = arith.constant dense<0.000000e+00> : vector<16xf32>
    %329 = vector.multi_reduction <add>, %328, %cst_135 [1] : vector<16x32xf32> to vector<16xf32>
    %330 = vector.shape_cast %329 : vector<16xf32> to vector<16x1xf32>
    %cst_136 = arith.constant 3.200000e+01 : f32
    %331 = vector.broadcast %cst_136 : f32 to vector<16x1xf32>
    %332 = arith.divf %330, %331 : vector<16x1xf32>
    %cst_137 = arith.constant 9.99999996E-13 : f32
    %333 = vector.broadcast %cst_137 : f32 to vector<16x1xf32>
    %334 = arith.addf %332, %333 : vector<16x1xf32>
    %335 = math.rsqrt %334 : vector<16x1xf32>
    %336 = vector.broadcast %335 : vector<16x1xf32> to vector<16x32xf32>
    %337 = arith.mulf %327, %336 : vector<16x32xf32>
    %338 = vector.broadcast %319 : vector<1x32xf32> to vector<16x32xf32>
    %339 = arith.mulf %337, %338 : vector<16x32xf32>
    %340 = vector.broadcast %321 : vector<1x32xf32> to vector<16x32xf32>
    %341 = arith.addf %339, %340 : vector<16x32xf32>
    %c0_138 = arith.constant 0 : index
    %c0_139 = arith.constant 0 : index
    %c0_140 = arith.constant 0 : index
    %342 = vector.load %arg16[%c0_138, %c0_139, %c0_140] : memref<2x16x32xf32, #tpu.memory_space<vmem>>, vector<1x16x32xf32>
    %343 = vector.shape_cast %342 : vector<1x16x32xf32> to vector<16x32xf32>
    %344 = vector.shape_cast %341 : vector<16x32xf32> to vector<1x16x32xf32>
    tpu.vector_store %arg16[%c0_138, %c0_139, %c0_140], %344 {strides = array<i32>} : memref<2x16x32xf32, #tpu.memory_space<vmem>>, vector<1x16x32xf32>,
    %c1_141 = arith.constant 1 : index
    %c0_142 = arith.constant 0 : index
    %c0_143 = arith.constant 0 : index
    %345 = vector.load %arg6[%c1_141, %c0_142, %c0_143] : memref<2x32x32xf32, #tpu.memory_space<vmem>>, vector<1x32x32xf32>
    %346 = vector.shape_cast %345 : vector<1x32x32xf32> to vector<32x32xf32>
    %c1_144 = arith.constant 1 : index
    %c0_145 = arith.constant 0 : index
    %c0_146 = arith.constant 0 : index
    %347 = vector.load %arg4[%c1_144, %c0_145, %c0_146] : memref<2x32x96xf32, #tpu.memory_space<vmem>>, vector<1x32x96xf32>
    %348 = vector.shape_cast %347 : vector<1x32x96xf32> to vector<32x96xf32>
    %cst_147 = arith.constant dense<0.000000e+00> : vector<16x96xf32>
    %349 = tpu.matmul %341, %348, %cst_147 {dimension_numbers = #tpu.dot_dimension_numbers<[1], [0], [0], [1], [0, 0, 1, 1], [], []>} : vector<16x32xf32>, vector<32x96xf32>, vector<16x96xf32> -> vector<16x96xf32>
    %c1_148 = arith.constant 1 : index
    %c0_149 = arith.constant 0 : index
    %c0_150 = arith.constant 0 : index
    %350 = vector.load %arg5[%c1_148, %c0_149, %c0_150] : memref<2x1x96xf32, #tpu.memory_space<vmem>>, vector<1x1x96xf32>
    %351 = vector.shape_cast %350 : vector<1x1x96xf32> to vector<1x96xf32>
    %352 = vector.broadcast %351 : vector<1x96xf32> to vector<16x96xf32>
    %353 = arith.addf %349, %352 : vector<16x96xf32>
    %c2 = arith.constant 2 : index
    %c0_151 = arith.constant 0 : index
    %c0_152 = arith.constant 0 : index
    %c0_153 = arith.constant 0 : index
    %354 = vector.load %arg2[%c2, %c0_151, %c0_152, %c0_153] : memref<4x8x8x8xf32, #tpu.memory_space<vmem>>, vector<1x8x8x8xf32>
    %355 = vector.shape_cast %354 : vector<1x8x8x8xf32> to vector<8x8x8xf32>
    %c2_154 = arith.constant 2 : index
    %c0_155 = arith.constant 0 : index
    %c0_156 = arith.constant 0 : index
    %c0_157 = arith.constant 0 : index
    %356 = vector.load %arg3[%c2_154, %c0_155, %c0_156, %c0_157] : memref<4x8x8x8xf32, #tpu.memory_space<vmem>>, vector<1x8x8x8xf32>
    %357 = vector.shape_cast %356 : vector<1x8x8x8xf32> to vector<8x8x8xf32>
    %c0_158 = arith.constant 0 : index
    %c0_159 = arith.constant 0 : index
    %c0_160 = arith.constant 0 : index
    %358 = vector.load %arg1[%c0_158, %c0_159, %c0_160] : memref<2x1x8xf32, #tpu.memory_space<vmem>>, vector<1x1x8xf32>
    %359 = vector.shape_cast %358 : vector<1x1x8xf32> to vector<1x8xf32>
    %360 = vector.extract_strided_slice %353 {offsets = [0, 0], sizes = [8, 8], strides = [1, 1]} : vector<16x96xf32> to vector<8x8xf32>
    %361 = vector.extract_strided_slice %353 {offsets = [0, 32], sizes = [8, 8], strides = [1, 1]} : vector<16x96xf32> to vector<8x8xf32>
    %362 = vector.extract_strided_slice %353 {offsets = [0, 64], sizes = [8, 8], strides = [1, 1]} : vector<16x96xf32> to vector<8x8xf32>
    %cst_161 = arith.constant dense<0.000000e+00> : vector<8x8xf32>
    %363 = tpu.matmul %360, %361, %cst_161 {dimension_numbers = #tpu.dot_dimension_numbers<[1], [1], [0], [0], [0, 0, 1, 0], [], []>} : vector<8x8xf32>, vector<8x8xf32>, vector<8x8xf32> -> vector<8x8xf32>
    %cst_162 = arith.constant 0.353553385 : f32
    %364 = vector.broadcast %cst_162 : f32 to vector<8x8xf32>
    %365 = arith.mulf %363, %364 : vector<8x8xf32>
    %366 = vector.shape_cast %360 : vector<8x8xf32> to vector<8x1x8xf32>
    %cst_163 = arith.constant dense<0.000000e+00> : vector<8x1x8xf32>
    %367 = tpu.matmul %366, %355, %cst_163 {dimension_numbers = #tpu.dot_dimension_numbers<[2], [2], [1], [1], [0, 0, 0, 1, 1, 1], [0], [0]>} : vector<8x1x8xf32>, vector<8x8x8xf32>, vector<8x1x8xf32> -> vector<8x1x8xf32>
    %368 = vector.shape_cast %367 : vector<8x1x8xf32> to vector<8x8xf32>
    %369 = arith.addf %365, %368 : vector<8x8xf32>
    %370 = vector.broadcast %359 : vector<1x8xf32> to vector<8x8xf32>
    %371 = arith.addf %369, %370 : vector<8x8xf32>
    %cst_164 = arith.constant dense<0xFF800000> : vector<8xf32>
    %372 = vector.multi_reduction <maximumf>, %371, %cst_164 [1] : vector<8x8xf32> to vector<8xf32>
    %373 = vector.shape_cast %372 : vector<8xf32> to vector<8x1xf32>
    %374 = vector.broadcast %373 : vector<8x1xf32> to vector<8x8xf32>
    %375 = arith.subf %371, %374 : vector<8x8xf32>
    %376 = math.exp %375 : vector<8x8xf32>
    %cst_165 = arith.constant dense<0.000000e+00> : vector<8xf32>
    %377 = vector.multi_reduction <add>, %376, %cst_165 [1] : vector<8x8xf32> to vector<8xf32>
    %378 = vector.shape_cast %377 : vector<8xf32> to vector<8x1xf32>
    %379 = tpu.reciprocal %378 {approx = true} : vector<8x1xf32> -> vector<8x1xf32>
    %380 = vector.broadcast %379 : vector<8x1xf32> to vector<8x8xf32>
    %381 = arith.mulf %376, %380 : vector<8x8xf32>
    %cst_166 = arith.constant dense<0.000000e+00> : vector<8x8xf32>
    %382 = tpu.matmul %381, %362, %cst_166 {dimension_numbers = #tpu.dot_dimension_numbers<[1], [0], [0], [1], [0, 0, 1, 1], [], []>} : vector<8x8xf32>, vector<8x8xf32>, vector<8x8xf32> -> vector<8x8xf32>
    %383 = vector.shape_cast %381 : vector<8x8xf32> to vector<8x1x8xf32>
    %cst_167 = arith.constant dense<0.000000e+00> : vector<8x1x8xf32>
    %384 = tpu.matmul %383, %357, %cst_167 {dimension_numbers = #tpu.dot_dimension_numbers<[2], [1], [1], [2], [0, 0, 0, 1, 1, 2], [0], [0]>} : vector<8x1x8xf32>, vector<8x8x8xf32>, vector<8x1x8xf32> -> vector<8x1x8xf32>
    %385 = vector.shape_cast %384 : vector<8x1x8xf32> to vector<8x8xf32>
    %386 = arith.addf %382, %385 : vector<8x8xf32>
    %387 = vector.extract_strided_slice %346 {offsets = [0, 0], sizes = [8, 32], strides = [1, 1]} : vector<32x32xf32> to vector<8x32xf32>
    %cst_168 = arith.constant dense<0.000000e+00> : vector<8x32xf32>
    %388 = tpu.matmul %386, %387, %cst_168 {dimension_numbers = #tpu.dot_dimension_numbers<[1], [0], [0], [1], [0, 0, 1, 1], [], []>} : vector<8x8xf32>, vector<8x32xf32>, vector<8x32xf32> -> vector<8x32xf32>
    %389 = vector.extract_strided_slice %353 {offsets = [0, 8], sizes = [8, 8], strides = [1, 1]} : vector<16x96xf32> to vector<8x8xf32>
    %390 = vector.extract_strided_slice %353 {offsets = [0, 40], sizes = [8, 8], strides = [1, 1]} : vector<16x96xf32> to vector<8x8xf32>
    %391 = vector.extract_strided_slice %353 {offsets = [0, 72], sizes = [8, 8], strides = [1, 1]} : vector<16x96xf32> to vector<8x8xf32>
    %cst_169 = arith.constant dense<0.000000e+00> : vector<8x8xf32>
    %392 = tpu.matmul %389, %390, %cst_169 {dimension_numbers = #tpu.dot_dimension_numbers<[1], [1], [0], [0], [0, 0, 1, 0], [], []>} : vector<8x8xf32>, vector<8x8xf32>, vector<8x8xf32> -> vector<8x8xf32>
    %cst_170 = arith.constant 0.353553385 : f32
    %393 = vector.broadcast %cst_170 : f32 to vector<8x8xf32>
    %394 = arith.mulf %392, %393 : vector<8x8xf32>
    %395 = vector.shape_cast %389 : vector<8x8xf32> to vector<8x1x8xf32>
    %cst_171 = arith.constant dense<0.000000e+00> : vector<8x1x8xf32>
    %396 = tpu.matmul %395, %355, %cst_171 {dimension_numbers = #tpu.dot_dimension_numbers<[2], [2], [1], [1], [0, 0, 0, 1, 1, 1], [0], [0]>} : vector<8x1x8xf32>, vector<8x8x8xf32>, vector<8x1x8xf32> -> vector<8x1x8xf32>
    %397 = vector.shape_cast %396 : vector<8x1x8xf32> to vector<8x8xf32>
    %398 = arith.addf %394, %397 : vector<8x8xf32>
    %399 = vector.broadcast %359 : vector<1x8xf32> to vector<8x8xf32>
    %400 = arith.addf %398, %399 : vector<8x8xf32>
    %cst_172 = arith.constant dense<0xFF800000> : vector<8xf32>
    %401 = vector.multi_reduction <maximumf>, %400, %cst_172 [1] : vector<8x8xf32> to vector<8xf32>
    %402 = vector.shape_cast %401 : vector<8xf32> to vector<8x1xf32>
    %403 = vector.broadcast %402 : vector<8x1xf32> to vector<8x8xf32>
    %404 = arith.subf %400, %403 : vector<8x8xf32>
    %405 = math.exp %404 : vector<8x8xf32>
    %cst_173 = arith.constant dense<0.000000e+00> : vector<8xf32>
    %406 = vector.multi_reduction <add>, %405, %cst_173 [1] : vector<8x8xf32> to vector<8xf32>
    %407 = vector.shape_cast %406 : vector<8xf32> to vector<8x1xf32>
    %408 = tpu.reciprocal %407 {approx = true} : vector<8x1xf32> -> vector<8x1xf32>
    %409 = vector.broadcast %408 : vector<8x1xf32> to vector<8x8xf32>
    %410 = arith.mulf %405, %409 : vector<8x8xf32>
    %cst_174 = arith.constant dense<0.000000e+00> : vector<8x8xf32>
    %411 = tpu.matmul %410, %391, %cst_174 {dimension_numbers = #tpu.dot_dimension_numbers<[1], [0], [0], [1], [0, 0, 1, 1], [], []>} : vector<8x8xf32>, vector<8x8xf32>, vector<8x8xf32> -> vector<8x8xf32>
    %412 = vector.shape_cast %410 : vector<8x8xf32> to vector<8x1x8xf32>
    %cst_175 = arith.constant dense<0.000000e+00> : vector<8x1x8xf32>
    %413 = tpu.matmul %412, %357, %cst_175 {dimension_numbers = #tpu.dot_dimension_numbers<[2], [1], [1], [2], [0, 0, 0, 1, 1, 2], [0], [0]>} : vector<8x1x8xf32>, vector<8x8x8xf32>, vector<8x1x8xf32> -> vector<8x1x8xf32>
    %414 = vector.shape_cast %413 : vector<8x1x8xf32> to vector<8x8xf32>
    %415 = arith.addf %411, %414 : vector<8x8xf32>
    %416 = vector.extract_strided_slice %346 {offsets = [8, 0], sizes = [8, 32], strides = [1, 1]} : vector<32x32xf32> to vector<8x32xf32>
    %cst_176 = arith.constant dense<0.000000e+00> : vector<8x32xf32>
    %417 = tpu.matmul %415, %416, %cst_176 {dimension_numbers = #tpu.dot_dimension_numbers<[1], [0], [0], [1], [0, 0, 1, 1], [], []>} : vector<8x8xf32>, vector<8x32xf32>, vector<8x32xf32> -> vector<8x32xf32>
    %418 = arith.addf %388, %417 : vector<8x32xf32>
    %419 = vector.extract_strided_slice %353 {offsets = [0, 16], sizes = [8, 8], strides = [1, 1]} : vector<16x96xf32> to vector<8x8xf32>
    %420 = vector.extract_strided_slice %353 {offsets = [0, 48], sizes = [8, 8], strides = [1, 1]} : vector<16x96xf32> to vector<8x8xf32>
    %421 = vector.extract_strided_slice %353 {offsets = [0, 80], sizes = [8, 8], strides = [1, 1]} : vector<16x96xf32> to vector<8x8xf32>
    %cst_177 = arith.constant dense<0.000000e+00> : vector<8x8xf32>
    %422 = tpu.matmul %419, %420, %cst_177 {dimension_numbers = #tpu.dot_dimension_numbers<[1], [1], [0], [0], [0, 0, 1, 0], [], []>} : vector<8x8xf32>, vector<8x8xf32>, vector<8x8xf32> -> vector<8x8xf32>
    %cst_178 = arith.constant 0.353553385 : f32
    %423 = vector.broadcast %cst_178 : f32 to vector<8x8xf32>
    %424 = arith.mulf %422, %423 : vector<8x8xf32>
    %425 = vector.shape_cast %419 : vector<8x8xf32> to vector<8x1x8xf32>
    %cst_179 = arith.constant dense<0.000000e+00> : vector<8x1x8xf32>
    %426 = tpu.matmul %425, %355, %cst_179 {dimension_numbers = #tpu.dot_dimension_numbers<[2], [2], [1], [1], [0, 0, 0, 1, 1, 1], [0], [0]>} : vector<8x1x8xf32>, vector<8x8x8xf32>, vector<8x1x8xf32> -> vector<8x1x8xf32>
    %427 = vector.shape_cast %426 : vector<8x1x8xf32> to vector<8x8xf32>
    %428 = arith.addf %424, %427 : vector<8x8xf32>
    %429 = vector.broadcast %359 : vector<1x8xf32> to vector<8x8xf32>
    %430 = arith.addf %428, %429 : vector<8x8xf32>
    %cst_180 = arith.constant dense<0xFF800000> : vector<8xf32>
    %431 = vector.multi_reduction <maximumf>, %430, %cst_180 [1] : vector<8x8xf32> to vector<8xf32>
    %432 = vector.shape_cast %431 : vector<8xf32> to vector<8x1xf32>
    %433 = vector.broadcast %432 : vector<8x1xf32> to vector<8x8xf32>
    %434 = arith.subf %430, %433 : vector<8x8xf32>
    %435 = math.exp %434 : vector<8x8xf32>
    %cst_181 = arith.constant dense<0.000000e+00> : vector<8xf32>
    %436 = vector.multi_reduction <add>, %435, %cst_181 [1] : vector<8x8xf32> to vector<8xf32>
    %437 = vector.shape_cast %436 : vector<8xf32> to vector<8x1xf32>
    %438 = tpu.reciprocal %437 {approx = true} : vector<8x1xf32> -> vector<8x1xf32>
    %439 = vector.broadcast %438 : vector<8x1xf32> to vector<8x8xf32>
    %440 = arith.mulf %435, %439 : vector<8x8xf32>
    %cst_182 = arith.constant dense<0.000000e+00> : vector<8x8xf32>
    %441 = tpu.matmul %440, %421, %cst_182 {dimension_numbers = #tpu.dot_dimension_numbers<[1], [0], [0], [1], [0, 0, 1, 1], [], []>} : vector<8x8xf32>, vector<8x8xf32>, vector<8x8xf32> -> vector<8x8xf32>
    %442 = vector.shape_cast %440 : vector<8x8xf32> to vector<8x1x8xf32>
    %cst_183 = arith.constant dense<0.000000e+00> : vector<8x1x8xf32>
    %443 = tpu.matmul %442, %357, %cst_183 {dimension_numbers = #tpu.dot_dimension_numbers<[2], [1], [1], [2], [0, 0, 0, 1, 1, 2], [0], [0]>} : vector<8x1x8xf32>, vector<8x8x8xf32>, vector<8x1x8xf32> -> vector<8x1x8xf32>
    %444 = vector.shape_cast %443 : vector<8x1x8xf32> to vector<8x8xf32>
    %445 = arith.addf %441, %444 : vector<8x8xf32>
    %446 = vector.extract_strided_slice %346 {offsets = [16, 0], sizes = [8, 32], strides = [1, 1]} : vector<32x32xf32> to vector<8x32xf32>
    %cst_184 = arith.constant dense<0.000000e+00> : vector<8x32xf32>
    %447 = tpu.matmul %445, %446, %cst_184 {dimension_numbers = #tpu.dot_dimension_numbers<[1], [0], [0], [1], [0, 0, 1, 1], [], []>} : vector<8x8xf32>, vector<8x32xf32>, vector<8x32xf32> -> vector<8x32xf32>
    %448 = arith.addf %418, %447 : vector<8x32xf32>
    %449 = vector.extract_strided_slice %353 {offsets = [0, 24], sizes = [8, 8], strides = [1, 1]} : vector<16x96xf32> to vector<8x8xf32>
    %450 = vector.extract_strided_slice %353 {offsets = [0, 56], sizes = [8, 8], strides = [1, 1]} : vector<16x96xf32> to vector<8x8xf32>
    %451 = vector.extract_strided_slice %353 {offsets = [0, 88], sizes = [8, 8], strides = [1, 1]} : vector<16x96xf32> to vector<8x8xf32>
    %cst_185 = arith.constant dense<0.000000e+00> : vector<8x8xf32>
    %452 = tpu.matmul %449, %450, %cst_185 {dimension_numbers = #tpu.dot_dimension_numbers<[1], [1], [0], [0], [0, 0, 1, 0], [], []>} : vector<8x8xf32>, vector<8x8xf32>, vector<8x8xf32> -> vector<8x8xf32>
    %cst_186 = arith.constant 0.353553385 : f32
    %453 = vector.broadcast %cst_186 : f32 to vector<8x8xf32>
    %454 = arith.mulf %452, %453 : vector<8x8xf32>
    %455 = vector.shape_cast %449 : vector<8x8xf32> to vector<8x1x8xf32>
    %cst_187 = arith.constant dense<0.000000e+00> : vector<8x1x8xf32>
    %456 = tpu.matmul %455, %355, %cst_187 {dimension_numbers = #tpu.dot_dimension_numbers<[2], [2], [1], [1], [0, 0, 0, 1, 1, 1], [0], [0]>} : vector<8x1x8xf32>, vector<8x8x8xf32>, vector<8x1x8xf32> -> vector<8x1x8xf32>
    %457 = vector.shape_cast %456 : vector<8x1x8xf32> to vector<8x8xf32>
    %458 = arith.addf %454, %457 : vector<8x8xf32>
    %459 = vector.broadcast %359 : vector<1x8xf32> to vector<8x8xf32>
    %460 = arith.addf %458, %459 : vector<8x8xf32>
    %cst_188 = arith.constant dense<0xFF800000> : vector<8xf32>
    %461 = vector.multi_reduction <maximumf>, %460, %cst_188 [1] : vector<8x8xf32> to vector<8xf32>
    %462 = vector.shape_cast %461 : vector<8xf32> to vector<8x1xf32>
    %463 = vector.broadcast %462 : vector<8x1xf32> to vector<8x8xf32>
    %464 = arith.subf %460, %463 : vector<8x8xf32>
    %465 = math.exp %464 : vector<8x8xf32>
    %cst_189 = arith.constant dense<0.000000e+00> : vector<8xf32>
    %466 = vector.multi_reduction <add>, %465, %cst_189 [1] : vector<8x8xf32> to vector<8xf32>
    %467 = vector.shape_cast %466 : vector<8xf32> to vector<8x1xf32>
    %468 = tpu.reciprocal %467 {approx = true} : vector<8x1xf32> -> vector<8x1xf32>
    %469 = vector.broadcast %468 : vector<8x1xf32> to vector<8x8xf32>
    %470 = arith.mulf %465, %469 : vector<8x8xf32>
    %cst_190 = arith.constant dense<0.000000e+00> : vector<8x8xf32>
    %471 = tpu.matmul %470, %451, %cst_190 {dimension_numbers = #tpu.dot_dimension_numbers<[1], [0], [0], [1], [0, 0, 1, 1], [], []>} : vector<8x8xf32>, vector<8x8xf32>, vector<8x8xf32> -> vector<8x8xf32>
    %472 = vector.shape_cast %470 : vector<8x8xf32> to vector<8x1x8xf32>
    %cst_191 = arith.constant dense<0.000000e+00> : vector<8x1x8xf32>
    %473 = tpu.matmul %472, %357, %cst_191 {dimension_numbers = #tpu.dot_dimension_numbers<[2], [1], [1], [2], [0, 0, 0, 1, 1, 2], [0], [0]>} : vector<8x1x8xf32>, vector<8x8x8xf32>, vector<8x1x8xf32> -> vector<8x1x8xf32>
    %474 = vector.shape_cast %473 : vector<8x1x8xf32> to vector<8x8xf32>
    %475 = arith.addf %471, %474 : vector<8x8xf32>
    %476 = vector.extract_strided_slice %346 {offsets = [24, 0], sizes = [8, 32], strides = [1, 1]} : vector<32x32xf32> to vector<8x32xf32>
    %cst_192 = arith.constant dense<0.000000e+00> : vector<8x32xf32>
    %477 = tpu.matmul %475, %476, %cst_192 {dimension_numbers = #tpu.dot_dimension_numbers<[1], [0], [0], [1], [0, 0, 1, 1], [], []>} : vector<8x8xf32>, vector<8x32xf32>, vector<8x32xf32> -> vector<8x32xf32>
    %478 = arith.addf %448, %477 : vector<8x32xf32>
    %c3 = arith.constant 3 : index
    %c0_193 = arith.constant 0 : index
    %c0_194 = arith.constant 0 : index
    %c0_195 = arith.constant 0 : index
    %479 = vector.load %arg2[%c3, %c0_193, %c0_194, %c0_195] : memref<4x8x8x8xf32, #tpu.memory_space<vmem>>, vector<1x8x8x8xf32>
    %480 = vector.shape_cast %479 : vector<1x8x8x8xf32> to vector<8x8x8xf32>
    %c3_196 = arith.constant 3 : index
    %c0_197 = arith.constant 0 : index
    %c0_198 = arith.constant 0 : index
    %c0_199 = arith.constant 0 : index
    %481 = vector.load %arg3[%c3_196, %c0_197, %c0_198, %c0_199] : memref<4x8x8x8xf32, #tpu.memory_space<vmem>>, vector<1x8x8x8xf32>
    %482 = vector.shape_cast %481 : vector<1x8x8x8xf32> to vector<8x8x8xf32>
    %c1_200 = arith.constant 1 : index
    %c0_201 = arith.constant 0 : index
    %c0_202 = arith.constant 0 : index
    %483 = vector.load %arg1[%c1_200, %c0_201, %c0_202] : memref<2x1x8xf32, #tpu.memory_space<vmem>>, vector<1x1x8xf32>
    %484 = vector.shape_cast %483 : vector<1x1x8xf32> to vector<1x8xf32>
    %485 = vector.extract_strided_slice %353 {offsets = [8, 0], sizes = [8, 8], strides = [1, 1]} : vector<16x96xf32> to vector<8x8xf32>
    %486 = vector.extract_strided_slice %353 {offsets = [8, 32], sizes = [8, 8], strides = [1, 1]} : vector<16x96xf32> to vector<8x8xf32>
    %487 = vector.extract_strided_slice %353 {offsets = [8, 64], sizes = [8, 8], strides = [1, 1]} : vector<16x96xf32> to vector<8x8xf32>
    %cst_203 = arith.constant dense<0.000000e+00> : vector<8x8xf32>
    %488 = tpu.matmul %485, %486, %cst_203 {dimension_numbers = #tpu.dot_dimension_numbers<[1], [1], [0], [0], [0, 0, 1, 0], [], []>} : vector<8x8xf32>, vector<8x8xf32>, vector<8x8xf32> -> vector<8x8xf32>
    %cst_204 = arith.constant 0.353553385 : f32
    %489 = vector.broadcast %cst_204 : f32 to vector<8x8xf32>
    %490 = arith.mulf %488, %489 : vector<8x8xf32>
    %491 = vector.shape_cast %485 : vector<8x8xf32> to vector<8x1x8xf32>
    %cst_205 = arith.constant dense<0.000000e+00> : vector<8x1x8xf32>
    %492 = tpu.matmul %491, %480, %cst_205 {dimension_numbers = #tpu.dot_dimension_numbers<[2], [2], [1], [1], [0, 0, 0, 1, 1, 1], [0], [0]>} : vector<8x1x8xf32>, vector<8x8x8xf32>, vector<8x1x8xf32> -> vector<8x1x8xf32>
    %493 = vector.shape_cast %492 : vector<8x1x8xf32> to vector<8x8xf32>
    %494 = arith.addf %490, %493 : vector<8x8xf32>
    %495 = vector.broadcast %484 : vector<1x8xf32> to vector<8x8xf32>
    %496 = arith.addf %494, %495 : vector<8x8xf32>
    %cst_206 = arith.constant dense<0xFF800000> : vector<8xf32>
    %497 = vector.multi_reduction <maximumf>, %496, %cst_206 [1] : vector<8x8xf32> to vector<8xf32>
    %498 = vector.shape_cast %497 : vector<8xf32> to vector<8x1xf32>
    %499 = vector.broadcast %498 : vector<8x1xf32> to vector<8x8xf32>
    %500 = arith.subf %496, %499 : vector<8x8xf32>
    %501 = math.exp %500 : vector<8x8xf32>
    %cst_207 = arith.constant dense<0.000000e+00> : vector<8xf32>
    %502 = vector.multi_reduction <add>, %501, %cst_207 [1] : vector<8x8xf32> to vector<8xf32>
    %503 = vector.shape_cast %502 : vector<8xf32> to vector<8x1xf32>
    %504 = tpu.reciprocal %503 {approx = true} : vector<8x1xf32> -> vector<8x1xf32>
    %505 = vector.broadcast %504 : vector<8x1xf32> to vector<8x8xf32>
    %506 = arith.mulf %501, %505 : vector<8x8xf32>
    %cst_208 = arith.constant dense<0.000000e+00> : vector<8x8xf32>
    %507 = tpu.matmul %506, %487, %cst_208 {dimension_numbers = #tpu.dot_dimension_numbers<[1], [0], [0], [1], [0, 0, 1, 1], [], []>} : vector<8x8xf32>, vector<8x8xf32>, vector<8x8xf32> -> vector<8x8xf32>
    %508 = vector.shape_cast %506 : vector<8x8xf32> to vector<8x1x8xf32>
    %cst_209 = arith.constant dense<0.000000e+00> : vector<8x1x8xf32>
    %509 = tpu.matmul %508, %482, %cst_209 {dimension_numbers = #tpu.dot_dimension_numbers<[2], [1], [1], [2], [0, 0, 0, 1, 1, 2], [0], [0]>} : vector<8x1x8xf32>, vector<8x8x8xf32>, vector<8x1x8xf32> -> vector<8x1x8xf32>
    %510 = vector.shape_cast %509 : vector<8x1x8xf32> to vector<8x8xf32>
    %511 = arith.addf %507, %510 : vector<8x8xf32>
    %512 = vector.extract_strided_slice %346 {offsets = [0, 0], sizes = [8, 32], strides = [1, 1]} : vector<32x32xf32> to vector<8x32xf32>
    %cst_210 = arith.constant dense<0.000000e+00> : vector<8x32xf32>
    %513 = tpu.matmul %511, %512, %cst_210 {dimension_numbers = #tpu.dot_dimension_numbers<[1], [0], [0], [1], [0, 0, 1, 1], [], []>} : vector<8x8xf32>, vector<8x32xf32>, vector<8x32xf32> -> vector<8x32xf32>
    %514 = vector.extract_strided_slice %353 {offsets = [8, 8], sizes = [8, 8], strides = [1, 1]} : vector<16x96xf32> to vector<8x8xf32>
    %515 = vector.extract_strided_slice %353 {offsets = [8, 40], sizes = [8, 8], strides = [1, 1]} : vector<16x96xf32> to vector<8x8xf32>
    %516 = vector.extract_strided_slice %353 {offsets = [8, 72], sizes = [8, 8], strides = [1, 1]} : vector<16x96xf32> to vector<8x8xf32>
    %cst_211 = arith.constant dense<0.000000e+00> : vector<8x8xf32>
    %517 = tpu.matmul %514, %515, %cst_211 {dimension_numbers = #tpu.dot_dimension_numbers<[1], [1], [0], [0], [0, 0, 1, 0], [], []>} : vector<8x8xf32>, vector<8x8xf32>, vector<8x8xf32> -> vector<8x8xf32>
    %cst_212 = arith.constant 0.353553385 : f32
    %518 = vector.broadcast %cst_212 : f32 to vector<8x8xf32>
    %519 = arith.mulf %517, %518 : vector<8x8xf32>
    %520 = vector.shape_cast %514 : vector<8x8xf32> to vector<8x1x8xf32>
    %cst_213 = arith.constant dense<0.000000e+00> : vector<8x1x8xf32>
    %521 = tpu.matmul %520, %480, %cst_213 {dimension_numbers = #tpu.dot_dimension_numbers<[2], [2], [1], [1], [0, 0, 0, 1, 1, 1], [0], [0]>} : vector<8x1x8xf32>, vector<8x8x8xf32>, vector<8x1x8xf32> -> vector<8x1x8xf32>
    %522 = vector.shape_cast %521 : vector<8x1x8xf32> to vector<8x8xf32>
    %523 = arith.addf %519, %522 : vector<8x8xf32>
    %524 = vector.broadcast %484 : vector<1x8xf32> to vector<8x8xf32>
    %525 = arith.addf %523, %524 : vector<8x8xf32>
    %cst_214 = arith.constant dense<0xFF800000> : vector<8xf32>
    %526 = vector.multi_reduction <maximumf>, %525, %cst_214 [1] : vector<8x8xf32> to vector<8xf32>
    %527 = vector.shape_cast %526 : vector<8xf32> to vector<8x1xf32>
    %528 = vector.broadcast %527 : vector<8x1xf32> to vector<8x8xf32>
    %529 = arith.subf %525, %528 : vector<8x8xf32>
    %530 = math.exp %529 : vector<8x8xf32>
    %cst_215 = arith.constant dense<0.000000e+00> : vector<8xf32>
    %531 = vector.multi_reduction <add>, %530, %cst_215 [1] : vector<8x8xf32> to vector<8xf32>
    %532 = vector.shape_cast %531 : vector<8xf32> to vector<8x1xf32>
    %533 = tpu.reciprocal %532 {approx = true} : vector<8x1xf32> -> vector<8x1xf32>
    %534 = vector.broadcast %533 : vector<8x1xf32> to vector<8x8xf32>
    %535 = arith.mulf %530, %534 : vector<8x8xf32>
    %cst_216 = arith.constant dense<0.000000e+00> : vector<8x8xf32>
    %536 = tpu.matmul %535, %516, %cst_216 {dimension_numbers = #tpu.dot_dimension_numbers<[1], [0], [0], [1], [0, 0, 1, 1], [], []>} : vector<8x8xf32>, vector<8x8xf32>, vector<8x8xf32> -> vector<8x8xf32>
    %537 = vector.shape_cast %535 : vector<8x8xf32> to vector<8x1x8xf32>
    %cst_217 = arith.constant dense<0.000000e+00> : vector<8x1x8xf32>
    %538 = tpu.matmul %537, %482, %cst_217 {dimension_numbers = #tpu.dot_dimension_numbers<[2], [1], [1], [2], [0, 0, 0, 1, 1, 2], [0], [0]>} : vector<8x1x8xf32>, vector<8x8x8xf32>, vector<8x1x8xf32> -> vector<8x1x8xf32>
    %539 = vector.shape_cast %538 : vector<8x1x8xf32> to vector<8x8xf32>
    %540 = arith.addf %536, %539 : vector<8x8xf32>
    %541 = vector.extract_strided_slice %346 {offsets = [8, 0], sizes = [8, 32], strides = [1, 1]} : vector<32x32xf32> to vector<8x32xf32>
    %cst_218 = arith.constant dense<0.000000e+00> : vector<8x32xf32>
    %542 = tpu.matmul %540, %541, %cst_218 {dimension_numbers = #tpu.dot_dimension_numbers<[1], [0], [0], [1], [0, 0, 1, 1], [], []>} : vector<8x8xf32>, vector<8x32xf32>, vector<8x32xf32> -> vector<8x32xf32>
    %543 = arith.addf %513, %542 : vector<8x32xf32>
    %544 = vector.extract_strided_slice %353 {offsets = [8, 16], sizes = [8, 8], strides = [1, 1]} : vector<16x96xf32> to vector<8x8xf32>
    %545 = vector.extract_strided_slice %353 {offsets = [8, 48], sizes = [8, 8], strides = [1, 1]} : vector<16x96xf32> to vector<8x8xf32>
    %546 = vector.extract_strided_slice %353 {offsets = [8, 80], sizes = [8, 8], strides = [1, 1]} : vector<16x96xf32> to vector<8x8xf32>
    %cst_219 = arith.constant dense<0.000000e+00> : vector<8x8xf32>
    %547 = tpu.matmul %544, %545, %cst_219 {dimension_numbers = #tpu.dot_dimension_numbers<[1], [1], [0], [0], [0, 0, 1, 0], [], []>} : vector<8x8xf32>, vector<8x8xf32>, vector<8x8xf32> -> vector<8x8xf32>
    %cst_220 = arith.constant 0.353553385 : f32
    %548 = vector.broadcast %cst_220 : f32 to vector<8x8xf32>
    %549 = arith.mulf %547, %548 : vector<8x8xf32>
    %550 = vector.shape_cast %544 : vector<8x8xf32> to vector<8x1x8xf32>
    %cst_221 = arith.constant dense<0.000000e+00> : vector<8x1x8xf32>
    %551 = tpu.matmul %550, %480, %cst_221 {dimension_numbers = #tpu.dot_dimension_numbers<[2], [2], [1], [1], [0, 0, 0, 1, 1, 1], [0], [0]>} : vector<8x1x8xf32>, vector<8x8x8xf32>, vector<8x1x8xf32> -> vector<8x1x8xf32>
    %552 = vector.shape_cast %551 : vector<8x1x8xf32> to vector<8x8xf32>
    %553 = arith.addf %549, %552 : vector<8x8xf32>
    %554 = vector.broadcast %484 : vector<1x8xf32> to vector<8x8xf32>
    %555 = arith.addf %553, %554 : vector<8x8xf32>
    %cst_222 = arith.constant dense<0xFF800000> : vector<8xf32>
    %556 = vector.multi_reduction <maximumf>, %555, %cst_222 [1] : vector<8x8xf32> to vector<8xf32>
    %557 = vector.shape_cast %556 : vector<8xf32> to vector<8x1xf32>
    %558 = vector.broadcast %557 : vector<8x1xf32> to vector<8x8xf32>
    %559 = arith.subf %555, %558 : vector<8x8xf32>
    %560 = math.exp %559 : vector<8x8xf32>
    %cst_223 = arith.constant dense<0.000000e+00> : vector<8xf32>
    %561 = vector.multi_reduction <add>, %560, %cst_223 [1] : vector<8x8xf32> to vector<8xf32>
    %562 = vector.shape_cast %561 : vector<8xf32> to vector<8x1xf32>
    %563 = tpu.reciprocal %562 {approx = true} : vector<8x1xf32> -> vector<8x1xf32>
    %564 = vector.broadcast %563 : vector<8x1xf32> to vector<8x8xf32>
    %565 = arith.mulf %560, %564 : vector<8x8xf32>
    %cst_224 = arith.constant dense<0.000000e+00> : vector<8x8xf32>
    %566 = tpu.matmul %565, %546, %cst_224 {dimension_numbers = #tpu.dot_dimension_numbers<[1], [0], [0], [1], [0, 0, 1, 1], [], []>} : vector<8x8xf32>, vector<8x8xf32>, vector<8x8xf32> -> vector<8x8xf32>
    %567 = vector.shape_cast %565 : vector<8x8xf32> to vector<8x1x8xf32>
    %cst_225 = arith.constant dense<0.000000e+00> : vector<8x1x8xf32>
    %568 = tpu.matmul %567, %482, %cst_225 {dimension_numbers = #tpu.dot_dimension_numbers<[2], [1], [1], [2], [0, 0, 0, 1, 1, 2], [0], [0]>} : vector<8x1x8xf32>, vector<8x8x8xf32>, vector<8x1x8xf32> -> vector<8x1x8xf32>
    %569 = vector.shape_cast %568 : vector<8x1x8xf32> to vector<8x8xf32>
    %570 = arith.addf %566, %569 : vector<8x8xf32>
    %571 = vector.extract_strided_slice %346 {offsets = [16, 0], sizes = [8, 32], strides = [1, 1]} : vector<32x32xf32> to vector<8x32xf32>
    %cst_226 = arith.constant dense<0.000000e+00> : vector<8x32xf32>
    %572 = tpu.matmul %570, %571, %cst_226 {dimension_numbers = #tpu.dot_dimension_numbers<[1], [0], [0], [1], [0, 0, 1, 1], [], []>} : vector<8x8xf32>, vector<8x32xf32>, vector<8x32xf32> -> vector<8x32xf32>
    %573 = arith.addf %543, %572 : vector<8x32xf32>
    %574 = vector.extract_strided_slice %353 {offsets = [8, 24], sizes = [8, 8], strides = [1, 1]} : vector<16x96xf32> to vector<8x8xf32>
    %575 = vector.extract_strided_slice %353 {offsets = [8, 56], sizes = [8, 8], strides = [1, 1]} : vector<16x96xf32> to vector<8x8xf32>
    %576 = vector.extract_strided_slice %353 {offsets = [8, 88], sizes = [8, 8], strides = [1, 1]} : vector<16x96xf32> to vector<8x8xf32>
    %cst_227 = arith.constant dense<0.000000e+00> : vector<8x8xf32>
    %577 = tpu.matmul %574, %575, %cst_227 {dimension_numbers = #tpu.dot_dimension_numbers<[1], [1], [0], [0], [0, 0, 1, 0], [], []>} : vector<8x8xf32>, vector<8x8xf32>, vector<8x8xf32> -> vector<8x8xf32>
    %cst_228 = arith.constant 0.353553385 : f32
    %578 = vector.broadcast %cst_228 : f32 to vector<8x8xf32>
    %579 = arith.mulf %577, %578 : vector<8x8xf32>
    %580 = vector.shape_cast %574 : vector<8x8xf32> to vector<8x1x8xf32>
    %cst_229 = arith.constant dense<0.000000e+00> : vector<8x1x8xf32>
    %581 = tpu.matmul %580, %480, %cst_229 {dimension_numbers = #tpu.dot_dimension_numbers<[2], [2], [1], [1], [0, 0, 0, 1, 1, 1], [0], [0]>} : vector<8x1x8xf32>, vector<8x8x8xf32>, vector<8x1x8xf32> -> vector<8x1x8xf32>
    %582 = vector.shape_cast %581 : vector<8x1x8xf32> to vector<8x8xf32>
    %583 = arith.addf %579, %582 : vector<8x8xf32>
    %584 = vector.broadcast %484 : vector<1x8xf32> to vector<8x8xf32>
    %585 = arith.addf %583, %584 : vector<8x8xf32>
    %cst_230 = arith.constant dense<0xFF800000> : vector<8xf32>
    %586 = vector.multi_reduction <maximumf>, %585, %cst_230 [1] : vector<8x8xf32> to vector<8xf32>
    %587 = vector.shape_cast %586 : vector<8xf32> to vector<8x1xf32>
    %588 = vector.broadcast %587 : vector<8x1xf32> to vector<8x8xf32>
    %589 = arith.subf %585, %588 : vector<8x8xf32>
    %590 = math.exp %589 : vector<8x8xf32>
    %cst_231 = arith.constant dense<0.000000e+00> : vector<8xf32>
    %591 = vector.multi_reduction <add>, %590, %cst_231 [1] : vector<8x8xf32> to vector<8xf32>
    %592 = vector.shape_cast %591 : vector<8xf32> to vector<8x1xf32>
    %593 = tpu.reciprocal %592 {approx = true} : vector<8x1xf32> -> vector<8x1xf32>
    %594 = vector.broadcast %593 : vector<8x1xf32> to vector<8x8xf32>
    %595 = arith.mulf %590, %594 : vector<8x8xf32>
    %cst_232 = arith.constant dense<0.000000e+00> : vector<8x8xf32>
    %596 = tpu.matmul %595, %576, %cst_232 {dimension_numbers = #tpu.dot_dimension_numbers<[1], [0], [0], [1], [0, 0, 1, 1], [], []>} : vector<8x8xf32>, vector<8x8xf32>, vector<8x8xf32> -> vector<8x8xf32>
    %597 = vector.shape_cast %595 : vector<8x8xf32> to vector<8x1x8xf32>
    %cst_233 = arith.constant dense<0.000000e+00> : vector<8x1x8xf32>
    %598 = tpu.matmul %597, %482, %cst_233 {dimension_numbers = #tpu.dot_dimension_numbers<[2], [1], [1], [2], [0, 0, 0, 1, 1, 2], [0], [0]>} : vector<8x1x8xf32>, vector<8x8x8xf32>, vector<8x1x8xf32> -> vector<8x1x8xf32>
    %599 = vector.shape_cast %598 : vector<8x1x8xf32> to vector<8x8xf32>
    %600 = arith.addf %596, %599 : vector<8x8xf32>
    %601 = vector.extract_strided_slice %346 {offsets = [24, 0], sizes = [8, 32], strides = [1, 1]} : vector<32x32xf32> to vector<8x32xf32>
    %cst_234 = arith.constant dense<0.000000e+00> : vector<8x32xf32>
    %602 = tpu.matmul %600, %601, %cst_234 {dimension_numbers = #tpu.dot_dimension_numbers<[1], [0], [0], [1], [0, 0, 1, 1], [], []>} : vector<8x8xf32>, vector<8x32xf32>, vector<8x32xf32> -> vector<8x32xf32>
    %603 = arith.addf %573, %602 : vector<8x32xf32>
    %604 = tpu.concatenate %478, %603 in 0 : vector<8x32xf32>, vector<8x32xf32> -> vector<16x32xf32>
    %c1_235 = arith.constant 1 : index
    %c0_236 = arith.constant 0 : index
    %c0_237 = arith.constant 0 : index
    %605 = vector.load %arg7[%c1_235, %c0_236, %c0_237] : memref<2x1x32xf32, #tpu.memory_space<vmem>>, vector<1x1x32xf32>
    %606 = vector.shape_cast %605 : vector<1x1x32xf32> to vector<1x32xf32>
    %607 = vector.broadcast %606 : vector<1x32xf32> to vector<16x32xf32>
    %608 = arith.addf %604, %607 : vector<16x32xf32>
    %609 = arith.addf %608, %341 : vector<16x32xf32>
    %c1_238 = arith.constant 1 : index
    %c0_239 = arith.constant 0 : index
    %c0_240 = arith.constant 0 : index
    %610 = vector.load %arg8[%c1_238, %c0_239, %c0_240] : memref<2x1x32xf32, #tpu.memory_space<vmem>>, vector<1x1x32xf32>
    %611 = vector.shape_cast %610 : vector<1x1x32xf32> to vector<1x32xf32>
    %c1_241 = arith.constant 1 : index
    %c0_242 = arith.constant 0 : index
    %c0_243 = arith.constant 0 : index
    %612 = vector.load %arg9[%c1_241, %c0_242, %c0_243] : memref<2x1x32xf32, #tpu.memory_space<vmem>>, vector<1x1x32xf32>
    %613 = vector.shape_cast %612 : vector<1x1x32xf32> to vector<1x32xf32>
    %cst_244 = arith.constant dense<0.000000e+00> : vector<16xf32>
    %614 = vector.multi_reduction <add>, %609, %cst_244 [1] : vector<16x32xf32> to vector<16xf32>
    %615 = vector.shape_cast %614 : vector<16xf32> to vector<16x1xf32>
    %cst_245 = arith.constant 3.200000e+01 : f32
    %616 = vector.broadcast %cst_245 : f32 to vector<16x1xf32>
    %617 = arith.divf %615, %616 : vector<16x1xf32>
    %618 = vector.broadcast %617 : vector<16x1xf32> to vector<16x32xf32>
    %619 = arith.subf %609, %618 : vector<16x32xf32>
    %620 = arith.mulf %619, %619 : vector<16x32xf32>
    %cst_246 = arith.constant dense<0.000000e+00> : vector<16xf32>
    %621 = vector.multi_reduction <add>, %620, %cst_246 [1] : vector<16x32xf32> to vector<16xf32>
    %622 = vector.shape_cast %621 : vector<16xf32> to vector<16x1xf32>
    %cst_247 = arith.constant 3.200000e+01 : f32
    %623 = vector.broadcast %cst_247 : f32 to vector<16x1xf32>
    %624 = arith.divf %622, %623 : vector<16x1xf32>
    %cst_248 = arith.constant 9.99999996E-13 : f32
    %625 = vector.broadcast %cst_248 : f32 to vector<16x1xf32>
    %626 = arith.addf %624, %625 : vector<16x1xf32>
    %627 = math.rsqrt %626 : vector<16x1xf32>
    %628 = vector.broadcast %627 : vector<16x1xf32> to vector<16x32xf32>
    %629 = arith.mulf %619, %628 : vector<16x32xf32>
    %630 = vector.broadcast %611 : vector<1x32xf32> to vector<16x32xf32>
    %631 = arith.mulf %629, %630 : vector<16x32xf32>
    %632 = vector.broadcast %613 : vector<1x32xf32> to vector<16x32xf32>
    %633 = arith.addf %631, %632 : vector<16x32xf32>
    %c1_249 = arith.constant 1 : index
    %c0_250 = arith.constant 0 : index
    %c0_251 = arith.constant 0 : index
    %634 = vector.load %arg10[%c1_249, %c0_250, %c0_251] : memref<2x32x64xf32, #tpu.memory_space<vmem>>, vector<1x32x64xf32>
    %635 = vector.shape_cast %634 : vector<1x32x64xf32> to vector<32x64xf32>
    %cst_252 = arith.constant dense<0.000000e+00> : vector<16x64xf32>
    %636 = tpu.matmul %633, %635, %cst_252 {dimension_numbers = #tpu.dot_dimension_numbers<[1], [0], [0], [1], [0, 0, 1, 1], [], []>} : vector<16x32xf32>, vector<32x64xf32>, vector<16x64xf32> -> vector<16x64xf32>
    %c1_253 = arith.constant 1 : index
    %c0_254 = arith.constant 0 : index
    %c0_255 = arith.constant 0 : index
    %637 = vector.load %arg11[%c1_253, %c0_254, %c0_255] : memref<2x1x64xf32, #tpu.memory_space<vmem>>, vector<1x1x64xf32>
    %638 = vector.shape_cast %637 : vector<1x1x64xf32> to vector<1x64xf32>
    %639 = vector.broadcast %638 : vector<1x64xf32> to vector<16x64xf32>
    %640 = arith.addf %636, %639 : vector<16x64xf32>
    %cst_256 = arith.constant 5.000000e-01 : f32
    %641 = vector.broadcast %cst_256 : f32 to vector<16x64xf32>
    %642 = arith.mulf %641, %640 : vector<16x64xf32>
    %cst_257 = arith.constant 4.471500e-02 : f32
    %643 = vector.broadcast %cst_257 : f32 to vector<16x64xf32>
    %644 = arith.mulf %643, %640 : vector<16x64xf32>
    %645 = arith.mulf %644, %640 : vector<16x64xf32>
    %646 = arith.mulf %645, %640 : vector<16x64xf32>
    %647 = arith.addf %640, %646 : vector<16x64xf32>
    %cst_258 = arith.constant 0.797884583 : f32
    %648 = vector.broadcast %cst_258 : f32 to vector<16x64xf32>
    %649 = arith.mulf %648, %647 : vector<16x64xf32>
    %650 = math.tanh %649 : vector<16x64xf32>
    %cst_259 = arith.constant 1.000000e+00 : f32
    %651 = vector.broadcast %cst_259 : f32 to vector<16x64xf32>
    %652 = arith.addf %651, %650 : vector<16x64xf32>
    %653 = arith.mulf %642, %652 : vector<16x64xf32>
    %c1_260 = arith.constant 1 : index
    %c0_261 = arith.constant 0 : index
    %c0_262 = arith.constant 0 : index
    %654 = vector.load %arg12[%c1_260, %c0_261, %c0_262] : memref<2x64x32xf32, #tpu.memory_space<vmem>>, vector<1x64x32xf32>
    %655 = vector.shape_cast %654 : vector<1x64x32xf32> to vector<64x32xf32>
    %cst_263 = arith.constant dense<0.000000e+00> : vector<16x32xf32>
    %656 = tpu.matmul %653, %655, %cst_263 {dimension_numbers = #tpu.dot_dimension_numbers<[1], [0], [0], [1], [0, 0, 1, 1], [], []>} : vector<16x64xf32>, vector<64x32xf32>, vector<16x32xf32> -> vector<16x32xf32>
    %c1_264 = arith.constant 1 : index
    %c0_265 = arith.constant 0 : index
    %c0_266 = arith.constant 0 : index
    %657 = vector.load %arg13[%c1_264, %c0_265, %c0_266] : memref<2x1x32xf32, #tpu.memory_space<vmem>>, vector<1x1x32xf32>
    %658 = vector.shape_cast %657 : vector<1x1x32xf32> to vector<1x32xf32>
    %659 = vector.broadcast %658 : vector<1x32xf32> to vector<16x32xf32>
    %660 = arith.addf %656, %659 : vector<16x32xf32>
    %661 = arith.addf %660, %633 : vector<16x32xf32>
    %c1_267 = arith.constant 1 : index
    %c0_268 = arith.constant 0 : index
    %c0_269 = arith.constant 0 : index
    %662 = vector.load %arg14[%c1_267, %c0_268, %c0_269] : memref<2x1x32xf32, #tpu.memory_space<vmem>>, vector<1x1x32xf32>
    %663 = vector.shape_cast %662 : vector<1x1x32xf32> to vector<1x32xf32>
    %c1_270 = arith.constant 1 : index
    %c0_271 = arith.constant 0 : index
    %c0_272 = arith.constant 0 : index
    %664 = vector.load %arg15[%c1_270, %c0_271, %c0_272] : memref<2x1x32xf32, #tpu.memory_space<vmem>>, vector<1x1x32xf32>
    %665 = vector.shape_cast %664 : vector<1x1x32xf32> to vector<1x32xf32>
    %cst_273 = arith.constant dense<0.000000e+00> : vector<16xf32>
    %666 = vector.multi_reduction <add>, %661, %cst_273 [1] : vector<16x32xf32> to vector<16xf32>
    %667 = vector.shape_cast %666 : vector<16xf32> to vector<16x1xf32>
    %cst_274 = arith.constant 3.200000e+01 : f32
    %668 = vector.broadcast %cst_274 : f32 to vector<16x1xf32>
    %669 = arith.divf %667, %668 : vector<16x1xf32>
    %670 = vector.broadcast %669 : vector<16x1xf32> to vector<16x32xf32>
    %671 = arith.subf %661, %670 : vector<16x32xf32>
    %672 = arith.mulf %671, %671 : vector<16x32xf32>
    %cst_275 = arith.constant dense<0.000000e+00> : vector<16xf32>
    %673 = vector.multi_reduction <add>, %672, %cst_275 [1] : vector<16x32xf32> to vector<16xf32>
    %674 = vector.shape_cast %673 : vector<16xf32> to vector<16x1xf32>
    %cst_276 = arith.constant 3.200000e+01 : f32
    %675 = vector.broadcast %cst_276 : f32 to vector<16x1xf32>
    %676 = arith.divf %674, %675 : vector<16x1xf32>
    %cst_277 = arith.constant 9.99999996E-13 : f32
    %677 = vector.broadcast %cst_277 : f32 to vector<16x1xf32>
    %678 = arith.addf %676, %677 : vector<16x1xf32>
    %679 = math.rsqrt %678 : vector<16x1xf32>
    %680 = vector.broadcast %679 : vector<16x1xf32> to vector<16x32xf32>
    %681 = arith.mulf %671, %680 : vector<16x32xf32>
    %682 = vector.broadcast %663 : vector<1x32xf32> to vector<16x32xf32>
    %683 = arith.mulf %681, %682 : vector<16x32xf32>
    %684 = vector.broadcast %665 : vector<1x32xf32> to vector<16x32xf32>
    %685 = arith.addf %683, %684 : vector<16x32xf32>
    %c1_278 = arith.constant 1 : index
    %c0_279 = arith.constant 0 : index
    %c0_280 = arith.constant 0 : index
    %686 = vector.load %arg16[%c1_278, %c0_279, %c0_280] : memref<2x16x32xf32, #tpu.memory_space<vmem>>, vector<1x16x32xf32>
    %687 = vector.shape_cast %686 : vector<1x16x32xf32> to vector<16x32xf32>
    %688 = vector.shape_cast %685 : vector<16x32xf32> to vector<1x16x32xf32>
    tpu.vector_store %arg16[%c1_278, %c0_279, %c0_280], %688 {strides = array<i32>} : memref<2x16x32xf32, #tpu.memory_space<vmem>>, vector<1x16x32xf32>,
    return
  }
}

</mosaic_0001>

<bundles_post_ra>
// kernel: tpu_custom_call.1
= control target key start
LH: loop header
LB: loop body
LE: loop exit
PB: predicated region body
PF: predicated region fallthrough
CT: control target
= control target key end

     0   :  { %s31736_s0 = inlined_call_operand.hbm [shape: f32[16,32], index: 0, kind: input, shape index: {}]   ;;  %s31737_s1 = inlined_call_operand.vmem [shape: f32[2,1,8], index: 1, kind: input, shape index: {}]   ;;  %s31738_s2 = inlined_call_operand.hbm [shape: f32[4,8,8,8], index: 2, kind: input, shape index: {}]   ;;  %s31739_s3 = inlined_call_operand.hbm [shape: f32[4,8,8,8], index: 3, kind: input, shape index: {}]   ;;  %s31740_s4 = inlined_call_operand.vmem [shape: f32[2,32,96], index: 4, kind: input, shape index: {}]   ;;  %s31741_s5 = inlined_call_operand.vmem [shape: f32[2,1,96], index: 5, kind: input, shape index: {}]   ;;  %s31742_s6 = inlined_call_operand.vmem [shape: f32[2,32,32], index: 6, kind: input, shape index: {}]   ;;  %s31743_s7 = inlined_call_operand.vmem [shape: f32[2,1,32], index: 7, kind: input, shape index: {}]   ;;  %s31744_s8 = inlined_call_operand.vmem [shape: f32[2,1,32], index: 8, kind: input, shape index: {}]   ;;  %s31745_s9 = inlined_call_operand.vmem [shape: f32[2,1,32], index: 9, kind: input, shape index: {}]   ;;  %s31746_s10 = inlined_call_operand.vmem [shape: f32[2,32,64], index: 10, kind: input, shape index: {}]   ;;  %s31747_s11 = inlined_call_operand.vmem [shape: f32[2,1,64], index: 11, kind: input, shape index: {}]   ;;  %s31748_s12 = inlined_call_operand.vmem [shape: f32[2,64,32], index: 12, kind: input, shape index: {}]   ;;  %s31749_s13 = inlined_call_operand.vmem [shape: f32[2,1,32], index: 13, kind: input, shape index: {}]   ;;  %s31750_s14 = inlined_call_operand.vmem [shape: f32[2,1,32], index: 14, kind: input, shape index: {}]   ;;  %s31751_s15 = inlined_call_operand.vmem [shape: f32[2,1,32], index: 15, kind: input, shape index: {}]   ;;  %s31752_s16 = inlined_call_operand.hbm [shape: f32[2,16,32], index: 16, kind: output, shape index: {}]  }
   0x1   :  { %31764 = sst [smem:[#allocation12_spill]] %s31736_s0 }
   0x2   :  { %21 = vsyncpa [#allocation3], 0 }
   0x3   :  { %22 = vsyncpa [#allocation6], 0 }
   0x4   :  { %23 = vsyncpa [#allocation4], 0  ;;  %s28576_s21 = smov [#allocation5]   ;;  %s28577_s23 = smov [#allocation2]  }
   0x5   :  { %s43_s22 = sshll.u32 %s28576_s21, 4  ;;  %s29_s24 = sshll.u32 %s28577_s23, 4  ;;  %s44_s22 = int_to_ptr.vmem [resolvable:$true] %s43_s22  ;;  %s28681_s24 = int_to_ptr.vmem [resolvable:$true] %s29_s24 }
   0x6   :  { %s28482_s27 = scalar_lea.hbm %s31738_s2, 4096 }
   0x7   :  { %p28483_p0 = scmp.ne.s32.totalorder %s31738_s2, %s28482_s27  ;;  %p28486_p1 = scmp.lt.u32.totalorder %s28482_s27, %s31738_s2 }
   0x9   :  { %p28488_p2 = pnand %p28486_p1, %p28483_p0 }
   0xb   :  { %28491 = shalt.err (!%p28488_p2)
}
   0xc   :  { %s28492_s17 = scalar_lea.vmem %s44_s22, 4096  ;;  %p28497_p4 = scmp.lt.s32.totalorder %s44_s22, %s44_s22 }
   0xd   :  { %p28493_p3 = scmp.ne.s32.totalorder %s44_s22, %s28492_s17  ;;  %p28498_p5 = scmp.lt.s32.totalorder %s28492_s17, %s28492_s17 }
   0xf   :  { %p28499_p6 = por %p28498_p5, %p28497_p4 }
  0x11   :  { %p28500_p7 = pnand %p28499_p6, %p28493_p3 }
  0x13   :  { %28503 = shalt.err (!%p28500_p7)
}
  0x14   :  { %s31754_s18 = smov 128   ;;  %s31755_s19 = smov 8  }
  0x15   :  { %49 = dma.hbm_to_vmem [thread:$0]  %s31738_s2, 4096, %s44_s22, [#allocation6], %s31754_s18, %s31754_s18, %s31755_s19  }
  0x16   :  { %s31765_s26 = sld [smem:[#allocation12_spill]] }
  0x1c   :  { %s28504_s27 = scalar_lea.hbm %s31765_s26, 256 }
  0x1d   :  { %p28505_p8 = scmp.ne.s32.totalorder %s31765_s26, %s28504_s27  ;;  %p28508_p9 = scmp.lt.u32.totalorder %s28504_s27, %s31765_s26 }
  0x1f   :  { %p28510_p10 = pnand %p28508_p9, %p28505_p8 }
  0x21   :  { %28513 = shalt.err (!%p28510_p10)
}
  0x22   :  { %s28514_s17 = scalar_lea.vmem %s28681_s24, 256  ;;  %p28519_p12 = scmp.lt.s32.totalorder %s28681_s24, %s28681_s24 }
  0x23   :  { %p28515_p11 = scmp.ne.s32.totalorder %s28681_s24, %s28514_s17  ;;  %p28520_p13 = scmp.lt.s32.totalorder %s28514_s17, %s28514_s17 }
  0x25   :  { %p28521_p0 = por %p28520_p13, %p28519_p12 }
  0x27   :  { %p28522_p1 = pnand %p28521_p0, %p28515_p11 }
  0x29   :  { %28525 = shalt.err (!%p28522_p1)
}
  0x2a   :  { %35 = dma.hbm_to_vmem [thread:$0]  %s31765_s26, 256, %s28681_s24, [#allocation3], %s31754_s18, %s31754_s18, %s31755_s19  }
  0x2b   :  { %s28580_s20 = smov [#allocation7]   ;;  %s28526_s27 = scalar_lea.hbm %s31739_s3, 4096 }
  0x2c   :  { %s55_s21 = sshll.u32 %s28580_s20, 4  ;;  %p28527_p2 = scmp.ne.s32.totalorder %s31739_s3, %s28526_s27  ;;  %s56_s21 = int_to_ptr.vmem [resolvable:$true] %s55_s21 }
  0x2d   :  { %p28530_p3 = scmp.lt.u32.totalorder %s28526_s27, %s31739_s3 }
  0x2f   :  { %p28532_p4 = pnand %p28530_p3, %p28527_p2 }
  0x31   :  { %28535 = shalt.err (!%p28532_p4)
}
  0x32   :  { %s28536_s17 = scalar_lea.vmem %s56_s21, 4096  ;;  %p28541_p6 = scmp.lt.s32.totalorder %s56_s21, %s56_s21 }
  0x33   :  { %p28537_p5 = scmp.ne.s32.totalorder %s56_s21, %s28536_s17  ;;  %p28542_p7 = scmp.lt.s32.totalorder %s28536_s17, %s28536_s17 }
  0x35   :  { %p28543_p8 = por %p28542_p7, %p28541_p6 }
  0x37   :  { %p28544_p9 = pnand %p28543_p8, %p28537_p5 }
  0x39   :  { %28547 = shalt.err (!%p28544_p9)
}
  0x3a   :  { %61 = dma.hbm_to_vmem [thread:$0]  %s31739_s3, 4096, %s56_s21, [#allocation6], %s31754_s18, %s31754_s18, %s31755_s19  }
  0x3b   :  { %28570 = dma.done.wait [#allocation3], 256  }
  0x3c   :  { %28571 = vsyncadd [#allocation3], 4294967040 }
  0x3d   :  { %28572 = dma.done.wait [#allocation6], 8192  }
  0x3e   :  { %28573 = vsyncadd [#allocation6], 4294959104  ;;  %vm112_vm0 = vcmask 261120   ;;  %v101_v0 = vld [vmem:[%s31740_s4] sm:$0xff]  ;;  %v102_v1 = vld [vmem:[%s31740_s4 + $0x8] sm:$0xff]  ;;  %v28581_v8 = vmov 0.0   ;;  %v294_v12 = vlaneseq }
  0x3f   :  { %v103_v2 = vld [vmem:[%s31740_s4 + $0x10] sm:$0xff]  ;;  %v28236_v3 = vpack.c.bf16 %v102_v1, %v101_v0  ;;  %v104_v4 = vld [vmem:[%s31740_s4 + $0x18] sm:$0xff]  ;;  %v95_v5 = vld [vmem:[#allocation2] sm:$0xff]  ;;  %26650 = vmatprep.subr.mxu1 %v28581_v8  ;;  %vm214_vm1 = vcmask 64512   ;;  %vm28582_vm2 = vmmov 0   ;;  %s28584_s30 = smov 64  }
  0x40   :  { %v28240_v6 = vpack.c.bf16 %v104_v4, %v103_v2  ;;  %26642 = vmatprep.mubr.msk.f32.mxu0 %vm112_vm0, %v95_v5  ;;  %v96_v7 = vld [vmem:[#allocation2 + $0x8] sm:$0xff]  ;;  %v28749_v9 = vld [vmem:[#allocation5] sm:$0xff]  ;;  %26652 = vmatprep.mubr.msk.f32.mxu1 %vm28582_vm2, %v28581_v8  ;;  %v28583_v10 = vmov 1966171168   ;;  %v28758_v14 = vshrl.u32 %v294_v12, 7  ;;  %s28585_s0 = smov 96  }
  0x41   :  { %28237 = vmatprep.subr.bf16.mxu0 %v28236_v3  ;;  %26651 = vmatpush3.xpose.msk.msra.mxu1 %vm214_vm1, %v28749_v9  ;;  %v292_v11 = vunpack.c.l.s4 %v28583_v10  ;;  %v25472_v15 = vld [vmem:[%s31741_s5] ss:$0 sm:$0xff]  ;;  %v28794_v26 = vld [vmem:[#allocation5 + $0x20] sm:$0xff]  ;;  %v28826_v33 = vld [vmem:[#allocation5 + $0x8] sm:$0xff]  ;;  %vm948_vm3 = vcmask 1041409   ;;  %vm951_vm4 = vcmask 1042434  }
  0x42   :  { %28239 = vmatpush3.bf16.msra.mxu0 %v28236_v3  ;;  %26660 = vmatprep.subr.mxu1 %v28581_v8  ;;  %v28779_v23 = vld [vmem:[#allocation5 + $0x10] sm:$0xff]  ;;  %v28838_v35 = vld [vmem:[#allocation5 + $0x18] sm:$0xff]  ;;  %v28851_v37 = vld [vmem:[#allocation5 + $0x28] sm:$0xff]  ;;  %vm954_vm5 = vcmask 1043459   ;;  %vm957_vm6 = vcmask 1044484   ;;  %vm960_vm7 = vcmask 1045509  }
  0x43   :  { %28241 = vmatprep.subr.bf16.mxu0 %v28240_v6  ;;  %v293_v13 = vunpack.c.0.s8 %v292_v11  ;;  %v28807_v29 = vld [vmem:[#allocation5 + $0x30] sm:$0xff]  ;;  %v28863_v40 = vld [vmem:[#allocation5 + $0x38] sm:$0xff]  ;;  %vm963_vm8 = vcmask 1046534   ;;  %vm966_vm9 = vcmask 1047559   ;;  %s28586_s26 = smov 120   ;;  %s28587_s2 = smov 88  }
  0x44   :  { %v28889_v12 = vld [vmem:[%s31737_s1] ss:$0 sm:$0xff]  ;;  %s28588_s22 = smov 56   ;;  %s28589_s20 = smov 112   ;;  %vm12644_vm10 = vcmask 523264  }
  0x45   :  { %v28764_v17 = vsub.s32 %v293_v13, %v28758_v14  ;;  %s28590_s23 = smov 80   ;;  %s31762_s21 = smov 72  }
  0x46   :  { %28243 = vmatpush3.bf16.msra.mxu0 %v28240_v6  ;;  %s31760_s29 = smov 104   ;;  %s31758_s17 = smov 48  }
  0x47   :  { %26645 = vmatprep.subr.mxu0 %v28581_v8  ;;  %s31756_s3 = smov 40   ;;  %s31766_s27 = smov 72  }
  0x48   :  { %s31767_s28 = smov 104  }
  0x49   :  { %26643 = vmatmul.mubr.msk.f32.vlgmr.msra.gmra.mrb[0].mxu0 %vm112_vm0, %v96_v7 }
  0x4a   :  { %26647 = vmatprep.mubr.msk.f32.mxu0 %vm28582_vm2, %v28581_v8 }
 0x11c   :  { %v26644_v16 = vpop.f32.mrb[0].mxu0 }
 0x11d   :  { %v28766_v18 = vadd.f32 %v26644_v16, %v25472_v15  ;;  %v185_v19 = vpop.f32.mrb[1].mxu0 }
 0x11e   :  { %v28768_v20 = vadd.f32 %v25472_v15, %v185_v19 }
 0x120   :  { %1614 = vrot.lane.b32.xlu1 %v28768_v20, %s28584_s30  ;;  %212 = vrot.lane.b32.xlu0 %v28768_v20, %s28585_s0  ;;  %v297_v21 = vrot.slane %v28768_v20, %v28764_v17  ;;  %v290_v24 = vcombine.high %v28768_v20, %v28768_v20 }
 0x122   :  { %v28777_v22 = vrot.slane %v297_v21, %v28764_v17  ;;  %v304_v27 = vrot.slane %v290_v24, %v28764_v17  ;;  %v305_v32 = vcombine.high %v297_v21, %v297_v21  ;;  %v28895_v21 = vsub.s32 0, %v28758_v14 }
 0x124   :  { %26653 = vmatmul.mubr.msk.f32.vlgmr.msra.gmra.mrb[0].mxu1 %vm214_vm1, %v28777_v22  ;;  %v28791_v25 = vcombine.high %v28777_v22, %v28777_v22  ;;  %v28804_v28 = vrot.slane %v304_v27, %v28764_v17  ;;  %v28835_v34 = vrot.slane %v305_v32, %v28764_v17  ;;  %v306_v38 = vcombine.high %v304_v27, %v304_v27 }
 0x125   :  { %26661 = vmatpush3.xpose.msk.msra.mxu1 %vm214_vm1, %v28779_v23  ;;  %26662 = vmatprep.mubr.msk.f32.mxu1 %vm28582_vm2, %v28581_v8  ;;  %v28910_v14 = vrot.slane %v28777_v22, %v28895_v21 }
 0x126   :  { %26670 = vmatprep.subr.mxu1 %v28581_v8  ;;  %v28817_v30 = vcombine.high %v28804_v28, %v28804_v28  ;;  %v28848_v36 = vcombine.high %v28835_v34, %v28835_v34  ;;  %v28860_v39 = vrot.slane %v306_v38, %v28764_v17  ;;  %v28899_v24 = vrot.slane %v28791_v25, %v28895_v21 }
 0x128   :  { %26663 = vmatmul.mubr.msk.f32.vlgmr.msra.gmra.mrb[2].mxu1 %vm214_vm1, %v28791_v25  ;;  %v28873_v41 = vcombine.high %v28860_v39, %v28860_v39  ;;  %v28914_v25 = vld [vmem:[#allocation7] sm:$0xff]  ;;  %v28929_v22 = vrot.slane %v28848_v36, %v28895_v21 }
 0x129   :  { %26671 = vmatpush3.xpose.msk.msra.mxu1 %vm214_vm1, %v28794_v26  ;;  %26672 = vmatprep.mubr.msk.f32.mxu1 %vm28582_vm2, %v28581_v8 }
 0x12a   :  { %26680 = vmatprep.subr.mxu1 %v28581_v8 }
 0x12c   :  { %26673 = vmatmul.mubr.msk.f32.vlgmr.msra.gmra.mrb[4].mxu1 %vm214_vm1, %v28804_v28 }
 0x12d   :  { %26681 = vmatpush3.xpose.msk.msra.mxu1 %vm214_vm1, %v28807_v29  ;;  %26682 = vmatprep.mubr.msk.f32.mxu1 %vm28582_vm2, %v28581_v8 }
 0x12e   :  { %26690 = vmatprep.subr.mxu1 %v28581_v8 }
 0x130   :  { %26683 = vmatmul.mubr.msk.f32.vlgmr.msra.gmra.mrb[6].mxu1 %vm214_vm1, %v28817_v30 }
 0x131   :  { %26692 = vmatprep.mubr.msk.f32.mxu1 %vm28582_vm2, %v28581_v8  ;;  %26691 = vmatpush3.msra.mxu1 %v28914_v25 }
 0x132   :  { %26700 = vmatprep.subr.mxu1 %v28581_v8 }
 0x192   :  { %v213_v31 = vpop.permute.xlu0 %212 }
 0x193   :  { %26646 = vmatpush3.xpose.msk.msra.mxu0 %vm214_vm1, %v213_v31 }
 0x194   :  { %26655 = vmatprep.subr.mxu0 %v28581_v8 }
 0x196   :  { %26648 = vmatmul.mubr.msk.f32.vlgmr.msra.gmra.mrb[2].mxu0 %vm214_vm1, %v28768_v20 }
 0x197   :  { %26656 = vmatpush3.xpose.msk.msra.mxu0 %vm214_vm1, %v28826_v33  ;;  %26657 = vmatprep.mubr.msk.f32.mxu0 %vm28582_vm2, %v28581_v8 }
 0x198   :  { %26665 = vmatprep.subr.mxu0 %v28581_v8 }
 0x19a   :  { %26658 = vmatmul.mubr.msk.f32.vlgmr.msra.gmra.mrb[4].mxu0 %vm214_vm1, %v28835_v34 }
 0x19b   :  { %26666 = vmatpush3.xpose.msk.msra.mxu0 %vm214_vm1, %v28838_v35  ;;  %26667 = vmatprep.mubr.msk.f32.mxu0 %vm28582_vm2, %v28581_v8 }
 0x19c   :  { %26675 = vmatprep.subr.mxu0 %v28581_v8 }
 0x19e   :  { %26668 = vmatmul.mubr.msk.f32.vlgmr.msra.gmra.mrb[6].mxu0 %vm214_vm1, %v28848_v36  ;;  %v28948_v36 = vrot.slane %v28817_v30, %v28895_v21 }
 0x19f   :  { %26676 = vmatpush3.xpose.msk.msra.mxu0 %vm214_vm1, %v28851_v37  ;;  %26677 = vmatprep.mubr.msk.f32.mxu0 %vm28582_vm2, %v28581_v8 }
 0x1a0   :  { %26685 = vmatprep.subr.mxu0 %v28581_v8 }
 0x1a2   :  { %26678 = vmatmul.mubr.msk.f32.vlgmr.msra.gmra.mrb[8].mxu0 %vm214_vm1, %v28860_v39 }
 0x1a3   :  { %26686 = vmatpush3.xpose.msk.msra.mxu0 %vm214_vm1, %v28863_v40  ;;  %26687 = vmatprep.mubr.msk.f32.mxu0 %vm28582_vm2, %v28581_v8 }
 0x1a4   :  { %26695 = vmatprep.subr.mxu0 %v28581_v8 }
 0x1a6   :  { %26688 = vmatmul.mubr.msk.f32.vlgmr.msra.gmra.mrb[10].mxu0 %vm214_vm1, %v28873_v41 }
 0x1a7   :  { %26697 = vmatprep.mubr.msk.f32.mxu0 %vm28582_vm2, %v28581_v8 }
 0x1f7   :  { %v410_v42 = vpop.f32.mrb[0].mxu1 }
 0x1f8   :  { %v26654_v43 = vpop.f32.mrb[1].mxu1 }
 0x1f9   :  { %v28919_v43 = vrot.slane %v28835_v34, %v28895_v21  ;;  %v28936_v34 = vrot.slane %v28804_v28, %v28895_v21  ;;  %v28954_v28 = vrot.slane %v28873_v41, %v28895_v21 }
 0x1fb   :  { %v560_v44 = vpop.f32.mrb[2].mxu1 }
 0x1fc   :  { %v26664_v45 = vpop.f32.mrb[3].mxu1  ;;  %v950_v55 = vrot.slane %v560_v44, 6  ;;  %v28924_v44 = vld [vmem:[#allocation7 + $0x8] sm:$0xff] }
 0x1fd   :  { %26696 = vmatpush3.msra.mxu0 %v28924_v44  ;;  %v28942_v45 = vrot.slane %v28860_v39, %v28895_v21 }
 0x1fe   :  { %26705 = vmatprep.subr.mxu0 %v28581_v8 }
 0x1ff   :  { %v710_v46 = vpop.f32.mrb[4].mxu1 }
 0x200   :  { %v26674_v47 = vpop.f32.mrb[5].mxu1  ;;  %v956_v61 = vrot.slane %v710_v46, 4  ;;  %v1615_v46 = vpop.permute.xlu1 %1614 }
 0x203   :  { %v860_v48 = vpop.f32.mrb[6].mxu1 }
 0x204   :  { %v26684_v49 = vpop.f32.mrb[7].mxu1  ;;  %v962_v3 = vrot.slane %v860_v48, 2 }
 0x269   :  { %v285_v50 = vpop.f32.mrb[2].mxu0 }
 0x26a   :  { %v26649_v51 = vpop.f32.mrb[3].mxu0  ;;  %v289_v11 = vmul.f32 0.35355338, %v285_v50 }
 0x26d   :  { %v485_v52 = vpop.f32.mrb[4].mxu0 }
 0x26e   :  { %v947_v53 = vrot.slane %v485_v52, 7  ;;  %v26659_v54 = vpop.f32.mrb[5].mxu0 }
 0x26f   :  { %v28960_v54 = vld [vmem:[#allocation7 + $0x10] sm:$0xff] }
 0x270   :  { %v949_v56 = vsel %vm948_vm3, %v947_v53, %v410_v42 }
 0x271   :  { %v635_v57 = vpop.f32.mrb[6].mxu0  ;;  %v952_v58 = vsel %vm951_vm4, %v950_v55, %v949_v56  ;;  %v28964_v56 = vld [vmem:[#allocation7 + $0x18] sm:$0xff] }
 0x272   :  { %v953_v59 = vrot.slane %v635_v57, 5  ;;  %v26669_v60 = vpop.f32.mrb[7].mxu0 }
 0x274   :  { %v955_v62 = vsel %vm954_vm5, %v953_v59, %v952_v58  ;;  %v28972_v59 = vld [vmem:[#allocation7 + $0x20] sm:$0xff] }
 0x275   :  { %v785_v63 = vpop.f32.mrb[8].mxu0  ;;  %v958_v0 = vsel %vm957_vm6, %v956_v61, %v955_v62  ;;  %v28979_v61 = vld [vmem:[#allocation7 + $0x28] sm:$0xff] }
 0x276   :  { %v959_v1 = vrot.slane %v785_v63, 3  ;;  %v26679_v2 = vpop.f32.mrb[9].mxu0 }
 0x278   :  { %v961_v4 = vsel %vm960_vm7, %v959_v1, %v958_v0  ;;  %v28987_v1 = vld [vmem:[#allocation7 + $0x30] sm:$0xff] }
 0x279   :  { %v935_v5 = vpop.f32.mrb[10].mxu0  ;;  %v964_v6 = vsel %vm963_vm8, %v962_v3, %v961_v4  ;;  %v28995_v3 = vld [vmem:[#allocation7 + $0x38] sm:$0xff] }
 0x27a   :  { %v965_v7 = vrot.slane %v935_v5, 1  ;;  %v26689_v10 = vpop.f32.mrb[11].mxu0 }
 0x27c   :  { %v967_v13 = vsel %vm966_vm9, %v965_v7, %v964_v6 }
 0x27d   :  { %v969_v15 = vadd.f32 %v967_v13, %v289_v11 }
 0x27f   :  { %v976_v16 = vadd.f32 %v28889_v12, %v969_v15 }
 0x281   :  { %v977_v19 = vsel %vm214_vm1, %v976_v16, -inf }
 0x282   :  { %978 = vmax.xlane.f32.xlu0 %v977_v19 }
 0x298   :  { %1951 = vrot.lane.b32.xlu0 %v28899_v24, %s28586_s26 }
 0x30f   :  { %v979_v27 = vpop.xlane.xlu0 %978 }
 0x310   :  { %v980_v31 = vsub.f32 %v976_v16, %v979_v27 }
 0x312   :  { %v981_v32 = vmul.f32 1.442695, %v980_v31 }
 0x313   :  { %v1952_v11 = vpop.permute.xlu0 %1951 }
 0x314   :  { %28320 = vpow2.f32 %v981_v32 }
 0x31e   :  { %v28321_v38 = vpop.eup %28320 }
 0x31f   :  { %v983_v42 = vsel %vm214_vm1, %v28321_v38, 0.0 }
 0x320   :  { %984 = vadd.xlane.f32.xlu1 %v983_v42 }
 0x331   :  { %1714 = vrot.lane.b32.xlu1 %v28768_v20, %s28587_s2 }
 0x335   :  { %1712 = vrot.lane.b32.xlu1 %v28768_v20, %s28586_s26 }
 0x339   :  { %1795 = vrot.lane.b32.xlu1 %v28910_v14, %s28586_s26 }
 0x33d   :  { %1873 = vrot.lane.b32.xlu1 %v28919_v43, %s28586_s26 }
 0x341   :  { %2029 = vrot.lane.b32.xlu1 %v28929_v22, %s28586_s26 }
 0x345   :  { %2107 = vrot.lane.b32.xlu1 %v28936_v34, %s28586_s26 }
 0x349   :  { %2185 = vrot.lane.b32.xlu1 %v28942_v45, %s28586_s26 }
 0x34d   :  { %2263 = vrot.lane.b32.xlu1 %v28948_v36, %s28586_s26 }
 0x351   :  { %2341 = vrot.lane.b32.xlu1 %v28954_v28, %s28586_s26 }
 0x3ad   :  { %v985_v39 = vpop.xlane.xlu1 %984 }
 0x3ae   :  { %28322 = vrcp.f32 %v985_v39 }
 0x3b1   :  { %v1715_v47 = vpop.permute.xlu1 %1714 }
 0x3b5   :  { %v1713_v50 = vpop.permute.xlu1 %1712 }
 0x3b8   :  { %v28323_v48 = vpop.eup %28322 }
 0x3b9   :  { %v987_v49 = vmul.f32 %v28323_v48, %v28321_v38  ;;  %v1796_v41 = vpop.permute.xlu1 %1795 }
 0x3bb   :  { %v996_v30 = vrot.slane %v987_v49, %v28764_v17  ;;  %v989_v51 = vcombine.high %v987_v49, %v987_v49 }
 0x3bd   :  { %v1012_v52 = vrot.slane %v996_v30, %v28764_v17  ;;  %v1004_v53 = vcombine.high %v996_v30, %v996_v30  ;;  %v1003_v57 = vrot.slane %v989_v51, %v28764_v17  ;;  %v1874_v63 = vpop.permute.xlu1 %1873 }
 0x3bf   :  { %26693 = vmatmul.mubr.msk.f32.vlgmr.msra.gmra.mrb[8].mxu1 %vm214_vm1, %v1012_v52  ;;  %v1026_v55 = vrot.slane %v1004_v53, %v28764_v17  ;;  %v1034_v58 = vcombine.high %v1012_v52, %v1012_v52  ;;  %v1005_v62 = vcombine.high %v1003_v57, %v1003_v57  ;;  %v1019_v0 = vrot.slane %v1003_v57, %v28764_v17 }
 0x3c0   :  { %26701 = vmatpush3.msra.mxu1 %v28960_v54  ;;  %26702 = vmatprep.mubr.msk.f32.mxu1 %vm28582_vm2, %v28581_v8 }
 0x3c1   :  { %26698 = vmatmul.mubr.msk.f32.vlgmr.msra.gmra.mrb[12].mxu0 %vm214_vm1, %v1026_v55  ;;  %26710 = vmatprep.subr.mxu1 %v28581_v8  ;;  %v1036_v60 = vcombine.high %v1026_v55, %v1026_v55  ;;  %v1033_v2 = vrot.slane %v1005_v62, %v28764_v17  ;;  %v1035_v4 = vcombine.high %v1019_v0, %v1019_v0  ;;  %v2030_v5 = vpop.permute.xlu1 %2029 }
 0x3c2   :  { %26706 = vmatpush3.msra.mxu0 %v28964_v56  ;;  %26707 = vmatprep.mubr.msk.f32.mxu0 %vm28582_vm2, %v28581_v8 }
 0x3c3   :  { %26703 = vmatmul.mubr.msk.f32.vlgmr.msra.gmra.mrb[10].mxu1 %vm214_vm1, %v1034_v58  ;;  %26715 = vmatprep.subr.mxu0 %v28581_v8  ;;  %v1037_v6 = vcombine.high %v1033_v2, %v1033_v2 }
 0x3c4   :  { %26711 = vmatpush3.msra.mxu1 %v28972_v59  ;;  %26712 = vmatprep.mubr.msk.f32.mxu1 %vm28582_vm2, %v28581_v8 }
 0x3c5   :  { %26708 = vmatmul.mubr.msk.f32.vlgmr.msra.gmra.mrb[14].mxu0 %vm214_vm1, %v1036_v60  ;;  %26720 = vmatprep.subr.mxu1 %v28581_v8  ;;  %v2108_v7 = vpop.permute.xlu1 %2107 }
 0x3c6   :  { %26716 = vmatpush3.msra.mxu0 %v28979_v61  ;;  %26717 = vmatprep.mubr.msk.f32.mxu0 %vm28582_vm2, %v28581_v8 }
 0x3c7   :  { %26713 = vmatmul.mubr.msk.f32.vlgmr.msra.gmra.mrb[12].mxu1 %vm214_vm1, %v1019_v0  ;;  %26725 = vmatprep.subr.mxu0 %v28581_v8 }
 0x3c8   :  { %26721 = vmatpush3.msra.mxu1 %v28987_v1  ;;  %26722 = vmatprep.mubr.msk.f32.mxu1 %vm28582_vm2, %v28581_v8 }
 0x3c9   :  { %26718 = vmatmul.mubr.msk.f32.vlgmr.msra.gmra.mrb[16].mxu0 %vm214_vm1, %v1033_v2  ;;  %26730 = vmatprep.subr.mxu1 %v28581_v8  ;;  %v2186_v10 = vpop.permute.xlu1 %2185 }
 0x3ca   :  { %26726 = vmatpush3.msra.mxu0 %v28995_v3  ;;  %26727 = vmatprep.mubr.msk.f32.mxu0 %vm28582_vm2, %v28581_v8 }
 0x3cb   :  { %26723 = vmatmul.mubr.msk.f32.vlgmr.msra.gmra.mrb[14].mxu1 %vm214_vm1, %v1035_v4  ;;  %26735 = vmatprep.subr.mxu0 %v28581_v8 }
 0x3cc   :  { %26731 = vmatpush3.msra.mxu1 %v1615_v46  ;;  %26732 = vmatprep.mubr.msk.f32.mxu1 %vm28582_vm2, %v28581_v8 }
 0x3cd   :  { %26728 = vmatmul.mubr.msk.f32.vlgmr.msra.gmra.mrb[18].mxu0 %vm214_vm1, %v1037_v6  ;;  %26740 = vmatprep.subr.mxu1 %v28581_v8  ;;  %v2264_v13 = vpop.permute.xlu1 %2263 }
 0x3ce   :  { %26737 = vmatprep.mubr.msk.f32.mxu0 %vm28582_vm2, %v28581_v8 }
 0x3cf   :  { %26733 = vmatmul.mubr.msk.f32.vlgmr.msra.gmra.mrb[16].mxu1 %vm214_vm1, %v987_v49 }
 0x3d0   :  { %26742 = vmatprep.mubr.msk.f32.mxu1 %vm28582_vm2, %v28581_v8 }
 0x3d1   :  { %26736 = vmatpush3.xpose.msk.msra.mxu0 %vm214_vm1, %v1715_v47  ;;  %v2342_v15 = vpop.permute.xlu1 %2341 }
 0x3d2   :  { %26745 = vmatprep.subr.mxu0 %v28581_v8 }
 0x3d3   :  { %26741 = vmatpush3.xpose.msk.msra.mxu1 %vm214_vm1, %v28749_v9 }
 0x3d4   :  { %26738 = vmatmul.mubr.msk.f32.vlgmr.msra.gmra.mrb[20].mxu0 %vm214_vm1, %v1713_v50  ;;  %26750 = vmatprep.subr.mxu1 %v28581_v8 }
 0x3d5   :  { %26746 = vmatpush3.xpose.msk.msra.mxu0 %vm214_vm1, %v28826_v33  ;;  %26747 = vmatprep.mubr.msk.f32.mxu0 %vm28582_vm2, %v28581_v8 }
 0x3d6   :  { %26743 = vmatmul.mubr.msk.f32.vlgmr.msra.gmra.mrb[18].mxu1 %vm214_vm1, %v1796_v41  ;;  %26755 = vmatprep.subr.mxu0 %v28581_v8 }
 0x3d7   :  { %26751 = vmatpush3.xpose.msk.msra.mxu1 %vm214_vm1, %v28779_v23  ;;  %26752 = vmatprep.mubr.msk.f32.mxu1 %vm28582_vm2, %v28581_v8 }
 0x3d8   :  { %26748 = vmatmul.mubr.msk.f32.vlgmr.msra.gmra.mrb[22].mxu0 %vm214_vm1, %v1874_v63  ;;  %26760 = vmatprep.subr.mxu1 %v28581_v8 }
 0x3d9   :  { %26756 = vmatpush3.xpose.msk.msra.mxu0 %vm214_vm1, %v28838_v35  ;;  %26757 = vmatprep.mubr.msk.f32.mxu0 %vm28582_vm2, %v28581_v8 }
 0x3da   :  { %26753 = vmatmul.mubr.msk.f32.vlgmr.msra.gmra.mrb[20].mxu1 %vm214_vm1, %v1952_v11  ;;  %26765 = vmatprep.subr.mxu0 %v28581_v8 }
 0x3db   :  { %26761 = vmatpush3.xpose.msk.msra.mxu1 %vm214_vm1, %v28794_v26  ;;  %26762 = vmatprep.mubr.msk.f32.mxu1 %vm28582_vm2, %v28581_v8 }
 0x3dc   :  { %26758 = vmatmul.mubr.msk.f32.vlgmr.msra.gmra.mrb[24].mxu0 %vm214_vm1, %v2030_v5  ;;  %26770 = vmatprep.subr.mxu1 %v28581_v8 }
 0x3dd   :  { %26766 = vmatpush3.xpose.msk.msra.mxu0 %vm214_vm1, %v28851_v37  ;;  %26767 = vmatprep.mubr.msk.f32.mxu0 %vm28582_vm2, %v28581_v8 }
 0x3de   :  { %26763 = vmatmul.mubr.msk.f32.vlgmr.msra.gmra.mrb[22].mxu1 %vm214_vm1, %v2108_v7  ;;  %26775 = vmatprep.subr.mxu0 %v28581_v8 }
 0x3df   :  { %26771 = vmatpush3.xpose.msk.msra.mxu1 %vm214_vm1, %v28807_v29  ;;  %26772 = vmatprep.mubr.msk.f32.mxu1 %vm28582_vm2, %v28581_v8 }
 0x3e0   :  { %26768 = vmatmul.mubr.msk.f32.vlgmr.msra.gmra.mrb[26].mxu0 %vm214_vm1, %v2186_v10  ;;  %26780 = vmatprep.subr.mxu1 %v28581_v8 }
 0x3e1   :  { %26776 = vmatpush3.xpose.msk.msra.mxu0 %vm214_vm1, %v28863_v40  ;;  %26777 = vmatprep.mubr.msk.f32.mxu0 %vm28582_vm2, %v28581_v8 }
 0x3e2   :  { %26773 = vmatmul.mubr.msk.f32.vlgmr.msra.gmra.mrb[24].mxu1 %vm214_vm1, %v2264_v13  ;;  %26785 = vmatprep.subr.mxu0 %v28581_v8 }
 0x3e3   :  { %26781 = vmatpush3.msra.mxu1 %v28914_v25  ;;  %26782 = vmatprep.mubr.msk.f32.mxu1 %vm28582_vm2, %v28581_v8 }
 0x3e4   :  { %26778 = vmatmul.mubr.msk.f32.vlgmr.msra.gmra.mrb[28].mxu0 %vm214_vm1, %v2342_v15  ;;  %26790 = vmatprep.subr.mxu1 %v28581_v8 }
 0x3e5   :  { %26786 = vmatpush3.msra.mxu0 %v28924_v44  ;;  %26787 = vmatprep.mubr.msk.f32.mxu0 %vm28582_vm2, %v28581_v8 }
 0x3e6   :  { %26795 = vmatprep.subr.mxu0 %v28581_v8 }
 0x492   :  { %v1106_v16 = vpop.f32.mrb[8].mxu1 }
 0x493   :  { %v26694_v19 = vpop.f32.mrb[9].mxu1 }
 0x494   :  { %v1178_v27 = vpop.f32.mrb[12].mxu0 }
 0x495   :  { %v1625_v31 = vrot.slane %v1178_v27, 7  ;;  %v26699_v32 = vpop.f32.mrb[13].mxu0 }
 0x496   :  { %v1250_v38 = vpop.f32.mrb[10].mxu1 }
 0x497   :  { %v1626_v42 = vsel %vm948_vm3, %v1625_v31, %v1106_v16  ;;  %v1627_v46 = vrot.slane %v1250_v38, 6  ;;  %v26704_v39 = vpop.f32.mrb[11].mxu1 }
 0x498   :  { %v1322_v47 = vpop.f32.mrb[14].mxu0 }
 0x499   :  { %v1628_v48 = vsel %vm951_vm4, %v1627_v46, %v1626_v42  ;;  %v1629_v49 = vrot.slane %v1322_v47, 5  ;;  %v26709_v50 = vpop.f32.mrb[15].mxu0 }
 0x49a   :  { %v1394_v30 = vpop.f32.mrb[12].mxu1 }
 0x49b   :  { %v1630_v51 = vsel %vm954_vm5, %v1629_v49, %v1628_v48  ;;  %v1631_v52 = vrot.slane %v1394_v30, 4  ;;  %v26714_v53 = vpop.f32.mrb[13].mxu1 }
 0x49c   :  { %v1466_v41 = vpop.f32.mrb[16].mxu0 }
 0x49d   :  { %v1632_v55 = vsel %vm957_vm6, %v1631_v52, %v1630_v51  ;;  %v1633_v57 = vrot.slane %v1466_v41, 3  ;;  %v26719_v58 = vpop.f32.mrb[17].mxu0 }
 0x49e   :  { %v1538_v60 = vpop.f32.mrb[14].mxu1 }
 0x49f   :  { %v1634_v62 = vsel %vm960_vm7, %v1633_v57, %v1632_v55  ;;  %v1635_v63 = vrot.slane %v1538_v60, 2  ;;  %v26724_v0 = vpop.f32.mrb[15].mxu1 }
 0x4a0   :  { %v1610_v2 = vpop.f32.mrb[18].mxu0 }
 0x4a1   :  { %v1637_v4 = vrot.slane %v1610_v2, 1  ;;  %v26729_v5 = vpop.f32.mrb[19].mxu0  ;;  %v1636_v6 = vsel %vm963_vm8, %v1635_v63, %v1634_v62 }
 0x4a2   :  { %v1708_v7 = vpop.f32.mrb[16].mxu1 }
 0x4a3   :  { %v1638_v10 = vsel %vm966_vm9, %v1637_v4, %v1636_v6  ;;  %v26734_v11 = vpop.f32.mrb[17].mxu1 }
 0x4a4   :  { %v29080_v13 = vadd.f32 %v1708_v7, %v1638_v10 }
 0x4a7   :  { %v1786_v15 = vpop.f32.mrb[20].mxu0 }
 0x4a8   :  { %v26739_v16 = vpop.f32.mrb[21].mxu0  ;;  %v1790_v10 = vmul.f32 0.35355338, %v1786_v15 }
 0x4a9   :  { %v1865_v19 = vpop.f32.mrb[18].mxu1 }
 0x4aa   :  { %v26744_v27 = vpop.f32.mrb[19].mxu1 }
 0x4ab   :  { %v1943_v31 = vpop.f32.mrb[22].mxu0 }
 0x4ac   :  { %v2423_v32 = vrot.slane %v1943_v31, 7  ;;  %v26749_v38 = vpop.f32.mrb[23].mxu0 }
 0x4ad   :  { %v2021_v42 = vpop.f32.mrb[20].mxu1 }
 0x4ae   :  { %v2424_v46 = vsel %vm948_vm3, %v2423_v32, %v1865_v19  ;;  %v2425_v39 = vrot.slane %v2021_v42, 6  ;;  %v26754_v47 = vpop.f32.mrb[21].mxu1 }
 0x4af   :  { %v2099_v48 = vpop.f32.mrb[24].mxu0 }
 0x4b0   :  { %v2426_v49 = vsel %vm951_vm4, %v2425_v39, %v2424_v46  ;;  %v2427_v50 = vrot.slane %v2099_v48, 5  ;;  %v26759_v30 = vpop.f32.mrb[25].mxu0 }
 0x4b1   :  { %v2177_v51 = vpop.f32.mrb[22].mxu1 }
 0x4b2   :  { %v2428_v52 = vsel %vm954_vm5, %v2427_v50, %v2426_v49  ;;  %v2429_v53 = vrot.slane %v2177_v51, 4  ;;  %v26764_v41 = vpop.f32.mrb[23].mxu1 }
 0x4b3   :  { %v2255_v55 = vpop.f32.mrb[26].mxu0 }
 0x4b4   :  { %v2430_v57 = vsel %vm957_vm6, %v2429_v53, %v2428_v52  ;;  %v2431_v58 = vrot.slane %v2255_v55, 3  ;;  %v26769_v60 = vpop.f32.mrb[27].mxu0 }
 0x4b5   :  { %v2333_v62 = vpop.f32.mrb[24].mxu1 }
 0x4b6   :  { %v2432_v63 = vsel %vm960_vm7, %v2431_v58, %v2430_v57  ;;  %v2433_v0 = vrot.slane %v2333_v62, 2  ;;  %v26774_v2 = vpop.f32.mrb[25].mxu1 }
 0x4b7   :  { %v2411_v4 = vpop.f32.mrb[28].mxu0  ;;  %v97_v2 = vld [vmem:[%s31742_s6] sm:$0xff] }
 0x4b8   :  { %v2435_v5 = vrot.slane %v2411_v4, 1  ;;  %v26779_v6 = vpop.f32.mrb[29].mxu0  ;;  %v2434_v7 = vsel %vm963_vm8, %v2433_v0, %v2432_v63 }
 0x4ba   :  { %v2436_v11 = vsel %vm966_vm9, %v2435_v5, %v2434_v7 }
 0x4bb   :  { %v2438_v16 = vadd.f32 %v2436_v11, %v1790_v10 }
 0x4bd   :  { %v2439_v19 = vadd.f32 %v28889_v12, %v2438_v16 }
 0x4bf   :  { %v2440_v27 = vsel %vm214_vm1, %v2439_v19, -inf }
 0x4c0   :  { %2441 = vmax.xlane.f32.xlu0 %v2440_v27 }
 0x4d6   :  { %3077 = vrot.lane.b32.xlu0 %v28768_v20, %s28588_s22 }
 0x4da   :  { %3321 = vrot.lane.b32.xlu0 %v28768_v20, %s28589_s20 }
 0x4de   :  { %3474 = vrot.lane.b32.xlu0 %v28919_v43, %s28589_s20 }
 0x4e2   :  { %3622 = vrot.lane.b32.xlu0 %v28929_v22, %s28589_s20 }
 0x4e6   :  { %3770 = vrot.lane.b32.xlu0 %v28942_v45, %s28589_s20 }
 0x4ea   :  { %3918 = vrot.lane.b32.xlu0 %v28954_v28, %s28589_s20 }
 0x54d   :  { %v2442_v15 = vpop.xlane.xlu0 %2441 }
 0x54e   :  { %v2443_v31 = vsub.f32 %v2439_v19, %v2442_v15 }
 0x550   :  { %v2444_v32 = vmul.f32 1.442695, %v2443_v31 }
 0x551   :  { %v3078_v62 = vpop.permute.xlu0 %3077 }
 0x552   :  { %28324 = vpow2.f32 %v2444_v32 }
 0x55c   :  { %v28325_v38 = vpop.eup %28324 }
 0x55d   :  { %v2446_v42 = vsel %vm214_vm1, %v28325_v38, 0.0 }
 0x55e   :  { %2447 = vadd.xlane.f32.xlu1 %v2446_v42 }
 0x56f   :  { %3323 = vrot.lane.b32.xlu1 %v28768_v20, %s28590_s23 }
 0x573   :  { %3400 = vrot.lane.b32.xlu1 %v28910_v14, %s28589_s20 }
 0x577   :  { %3548 = vrot.lane.b32.xlu1 %v28899_v24, %s28589_s20 }
 0x57b   :  { %3696 = vrot.lane.b32.xlu1 %v28936_v34, %s28589_s20 }
 0x57f   :  { %3844 = vrot.lane.b32.xlu1 %v28948_v36, %s28589_s20 }
 0x5eb   :  { %v2448_v46 = vpop.xlane.xlu1 %2447 }
 0x5ec   :  { %28326 = vrcp.f32 %v2448_v46 }
 0x5ef   :  { %v29153_v0 = vpop.permute.xlu1 %3323 }
 0x5f3   :  { %v3401_v4 = vpop.permute.xlu1 %3400 }
 0x5f6   :  { %v28327_v39 = vpop.eup %28326 }
 0x5f7   :  { %v2450_v47 = vmul.f32 %v28327_v39, %v28325_v38  ;;  %v3549_v5 = vpop.permute.xlu1 %3548 }
 0x5f9   :  { %v2459_v48 = vrot.slane %v2450_v47, %v28764_v17  ;;  %v2452_v49 = vcombine.high %v2450_v47, %v2450_v47 }
 0x5fb   :  { %v2475_v50 = vrot.slane %v2459_v48, %v28764_v17  ;;  %v2467_v30 = vcombine.high %v2459_v48, %v2459_v48  ;;  %v2466_v52 = vrot.slane %v2452_v49, %v28764_v17 }
 0x5fd   :  { %26783 = vmatmul.mubr.msk.f32.vlgmr.msra.gmra.mrb[26].mxu1 %vm214_vm1, %v2475_v50  ;;  %v2489_v51 = vrot.slane %v2467_v30, %v28764_v17  ;;  %v2497_v53 = vcombine.high %v2475_v50, %v2475_v50  ;;  %v2468_v55 = vcombine.high %v2466_v52, %v2466_v52  ;;  %v2482_v57 = vrot.slane %v2466_v52, %v28764_v17 }
 0x5fe   :  { %26791 = vmatpush3.msra.mxu1 %v28960_v54  ;;  %26792 = vmatprep.mubr.msk.f32.mxu1 %vm28582_vm2, %v28581_v8 }
 0x5ff   :  { %26788 = vmatmul.mubr.msk.f32.vlgmr.msra.gmra.mrb[30].mxu0 %vm214_vm1, %v2489_v51  ;;  %26800 = vmatprep.subr.mxu1 %v28581_v8  ;;  %v2499_v41 = vcombine.high %v2489_v51, %v2489_v51  ;;  %v2496_v58 = vrot.slane %v2468_v55, %v28764_v17  ;;  %v2498_v60 = vcombine.high %v2482_v57, %v2482_v57  ;;  %v3322_v55 = vpop.permute.xlu0 %3321 }
 0x600   :  { %26796 = vmatpush3.msra.mxu0 %v28964_v56  ;;  %26797 = vmatprep.mubr.msk.f32.mxu0 %vm28582_vm2, %v28581_v8 }
 0x601   :  { %26793 = vmatmul.mubr.msk.f32.vlgmr.msra.gmra.mrb[28].mxu1 %vm214_vm1, %v2497_v53  ;;  %26805 = vmatprep.subr.mxu0 %v28581_v8  ;;  %v2500_v63 = vcombine.high %v2496_v58, %v2496_v58 }
 0x602   :  { %26801 = vmatpush3.msra.mxu1 %v28972_v59  ;;  %26802 = vmatprep.mubr.msk.f32.mxu1 %vm28582_vm2, %v28581_v8 }
 0x603   :  { %26798 = vmatmul.mubr.msk.f32.vlgmr.msra.gmra.mrb[32].mxu0 %vm214_vm1, %v2499_v41  ;;  %26810 = vmatprep.subr.mxu1 %v28581_v8 }
 0x604   :  { %26806 = vmatpush3.msra.mxu0 %v28979_v61  ;;  %26807 = vmatprep.mubr.msk.f32.mxu0 %vm28582_vm2, %v28581_v8 }
 0x605   :  { %26803 = vmatmul.mubr.msk.f32.vlgmr.msra.gmra.mrb[30].mxu1 %vm214_vm1, %v2482_v57  ;;  %26815 = vmatprep.subr.mxu0 %v28581_v8 }
 0x606   :  { %26811 = vmatpush3.msra.mxu1 %v28987_v1  ;;  %26812 = vmatprep.mubr.msk.f32.mxu1 %vm28582_vm2, %v28581_v8 }
 0x607   :  { %26808 = vmatmul.mubr.msk.f32.vlgmr.msra.gmra.mrb[34].mxu0 %vm214_vm1, %v2496_v58  ;;  %26820 = vmatprep.subr.mxu1 %v28581_v8 }
 0x608   :  { %26816 = vmatpush3.msra.mxu0 %v28995_v3  ;;  %26817 = vmatprep.mubr.msk.f32.mxu0 %vm28582_vm2, %v28581_v8 }
 0x609   :  { %26813 = vmatmul.mubr.msk.f32.vlgmr.msra.gmra.mrb[32].mxu1 %vm214_vm1, %v2498_v60  ;;  %26825 = vmatprep.subr.mxu0 %v28581_v8 }
 0x60a   :  { %26821 = vmatpush3.msra.mxu1 %v3078_v62  ;;  %26822 = vmatprep.mubr.msk.f32.mxu1 %vm28582_vm2, %v28581_v8 }
 0x60b   :  { %26818 = vmatmul.mubr.msk.f32.vlgmr.msra.gmra.mrb[36].mxu0 %vm214_vm1, %v2500_v63  ;;  %26830 = vmatprep.subr.mxu1 %v28581_v8 }
 0x60c   :  { %26827 = vmatprep.mubr.msk.f32.mxu0 %vm28582_vm2, %v28581_v8 }
 0x60d   :  { %26823 = vmatmul.mubr.msk.f32.vlgmr.msra.gmra.mrb[34].mxu1 %vm214_vm1, %v2450_v47 }
 0x60e   :  { %26831 = vmatpush3.msra.mxu1 %v97_v2  ;;  %26832 = vmatprep.mubr.msk.f32.mxu1 %vm28582_vm2, %v28581_v8 }
 0x60f   :  { %26840 = vmatprep.subr.mxu1 %v28581_v8 }
 0x611   :  { %26833 = vmatmul.mubr.msk.f32.vlgmr.msra.gmra.mrb[36].mxu1 %vm214_vm1, %v29080_v13  ;;  %v3697_v13 = vpop.permute.xlu1 %3696 }
 0x612   :  { %26842 = vmatprep.mubr.msk.f32.mxu1 %vm28582_vm2, %v28581_v8 }
 0x615   :  { %26841 = vmatpush3.xpose.msk.msra.mxu1 %vm214_vm1, %v28749_v9  ;;  %v3845_v9 = vpop.permute.xlu1 %3844 }
 0x616   :  { %26850 = vmatprep.subr.mxu1 %v28581_v8 }
 0x618   :  { %26843 = vmatmul.mubr.msk.f32.vlgmr.msra.gmra.mrb[38].mxu1 %vm214_vm1, %v3401_v4 }
 0x619   :  { %26851 = vmatpush3.xpose.msk.msra.mxu1 %vm214_vm1, %v28779_v23  ;;  %26852 = vmatprep.mubr.msk.f32.mxu1 %vm28582_vm2, %v28581_v8  ;;  %v98_v23 = vld [vmem:[%s31742_s6 + $0x8] sm:$0xff] }
 0x61a   :  { %26860 = vmatprep.subr.mxu1 %v28581_v8  ;;  %26826 = vmatpush3.msra.mxu0 %v98_v23 }
 0x61b   :  { %26835 = vmatprep.subr.mxu0 %v28581_v8 }
 0x61c   :  { %26853 = vmatmul.mubr.msk.f32.vlgmr.msra.gmra.mrb[40].mxu1 %vm214_vm1, %v3549_v5 }
 0x61d   :  { %26861 = vmatpush3.xpose.msk.msra.mxu1 %vm214_vm1, %v28794_v26  ;;  %26862 = vmatprep.mubr.msk.f32.mxu1 %vm28582_vm2, %v28581_v8 }
 0x61e   :  { %26870 = vmatprep.subr.mxu1 %v28581_v8 }
 0x620   :  { %26863 = vmatmul.mubr.msk.f32.vlgmr.msra.gmra.mrb[42].mxu1 %vm214_vm1, %v3697_v13  ;;  %v3475_v13 = vpop.permute.xlu0 %3474 }
 0x621   :  { %26871 = vmatpush3.xpose.msk.msra.mxu1 %vm214_vm1, %v28807_v29  ;;  %26872 = vmatprep.mubr.msk.f32.mxu1 %vm28582_vm2, %v28581_v8 }
 0x622   :  { %26880 = vmatprep.subr.mxu1 %v28581_v8 }
 0x624   :  { %26873 = vmatmul.mubr.msk.f32.vlgmr.msra.gmra.mrb[44].mxu1 %vm214_vm1, %v3845_v9  ;;  %v3623_v23 = vpop.permute.xlu0 %3622 }
 0x625   :  { %26881 = vmatpush3.msra.mxu1 %v28914_v25  ;;  %26882 = vmatprep.mubr.msk.f32.mxu1 %vm28582_vm2, %v28581_v8 }
 0x626   :  { %26890 = vmatprep.subr.mxu1 %v28581_v8 }
 0x6d0   :  { %v2569_v26 = vpop.f32.mrb[26].mxu1 }
 0x6d1   :  { %v26784_v29 = vpop.f32.mrb[27].mxu1 }
 0x6d2   :  { %v2641_v6 = vpop.f32.mrb[30].mxu0 }
 0x6d3   :  { %v3088_v7 = vrot.slane %v2641_v6, 7  ;;  %v26789_v10 = vpop.f32.mrb[31].mxu0  ;;  %v3771_v6 = vpop.permute.xlu0 %3770 }
 0x6d4   :  { %v2713_v11 = vpop.f32.mrb[28].mxu1 }
 0x6d5   :  { %v3089_v25 = vsel %vm948_vm3, %v3088_v7, %v2569_v26  ;;  %v3090_v16 = vrot.slane %v2713_v11, 6  ;;  %v26794_v19 = vpop.f32.mrb[29].mxu1 }
 0x6d6   :  { %v2785_v27 = vpop.f32.mrb[32].mxu0 }
 0x6d7   :  { %v3091_v15 = vsel %vm951_vm4, %v3090_v16, %v3089_v25  ;;  %v3092_v31 = vrot.slane %v2785_v27, 5  ;;  %v26799_v32 = vpop.f32.mrb[33].mxu0  ;;  %v3919_v10 = vpop.permute.xlu0 %3918 }
 0x6d8   :  { %v2857_v38 = vpop.f32.mrb[30].mxu1 }
 0x6d9   :  { %v3093_v42 = vsel %vm954_vm5, %v3092_v31, %v3091_v15  ;;  %v3094_v46 = vrot.slane %v2857_v38, 4  ;;  %v26804_v39 = vpop.f32.mrb[31].mxu1 }
 0x6da   :  { %v2929_v47 = vpop.f32.mrb[34].mxu0 }
 0x6db   :  { %v3095_v48 = vsel %vm957_vm6, %v3094_v46, %v3093_v42  ;;  %v3096_v49 = vrot.slane %v2929_v47, 3  ;;  %v26809_v50 = vpop.f32.mrb[35].mxu0 }
 0x6dc   :  { %v3001_v30 = vpop.f32.mrb[32].mxu1 }
 0x6dd   :  { %v3097_v51 = vsel %vm960_vm7, %v3096_v49, %v3095_v48  ;;  %v3098_v52 = vrot.slane %v3001_v30, 2  ;;  %v26814_v53 = vpop.f32.mrb[33].mxu1 }
 0x6de   :  { %v3073_v41 = vpop.f32.mrb[36].mxu0 }
 0x6df   :  { %v3100_v57 = vrot.slane %v3073_v41, 1  ;;  %v26819_v58 = vpop.f32.mrb[37].mxu0  ;;  %v3099_v60 = vsel %vm963_vm8, %v3098_v52, %v3097_v51 }
 0x6e0   :  { %v3171_v62 = vpop.f32.mrb[34].mxu1 }
 0x6e1   :  { %v3101_v63 = vsel %vm966_vm9, %v3100_v57, %v3099_v60  ;;  %v26824_v2 = vpop.f32.mrb[35].mxu1 }
 0x6e2   :  { %v3172_v4 = vadd.f32 %v3171_v62, %v3101_v63 }
 0x6e4   :  { %26828 = vmatmul.mubr.msk.f32.vlgmr.msra.gmra.mrb[38].mxu0 %vm214_vm1, %v3172_v4  ;;  %v3317_v5 = vpop.f32.mrb[36].mxu1 }
 0x6e5   :  { %26836 = vmatpush3.xpose.msk.msra.mxu0 %vm214_vm1, %v29153_v0  ;;  %v26834_v9 = vpop.f32.mrb[37].mxu1  ;;  %26837 = vmatprep.mubr.msk.f32.mxu0 %vm28582_vm2, %v28581_v8 }
 0x6e6   :  { %26845 = vmatprep.subr.mxu0 %v28581_v8 }
 0x6e8   :  { %26838 = vmatmul.mubr.msk.f32.vlgmr.msra.gmra.mrb[40].mxu0 %vm214_vm1, %v3322_v55 }
 0x6e9   :  { %26846 = vmatpush3.xpose.msk.msra.mxu0 %vm214_vm1, %v28826_v33  ;;  %26847 = vmatprep.mubr.msk.f32.mxu0 %vm28582_vm2, %v28581_v8 }
 0x6ea   :  { %26855 = vmatprep.subr.mxu0 %v28581_v8 }
 0x6eb   :  { %v3470_v26 = vpop.f32.mrb[38].mxu1 }
 0x6ec   :  { %v26844_v29 = vpop.f32.mrb[39].mxu1  ;;  %26848 = vmatmul.mubr.msk.f32.vlgmr.msra.gmra.mrb[42].mxu0 %vm214_vm1, %v3475_v13 }
 0x6ed   :  { %26856 = vmatpush3.xpose.msk.msra.mxu0 %vm214_vm1, %v28838_v35  ;;  %26857 = vmatprep.mubr.msk.f32.mxu0 %vm28582_vm2, %v28581_v8 }
 0x6ee   :  { %26865 = vmatprep.subr.mxu0 %v28581_v8 }
 0x6ef   :  { %v3618_v0 = vpop.f32.mrb[40].mxu1 }
 0x6f0   :  { %v26854_v33 = vpop.f32.mrb[41].mxu1  ;;  %26858 = vmatmul.mubr.msk.f32.vlgmr.msra.gmra.mrb[44].mxu0 %vm214_vm1, %v3623_v23  ;;  %v4002_v38 = vrot.slane %v3618_v0, 6 }
 0x6f1   :  { %26866 = vmatpush3.xpose.msk.msra.mxu0 %vm214_vm1, %v28851_v37  ;;  %26867 = vmatprep.mubr.msk.f32.mxu0 %vm28582_vm2, %v28581_v8 }
 0x6f2   :  { %26875 = vmatprep.subr.mxu0 %v28581_v8 }
 0x6f3   :  { %v3766_v7 = vpop.f32.mrb[42].mxu1 }
 0x6f4   :  { %v26864_v35 = vpop.f32.mrb[43].mxu1  ;;  %26868 = vmatmul.mubr.msk.f32.vlgmr.msra.gmra.mrb[46].mxu0 %vm214_vm1, %v3771_v6  ;;  %v4006_v49 = vrot.slane %v3766_v7, 4 }
 0x6f5   :  { %26876 = vmatpush3.xpose.msk.msra.mxu0 %vm214_vm1, %v28863_v40  ;;  %26877 = vmatprep.mubr.msk.f32.mxu0 %vm28582_vm2, %v28581_v8 }
 0x6f6   :  { %26885 = vmatprep.subr.mxu0 %v28581_v8 }
 0x6f7   :  { %v3914_v11 = vpop.f32.mrb[44].mxu1 }
 0x6f8   :  { %v26874_v37 = vpop.f32.mrb[45].mxu1  ;;  %26878 = vmatmul.mubr.msk.f32.vlgmr.msra.gmra.mrb[48].mxu0 %vm214_vm1, %v3919_v10  ;;  %v4010_v41 = vrot.slane %v3914_v11, 2  ;;  %v28408_v11 = vld [vmem:[#allocation5 + $0x8] sm:$0xff] }
 0x6f9   :  { %26886 = vmatpush3.msra.mxu0 %v28924_v44  ;;  %26887 = vmatprep.mubr.msk.f32.mxu0 %vm28582_vm2, %v28581_v8 }
 0x6fa   :  { %26895 = vmatprep.subr.mxu0 %v28581_v8 }
 0x7b7   :  { %v3244_v25 = vpop.f32.mrb[38].mxu0 }
 0x7b8   :  { %v26829_v16 = vpop.f32.mrb[39].mxu0  ;;  %v29242_v40 = vadd.f32 %v3317_v5, %v3244_v25  ;;  %v28409_v25 = vld [vmem:[#allocation5 + $0x18] sm:$0xff] }
 0x7bb   :  { %v3395_v19 = vpop.f32.mrb[40].mxu0 }
 0x7bc   :  { %v26839_v27 = vpop.f32.mrb[41].mxu0  ;;  %v3399_v63 = vmul.f32 0.35355338, %v3395_v19  ;;  %v28410_v19 = vld [vmem:[#allocation5 + $0x28] sm:$0xff] }
 0x7bd   :  { %v28411_v27 = vld [vmem:[#allocation5 + $0x38] sm:$0xff] }
 0x7bf   :  { %v3544_v15 = vpop.f32.mrb[42].mxu0 }
 0x7c0   :  { %v4000_v31 = vrot.slane %v3544_v15, 7  ;;  %v26849_v32 = vpop.f32.mrb[43].mxu0 }
 0x7c2   :  { %v4001_v42 = vsel %vm948_vm3, %v4000_v31, %v3470_v26  ;;  %v99_v31 = vld [vmem:[%s31742_s6 + $0x10] sm:$0xff] }
 0x7c3   :  { %v3692_v46 = vpop.f32.mrb[44].mxu0  ;;  %v4003_v39 = vsel %vm951_vm4, %v4002_v38, %v4001_v42 }
 0x7c4   :  { %v4004_v47 = vrot.slane %v3692_v46, 5  ;;  %v26859_v48 = vpop.f32.mrb[45].mxu0 }
 0x7c6   :  { %v4005_v50 = vsel %vm954_vm5, %v4004_v47, %v4003_v39 }
 0x7c7   :  { %v3840_v30 = vpop.f32.mrb[46].mxu0  ;;  %v4007_v51 = vsel %vm957_vm6, %v4006_v49, %v4005_v50 }
 0x7c8   :  { %v4008_v52 = vrot.slane %v3840_v30, 3  ;;  %v26869_v53 = vpop.f32.mrb[47].mxu0 }
 0x7ca   :  { %v4009_v55 = vsel %vm960_vm7, %v4008_v52, %v4007_v51 }
 0x7cb   :  { %v3988_v57 = vpop.f32.mrb[48].mxu0  ;;  %v4011_v58 = vsel %vm963_vm8, %v4010_v41, %v4009_v55 }
 0x7cc   :  { %v4012_v60 = vrot.slane %v3988_v57, 1  ;;  %v26879_v62 = vpop.f32.mrb[49].mxu0 }
 0x7ce   :  { %v4013_v2 = vsel %vm966_vm9, %v4012_v60, %v4011_v58 }
 0x7cf   :  { %v4015_v4 = vadd.f32 %v4013_v2, %v3399_v63 }
 0x7d1   :  { %v4016_v5 = vadd.f32 %v28889_v12, %v4015_v4 }
 0x7d3   :  { %v4017_v13 = vsel %vm214_vm1, %v4016_v5, -inf }
 0x7d4   :  { %4018 = vmax.xlane.f32.xlu1 %v4017_v13 }
 0x7e5   :  { %4828 = vrot.lane.b32.xlu1 %v28768_v20, %s31762_s21 }
 0x7e9   :  { %4826 = vrot.lane.b32.xlu1 %v28768_v20, %s31760_s29 }
 0x7ed   :  { %4979 = vrot.lane.b32.xlu1 %v28919_v43, %s31760_s29 }
 0x7f1   :  { %5127 = vrot.lane.b32.xlu1 %v28929_v22, %s31760_s29 }
 0x7f5   :  { %5275 = vrot.lane.b32.xlu1 %v28942_v45, %s31760_s29 }
 0x7f9   :  { %5423 = vrot.lane.b32.xlu1 %v28954_v28, %s31760_s29 }
 0x861   :  { %v4019_v12 = vpop.xlane.xlu1 %4018 }
 0x862   :  { %v4020_v9 = vsub.f32 %v4016_v5, %v4019_v12 }
 0x864   :  { %v4021_v23 = vmul.f32 1.442695, %v4020_v9 }
 0x866   :  { %28328 = vpow2.f32 %v4021_v23 }
 0x870   :  { %v28329_v26 = vpop.eup %28328 }
 0x871   :  { %v4023_v29 = vsel %vm214_vm1, %v28329_v26, 0.0 }
 0x872   :  { %4024 = vadd.xlane.f32.xlu0 %v4023_v29 }
 0x888   :  { %4654 = vrot.lane.b32.xlu0 %v28768_v20, %s31758_s17 }
 0x88c   :  { %4905 = vrot.lane.b32.xlu0 %v28910_v14, %s31760_s29 }
 0x890   :  { %5053 = vrot.lane.b32.xlu0 %v28899_v24, %s31760_s29 }
 0x894   :  { %5201 = vrot.lane.b32.xlu0 %v28936_v34, %s31760_s29 }
 0x898   :  { %5349 = vrot.lane.b32.xlu0 %v28948_v36, %s31760_s29 }
 0x8ff   :  { %v4025_v43 = vpop.xlane.xlu0 %4024 }
 0x900   :  { %28330 = vrcp.f32 %v4025_v43 }
 0x90a   :  { %v28331_v22 = vpop.eup %28330 }
 0x90b   :  { %v4027_v45 = vmul.f32 %v28331_v22, %v28329_v26 }
 0x90d   :  { %v4036_v28 = vrot.slane %v4027_v45, %v28764_v17  ;;  %v4029_v0 = vcombine.high %v4027_v45, %v4027_v45 }
 0x90f   :  { %v4052_v33 = vrot.slane %v4036_v28, %v28764_v17  ;;  %v4044_v6 = vcombine.high %v4036_v28, %v4036_v28  ;;  %v4043_v14 = vrot.slane %v4029_v0, %v28764_v17  ;;  %v28412_v0 = vld [vmem:[#allocation5] sm:$0xff] }
 0x911   :  { %26883 = vmatmul.mubr.msk.f32.vlgmr.msra.gmra.mrb[46].mxu1 %vm214_vm1, %v4052_v33  ;;  %v4066_v24 = vrot.slane %v4044_v6, %v28764_v17  ;;  %v4074_v34 = vcombine.high %v4052_v33, %v4052_v33  ;;  %v4045_v7 = vcombine.high %v4043_v14, %v4043_v14 }
 0x912   :  { %26891 = vmatpush3.msra.mxu1 %v28960_v54  ;;  %26892 = vmatprep.mubr.msk.f32.mxu1 %vm28582_vm2, %v28581_v8  ;;  %v4059_v54 = vrot.slane %v4043_v14, %v28764_v17  ;;  %v28413_v14 = vld [vmem:[#allocation5 + $0x10] sm:$0xff] }
 0x913   :  { %26888 = vmatmul.mubr.msk.f32.vlgmr.msra.gmra.mrb[50].mxu0 %vm214_vm1, %v4066_v24  ;;  %26900 = vmatprep.subr.mxu1 %v28581_v8  ;;  %v4076_v36 = vcombine.high %v4066_v24, %v4066_v24  ;;  %v4073_v35 = vrot.slane %v4045_v7, %v28764_v17 }
 0x914   :  { %26896 = vmatpush3.msra.mxu0 %v28964_v56  ;;  %26897 = vmatprep.mubr.msk.f32.mxu0 %vm28582_vm2, %v28581_v8  ;;  %v4829_v56 = vpop.permute.xlu1 %4828 }
 0x915   :  { %26893 = vmatmul.mubr.msk.f32.vlgmr.msra.gmra.mrb[48].mxu1 %vm214_vm1, %v4074_v34  ;;  %26905 = vmatprep.subr.mxu0 %v28581_v8  ;;  %v4077_v10 = vcombine.high %v4073_v35, %v4073_v35 }
 0x916   :  { %26901 = vmatpush3.msra.mxu1 %v28972_v59  ;;  %26902 = vmatprep.mubr.msk.f32.mxu1 %vm28582_vm2, %v28581_v8  ;;  %v4075_v59 = vcombine.high %v4059_v54, %v4059_v54 }
 0x917   :  { %26898 = vmatmul.mubr.msk.f32.vlgmr.msra.gmra.mrb[52].mxu0 %vm214_vm1, %v4076_v36  ;;  %26910 = vmatprep.subr.mxu1 %v28581_v8 }
 0x918   :  { %26906 = vmatpush3.msra.mxu0 %v28979_v61  ;;  %26907 = vmatprep.mubr.msk.f32.mxu0 %vm28582_vm2, %v28581_v8  ;;  %v4655_v61 = vpop.permute.xlu0 %4654 }
 0x919   :  { %26903 = vmatmul.mubr.msk.f32.vlgmr.msra.gmra.mrb[50].mxu1 %vm214_vm1, %v4059_v54  ;;  %26915 = vmatprep.subr.mxu0 %v28581_v8  ;;  %v28414_v54 = vld [vmem:[#allocation5 + $0x20] sm:$0xff] }
 0x91a   :  { %26911 = vmatpush3.msra.mxu1 %v28987_v1  ;;  %26912 = vmatprep.mubr.msk.f32.mxu1 %vm28582_vm2, %v28581_v8  ;;  %v4827_v1 = vpop.permute.xlu1 %4826 }
 0x91b   :  { %26908 = vmatmul.mubr.msk.f32.vlgmr.msra.gmra.mrb[54].mxu0 %vm214_vm1, %v4073_v35  ;;  %26920 = vmatprep.subr.mxu1 %v28581_v8 }
 0x91c   :  { %26916 = vmatpush3.msra.mxu0 %v28995_v3  ;;  %26917 = vmatprep.mubr.msk.f32.mxu0 %vm28582_vm2, %v28581_v8  ;;  %v4906_v43 = vpop.permute.xlu0 %4905 }
 0x91d   :  { %26913 = vmatmul.mubr.msk.f32.vlgmr.msra.gmra.mrb[52].mxu1 %vm214_vm1, %v4075_v59  ;;  %26925 = vmatprep.subr.mxu0 %v28581_v8  ;;  %v28415_v59 = vld [vmem:[#allocation5 + $0x30] sm:$0xff] }
 0x91e   :  { %26921 = vmatpush3.msra.mxu1 %v4655_v61  ;;  %26922 = vmatprep.mubr.msk.f32.mxu1 %vm28582_vm2, %v28581_v8  ;;  %v4980_v3 = vpop.permute.xlu1 %4979 }
 0x91f   :  { %26918 = vmatmul.mubr.msk.f32.vlgmr.msra.gmra.mrb[56].mxu0 %vm214_vm1, %v4077_v10  ;;  %26930 = vmatprep.subr.mxu1 %v28581_v8 }
 0x920   :  { %26927 = vmatprep.mubr.msk.f32.mxu0 %vm28582_vm2, %v28581_v8  ;;  %26926 = vmatpush3.msra.mxu0 %v99_v31  ;;  %v5054_v33 = vpop.permute.xlu0 %5053 }
 0x921   :  { %26923 = vmatmul.mubr.msk.f32.vlgmr.msra.gmra.mrb[54].mxu1 %vm214_vm1, %v4027_v45  ;;  %26935 = vmatprep.subr.mxu0 %v28581_v8 }
 0x922   :  { %26932 = vmatprep.mubr.msk.f32.mxu1 %vm28582_vm2, %v28581_v8  ;;  %v5128_v37 = vpop.permute.xlu1 %5127 }
 0x924   :  { %v5202_v7 = vpop.permute.xlu0 %5201 }
 0x925   :  { %26931 = vmatpush3.xpose.msk.msra.mxu1 %vm214_vm1, %v4829_v56 }
 0x926   :  { %26940 = vmatprep.subr.mxu1 %v28581_v8  ;;  %v5276_v16 = vpop.permute.xlu1 %5275 }
 0x928   :  { %26933 = vmatmul.mubr.msk.f32.vlgmr.msra.gmra.mrb[56].mxu1 %vm214_vm1, %v4827_v1  ;;  %v5350_v61 = vpop.permute.xlu0 %5349 }
 0x929   :  { %26941 = vmatpush3.xpose.msk.msra.mxu1 %vm214_vm1, %v28408_v11  ;;  %26942 = vmatprep.mubr.msk.f32.mxu1 %vm28582_vm2, %v28581_v8 }
 0x92a   :  { %26950 = vmatprep.subr.mxu1 %v28581_v8  ;;  %v5424_v15 = vpop.permute.xlu1 %5423 }
 0x92c   :  { %26943 = vmatmul.mubr.msk.f32.vlgmr.msra.gmra.mrb[58].mxu1 %vm214_vm1, %v4980_v3  ;;  %v28416_v3 = vld [vmem:[#allocation7] sm:$0xff] }
 0x92d   :  { %26951 = vmatpush3.xpose.msk.msra.mxu1 %vm214_vm1, %v28409_v25  ;;  %26952 = vmatprep.mubr.msk.f32.mxu1 %vm28582_vm2, %v28581_v8 }
 0x92e   :  { %26960 = vmatprep.subr.mxu1 %v28581_v8 }
 0x930   :  { %26953 = vmatmul.mubr.msk.f32.vlgmr.msra.gmra.mrb[60].mxu1 %vm214_vm1, %v5128_v37 }
 0x931   :  { %26961 = vmatpush3.xpose.msk.msra.mxu1 %vm214_vm1, %v28410_v19  ;;  %26962 = vmatprep.mubr.msk.f32.mxu1 %vm28582_vm2, %v28581_v8 }
 0x932   :  { %26970 = vmatprep.subr.mxu1 %v28581_v8 }
 0x934   :  { %26963 = vmatmul.mubr.msk.f32.vlgmr.msra.gmra.mrb[62].mxu1 %vm214_vm1, %v5276_v16 }
 0x935   :  { %26971 = vmatpush3.xpose.msk.msra.mxu1 %vm214_vm1, %v28411_v27  ;;  %26972 = vmatprep.mubr.msk.f32.mxu1 %vm28582_vm2, %v28581_v8 }
 0x936   :  { %26980 = vmatprep.subr.mxu1 %v28581_v8 }
 0x938   :  { %26973 = vmatmul.mubr.msk.f32.vlgmr.msra.gmra.mrb[64].mxu1 %vm214_vm1, %v5424_v15 }
 0x939   :  { %26981 = vmatpush3.msra.mxu1 %v28924_v44  ;;  %26982 = vmatprep.mubr.msk.f32.mxu1 %vm28582_vm2, %v28581_v8 }
 0x93a   :  { %26990 = vmatprep.subr.mxu1 %v28581_v8 }
 0x9e4   :  { %v4146_v32 = vpop.f32.mrb[46].mxu1 }
 0x9e5   :  { %v26884_v38 = vpop.f32.mrb[47].mxu1 }
 0x9e6   :  { %v4218_v42 = vpop.f32.mrb[50].mxu0 }
 0x9e7   :  { %v4665_v46 = vrot.slane %v4218_v42, 7  ;;  %v26889_v39 = vpop.f32.mrb[51].mxu0 }
 0x9e8   :  { %v4290_v47 = vpop.f32.mrb[48].mxu1 }
 0x9e9   :  { %v4666_v44 = vsel %vm948_vm3, %v4665_v46, %v4146_v32  ;;  %v4667_v48 = vrot.slane %v4290_v47, 6  ;;  %v26894_v49 = vpop.f32.mrb[49].mxu1 }
 0x9ea   :  { %v4362_v50 = vpop.f32.mrb[52].mxu0 }
 0x9eb   :  { %v4668_v30 = vsel %vm951_vm4, %v4667_v48, %v4666_v44  ;;  %v4669_v51 = vrot.slane %v4362_v50, 5  ;;  %v26899_v52 = vpop.f32.mrb[53].mxu0 }
 0x9ec   :  { %v4434_v53 = vpop.f32.mrb[50].mxu1 }
 0x9ed   :  { %v4670_v41 = vsel %vm954_vm5, %v4669_v51, %v4668_v30  ;;  %v4671_v55 = vrot.slane %v4434_v53, 4  ;;  %v26904_v57 = vpop.f32.mrb[51].mxu1 }
 0x9ee   :  { %v4506_v58 = vpop.f32.mrb[54].mxu0 }
 0x9ef   :  { %v4672_v60 = vsel %vm957_vm6, %v4671_v55, %v4670_v41  ;;  %v4673_v62 = vrot.slane %v4506_v58, 3  ;;  %v26909_v63 = vpop.f32.mrb[55].mxu0 }
 0x9f0   :  { %v4578_v2 = vpop.f32.mrb[52].mxu1  ;;  %v28417_v63 = vld [vmem:[%s31737_s1] ss:$0 sm:$0xff] }
 0x9f1   :  { %v4675_v4 = vrot.slane %v4578_v2, 2  ;;  %v26914_v5 = vpop.f32.mrb[53].mxu1  ;;  %v4674_v13 = vsel %vm960_vm7, %v4673_v62, %v4672_v60 }
 0x9f2   :  { %v4650_v12 = vpop.f32.mrb[56].mxu0 }
 0x9f3   :  { %v4677_v9 = vrot.slane %v4650_v12, 1  ;;  %v26919_v23 = vpop.f32.mrb[57].mxu0  ;;  %v4676_v26 = vsel %vm963_vm8, %v4675_v4, %v4674_v13 }
 0x9f4   :  { %v4748_v29 = vpop.f32.mrb[54].mxu1 }
 0x9f5   :  { %v4678_v22 = vsel %vm966_vm9, %v4677_v9, %v4676_v26  ;;  %v26924_v45 = vpop.f32.mrb[55].mxu1 }
 0x9f6   :  { %v4749_v28 = vadd.f32 %v4748_v29, %v4678_v22 }
 0x9f8   :  { %26928 = vmatmul.mubr.msk.f32.vlgmr.msra.gmra.mrb[58].mxu0 %vm214_vm1, %v4749_v28 }
 0x9f9   :  { %26936 = vmatpush3.xpose.msk.msra.mxu0 %vm214_vm1, %v28412_v0  ;;  %26937 = vmatprep.mubr.msk.f32.mxu0 %vm28582_vm2, %v28581_v8 }
 0x9fa   :  { %26945 = vmatprep.subr.mxu0 %v28581_v8 }
 0x9fb   :  { %v4900_v6 = vpop.f32.mrb[56].mxu1 }
 0x9fc   :  { %v26934_v24 = vpop.f32.mrb[57].mxu1  ;;  %26938 = vmatmul.mubr.msk.f32.vlgmr.msra.gmra.mrb[60].mxu0 %vm214_vm1, %v4906_v43  ;;  %v4904_v57 = vmul.f32 0.35355338, %v4900_v6  ;;  %v28418_v6 = vld [vmem:[#allocation7 + $0x10] sm:$0xff] }
 0x9fd   :  { %26946 = vmatpush3.xpose.msk.msra.mxu0 %vm214_vm1, %v28413_v14  ;;  %26947 = vmatprep.mubr.msk.f32.mxu0 %vm28582_vm2, %v28581_v8  ;;  %v28419_v14 = vld [vmem:[#allocation7 + $0x18] sm:$0xff] }
 0x9fe   :  { %26955 = vmatprep.subr.mxu0 %v28581_v8 }
 0x9ff   :  { %v5049_v34 = vpop.f32.mrb[58].mxu1 }
 0xa00   :  { %v26944_v36 = vpop.f32.mrb[59].mxu1  ;;  %26948 = vmatmul.mubr.msk.f32.vlgmr.msra.gmra.mrb[62].mxu0 %vm214_vm1, %v5054_v33  ;;  %v5505_v27 = vrot.slane %v5049_v34, 7 }
 0xa01   :  { %26956 = vmatpush3.xpose.msk.msra.mxu0 %vm214_vm1, %v28414_v54  ;;  %26957 = vmatprep.mubr.msk.f32.mxu0 %vm28582_vm2, %v28581_v8 }
 0xa02   :  { %26965 = vmatprep.subr.mxu0 %v28581_v8 }
 0xa03   :  { %v5197_v56 = vpop.f32.mrb[60].mxu1 }
 0xa04   :  { %v26954_v35 = vpop.f32.mrb[61].mxu1  ;;  %26958 = vmatmul.mubr.msk.f32.vlgmr.msra.gmra.mrb[64].mxu0 %vm214_vm1, %v5202_v7  ;;  %v5509_v39 = vrot.slane %v5197_v56, 5  ;;  %v28420_v7 = vld [vmem:[#allocation7 + $0x20] sm:$0xff]  ;;  %v28421_v56 = vld [vmem:[#allocation7 + $0x28] sm:$0xff] }
 0xa05   :  { %26966 = vmatpush3.xpose.msk.msra.mxu0 %vm214_vm1, %v28415_v59  ;;  %26967 = vmatprep.mubr.msk.f32.mxu0 %vm28582_vm2, %v28581_v8  ;;  %v28422_v59 = vld [vmem:[#allocation7 + $0x30] sm:$0xff] }
 0xa06   :  { %26975 = vmatprep.subr.mxu0 %v28581_v8 }
 0xa07   :  { %v5345_v10 = vpop.f32.mrb[62].mxu1 }
 0xa08   :  { %v26964_v1 = vpop.f32.mrb[63].mxu1  ;;  %26968 = vmatmul.mubr.msk.f32.vlgmr.msra.gmra.mrb[66].mxu0 %vm214_vm1, %v5350_v61  ;;  %v5513_v30 = vrot.slane %v5345_v10, 3  ;;  %v28423_v10 = vld [vmem:[#allocation7 + $0x38] sm:$0xff] }
 0xa09   :  { %26976 = vmatpush3.msra.mxu0 %v28416_v3  ;;  %26977 = vmatprep.mubr.msk.f32.mxu0 %vm28582_vm2, %v28581_v8 }
 0xa0a   :  { %26985 = vmatprep.subr.mxu0 %v28581_v8 }
 0xa0b   :  { %v5493_v11 = vpop.f32.mrb[64].mxu1 }
 0xa0c   :  { %v26974_v37 = vpop.f32.mrb[65].mxu1  ;;  %v5517_v55 = vrot.slane %v5493_v11, 1  ;;  %v29445_v11 = vrot.slane %v28766_v18, %v28764_v17 }
 0xacb   :  { %v4821_v25 = vpop.f32.mrb[58].mxu0 }
 0xacc   :  { %v29385_v16 = vadd.f32 %v4821_v25, %v29242_v40  ;;  %v26929_v19 = vpop.f32.mrb[59].mxu0  ;;  %v29449_v25 = vld [vmem:[#allocation5 + $0x48] sm:$0xff] }
 0xacd   :  { %v6444_v19 = vcombine.high %v29445_v11, %v29445_v11 }
 0xacf   :  { %v4975_v15 = vpop.f32.mrb[60].mxu0 }
 0xad0   :  { %v5506_v31 = vsel %vm948_vm3, %v5505_v27, %v4975_v15  ;;  %v26939_v32 = vpop.f32.mrb[61].mxu0  ;;  %v6429_v27 = vcombine.high %v28766_v18, %v28766_v18  ;;  %v29462_v15 = vrot.slane %v6444_v19, %v28764_v17 }
 0xad2   :  { %v29468_v32 = vrot.slane %v6429_v27, %v28764_v17 }
 0xad3   :  { %v5123_v38 = vpop.f32.mrb[62].mxu0 }
 0xad4   :  { %v5507_v42 = vrot.slane %v5123_v38, 6  ;;  %v26949_v46 = vpop.f32.mrb[63].mxu0  ;;  %v29478_v38 = vcombine.high %v29462_v15, %v29462_v15 }
 0xad5   :  { %v6445_v46 = vcombine.high %v29468_v32, %v29468_v32 }
 0xad6   :  { %v5508_v47 = vsel %vm951_vm4, %v5507_v42, %v5506_v31  ;;  %v29465_v31 = vld [vmem:[#allocation5 + $0x58] sm:$0xff]  ;;  %v29481_v42 = vld [vmem:[#allocation5 + $0x68] sm:$0xff] }
 0xad7   :  { %v5271_v44 = vpop.f32.mrb[64].mxu0  ;;  %v5510_v48 = vsel %vm954_vm5, %v5509_v39, %v5508_v47  ;;  %v29492_v39 = vrot.slane %v6445_v46, %v28764_v17  ;;  %v29495_v47 = vld [vmem:[#allocation5 + $0x78] sm:$0xff] }
 0xad8   :  { %v5511_v49 = vrot.slane %v5271_v44, 4  ;;  %v26959_v50 = vpop.f32.mrb[65].mxu0 }
 0xad9   :  { %v29505_v44 = vcombine.high %v29492_v39, %v29492_v39 }
 0xada   :  { %v5512_v40 = vsel %vm957_vm6, %v5511_v49, %v5510_v48  ;;  %v100_v48 = vld [vmem:[%s31742_s6 + $0x18] sm:$0xff] }
 0xadb   :  { %v5419_v51 = vpop.f32.mrb[66].mxu0  ;;  %v5514_v52 = vsel %vm960_vm7, %v5513_v30, %v5512_v40 }
 0xadc   :  { %v5515_v53 = vrot.slane %v5419_v51, 2  ;;  %v26969_v41 = vpop.f32.mrb[67].mxu0 }
 0xade   :  { %v5516_v58 = vsel %vm963_vm8, %v5515_v53, %v5514_v52 }
 0xadf   :  { %v5518_v60 = vsel %vm966_vm9, %v5517_v55, %v5516_v58 }
 0xae0   :  { %v5520_v62 = vadd.f32 %v5518_v60, %v4904_v57 }
 0xae2   :  { %v5521_v2 = vadd.f32 %v28417_v63, %v5520_v62 }
 0xae4   :  { %v5522_v4 = vsel %vm214_vm1, %v5521_v2, -inf }
 0xae5   :  { %5523 = vmax.xlane.f32.xlu0 %v5522_v4 }
 0xafb   :  { %6159 = vrot.lane.b32.xlu0 %v28768_v20, %s31756_s3 }
 0xb72   :  { %v5524_v5 = vpop.xlane.xlu0 %5523 }
 0xb73   :  { %v5525_v13 = vsub.f32 %v5521_v2, %v5524_v5 }
 0xb75   :  { %v5526_v12 = vmul.f32 1.442695, %v5525_v13 }
 0xb76   :  { %v6160_v1 = vpop.permute.xlu0 %6159 }
 0xb77   :  { %28332 = vpow2.f32 %v5526_v12 }
 0xb81   :  { %v28333_v9 = vpop.eup %28332 }
 0xb82   :  { %v5528_v23 = vsel %vm214_vm1, %v28333_v9, 0.0 }
 0xb83   :  { %5529 = vadd.xlane.f32.xlu1 %v5528_v23 }
 0xb94   :  { %6352 = vrot.lane.b32.xlu1 %v28766_v18, %s28585_s0 }
 0xc10   :  { %v5530_v26 = vpop.xlane.xlu1 %5529 }
 0xc11   :  { %28334 = vrcp.f32 %v5530_v26 }
 0xc14   :  { %v6353_v37 = vpop.permute.xlu1 %6352 }
 0xc1b   :  { %v28335_v29 = vpop.eup %28334 }
 0xc1c   :  { %v5532_v43 = vmul.f32 %v28335_v29, %v28333_v9 }
 0xc1e   :  { %v5541_v22 = vrot.slane %v5532_v43, %v28764_v17  ;;  %v5534_v45 = vcombine.high %v5532_v43, %v5532_v43 }
 0xc20   :  { %v5557_v20 = vrot.slane %v5541_v22, %v28764_v17  ;;  %v5549_v28 = vcombine.high %v5541_v22, %v5541_v22  ;;  %v5548_v33 = vrot.slane %v5534_v45, %v28764_v17 }
 0xc22   :  { %26978 = vmatmul.mubr.msk.f32.vlgmr.msra.gmra.mrb[68].mxu0 %vm214_vm1, %v5557_v20  ;;  %v5571_v0 = vrot.slane %v5549_v28, %v28764_v17  ;;  %v5579_v24 = vcombine.high %v5557_v20, %v5557_v20  ;;  %v5550_v36 = vcombine.high %v5548_v33, %v5548_v33  ;;  %v5564_v54 = vrot.slane %v5548_v33, %v28764_v17 }
 0xc23   :  { %26986 = vmatpush3.msra.mxu0 %v28418_v6  ;;  %26987 = vmatprep.mubr.msk.f32.mxu0 %vm28582_vm2, %v28581_v8 }
 0xc24   :  { %26983 = vmatmul.mubr.msk.f32.vlgmr.msra.gmra.mrb[66].mxu1 %vm214_vm1, %v5571_v0  ;;  %26995 = vmatprep.subr.mxu0 %v28581_v8  ;;  %v5581_v34 = vcombine.high %v5571_v0, %v5571_v0  ;;  %v5578_v35 = vrot.slane %v5550_v36, %v28764_v17  ;;  %v5580_v61 = vcombine.high %v5564_v54, %v5564_v54 }
 0xc25   :  { %26991 = vmatpush3.msra.mxu1 %v28419_v14  ;;  %26992 = vmatprep.mubr.msk.f32.mxu1 %vm28582_vm2, %v28581_v8  ;;  %v29532_v36 = vrot.slane %v29445_v11, %v28764_v17 }
 0xc26   :  { %26988 = vmatmul.mubr.msk.f32.vlgmr.msra.gmra.mrb[70].mxu0 %vm214_vm1, %v5579_v24  ;;  %27000 = vmatprep.subr.mxu1 %v28581_v8  ;;  %v5582_v3 = vcombine.high %v5578_v35, %v5578_v35 }
 0xc27   :  { %26996 = vmatpush3.msra.mxu0 %v28420_v7  ;;  %26997 = vmatprep.mubr.msk.f32.mxu0 %vm28582_vm2, %v28581_v8  ;;  %v29535_v7 = vld [vmem:[#allocation5 + $0x50] sm:$0xff] }
 0xc28   :  { %26993 = vmatmul.mubr.msk.f32.vlgmr.msra.gmra.mrb[68].mxu1 %vm214_vm1, %v5581_v34  ;;  %27005 = vmatprep.subr.mxu0 %v28581_v8  ;;  %v29523_v34 = vld [vmem:[#allocation5 + $0x40] sm:$0xff] }
 0xc29   :  { %27001 = vmatpush3.msra.mxu1 %v28421_v56  ;;  %27002 = vmatprep.mubr.msk.f32.mxu1 %vm28582_vm2, %v28581_v8 }
 0xc2a   :  { %26998 = vmatmul.mubr.msk.f32.vlgmr.msra.gmra.mrb[72].mxu0 %vm214_vm1, %v5564_v54  ;;  %27010 = vmatprep.subr.mxu1 %v28581_v8 }
 0xc2b   :  { %27006 = vmatpush3.msra.mxu0 %v28422_v59  ;;  %27007 = vmatprep.mubr.msk.f32.mxu0 %vm28582_vm2, %v28581_v8  ;;  %v29548_v59 = vld [vmem:[#allocation5 + $0x60] sm:$0xff] }
 0xc2c   :  { %27003 = vmatmul.mubr.msk.f32.vlgmr.msra.gmra.mrb[70].mxu1 %vm214_vm1, %v5578_v35  ;;  %27015 = vmatprep.subr.mxu0 %v28581_v8  ;;  %v29545_v35 = vcombine.high %v29532_v36, %v29532_v36 }
 0xc2d   :  { %27011 = vmatpush3.msra.mxu1 %v28423_v10  ;;  %27012 = vmatprep.mubr.msk.f32.mxu1 %vm28582_vm2, %v28581_v8 }
 0xc2e   :  { %27008 = vmatmul.mubr.msk.f32.vlgmr.msra.gmra.mrb[74].mxu0 %vm214_vm1, %v5580_v61  ;;  %27020 = vmatprep.subr.mxu1 %v28581_v8 }
 0xc2f   :  { %27016 = vmatpush3.msra.mxu0 %v6160_v1  ;;  %27017 = vmatprep.mubr.msk.f32.mxu0 %vm28582_vm2, %v28581_v8  ;;  %v29558_v1 = vrot.slane %v29468_v32, %v28764_v17 }
 0xc30   :  { %27013 = vmatmul.mubr.msk.f32.vlgmr.msra.gmra.mrb[72].mxu1 %vm214_vm1, %v5582_v3  ;;  %27025 = vmatprep.subr.mxu0 %v28581_v8  ;;  %v29561_v3 = vld [vmem:[#allocation5 + $0x70] sm:$0xff] }
 0xc31   :  { %27022 = vmatprep.mubr.msk.f32.mxu1 %vm28582_vm2, %v28581_v8  ;;  %27021 = vmatpush3.msra.mxu1 %v100_v48  ;;  %v29571_v19 = vcombine.high %v29558_v1, %v29558_v1 }
 0xc32   :  { %27018 = vmatmul.mubr.msk.f32.vlgmr.msra.gmra.mrb[76].mxu0 %vm214_vm1, %v5532_v43  ;;  %27030 = vmatprep.subr.mxu1 %v28581_v8 }
 0xc33   :  { %27027 = vmatprep.mubr.msk.f32.mxu0 %vm28582_vm2, %v28581_v8 }
 0xc36   :  { %27026 = vmatpush3.xpose.msk.msra.mxu0 %vm214_vm1, %v6353_v37 }
 0xc37   :  { %27035 = vmatprep.subr.mxu0 %v28581_v8 }
 0xc39   :  { %27028 = vmatmul.mubr.msk.f32.vlgmr.msra.gmra.mrb[78].mxu0 %vm214_vm1, %v28766_v18 }
 0xc3a   :  { %27036 = vmatpush3.xpose.msk.msra.mxu0 %vm214_vm1, %v29449_v25  ;;  %27037 = vmatprep.mubr.msk.f32.mxu0 %vm28582_vm2, %v28581_v8 }
 0xc3b   :  { %27045 = vmatprep.subr.mxu0 %v28581_v8 }
 0xc3d   :  { %27038 = vmatmul.mubr.msk.f32.vlgmr.msra.gmra.mrb[80].mxu0 %vm214_vm1, %v29462_v15 }
 0xc3e   :  { %27046 = vmatpush3.xpose.msk.msra.mxu0 %vm214_vm1, %v29465_v31  ;;  %27047 = vmatprep.mubr.msk.f32.mxu0 %vm28582_vm2, %v28581_v8 }
 0xc3f   :  { %27055 = vmatprep.subr.mxu0 %v28581_v8 }
 0xc41   :  { %27048 = vmatmul.mubr.msk.f32.vlgmr.msra.gmra.mrb[82].mxu0 %vm214_vm1, %v29478_v38 }
 0xc42   :  { %27056 = vmatpush3.xpose.msk.msra.mxu0 %vm214_vm1, %v29481_v42  ;;  %27057 = vmatprep.mubr.msk.f32.mxu0 %vm28582_vm2, %v28581_v8 }
 0xc43   :  { %27065 = vmatprep.subr.mxu0 %v28581_v8 }
 0xc45   :  { %27058 = vmatmul.mubr.msk.f32.vlgmr.msra.gmra.mrb[84].mxu0 %vm214_vm1, %v29492_v39 }
 0xc46   :  { %27066 = vmatpush3.xpose.msk.msra.mxu0 %vm214_vm1, %v29495_v47  ;;  %27067 = vmatprep.mubr.msk.f32.mxu0 %vm28582_vm2, %v28581_v8 }
 0xc47   :  { %27075 = vmatprep.subr.mxu0 %v28581_v8 }
 0xc49   :  { %27068 = vmatmul.mubr.msk.f32.vlgmr.msra.gmra.mrb[86].mxu0 %vm214_vm1, %v29505_v44 }
 0xc4a   :  { %27077 = vmatprep.mubr.msk.f32.mxu0 %vm28582_vm2, %v28581_v8 }
 0xcf5   :  { %v5651_v49 = vpop.f32.mrb[68].mxu0 }
 0xcf6   :  { %v26979_v50 = vpop.f32.mrb[69].mxu0 }
 0xcf7   :  { %v5723_v30 = vpop.f32.mrb[66].mxu1 }
 0xcf8   :  { %v6170_v40 = vrot.slane %v5723_v30, 7  ;;  %v26984_v51 = vpop.f32.mrb[67].mxu1 }
 0xcf9   :  { %v5795_v52 = vpop.f32.mrb[70].mxu0 }
 0xcfa   :  { %v6171_v53 = vsel %vm948_vm3, %v6170_v40, %v5651_v49  ;;  %v6172_v41 = vrot.slane %v5795_v52, 6  ;;  %v26989_v55 = vpop.f32.mrb[71].mxu0 }
 0xcfb   :  { %v5867_v57 = vpop.f32.mrb[68].mxu1 }
 0xcfc   :  { %v6173_v58 = vsel %vm951_vm4, %v6172_v41, %v6171_v53  ;;  %v6174_v60 = vrot.slane %v5867_v57, 5  ;;  %v26994_v62 = vpop.f32.mrb[69].mxu1 }
 0xcfd   :  { %v5939_v63 = vpop.f32.mrb[72].mxu0 }
 0xcfe   :  { %v6175_v2 = vsel %vm954_vm5, %v6174_v60, %v6173_v58  ;;  %v6176_v4 = vrot.slane %v5939_v63, 4  ;;  %v26999_v5 = vpop.f32.mrb[73].mxu0 }
 0xcff   :  { %v6011_v13 = vpop.f32.mrb[70].mxu1 }
 0xd00   :  { %v6177_v12 = vsel %vm957_vm6, %v6176_v4, %v6175_v2  ;;  %v6178_v9 = vrot.slane %v6011_v13, 3  ;;  %v27004_v23 = vpop.f32.mrb[71].mxu1 }
 0xd01   :  { %v6083_v26 = vpop.f32.mrb[74].mxu0 }
 0xd02   :  { %v6179_v29 = vsel %vm960_vm7, %v6178_v9, %v6177_v12  ;;  %v6180_v43 = vrot.slane %v6083_v26, 2  ;;  %v27009_v22 = vpop.f32.mrb[75].mxu0 }
 0xd03   :  { %v6155_v45 = vpop.f32.mrb[72].mxu1  ;;  %v29590_v22 = vld [vmem:[%s31737_s1 + $0x1] ss:$0 sm:$0xff] }
 0xd04   :  { %v6182_v20 = vrot.slane %v6155_v45, 1  ;;  %v27014_v28 = vpop.f32.mrb[73].mxu1  ;;  %v6181_v0 = vsel %vm963_vm8, %v6180_v43, %v6179_v29 }
 0xd05   :  { %v6253_v33 = vpop.f32.mrb[76].mxu0 }
 0xd06   :  { %v6183_v6 = vsel %vm966_vm9, %v6182_v20, %v6181_v0  ;;  %v27019_v24 = vpop.f32.mrb[77].mxu0 }
 0xd07   :  { %v6254_v14 = vadd.f32 %v6253_v33, %v6183_v6  ;;  %v29601_v33 = vrot.slane %v29462_v15, %v28895_v21  ;;  %v29607_v6 = vrot.slane %v29478_v38, %v28895_v21  ;;  %v29613_v24 = vrot.slane %v29492_v39, %v28895_v21 }
 0xd08   :  { %v29619_v15 = vrot.slane %v29505_v44, %v28895_v21  ;;  %v29628_v39 = vrot.slane %v29532_v36, %v28895_v21  ;;  %v29634_v44 = vrot.slane %v29545_v35, %v28895_v21 }
 0xd09   :  { %27023 = vmatmul.mubr.msk.f32.vlgmr.msra.gmra.mrb[74].mxu1 %vm214_vm1, %v6254_v14 }
 0xd0a   :  { %27031 = vmatpush3.xpose.msk.msra.mxu1 %vm214_vm1, %v29523_v34  ;;  %27032 = vmatprep.mubr.msk.f32.mxu1 %vm28582_vm2, %v28581_v8 }
 0xd0b   :  { %27040 = vmatprep.subr.mxu1 %v28581_v8 }
 0xd0c   :  { %v6424_v54 = vpop.f32.mrb[78].mxu0 }
 0xd0d   :  { %v27029_v56 = vpop.f32.mrb[79].mxu0  ;;  %27033 = vmatmul.mubr.msk.f32.vlgmr.msra.gmra.mrb[76].mxu1 %vm214_vm1, %v29532_v36  ;;  %v6428_v29 = vmul.f32 0.35355338, %v6424_v54  ;;  %v29648_v36 = vld [vmem:[#allocation7 + $0x48] sm:$0xff] }
 0xd0e   :  { %27041 = vmatpush3.xpose.msk.msra.mxu1 %vm214_vm1, %v29535_v7  ;;  %27042 = vmatprep.mubr.msk.f32.mxu1 %vm28582_vm2, %v28581_v8 }
 0xd0f   :  { %27050 = vmatprep.subr.mxu1 %v28581_v8  ;;  %27076 = vmatpush3.msra.mxu0 %v29648_v36 }
 0xd10   :  { %v6624_v61 = vpop.f32.mrb[80].mxu0  ;;  %27085 = vmatprep.subr.mxu0 %v28581_v8 }
 0xd11   :  { %v27039_v10 = vpop.f32.mrb[81].mxu0  ;;  %27043 = vmatmul.mubr.msk.f32.vlgmr.msra.gmra.mrb[78].mxu1 %vm214_vm1, %v29545_v35  ;;  %v7086_v40 = vrot.slane %v6624_v61, 7  ;;  %v29653_v35 = vrot.slane %v29571_v19, %v28895_v21 }
 0xd12   :  { %27051 = vmatpush3.xpose.msk.msra.mxu1 %vm214_vm1, %v29548_v59  ;;  %27052 = vmatprep.mubr.msk.f32.mxu1 %vm28582_vm2, %v28581_v8  ;;  %v29638_v10 = vld [vmem:[#allocation7 + $0x40] sm:$0xff] }
 0xd13   :  { %27060 = vmatprep.subr.mxu1 %v28581_v8 }
 0xd14   :  { %v6774_v11 = vpop.f32.mrb[82].mxu0 }
 0xd15   :  { %v27049_v37 = vpop.f32.mrb[83].mxu0  ;;  %27053 = vmatmul.mubr.msk.f32.vlgmr.msra.gmra.mrb[80].mxu1 %vm214_vm1, %v29558_v1  ;;  %v7090_v58 = vrot.slane %v6774_v11, 5  ;;  %v29643_v11 = vrot.slane %v29558_v1, %v28895_v21 }
 0xd16   :  { %27061 = vmatpush3.xpose.msk.msra.mxu1 %vm214_vm1, %v29561_v3  ;;  %27062 = vmatprep.mubr.msk.f32.mxu1 %vm28582_vm2, %v28581_v8 }
 0xd17   :  { %27070 = vmatprep.subr.mxu1 %v28581_v8 }
 0xd18   :  { %v6924_v27 = vpop.f32.mrb[84].mxu0 }
 0xd19   :  { %v27059_v32 = vpop.f32.mrb[85].mxu0  ;;  %27063 = vmatmul.mubr.msk.f32.vlgmr.msra.gmra.mrb[82].mxu1 %vm214_vm1, %v29571_v19  ;;  %v7094_v5 = vrot.slane %v6924_v27, 3 }
 0xd1a   :  { %27072 = vmatprep.mubr.msk.f32.mxu1 %vm28582_vm2, %v28581_v8  ;;  %27071 = vmatpush3.msra.mxu1 %v29638_v10 }
 0xd1b   :  { %27080 = vmatprep.subr.mxu1 %v28581_v8 }
 0xd1c   :  { %v7074_v46 = vpop.f32.mrb[86].mxu0 }
 0xd1d   :  { %v27069_v48 = vpop.f32.mrb[87].mxu0  ;;  %v7098_v26 = vrot.slane %v7074_v46, 1 }
 0xddc   :  { %v6326_v49 = vpop.f32.mrb[74].mxu1 }
 0xddd   :  { %v29579_v50 = vadd.f32 %v6326_v49, %v29385_v16  ;;  %v27024_v30 = vpop.f32.mrb[75].mxu1 }
 0xdde   :  { %v29660_v30 = vld [vmem:[#allocation7 + $0x50] sm:$0xff] }
 0xde0   :  { %v6549_v51 = vpop.f32.mrb[76].mxu1 }
 0xde1   :  { %v7087_v52 = vsel %vm948_vm3, %v7086_v40, %v6549_v51  ;;  %v27034_v53 = vpop.f32.mrb[77].mxu1  ;;  %v29664_v40 = vld [vmem:[#allocation7 + $0x58] sm:$0xff] }
 0xde2   :  { %v29672_v53 = vld [vmem:[#allocation7 + $0x60] sm:$0xff] }
 0xde4   :  { %v6699_v41 = vpop.f32.mrb[78].mxu1 }
 0xde5   :  { %v7088_v55 = vrot.slane %v6699_v41, 6  ;;  %v27044_v57 = vpop.f32.mrb[79].mxu1 }
 0xde7   :  { %v7089_v60 = vsel %vm951_vm4, %v7088_v55, %v7087_v52  ;;  %v29679_v55 = vld [vmem:[#allocation7 + $0x68] sm:$0xff] }
 0xde8   :  { %v6849_v62 = vpop.f32.mrb[80].mxu1  ;;  %v7091_v63 = vsel %vm954_vm5, %v7090_v58, %v7089_v60 }
 0xde9   :  { %v7092_v2 = vrot.slane %v6849_v62, 4  ;;  %v27054_v4 = vpop.f32.mrb[81].mxu1  ;;  %v29687_v62 = vld [vmem:[#allocation7 + $0x70] sm:$0xff] }
 0xdeb   :  { %v7093_v16 = vsel %vm957_vm6, %v7092_v2, %v7091_v63  ;;  %v29695_v2 = vld [vmem:[#allocation7 + $0x78] sm:$0xff] }
 0xdec   :  { %v6999_v13 = vpop.f32.mrb[82].mxu1  ;;  %v7095_v12 = vsel %vm960_vm7, %v7094_v5, %v7093_v16 }
 0xded   :  { %v7096_v9 = vrot.slane %v6999_v13, 2  ;;  %v27064_v23 = vpop.f32.mrb[83].mxu1 }
 0xdef   :  { %v7097_v43 = vsel %vm963_vm8, %v7096_v9, %v7095_v12 }
 0xdf0   :  { %v7099_v45 = vsel %vm966_vm9, %v7098_v26, %v7097_v43 }
 0xdf1   :  { %v7101_v20 = vadd.f32 %v7099_v45, %v6428_v29 }
 0xdf3   :  { %v7108_v28 = vadd.f32 %v29590_v22, %v7101_v20 }
 0xdf5   :  { %v7109_v0 = vsel %vm214_vm1, %v7108_v28, -inf }
 0xdf6   :  { %7110 = vmax.xlane.f32.xlu0 %v7109_v0 }
 0xe0c   :  { %7746 = vrot.lane.b32.xlu0 %v28766_v18, %s28584_s30 }
 0xe10   :  { %7844 = vrot.lane.b32.xlu0 %v28766_v18, %s28586_s26 }
 0xe14   :  { %8005 = vrot.lane.b32.xlu0 %v29601_v33, %s28586_s26 }
 0xe18   :  { %8161 = vrot.lane.b32.xlu0 %v29607_v6, %s28586_s26 }
 0xe1c   :  { %8317 = vrot.lane.b32.xlu0 %v29613_v24, %s28586_s26 }
 0xe20   :  { %8473 = vrot.lane.b32.xlu0 %v29619_v15, %s28586_s26 }
 0xe83   :  { %v7111_v14 = vpop.xlane.xlu0 %7110 }
 0xe84   :  { %v7112_v38 = vsub.f32 %v7108_v28, %v7111_v14 }
 0xe86   :  { %v7113_v54 = vmul.f32 1.442695, %v7112_v38 }
 0xe87   :  { %v7747_v58 = vpop.permute.xlu0 %7746 }
 0xe88   :  { %28336 = vpow2.f32 %v7113_v54 }
 0xe8b   :  { %v7845_v16 = vpop.permute.xlu0 %7844 }
 0xe8f   :  { %v8006_v9 = vpop.permute.xlu0 %8005 }
 0xe92   :  { %v28337_v56 = vpop.eup %28336 }
 0xe93   :  { %v7115_v61 = vsel %vm214_vm1, %v28337_v56, 0.0  ;;  %v8162_v26 = vpop.permute.xlu0 %8161 }
 0xe94   :  { %7116 = vadd.xlane.f32.xlu1 %v7115_v61 }
 0xe97   :  { %v8318_v43 = vpop.permute.xlu0 %8317 }
 0xe9b   :  { %v8474_v20 = vpop.permute.xlu0 %8473 }
 0xea5   :  { %7846 = vrot.lane.b32.xlu1 %v28766_v18, %s28587_s2 }
 0xea9   :  { %7927 = vrot.lane.b32.xlu1 %v29628_v39, %s28586_s26 }
 0xead   :  { %8083 = vrot.lane.b32.xlu1 %v29634_v44, %s28586_s26 }
 0xeb1   :  { %8239 = vrot.lane.b32.xlu1 %v29643_v11, %s28586_s26 }
 0xeb5   :  { %8395 = vrot.lane.b32.xlu1 %v29653_v35, %s28586_s26 }
 0xf21   :  { %v7117_v1 = vpop.xlane.xlu1 %7116 }
 0xf22   :  { %28338 = vrcp.f32 %v7117_v1 }
 0xf25   :  { %v7847_v4 = vpop.permute.xlu1 %7846 }
 0xf29   :  { %v7928_v12 = vpop.permute.xlu1 %7927 }
 0xf2c   :  { %v28339_v37 = vpop.eup %28338 }
 0xf2d   :  { %v7119_v27 = vmul.f32 %v28339_v37, %v28337_v56  ;;  %v8084_v23 = vpop.permute.xlu1 %8083 }
 0xf2f   :  { %v7128_v32 = vrot.slane %v7119_v27, %v28764_v17  ;;  %v7121_v46 = vcombine.high %v7119_v27, %v7119_v27 }
 0xf31   :  { %v7144_v48 = vrot.slane %v7128_v32, %v28764_v17  ;;  %v7136_v49 = vcombine.high %v7128_v32, %v7128_v32  ;;  %v7135_v51 = vrot.slane %v7121_v46, %v28764_v17  ;;  %v8240_v29 = vpop.permute.xlu1 %8239 }
 0xf33   :  { %27073 = vmatmul.mubr.msk.f32.vlgmr.msra.gmra.mrb[84].mxu1 %vm214_vm1, %v7144_v48  ;;  %v7158_v19 = vrot.slane %v7136_v49, %v28764_v17  ;;  %v7166_v52 = vcombine.high %v7144_v48, %v7144_v48  ;;  %v7137_v57 = vcombine.high %v7135_v51, %v7135_v51  ;;  %v7151_v60 = vrot.slane %v7135_v51, %v28764_v17 }
 0xf34   :  { %27081 = vmatpush3.msra.mxu1 %v29660_v30  ;;  %27082 = vmatprep.mubr.msk.f32.mxu1 %vm28582_vm2, %v28581_v8 }
 0xf35   :  { %27078 = vmatmul.mubr.msk.f32.vlgmr.msra.gmra.mrb[88].mxu0 %vm214_vm1, %v7158_v19  ;;  %27090 = vmatprep.subr.mxu1 %v28581_v8  ;;  %v7168_v41 = vcombine.high %v7158_v19, %v7158_v19  ;;  %v7165_v63 = vrot.slane %v7137_v57, %v28764_v17  ;;  %v7167_v5 = vcombine.high %v7151_v60, %v7151_v60  ;;  %v8396_v45 = vpop.permute.xlu1 %8395 }
 0xf36   :  { %27086 = vmatpush3.msra.mxu0 %v29664_v40  ;;  %27087 = vmatprep.mubr.msk.f32.mxu0 %vm28582_vm2, %v28581_v8 }
 0xf37   :  { %27083 = vmatmul.mubr.msk.f32.vlgmr.msra.gmra.mrb[86].mxu1 %vm214_vm1, %v7166_v52  ;;  %27095 = vmatprep.subr.mxu0 %v28581_v8  ;;  %v7169_v13 = vcombine.high %v7165_v63, %v7165_v63 }
 0xf38   :  { %27091 = vmatpush3.msra.mxu1 %v29672_v53  ;;  %27092 = vmatprep.mubr.msk.f32.mxu1 %vm28582_vm2, %v28581_v8 }
 0xf39   :  { %27088 = vmatmul.mubr.msk.f32.vlgmr.msra.gmra.mrb[90].mxu0 %vm214_vm1, %v7168_v41  ;;  %27100 = vmatprep.subr.mxu1 %v28581_v8 }
 0xf3a   :  { %27096 = vmatpush3.msra.mxu0 %v29679_v55  ;;  %27097 = vmatprep.mubr.msk.f32.mxu0 %vm28582_vm2, %v28581_v8 }
 0xf3b   :  { %27093 = vmatmul.mubr.msk.f32.vlgmr.msra.gmra.mrb[88].mxu1 %vm214_vm1, %v7151_v60  ;;  %27105 = vmatprep.subr.mxu0 %v28581_v8 }
 0xf3c   :  { %27101 = vmatpush3.msra.mxu1 %v29687_v62  ;;  %27102 = vmatprep.mubr.msk.f32.mxu1 %vm28582_vm2, %v28581_v8 }
 0xf3d   :  { %27098 = vmatmul.mubr.msk.f32.vlgmr.msra.gmra.mrb[92].mxu0 %vm214_vm1, %v7165_v63  ;;  %27110 = vmatprep.subr.mxu1 %v28581_v8 }
 0xf3e   :  { %27106 = vmatpush3.msra.mxu0 %v29695_v2  ;;  %27107 = vmatprep.mubr.msk.f32.mxu0 %vm28582_vm2, %v28581_v8 }
 0xf3f   :  { %27103 = vmatmul.mubr.msk.f32.vlgmr.msra.gmra.mrb[90].mxu1 %vm214_vm1, %v7167_v5  ;;  %27115 = vmatprep.subr.mxu0 %v28581_v8 }
 0xf40   :  { %27111 = vmatpush3.msra.mxu1 %v7747_v58  ;;  %27112 = vmatprep.mubr.msk.f32.mxu1 %vm28582_vm2, %v28581_v8 }
 0xf41   :  { %27108 = vmatmul.mubr.msk.f32.vlgmr.msra.gmra.mrb[94].mxu0 %vm214_vm1, %v7169_v13  ;;  %27120 = vmatprep.subr.mxu1 %v28581_v8 }
 0xf42   :  { %27117 = vmatprep.mubr.msk.f32.mxu0 %vm28582_vm2, %v28581_v8 }
 0xf43   :  { %27113 = vmatmul.mubr.msk.f32.vlgmr.msra.gmra.mrb[92].mxu1 %vm214_vm1, %v7119_v27 }
 0xf44   :  { %27122 = vmatprep.mubr.msk.f32.mxu1 %vm28582_vm2, %v28581_v8 }
 0xf45   :  { %27116 = vmatpush3.xpose.msk.msra.mxu0 %vm214_vm1, %v7847_v4 }
 0xf46   :  { %27125 = vmatprep.subr.mxu0 %v28581_v8 }
 0xf47   :  { %27121 = vmatpush3.xpose.msk.msra.mxu1 %vm214_vm1, %v29523_v34 }
 0xf48   :  { %27118 = vmatmul.mubr.msk.f32.vlgmr.msra.gmra.mrb[96].mxu0 %vm214_vm1, %v7845_v16  ;;  %27130 = vmatprep.subr.mxu1 %v28581_v8 }
 0xf49   :  { %27126 = vmatpush3.xpose.msk.msra.mxu0 %vm214_vm1, %v29449_v25  ;;  %27127 = vmatprep.mubr.msk.f32.mxu0 %vm28582_vm2, %v28581_v8 }
 0xf4a   :  { %27123 = vmatmul.mubr.msk.f32.vlgmr.msra.gmra.mrb[94].mxu1 %vm214_vm1, %v7928_v12  ;;  %27135 = vmatprep.subr.mxu0 %v28581_v8 }
 0xf4b   :  { %27131 = vmatpush3.xpose.msk.msra.mxu1 %vm214_vm1, %v29535_v7  ;;  %27132 = vmatprep.mubr.msk.f32.mxu1 %vm28582_vm2, %v28581_v8 }
 0xf4c   :  { %27128 = vmatmul.mubr.msk.f32.vlgmr.msra.gmra.mrb[98].mxu0 %vm214_vm1, %v8006_v9  ;;  %27140 = vmatprep.subr.mxu1 %v28581_v8 }
 0xf4d   :  { %27136 = vmatpush3.xpose.msk.msra.mxu0 %vm214_vm1, %v29465_v31  ;;  %27137 = vmatprep.mubr.msk.f32.mxu0 %vm28582_vm2, %v28581_v8 }
 0xf4e   :  { %27133 = vmatmul.mubr.msk.f32.vlgmr.msra.gmra.mrb[96].mxu1 %vm214_vm1, %v8084_v23  ;;  %27145 = vmatprep.subr.mxu0 %v28581_v8 }
 0xf4f   :  { %27141 = vmatpush3.xpose.msk.msra.mxu1 %vm214_vm1, %v29548_v59  ;;  %27142 = vmatprep.mubr.msk.f32.mxu1 %vm28582_vm2, %v28581_v8 }
 0xf50   :  { %27138 = vmatmul.mubr.msk.f32.vlgmr.msra.gmra.mrb[100].mxu0 %vm214_vm1, %v8162_v26  ;;  %27150 = vmatprep.subr.mxu1 %v28581_v8 }
 0xf51   :  { %27146 = vmatpush3.xpose.msk.msra.mxu0 %vm214_vm1, %v29481_v42  ;;  %27147 = vmatprep.mubr.msk.f32.mxu0 %vm28582_vm2, %v28581_v8 }
 0xf52   :  { %27143 = vmatmul.mubr.msk.f32.vlgmr.msra.gmra.mrb[98].mxu1 %vm214_vm1, %v8240_v29  ;;  %27155 = vmatprep.subr.mxu0 %v28581_v8 }
 0xf53   :  { %27151 = vmatpush3.xpose.msk.msra.mxu1 %vm214_vm1, %v29561_v3  ;;  %27152 = vmatprep.mubr.msk.f32.mxu1 %vm28582_vm2, %v28581_v8 }
 0xf54   :  { %27148 = vmatmul.mubr.msk.f32.vlgmr.msra.gmra.mrb[102].mxu0 %vm214_vm1, %v8318_v43  ;;  %27160 = vmatprep.subr.mxu1 %v28581_v8 }
 0xf55   :  { %27156 = vmatpush3.xpose.msk.msra.mxu0 %vm214_vm1, %v29495_v47  ;;  %27157 = vmatprep.mubr.msk.f32.mxu0 %vm28582_vm2, %v28581_v8 }
 0xf56   :  { %27153 = vmatmul.mubr.msk.f32.vlgmr.msra.gmra.mrb[100].mxu1 %vm214_vm1, %v8396_v45  ;;  %27165 = vmatprep.subr.mxu0 %v28581_v8 }
 0xf57   :  { %27161 = vmatpush3.msra.mxu1 %v29638_v10  ;;  %27162 = vmatprep.mubr.msk.f32.mxu1 %vm28582_vm2, %v28581_v8 }
 0xf58   :  { %27158 = vmatmul.mubr.msk.f32.vlgmr.msra.gmra.mrb[104].mxu0 %vm214_vm1, %v8474_v20  ;;  %27170 = vmatprep.subr.mxu1 %v28581_v8 }
 0xf59   :  { %27166 = vmatpush3.msra.mxu0 %v29648_v36  ;;  %27167 = vmatprep.mubr.msk.f32.mxu0 %vm28582_vm2, %v28581_v8 }
 0xf5a   :  { %27175 = vmatprep.subr.mxu0 %v28581_v8 }
0x1006   :  { %v7238_v28 = vpop.f32.mrb[84].mxu1 }
0x1007   :  { %v27074_v0 = vpop.f32.mrb[85].mxu1 }
0x1008   :  { %v7310_v14 = vpop.f32.mrb[88].mxu0 }
0x1009   :  { %v7757_v38 = vrot.slane %v7310_v14, 7  ;;  %v27079_v54 = vpop.f32.mrb[89].mxu0 }
0x100a   :  { %v7382_v56 = vpop.f32.mrb[86].mxu1 }
0x100b   :  { %v7758_v61 = vsel %vm948_vm3, %v7757_v38, %v7238_v28  ;;  %v7759_v1 = vrot.slane %v7382_v56, 6  ;;  %v27084_v37 = vpop.f32.mrb[87].mxu1 }
0x100c   :  { %v7454_v27 = vpop.f32.mrb[90].mxu0 }
0x100d   :  { %v7760_v32 = vsel %vm951_vm4, %v7759_v1, %v7758_v61  ;;  %v7761_v46 = vrot.slane %v7454_v27, 5  ;;  %v27089_v48 = vpop.f32.mrb[91].mxu0 }
0x100e   :  { %v7526_v49 = vpop.f32.mrb[88].mxu1 }
0x100f   :  { %v7762_v19 = vsel %vm954_vm5, %v7761_v46, %v7760_v32  ;;  %v7763_v51 = vrot.slane %v7526_v49, 4  ;;  %v27094_v52 = vpop.f32.mrb[89].mxu1 }
0x1010   :  { %v7598_v41 = vpop.f32.mrb[92].mxu0 }
0x1011   :  { %v7764_v57 = vsel %vm957_vm6, %v7763_v51, %v7762_v19  ;;  %v7765_v58 = vrot.slane %v7598_v41, 3  ;;  %v27099_v60 = vpop.f32.mrb[93].mxu0 }
0x1012   :  { %v7670_v63 = vpop.f32.mrb[90].mxu1 }
0x1013   :  { %v7766_v4 = vsel %vm960_vm7, %v7765_v58, %v7764_v57  ;;  %v7767_v5 = vrot.slane %v7670_v63, 2  ;;  %v27104_v16 = vpop.f32.mrb[91].mxu1 }
0x1014   :  { %v7742_v13 = vpop.f32.mrb[94].mxu0 }
0x1015   :  { %v7769_v12 = vrot.slane %v7742_v13, 1  ;;  %v27109_v9 = vpop.f32.mrb[95].mxu0  ;;  %v7768_v23 = vsel %vm963_vm8, %v7767_v5, %v7766_v4 }
0x1016   :  { %v7840_v26 = vpop.f32.mrb[92].mxu1 }
0x1017   :  { %v7770_v29 = vsel %vm966_vm9, %v7769_v12, %v7768_v23  ;;  %v27114_v43 = vpop.f32.mrb[93].mxu1 }
0x1018   :  { %v29780_v45 = vadd.f32 %v7840_v26, %v7770_v29 }
0x101b   :  { %v7918_v20 = vpop.f32.mrb[96].mxu0 }
0x101c   :  { %v27119_v28 = vpop.f32.mrb[97].mxu0  ;;  %v7922_v29 = vmul.f32 0.35355338, %v7918_v20 }
0x101d   :  { %v7997_v0 = vpop.f32.mrb[94].mxu1 }
0x101e   :  { %v27124_v14 = vpop.f32.mrb[95].mxu1 }
0x101f   :  { %v8075_v38 = vpop.f32.mrb[98].mxu0 }
0x1020   :  { %v8555_v54 = vrot.slane %v8075_v38, 7  ;;  %v27129_v56 = vpop.f32.mrb[99].mxu0 }
0x1021   :  { %v8153_v61 = vpop.f32.mrb[96].mxu1 }
0x1022   :  { %v8556_v1 = vsel %vm948_vm3, %v8555_v54, %v7997_v0  ;;  %v8557_v37 = vrot.slane %v8153_v61, 6  ;;  %v27134_v27 = vpop.f32.mrb[97].mxu1 }
0x1023   :  { %v8231_v32 = vpop.f32.mrb[100].mxu0 }
0x1024   :  { %v8558_v46 = vsel %vm951_vm4, %v8557_v37, %v8556_v1  ;;  %v8559_v48 = vrot.slane %v8231_v32, 5  ;;  %v27139_v49 = vpop.f32.mrb[101].mxu0 }
0x1025   :  { %v8309_v19 = vpop.f32.mrb[98].mxu1 }
0x1026   :  { %v8560_v51 = vsel %vm954_vm5, %v8559_v48, %v8558_v46  ;;  %v8561_v52 = vrot.slane %v8309_v19, 4  ;;  %v27144_v41 = vpop.f32.mrb[99].mxu1 }
0x1027   :  { %v8387_v57 = vpop.f32.mrb[102].mxu0 }
0x1028   :  { %v8562_v58 = vsel %vm957_vm6, %v8561_v52, %v8560_v51  ;;  %v8563_v60 = vrot.slane %v8387_v57, 3  ;;  %v27149_v63 = vpop.f32.mrb[103].mxu0 }
0x1029   :  { %v8465_v4 = vpop.f32.mrb[100].mxu1 }
0x102a   :  { %v8564_v5 = vsel %vm960_vm7, %v8563_v60, %v8562_v58  ;;  %v8565_v16 = vrot.slane %v8465_v4, 2  ;;  %v27154_v13 = vpop.f32.mrb[101].mxu1 }
0x102b   :  { %v8543_v12 = vpop.f32.mrb[104].mxu0  ;;  %v28425_v13 = vld [vmem:[%s31742_s6] sm:$0xff] }
0x102c   :  { %v8566_v9 = vsel %vm963_vm8, %v8565_v16, %v8564_v5  ;;  %v8567_v23 = vrot.slane %v8543_v12, 1  ;;  %v27159_v26 = vpop.f32.mrb[105].mxu0  ;;  %v28424_v16 = vld [vmem:[%s31742_s6 + $0x8] sm:$0xff] }
0x102e   :  { %v8568_v43 = vsel %vm966_vm9, %v8567_v23, %v8566_v9 }
0x102f   :  { %v8570_v28 = vadd.f32 %v8568_v43, %v7922_v29 }
0x1031   :  { %v8571_v0 = vadd.f32 %v29590_v22, %v8570_v28 }
0x1033   :  { %v8572_v14 = vsel %vm214_vm1, %v8571_v0, -inf }
0x1034   :  { %8573 = vmax.xlane.f32.xlu1 %v8572_v14 }
0x1045   :  { %9455 = vrot.lane.b32.xlu1 %v28766_v18, %s28590_s23 }
0x1049   :  { %9453 = vrot.lane.b32.xlu1 %v28766_v18, %s28589_s20 }
0x104d   :  { %9606 = vrot.lane.b32.xlu1 %v29601_v33, %s28589_s20 }
0x1051   :  { %9754 = vrot.lane.b32.xlu1 %v29607_v6, %s28589_s20 }
0x1055   :  { %9902 = vrot.lane.b32.xlu1 %v29613_v24, %s28589_s20 }
0x1059   :  { %10050 = vrot.lane.b32.xlu1 %v29619_v15, %s28589_s20 }
0x10c1   :  { %v8574_v20 = vpop.xlane.xlu1 %8573 }
0x10c2   :  { %v8575_v38 = vsub.f32 %v8571_v0, %v8574_v20 }
0x10c4   :  { %v8576_v54 = vmul.f32 1.442695, %v8575_v38 }
0x10c6   :  { %28340 = vpow2.f32 %v8576_v54 }
0x10d0   :  { %v28341_v56 = vpop.eup %28340 }
0x10d1   :  { %v8578_v61 = vsel %vm214_vm1, %v28341_v56, 0.0 }
0x10d2   :  { %8579 = vadd.xlane.f32.xlu0 %v8578_v61 }
0x10e8   :  { %9209 = vrot.lane.b32.xlu0 %v28766_v18, %s28588_s22 }
0x10ec   :  { %9532 = vrot.lane.b32.xlu0 %v29628_v39, %s28589_s20 }
0x10f0   :  { %9680 = vrot.lane.b32.xlu0 %v29634_v44, %s28589_s20 }
0x10f4   :  { %9828 = vrot.lane.b32.xlu0 %v29643_v11, %s28589_s20 }
0x10f8   :  { %9976 = vrot.lane.b32.xlu0 %v29653_v35, %s28589_s20 }
0x115f   :  { %v8580_v1 = vpop.xlane.xlu0 %8579 }
0x1160   :  { %28342 = vrcp.f32 %v8580_v1 }
0x1163   :  { %v9210_v4 = vpop.permute.xlu0 %9209 }
0x1167   :  { %v9533_v12 = vpop.permute.xlu0 %9532 }
0x116a   :  { %v28343_v37 = vpop.eup %28342 }
0x116b   :  { %v8582_v27 = vmul.f32 %v28343_v37, %v28341_v56  ;;  %v9681_v9 = vpop.permute.xlu0 %9680  ;;  %v9456_v56 = vpop.permute.xlu1 %9455 }
0x116d   :  { %v8591_v32 = vrot.slane %v8582_v27, %v28764_v17  ;;  %v8584_v46 = vcombine.high %v8582_v27, %v8582_v27 }
0x116f   :  { %v8607_v48 = vrot.slane %v8591_v32, %v28764_v17  ;;  %v8599_v49 = vcombine.high %v8591_v32, %v8591_v32  ;;  %v8598_v51 = vrot.slane %v8584_v46, %v28764_v17 }
0x1171   :  { %27163 = vmatmul.mubr.msk.f32.vlgmr.msra.gmra.mrb[102].mxu1 %vm214_vm1, %v8607_v48  ;;  %v8621_v19 = vrot.slane %v8599_v49, %v28764_v17  ;;  %v8629_v52 = vcombine.high %v8607_v48, %v8607_v48  ;;  %v8600_v57 = vcombine.high %v8598_v51, %v8598_v51  ;;  %v8614_v58 = vrot.slane %v8598_v51, %v28764_v17 }
0x1172   :  { %27171 = vmatpush3.msra.mxu1 %v29660_v30  ;;  %27172 = vmatprep.mubr.msk.f32.mxu1 %vm28582_vm2, %v28581_v8 }
0x1173   :  { %27168 = vmatmul.mubr.msk.f32.vlgmr.msra.gmra.mrb[106].mxu0 %vm214_vm1, %v8621_v19  ;;  %27180 = vmatprep.subr.mxu1 %v28581_v8  ;;  %v8631_v41 = vcombine.high %v8621_v19, %v8621_v19  ;;  %v8628_v60 = vrot.slane %v8600_v57, %v28764_v17  ;;  %v8630_v63 = vcombine.high %v8614_v58, %v8614_v58  ;;  %v9454_v57 = vpop.permute.xlu1 %9453 }
0x1174   :  { %27176 = vmatpush3.msra.mxu0 %v29664_v40  ;;  %27177 = vmatprep.mubr.msk.f32.mxu0 %vm28582_vm2, %v28581_v8 }
0x1175   :  { %27173 = vmatmul.mubr.msk.f32.vlgmr.msra.gmra.mrb[104].mxu1 %vm214_vm1, %v8629_v52  ;;  %27185 = vmatprep.subr.mxu0 %v28581_v8  ;;  %v8632_v5 = vcombine.high %v8628_v60, %v8628_v60 }
0x1176   :  { %27181 = vmatpush3.msra.mxu1 %v29672_v53  ;;  %27182 = vmatprep.mubr.msk.f32.mxu1 %vm28582_vm2, %v28581_v8 }
0x1177   :  { %27178 = vmatmul.mubr.msk.f32.vlgmr.msra.gmra.mrb[108].mxu0 %vm214_vm1, %v8631_v41  ;;  %27190 = vmatprep.subr.mxu1 %v28581_v8 }
0x1178   :  { %27186 = vmatpush3.msra.mxu0 %v29679_v55  ;;  %27187 = vmatprep.mubr.msk.f32.mxu0 %vm28582_vm2, %v28581_v8 }
0x1179   :  { %27183 = vmatmul.mubr.msk.f32.vlgmr.msra.gmra.mrb[106].mxu1 %vm214_vm1, %v8614_v58  ;;  %27195 = vmatprep.subr.mxu0 %v28581_v8 }
0x117a   :  { %27191 = vmatpush3.msra.mxu1 %v29687_v62  ;;  %27192 = vmatprep.mubr.msk.f32.mxu1 %vm28582_vm2, %v28581_v8 }
0x117b   :  { %27188 = vmatmul.mubr.msk.f32.vlgmr.msra.gmra.mrb[110].mxu0 %vm214_vm1, %v8628_v60  ;;  %27200 = vmatprep.subr.mxu1 %v28581_v8 }
0x117c   :  { %27196 = vmatpush3.msra.mxu0 %v29695_v2  ;;  %27197 = vmatprep.mubr.msk.f32.mxu0 %vm28582_vm2, %v28581_v8 }
0x117d   :  { %27193 = vmatmul.mubr.msk.f32.vlgmr.msra.gmra.mrb[108].mxu1 %vm214_vm1, %v8630_v63  ;;  %27205 = vmatprep.subr.mxu0 %v28581_v8 }
0x117e   :  { %27201 = vmatpush3.msra.mxu1 %v9210_v4  ;;  %27202 = vmatprep.mubr.msk.f32.mxu1 %vm28582_vm2, %v28581_v8 }
0x117f   :  { %27198 = vmatmul.mubr.msk.f32.vlgmr.msra.gmra.mrb[112].mxu0 %vm214_vm1, %v8632_v5  ;;  %27210 = vmatprep.subr.mxu1 %v28581_v8 }
0x1180   :  { %27206 = vmatpush3.msra.mxu0 %v28424_v16  ;;  %27207 = vmatprep.mubr.msk.f32.mxu0 %vm28582_vm2, %v28581_v8 }
0x1181   :  { %27203 = vmatmul.mubr.msk.f32.vlgmr.msra.gmra.mrb[110].mxu1 %vm214_vm1, %v8582_v27  ;;  %27215 = vmatprep.subr.mxu0 %v28581_v8 }
0x1182   :  { %27211 = vmatpush3.msra.mxu1 %v28425_v13  ;;  %27212 = vmatprep.mubr.msk.f32.mxu1 %vm28582_vm2, %v28581_v8 }
0x1183   :  { %27220 = vmatprep.subr.mxu1 %v28581_v8 }
0x1185   :  { %27213 = vmatmul.mubr.msk.f32.vlgmr.msra.gmra.mrb[112].mxu1 %vm214_vm1, %v29780_v45  ;;  %v9829_v45 = vpop.permute.xlu0 %9828 }
0x1186   :  { %27222 = vmatprep.mubr.msk.f32.mxu1 %vm28582_vm2, %v28581_v8 }
0x1189   :  { %27221 = vmatpush3.xpose.msk.msra.mxu1 %vm214_vm1, %v29523_v34  ;;  %v9977_v34 = vpop.permute.xlu0 %9976 }
0x118a   :  { %27230 = vmatprep.subr.mxu1 %v28581_v8 }
0x118c   :  { %27223 = vmatmul.mubr.msk.f32.vlgmr.msra.gmra.mrb[114].mxu1 %vm214_vm1, %v9533_v12 }
0x118d   :  { %27231 = vmatpush3.xpose.msk.msra.mxu1 %vm214_vm1, %v29535_v7  ;;  %27232 = vmatprep.mubr.msk.f32.mxu1 %vm28582_vm2, %v28581_v8 }
0x118e   :  { %27240 = vmatprep.subr.mxu1 %v28581_v8 }
0x1190   :  { %27233 = vmatmul.mubr.msk.f32.vlgmr.msra.gmra.mrb[116].mxu1 %vm214_vm1, %v9681_v9  ;;  %v9607_v9 = vpop.permute.xlu1 %9606 }
0x1191   :  { %27241 = vmatpush3.xpose.msk.msra.mxu1 %vm214_vm1, %v29548_v59  ;;  %27242 = vmatprep.mubr.msk.f32.mxu1 %vm28582_vm2, %v28581_v8 }
0x1192   :  { %27250 = vmatprep.subr.mxu1 %v28581_v8 }
0x1194   :  { %27243 = vmatmul.mubr.msk.f32.vlgmr.msra.gmra.mrb[118].mxu1 %vm214_vm1, %v9829_v45 }
0x1195   :  { %27251 = vmatpush3.xpose.msk.msra.mxu1 %vm214_vm1, %v29561_v3  ;;  %27252 = vmatprep.mubr.msk.f32.mxu1 %vm28582_vm2, %v28581_v8 }
0x1196   :  { %27260 = vmatprep.subr.mxu1 %v28581_v8 }
0x1198   :  { %27253 = vmatmul.mubr.msk.f32.vlgmr.msra.gmra.mrb[120].mxu1 %vm214_vm1, %v9977_v34  ;;  %v9755_v34 = vpop.permute.xlu1 %9754 }
0x1199   :  { %27261 = vmatpush3.msra.mxu1 %v29638_v10  ;;  %27262 = vmatprep.mubr.msk.f32.mxu1 %vm28582_vm2, %v28581_v8 }
0x119a   :  { %27270 = vmatprep.subr.mxu1 %v28581_v8 }
0x1244   :  { %v8701_v7 = vpop.f32.mrb[102].mxu1 }
0x1245   :  { %v27164_v59 = vpop.f32.mrb[103].mxu1 }
0x1246   :  { %v8773_v23 = vpop.f32.mrb[106].mxu0 }
0x1247   :  { %v9220_v26 = vrot.slane %v8773_v23, 7  ;;  %v27169_v3 = vpop.f32.mrb[107].mxu0 }
0x1248   :  { %v8845_v29 = vpop.f32.mrb[104].mxu1 }
0x1249   :  { %v9221_v43 = vsel %vm948_vm3, %v9220_v26, %v8701_v7  ;;  %v9222_v28 = vrot.slane %v8845_v29, 6  ;;  %v27174_v0 = vpop.f32.mrb[105].mxu1  ;;  %v9903_v26 = vpop.permute.xlu1 %9902 }
0x124a   :  { %v8917_v14 = vpop.f32.mrb[108].mxu0 }
0x124b   :  { %v9223_v20 = vsel %vm951_vm4, %v9222_v28, %v9221_v43  ;;  %v9224_v38 = vrot.slane %v8917_v14, 5  ;;  %v27179_v10 = vpop.f32.mrb[109].mxu0 }
0x124c   :  { %v8989_v54 = vpop.f32.mrb[106].mxu1 }
0x124d   :  { %v9225_v61 = vsel %vm954_vm5, %v9224_v38, %v9223_v20  ;;  %v9226_v1 = vrot.slane %v8989_v54, 4  ;;  %v27184_v37 = vpop.f32.mrb[107].mxu1  ;;  %v10051_v29 = vpop.permute.xlu1 %10050 }
0x124e   :  { %v9061_v27 = vpop.f32.mrb[110].mxu0 }
0x124f   :  { %v9227_v32 = vsel %vm957_vm6, %v9226_v1, %v9225_v61  ;;  %v9228_v46 = vrot.slane %v9061_v27, 3  ;;  %v27189_v48 = vpop.f32.mrb[111].mxu0 }
0x1250   :  { %v9133_v49 = vpop.f32.mrb[108].mxu1 }
0x1251   :  { %v9229_v19 = vsel %vm960_vm7, %v9228_v46, %v9227_v32  ;;  %v9230_v51 = vrot.slane %v9133_v49, 2  ;;  %v27194_v52 = vpop.f32.mrb[109].mxu1 }
0x1252   :  { %v9205_v41 = vpop.f32.mrb[112].mxu0 }
0x1253   :  { %v9232_v58 = vrot.slane %v9205_v41, 1  ;;  %v27199_v60 = vpop.f32.mrb[113].mxu0  ;;  %v9231_v63 = vsel %vm963_vm8, %v9230_v51, %v9229_v19 }
0x1254   :  { %v9303_v4 = vpop.f32.mrb[110].mxu1 }
0x1255   :  { %v9233_v5 = vsel %vm966_vm9, %v9232_v58, %v9231_v63  ;;  %v27204_v16 = vpop.f32.mrb[111].mxu1 }
0x1256   :  { %v9304_v13 = vadd.f32 %v9303_v4, %v9233_v5 }
0x1258   :  { %27208 = vmatmul.mubr.msk.f32.vlgmr.msra.gmra.mrb[114].mxu0 %vm214_vm1, %v9304_v13  ;;  %v9449_v12 = vpop.f32.mrb[112].mxu1 }
0x1259   :  { %27216 = vmatpush3.xpose.msk.msra.mxu0 %vm214_vm1, %v9456_v56  ;;  %v27214_v45 = vpop.f32.mrb[113].mxu1  ;;  %27217 = vmatprep.mubr.msk.f32.mxu0 %vm28582_vm2, %v28581_v8 }
0x125a   :  { %27225 = vmatprep.subr.mxu0 %v28581_v8 }
0x125c   :  { %27218 = vmatmul.mubr.msk.f32.vlgmr.msra.gmra.mrb[116].mxu0 %vm214_vm1, %v9454_v57 }
0x125d   :  { %27226 = vmatpush3.xpose.msk.msra.mxu0 %vm214_vm1, %v29449_v25  ;;  %27227 = vmatprep.mubr.msk.f32.mxu0 %vm28582_vm2, %v28581_v8 }
0x125e   :  { %27235 = vmatprep.subr.mxu0 %v28581_v8 }
0x125f   :  { %v9602_v7 = vpop.f32.mrb[114].mxu1 }
0x1260   :  { %v27224_v59 = vpop.f32.mrb[115].mxu1  ;;  %27228 = vmatmul.mubr.msk.f32.vlgmr.msra.gmra.mrb[118].mxu0 %vm214_vm1, %v9607_v9 }
0x1261   :  { %27236 = vmatpush3.xpose.msk.msra.mxu0 %vm214_vm1, %v29465_v31  ;;  %27237 = vmatprep.mubr.msk.f32.mxu0 %vm28582_vm2, %v28581_v8 }
0x1262   :  { %27245 = vmatprep.subr.mxu0 %v28581_v8 }
0x1263   :  { %v9750_v23 = vpop.f32.mrb[116].mxu1 }
0x1264   :  { %v27234_v25 = vpop.f32.mrb[117].mxu1  ;;  %27238 = vmatmul.mubr.msk.f32.vlgmr.msra.gmra.mrb[120].mxu0 %vm214_vm1, %v9755_v34  ;;  %v10134_v56 = vrot.slane %v9750_v23, 6 }
0x1265   :  { %27246 = vmatpush3.xpose.msk.msra.mxu0 %vm214_vm1, %v29481_v42  ;;  %27247 = vmatprep.mubr.msk.f32.mxu0 %vm28582_vm2, %v28581_v8 }
0x1266   :  { %27255 = vmatprep.subr.mxu0 %v28581_v8 }
0x1267   :  { %v9898_v3 = vpop.f32.mrb[118].mxu1 }
0x1268   :  { %v27244_v31 = vpop.f32.mrb[119].mxu1  ;;  %27248 = vmatmul.mubr.msk.f32.vlgmr.msra.gmra.mrb[122].mxu0 %vm214_vm1, %v9903_v26  ;;  %v10138_v46 = vrot.slane %v9898_v3, 4 }
0x1269   :  { %27256 = vmatpush3.xpose.msk.msra.mxu0 %vm214_vm1, %v29495_v47  ;;  %27257 = vmatprep.mubr.msk.f32.mxu0 %vm28582_vm2, %v28581_v8 }
0x126a   :  { %27265 = vmatprep.subr.mxu0 %v28581_v8 }
0x126b   :  { %v10046_v43 = vpop.f32.mrb[120].mxu1 }
0x126c   :  { %v27254_v42 = vpop.f32.mrb[121].mxu1  ;;  %27258 = vmatmul.mubr.msk.f32.vlgmr.msra.gmra.mrb[124].mxu0 %vm214_vm1, %v10051_v29  ;;  %v10142_v41 = vrot.slane %v10046_v43, 2 }
0x126d   :  { %27266 = vmatpush3.msra.mxu0 %v29648_v36  ;;  %27267 = vmatprep.mubr.msk.f32.mxu0 %vm28582_vm2, %v28581_v8  ;;  %v28427_v42 = vld [vmem:[#allocation5 + $0x48] sm:$0xff] }
0x126e   :  { %27275 = vmatprep.subr.mxu0 %v28581_v8 }
0x132b   :  { %v9376_v28 = vpop.f32.mrb[114].mxu0 }
0x132c   :  { %v29939_v0 = vadd.f32 %v9449_v12, %v9376_v28  ;;  %v27209_v47 = vpop.f32.mrb[115].mxu0 }
0x132d   :  { %v28428_v47 = vld [vmem:[#allocation5 + $0x58] sm:$0xff] }
0x132f   :  { %v9527_v14 = vpop.f32.mrb[116].mxu0 }
0x1330   :  { %v27219_v20 = vpop.f32.mrb[117].mxu0  ;;  %v9531_v5 = vmul.f32 0.35355338, %v9527_v14 }
0x1331   :  { %v28429_v20 = vld [vmem:[#allocation5 + $0x68] sm:$0xff] }
0x1333   :  { %v9676_v38 = vpop.f32.mrb[118].mxu0 }
0x1334   :  { %v10132_v10 = vrot.slane %v9676_v38, 7  ;;  %v27229_v54 = vpop.f32.mrb[119].mxu0  ;;  %v28430_v38 = vld [vmem:[#allocation5 + $0x78] sm:$0xff] }
0x1336   :  { %v10133_v61 = vsel %vm948_vm3, %v10132_v10, %v9602_v7 }
0x1337   :  { %v9824_v1 = vpop.f32.mrb[120].mxu0  ;;  %v10135_v37 = vsel %vm951_vm4, %v10134_v56, %v10133_v61 }
0x1338   :  { %v10136_v27 = vrot.slane %v9824_v1, 5  ;;  %v27239_v32 = vpop.f32.mrb[121].mxu0 }
0x133a   :  { %v10137_v48 = vsel %vm954_vm5, %v10136_v27, %v10135_v37 }
0x133b   :  { %v9972_v49 = vpop.f32.mrb[122].mxu0  ;;  %v10139_v19 = vsel %vm957_vm6, %v10138_v46, %v10137_v48 }
0x133c   :  { %v10140_v51 = vrot.slane %v9972_v49, 3  ;;  %v27249_v52 = vpop.f32.mrb[123].mxu0 }
0x133e   :  { %v10141_v57 = vsel %vm960_vm7, %v10140_v51, %v10139_v19 }
0x133f   :  { %v10120_v58 = vpop.f32.mrb[124].mxu0  ;;  %v10143_v60 = vsel %vm963_vm8, %v10142_v41, %v10141_v57 }
0x1340   :  { %v10144_v63 = vrot.slane %v10120_v58, 1  ;;  %v27259_v4 = vpop.f32.mrb[125].mxu0 }
0x1342   :  { %v10145_v16 = vsel %vm966_vm9, %v10144_v63, %v10143_v60 }
0x1343   :  { %v10147_v13 = vadd.f32 %v10145_v16, %v9531_v5 }
0x1345   :  { %v10148_v12 = vadd.f32 %v29590_v22, %v10147_v13 }
0x1347   :  { %v10149_v9 = vsel %vm214_vm1, %v10148_v12, -inf }
0x1348   :  { %10150 = vmax.xlane.f32.xlu0 %v10149_v9 }
0x135e   :  { %10786 = vrot.lane.b32.xlu0 %v28766_v18, %s31758_s17 }
0x1362   :  { %10958 = vrot.lane.b32.xlu0 %v28766_v18, %s31760_s29 }
0x1366   :  { %11111 = vrot.lane.b32.xlu0 %v29601_v33, %s31760_s29 }
0x136a   :  { %11259 = vrot.lane.b32.xlu0 %v29607_v6, %s31760_s29 }
0x136e   :  { %11407 = vrot.lane.b32.xlu0 %v29613_v24, %s31760_s29 }
0x1372   :  { %11555 = vrot.lane.b32.xlu0 %v29619_v15, %s31760_s29 }
0x13d5   :  { %v10151_v22 = vpop.xlane.xlu0 %10150 }
0x13d6   :  { %v10152_v45 = vsub.f32 %v10148_v12, %v10151_v22 }
0x13d8   :  { %v10153_v34 = vmul.f32 1.442695, %v10152_v45 }
0x13da   :  { %28344 = vpow2.f32 %v10153_v34 }
0x13e4   :  { %v28345_v7 = vpop.eup %28344 }
0x13e5   :  { %v10155_v59 = vsel %vm214_vm1, %v28345_v7, 0.0 }
0x13e6   :  { %10156 = vadd.xlane.f32.xlu1 %v10155_v59 }
0x13f7   :  { %10960 = vrot.lane.b32.xlu1 %v28766_v18, %s31762_s21 }
0x13fb   :  { %11037 = vrot.lane.b32.xlu1 %v29628_v39, %s31760_s29 }
0x13ff   :  { %11185 = vrot.lane.b32.xlu1 %v29634_v44, %s31760_s29 }
0x1403   :  { %11333 = vrot.lane.b32.xlu1 %v29643_v11, %s31760_s29 }
0x1407   :  { %11481 = vrot.lane.b32.xlu1 %v29653_v35, %s31760_s29 }
0x1473   :  { %v10157_v33 = vpop.xlane.xlu1 %10156 }
0x1474   :  { %28346 = vrcp.f32 %v10157_v33 }
0x1477   :  { %v10961_v29 = vpop.permute.xlu1 %10960 }
0x147b   :  { %v11038_v33 = vpop.permute.xlu1 %11037 }
0x147e   :  { %v28347_v6 = vpop.eup %28346 }
0x147f   :  { %v10159_v24 = vmul.f32 %v28347_v6, %v28345_v7 }
0x1481   :  { %v10168_v15 = vrot.slane %v10159_v24, %v28764_v17  ;;  %v10161_v23 = vcombine.high %v10159_v24, %v10159_v24 }
0x1483   :  { %v10184_v25 = vrot.slane %v10168_v15, %v28764_v17  ;;  %v10176_v26 = vcombine.high %v10168_v15, %v10168_v15  ;;  %v10175_v44 = vrot.slane %v10161_v23, %v28764_v17  ;;  %v28431_v23 = vld [vmem:[#allocation5 + $0x40] sm:$0xff] }
0x1485   :  { %27263 = vmatmul.mubr.msk.f32.vlgmr.msra.gmra.mrb[122].mxu1 %vm214_vm1, %v10184_v25  ;;  %v10198_v39 = vrot.slane %v10176_v26, %v28764_v17  ;;  %v10206_v11 = vcombine.high %v10184_v25, %v10184_v25  ;;  %v10177_v3 = vcombine.high %v10175_v44, %v10175_v44  ;;  %v11186_v25 = vpop.permute.xlu1 %11185 }
0x1486   :  { %27271 = vmatpush3.msra.mxu1 %v29660_v30  ;;  %27272 = vmatprep.mubr.msk.f32.mxu1 %vm28582_vm2, %v28581_v8  ;;  %v10191_v30 = vrot.slane %v10175_v44, %v28764_v17  ;;  %v28432_v44 = vld [vmem:[#allocation5 + $0x50] sm:$0xff] }
0x1487   :  { %27268 = vmatmul.mubr.msk.f32.vlgmr.msra.gmra.mrb[126].mxu0 %vm214_vm1, %v10198_v39  ;;  %27280 = vmatprep.subr.mxu1 %v28581_v8  ;;  %v10208_v35 = vcombine.high %v10198_v39, %v10198_v39  ;;  %v10205_v31 = vrot.slane %v10177_v3, %v28764_v17 }
0x1488   :  { %27276 = vmatpush3.msra.mxu0 %v29664_v40  ;;  %27277 = vmatprep.mubr.msk.f32.mxu0 %vm28582_vm2, %v28581_v8  ;;  %v10787_v40 = vpop.permute.xlu0 %10786 }
0x1489   :  { %27273 = vmatmul.mubr.msk.f32.vlgmr.msra.gmra.mrb[124].mxu1 %vm214_vm1, %v10206_v11  ;;  %27285 = vmatprep.subr.mxu0 %v28581_v8  ;;  %v11334_v3 = vpop.permute.xlu1 %11333 }
0x148a   :  { %27281 = vmatpush3.msra.mxu1 %v29672_v53  ;;  %27282 = vmatprep.mubr.msk.f32.mxu1 %vm28582_vm2, %v28581_v8  ;;  %v10207_v53 = vcombine.high %v10191_v30, %v10191_v30 }
0x148b   :  { %27278 = vmatmul.mubr.msk.f32.vlgmr.msra.gmra.mrb[128].mxu0 %vm214_vm1, %v10208_v35  ;;  %27290 = vmatprep.subr.mxu1 %v28581_v8 }
0x148c   :  { %27286 = vmatpush3.msra.mxu0 %v29679_v55  ;;  %27287 = vmatprep.mubr.msk.f32.mxu0 %vm28582_vm2, %v28581_v8  ;;  %v10209_v55 = vcombine.high %v10205_v31, %v10205_v31 }
0x148d   :  { %27283 = vmatmul.mubr.msk.f32.vlgmr.msra.gmra.mrb[126].mxu1 %vm214_vm1, %v10191_v30  ;;  %27295 = vmatprep.subr.mxu0 %v28581_v8  ;;  %v28433_v30 = vld [vmem:[#allocation5 + $0x60] sm:$0xff] }
0x148e   :  { %27291 = vmatpush3.msra.mxu1 %v29687_v62  ;;  %27292 = vmatprep.mubr.msk.f32.mxu1 %vm28582_vm2, %v28581_v8  ;;  %v10959_v62 = vpop.permute.xlu0 %10958 }
0x148f   :  { %27288 = vmatmul.mubr.msk.f32.vlgmr.msra.gmra.mrb[130].mxu0 %vm214_vm1, %v10205_v31  ;;  %27300 = vmatprep.subr.mxu1 %v28581_v8 }
0x1490   :  { %27296 = vmatpush3.msra.mxu0 %v29695_v2  ;;  %27297 = vmatprep.mubr.msk.f32.mxu0 %vm28582_vm2, %v28581_v8  ;;  %v28426_v2 = vld [vmem:[%s31742_s6 + $0x10] sm:$0xff] }
0x1491   :  { %27293 = vmatmul.mubr.msk.f32.vlgmr.msra.gmra.mrb[128].mxu1 %vm214_vm1, %v10207_v53  ;;  %27305 = vmatprep.subr.mxu0 %v28581_v8  ;;  %v28434_v53 = vld [vmem:[#allocation5 + $0x70] sm:$0xff] }
0x1492   :  { %27301 = vmatpush3.msra.mxu1 %v10787_v40  ;;  %27302 = vmatprep.mubr.msk.f32.mxu1 %vm28582_vm2, %v28581_v8  ;;  %v11112_v43 = vpop.permute.xlu0 %11111 }
0x1493   :  { %27298 = vmatmul.mubr.msk.f32.vlgmr.msra.gmra.mrb[132].mxu0 %vm214_vm1, %v10209_v55  ;;  %27310 = vmatprep.subr.mxu1 %v28581_v8  ;;  %v11482_v55 = vpop.permute.xlu1 %11481 }
0x1494   :  { %27306 = vmatpush3.msra.mxu0 %v28426_v2  ;;  %27307 = vmatprep.mubr.msk.f32.mxu0 %vm28582_vm2, %v28581_v8 }
0x1495   :  { %27303 = vmatmul.mubr.msk.f32.vlgmr.msra.gmra.mrb[130].mxu1 %vm214_vm1, %v10159_v24  ;;  %27315 = vmatprep.subr.mxu0 %v28581_v8 }
0x1496   :  { %27312 = vmatprep.mubr.msk.f32.mxu1 %vm28582_vm2, %v28581_v8  ;;  %v11260_v28 = vpop.permute.xlu0 %11259 }
0x1499   :  { %27311 = vmatpush3.xpose.msk.msra.mxu1 %vm214_vm1, %v10961_v29  ;;  %v28435_v29 = vld [vmem:[#allocation7 + $0x40] sm:$0xff] }
0x149a   :  { %27320 = vmatprep.subr.mxu1 %v28581_v8  ;;  %v11408_v14 = vpop.permute.xlu0 %11407 }
0x149c   :  { %27313 = vmatmul.mubr.msk.f32.vlgmr.msra.gmra.mrb[132].mxu1 %vm214_vm1, %v10959_v62 }
0x149d   :  { %27321 = vmatpush3.xpose.msk.msra.mxu1 %vm214_vm1, %v28427_v42  ;;  %27322 = vmatprep.mubr.msk.f32.mxu1 %vm28582_vm2, %v28581_v8 }
0x149e   :  { %27330 = vmatprep.subr.mxu1 %v28581_v8  ;;  %v11556_v10 = vpop.permute.xlu0 %11555 }
0x14a0   :  { %27323 = vmatmul.mubr.msk.f32.vlgmr.msra.gmra.mrb[134].mxu1 %vm214_vm1, %v11112_v43 }
0x14a1   :  { %27331 = vmatpush3.xpose.msk.msra.mxu1 %vm214_vm1, %v28428_v47  ;;  %27332 = vmatprep.mubr.msk.f32.mxu1 %vm28582_vm2, %v28581_v8 }
0x14a2   :  { %27340 = vmatprep.subr.mxu1 %v28581_v8 }
0x14a4   :  { %27333 = vmatmul.mubr.msk.f32.vlgmr.msra.gmra.mrb[136].mxu1 %vm214_vm1, %v11260_v28 }
0x14a5   :  { %27341 = vmatpush3.xpose.msk.msra.mxu1 %vm214_vm1, %v28429_v20  ;;  %27342 = vmatprep.mubr.msk.f32.mxu1 %vm28582_vm2, %v28581_v8 }
0x14a6   :  { %27350 = vmatprep.subr.mxu1 %v28581_v8 }
0x14a8   :  { %27343 = vmatmul.mubr.msk.f32.vlgmr.msra.gmra.mrb[138].mxu1 %vm214_vm1, %v11408_v14 }
0x14a9   :  { %27351 = vmatpush3.xpose.msk.msra.mxu1 %vm214_vm1, %v28430_v38  ;;  %27352 = vmatprep.mubr.msk.f32.mxu1 %vm28582_vm2, %v28581_v8 }
0x14aa   :  { %27360 = vmatprep.subr.mxu1 %v28581_v8 }
0x14ac   :  { %27353 = vmatmul.mubr.msk.f32.vlgmr.msra.gmra.mrb[140].mxu1 %vm214_vm1, %v11556_v10 }
0x14ad   :  { %27361 = vmatpush3.msra.mxu1 %v29648_v36  ;;  %27362 = vmatprep.mubr.msk.f32.mxu1 %vm28582_vm2, %v28581_v8 }
0x14ae   :  { %27370 = vmatprep.subr.mxu1 %v28581_v8 }
0x1558   :  { %v10278_v54 = vpop.f32.mrb[122].mxu1 }
0x1559   :  { %v27264_v56 = vpop.f32.mrb[123].mxu1 }
0x155a   :  { %v10350_v61 = vpop.f32.mrb[126].mxu0 }
0x155b   :  { %v10797_v1 = vrot.slane %v10350_v61, 7  ;;  %v27269_v37 = vpop.f32.mrb[127].mxu0 }
0x155c   :  { %v10422_v27 = vpop.f32.mrb[124].mxu1 }
0x155d   :  { %v10798_v32 = vsel %vm948_vm3, %v10797_v1, %v10278_v54  ;;  %v10799_v46 = vrot.slane %v10422_v27, 6  ;;  %v27274_v48 = vpop.f32.mrb[125].mxu1 }
0x155e   :  { %v10494_v49 = vpop.f32.mrb[128].mxu0 }
0x155f   :  { %v10800_v19 = vsel %vm951_vm4, %v10799_v46, %v10798_v32  ;;  %v10801_v51 = vrot.slane %v10494_v49, 5  ;;  %v27279_v36 = vpop.f32.mrb[129].mxu0 }
0x1560   :  { %v10566_v52 = vpop.f32.mrb[126].mxu1 }
0x1561   :  { %v10802_v41 = vsel %vm954_vm5, %v10801_v51, %v10800_v19  ;;  %v10803_v57 = vrot.slane %v10566_v52, 4  ;;  %v27284_v58 = vpop.f32.mrb[127].mxu1 }
0x1562   :  { %v10638_v60 = vpop.f32.mrb[130].mxu0 }
0x1563   :  { %v10804_v63 = vsel %vm957_vm6, %v10803_v57, %v10802_v41  ;;  %v10805_v4 = vrot.slane %v10638_v60, 3  ;;  %v27289_v5 = vpop.f32.mrb[131].mxu0  ;;  %v30092_v57 = vld [vmem:[%s31743_s7] ss:$0 sm:$0xff] }
0x1564   :  { %v10710_v16 = vpop.f32.mrb[128].mxu1  ;;  %v12470_v5 = vadd.f32 %v30092_v57, %v29579_v50 }
0x1565   :  { %v10806_v13 = vsel %vm960_vm7, %v10805_v4, %v10804_v63  ;;  %v10807_v12 = vrot.slane %v10710_v16, 2  ;;  %v27294_v9 = vpop.f32.mrb[129].mxu1 }
0x1566   :  { %v10782_v22 = vpop.f32.mrb[132].mxu0 }
0x1567   :  { %v10809_v45 = vrot.slane %v10782_v22, 1  ;;  %v27299_v34 = vpop.f32.mrb[133].mxu0  ;;  %v10808_v7 = vsel %vm963_vm8, %v10807_v12, %v10806_v13  ;;  %v28436_v13 = vld [vmem:[%s31737_s1 + $0x1] ss:$0 sm:$0xff] }
0x1568   :  { %v10880_v59 = vpop.f32.mrb[130].mxu1  ;;  %v28437_v22 = vld [vmem:[#allocation2] sm:$0xff] }
0x1569   :  { %v10810_v6 = vsel %vm966_vm9, %v10809_v45, %v10808_v7  ;;  %v27304_v24 = vpop.f32.mrb[131].mxu1  ;;  %v30102_v45 = vadd.f32 %v28437_v22, %v12470_v5 }
0x156a   :  { %v10881_v15 = vadd.f32 %v10880_v59, %v10810_v6 }
0x156b   :  { %v12476_v34 = vsel %vm112_vm0, %v30102_v45, 0.0 }
0x156c   :  { %27308 = vmatmul.mubr.msk.f32.vlgmr.msra.gmra.mrb[134].mxu0 %vm214_vm1, %v10881_v15 }
0x156d   :  { %27316 = vmatpush3.xpose.msk.msra.mxu0 %vm214_vm1, %v28431_v23  ;;  %27317 = vmatprep.mubr.msk.f32.mxu0 %vm28582_vm2, %v28581_v8 }
0x156e   :  { %27325 = vmatprep.subr.mxu0 %v28581_v8 }
0x156f   :  { %v11032_v26 = vpop.f32.mrb[132].mxu1 }
0x1570   :  { %v27314_v39 = vpop.f32.mrb[133].mxu1  ;;  %27318 = vmatmul.mubr.msk.f32.vlgmr.msra.gmra.mrb[136].mxu0 %vm214_vm1, %v11038_v33  ;;  %v11036_v60 = vmul.f32 0.35355338, %v11032_v26 }
0x1571   :  { %27326 = vmatpush3.xpose.msk.msra.mxu0 %vm214_vm1, %v28432_v44  ;;  %27327 = vmatprep.mubr.msk.f32.mxu0 %vm28582_vm2, %v28581_v8 }
0x1572   :  { %27335 = vmatprep.subr.mxu0 %v28581_v8 }
0x1573   :  { %v11181_v11 = vpop.f32.mrb[134].mxu1 }
0x1574   :  { %v27324_v35 = vpop.f32.mrb[135].mxu1  ;;  %27328 = vmatmul.mubr.msk.f32.vlgmr.msra.gmra.mrb[138].mxu0 %vm214_vm1, %v11186_v25  ;;  %v11637_v20 = vrot.slane %v11181_v11, 7 }
0x1575   :  { %27336 = vmatpush3.xpose.msk.msra.mxu0 %vm214_vm1, %v28433_v30  ;;  %27337 = vmatprep.mubr.msk.f32.mxu0 %vm28582_vm2, %v28581_v8  ;;  %v28439_v30 = vld [vmem:[#allocation7 + $0x58] sm:$0xff] }
0x1576   :  { %27345 = vmatprep.subr.mxu0 %v28581_v8 }
0x1577   :  { %v11329_v40 = vpop.f32.mrb[136].mxu1 }
0x1578   :  { %v27334_v31 = vpop.f32.mrb[137].mxu1  ;;  %27338 = vmatmul.mubr.msk.f32.vlgmr.msra.gmra.mrb[140].mxu0 %vm214_vm1, %v11334_v3  ;;  %v11641_v37 = vrot.slane %v11329_v40, 5  ;;  %v28438_v3 = vld [vmem:[#allocation7 + $0x50] sm:$0xff] }
0x1579   :  { %27346 = vmatpush3.xpose.msk.msra.mxu0 %vm214_vm1, %v28434_v53  ;;  %27347 = vmatprep.mubr.msk.f32.mxu0 %vm28582_vm2, %v28581_v8  ;;  %v28440_v53 = vld [vmem:[#allocation7 + $0x60] sm:$0xff] }
0x157a   :  { %27355 = vmatprep.subr.mxu0 %v28581_v8 }
0x157b   :  { %v11477_v62 = vpop.f32.mrb[138].mxu1 }
0x157c   :  { %v27344_v2 = vpop.f32.mrb[139].mxu1  ;;  %27348 = vmatmul.mubr.msk.f32.vlgmr.msra.gmra.mrb[142].mxu0 %vm214_vm1, %v11482_v55  ;;  %v11645_v19 = vrot.slane %v11477_v62, 3  ;;  %v28441_v62 = vld [vmem:[#allocation7 + $0x68] sm:$0xff] }
0x157d   :  { %27356 = vmatpush3.msra.mxu0 %v28435_v29  ;;  %27357 = vmatprep.mubr.msk.f32.mxu0 %vm28582_vm2, %v28581_v8  ;;  %v28442_v29 = vld [vmem:[#allocation7 + $0x70] sm:$0xff] }
0x157e   :  { %27365 = vmatprep.subr.mxu0 %v28581_v8 }
0x157f   :  { %v11625_v43 = vpop.f32.mrb[140].mxu1 }
0x1580   :  { %v27354_v42 = vpop.f32.mrb[141].mxu1  ;;  %v11649_v58 = vrot.slane %v11625_v43, 1 }
0x1581   :  { %v28443_v42 = vld [vmem:[#allocation7 + $0x78] sm:$0xff] }
0x163f   :  { %v10953_v28 = vpop.f32.mrb[134].mxu0 }
0x1640   :  { %v30082_v47 = vadd.f32 %v10953_v28, %v29939_v0  ;;  %v27309_v14 = vpop.f32.mrb[135].mxu0 }
0x1643   :  { %v11107_v38 = vpop.f32.mrb[136].mxu0 }
0x1644   :  { %v11638_v10 = vsel %vm948_vm3, %v11637_v20, %v11107_v38  ;;  %v27319_v54 = vpop.f32.mrb[137].mxu0  ;;  %v28444_v20 = vld [vmem:[%s31742_s6 + $0x18] sm:$0xff] }
0x1647   :  { %v11255_v56 = vpop.f32.mrb[138].mxu0 }
0x1648   :  { %v11639_v61 = vrot.slane %v11255_v56, 6  ;;  %v27329_v1 = vpop.f32.mrb[139].mxu0 }
0x164a   :  { %v11640_v27 = vsel %vm951_vm4, %v11639_v61, %v11638_v10 }
0x164b   :  { %v11403_v32 = vpop.f32.mrb[140].mxu0  ;;  %v11642_v46 = vsel %vm954_vm5, %v11641_v37, %v11640_v27 }
0x164c   :  { %v11643_v48 = vrot.slane %v11403_v32, 4  ;;  %v27339_v49 = vpop.f32.mrb[141].mxu0 }
0x164e   :  { %v11644_v0 = vsel %vm957_vm6, %v11643_v48, %v11642_v46 }
0x164f   :  { %v11551_v51 = vpop.f32.mrb[142].mxu0  ;;  %v11646_v36 = vsel %vm960_vm7, %v11645_v19, %v11644_v0 }
0x1650   :  { %v11647_v52 = vrot.slane %v11551_v51, 2  ;;  %v27349_v41 = vpop.f32.mrb[143].mxu0 }
0x1652   :  { %v11648_v63 = vsel %vm963_vm8, %v11647_v52, %v11646_v36 }
0x1653   :  { %v11650_v4 = vsel %vm966_vm9, %v11649_v58, %v11648_v63 }
0x1654   :  { %v11652_v16 = vadd.f32 %v11650_v4, %v11036_v60 }
0x1656   :  { %v11653_v12 = vadd.f32 %v28436_v13, %v11652_v16 }
0x1658   :  { %v11654_v9 = vsel %vm214_vm1, %v11653_v12, -inf }
0x1659   :  { %11655 = vmax.xlane.f32.xlu1 %v11654_v9 }
0x165d   :  { %12477 = vadd.xlane.f32.xlu1 %v12476_v34 }
0x16e6   :  { %v11656_v7 = vpop.xlane.xlu1 %11655 }
0x16e7   :  { %v11657_v59 = vsub.f32 %v11653_v12, %v11656_v7 }
0x16e9   :  { %v11658_v33 = vmul.f32 1.442695, %v11657_v59 }
0x16eb   :  { %28348 = vpow2.f32 %v11658_v33 }
0x16f5   :  { %v28349_v50 = vpop.eup %28348 }
0x16f6   :  { %v11660_v6 = vsel %vm214_vm1, %v28349_v50, 0.0 }
0x16f7   :  { %11661 = vadd.xlane.f32.xlu0 %v11660_v6  ;;  %v12478_v6 = vpop.xlane.xlu1 %12477 }
0x170d   :  { %12291 = vrot.lane.b32.xlu0 %v28766_v18, %s31756_s3  ;;  %s31769_s3 = smov 40  }
0x1784   :  { %v11662_v24 = vpop.xlane.xlu0 %11661 }
0x1785   :  { %28350 = vrcp.f32 %v11662_v24  ;;  %v12483_v24 = vmul.f32 0.03125, %v12478_v6 }
0x1788   :  { %v12292_v28 = vpop.permute.xlu0 %12291 }
0x178f   :  { %v28351_v15 = vpop.eup %28350 }
0x1790   :  { %v11664_v23 = vmul.f32 %v28351_v15, %v28349_v50 }
0x1792   :  { %v11673_v25 = vrot.slane %v11664_v23, %v28764_v17  ;;  %v11666_v26 = vcombine.high %v11664_v23, %v11664_v23 }
0x1794   :  { %v11689_v39 = vrot.slane %v11673_v25, %v28764_v17  ;;  %v11681_v44 = vcombine.high %v11673_v25, %v11673_v25  ;;  %v11680_v35 = vrot.slane %v11666_v26, %v28764_v17  ;;  %v12485_v26 = vsub.f32 %v30102_v45, %v12483_v24 }
0x1796   :  { %27358 = vmatmul.mubr.msk.f32.vlgmr.msra.gmra.mrb[144].mxu0 %vm214_vm1, %v11689_v39  ;;  %v11703_v11 = vrot.slane %v11681_v44, %v28764_v17  ;;  %v11711_v18 = vcombine.high %v11689_v39, %v11689_v39  ;;  %v11682_v31 = vcombine.high %v11680_v35, %v11680_v35  ;;  %v11696_v55 = vrot.slane %v11680_v35, %v28764_v17  ;;  %v28445_v44 = vld [vmem:[#allocation2 + $0x8] sm:$0xff] }
0x1797   :  { %27366 = vmatpush3.msra.mxu0 %v28438_v3  ;;  %27367 = vmatprep.mubr.msk.f32.mxu0 %vm28582_vm2, %v28581_v8  ;;  %v12487_v3 = vmul.f32 %v12485_v26, %v12485_v26 }
0x1798   :  { %27363 = vmatmul.mubr.msk.f32.vlgmr.msra.gmra.mrb[142].mxu1 %vm214_vm1, %v11703_v11  ;;  %27375 = vmatprep.subr.mxu0 %v28581_v8  ;;  %v11713_v40 = vcombine.high %v11703_v11, %v11703_v11  ;;  %v11710_v2 = vrot.slane %v11682_v31, %v28764_v17  ;;  %v11712_v43 = vcombine.high %v11696_v55, %v11696_v55 }
0x1799   :  { %27371 = vmatpush3.msra.mxu1 %v28439_v30  ;;  %27372 = vmatprep.mubr.msk.f32.mxu1 %vm28582_vm2, %v28581_v8 }
0x179a   :  { %27368 = vmatmul.mubr.msk.f32.vlgmr.msra.gmra.mrb[146].mxu0 %vm214_vm1, %v11711_v18  ;;  %27380 = vmatprep.subr.mxu1 %v28581_v8  ;;  %v11714_v14 = vcombine.high %v11710_v2, %v11710_v2  ;;  %v12489_v18 = vsel %vm112_vm0, %v12487_v3, 0.0 }
0x179b   :  { %27376 = vmatpush3.msra.mxu0 %v28440_v53  ;;  %27377 = vmatprep.mubr.msk.f32.mxu0 %vm28582_vm2, %v28581_v8 }
0x179c   :  { %27373 = vmatmul.mubr.msk.f32.vlgmr.msra.gmra.mrb[144].mxu1 %vm214_vm1, %v11713_v40  ;;  %27385 = vmatprep.subr.mxu0 %v28581_v8 }
0x179d   :  { %27381 = vmatpush3.msra.mxu1 %v28441_v62  ;;  %27382 = vmatprep.mubr.msk.f32.mxu1 %vm28582_vm2, %v28581_v8 }
0x179e   :  { %27378 = vmatmul.mubr.msk.f32.vlgmr.msra.gmra.mrb[148].mxu0 %vm214_vm1, %v11696_v55  ;;  %27390 = vmatprep.subr.mxu1 %v28581_v8 }
0x179f   :  { %27386 = vmatpush3.msra.mxu0 %v28442_v29  ;;  %27387 = vmatprep.mubr.msk.f32.mxu0 %vm28582_vm2, %v28581_v8 }
0x17a0   :  { %27383 = vmatmul.mubr.msk.f32.vlgmr.msra.gmra.mrb[146].mxu1 %vm214_vm1, %v11710_v2  ;;  %27395 = vmatprep.subr.mxu0 %v28581_v8  ;;  %v25703_v2 = vld [vmem:[%s31744_s8] ss:$0 sm:$0xff] }
0x17a1   :  { %27391 = vmatpush3.msra.mxu1 %v28443_v42  ;;  %27392 = vmatprep.mubr.msk.f32.mxu1 %vm28582_vm2, %v28581_v8 }
0x17a2   :  { %27388 = vmatmul.mubr.msk.f32.vlgmr.msra.gmra.mrb[150].mxu0 %vm214_vm1, %v11712_v43  ;;  %27400 = vmatprep.subr.mxu1 %v28581_v8  ;;  %v25704_v43 = vld [vmem:[%s31745_s9] ss:$0 sm:$0xff] }
0x17a3   :  { %27396 = vmatpush3.msra.mxu0 %v12292_v28  ;;  %27397 = vmatprep.mubr.msk.f32.mxu0 %vm28582_vm2, %v28581_v8 }
0x17a4   :  { %27393 = vmatmul.mubr.msk.f32.vlgmr.msra.gmra.mrb[148].mxu1 %vm214_vm1, %v11714_v14  ;;  %v12519_v14 = vld [vmem:[%s31746_s10] sm:$0xff] }
0x17a5   :  { %27401 = vmatpush3.msra.mxu1 %v28444_v20  ;;  %27402 = vmatprep.mubr.msk.f32.mxu1 %vm28582_vm2, %v28581_v8  ;;  %v12520_v20 = vld [vmem:[%s31746_s10 + $0x8] sm:$0xff] }
0x17a6   :  { %27398 = vmatmul.mubr.msk.f32.vlgmr.msra.gmra.mrb[152].mxu0 %vm214_vm1, %v11664_v23 }
0x1869   :  { %v11783_v38 = vpop.f32.mrb[144].mxu0 }
0x186a   :  { %v27359_v10 = vpop.f32.mrb[145].mxu0 }
0x186b   :  { %v11855_v54 = vpop.f32.mrb[142].mxu1  ;;  %v28244_v10 = vpack.c.bf16 %v12520_v20, %v12519_v14 }
0x186c   :  { %v12302_v56 = vrot.slane %v11855_v54, 7  ;;  %v27364_v61 = vpop.f32.mrb[143].mxu1  ;;  %v12522_v54 = vld [vmem:[%s31746_s10 + $0x18] sm:$0xff] }
0x186d   :  { %v11927_v1 = vpop.f32.mrb[146].mxu0  ;;  %28245 = vmatprep.subr.bf16.mxu0 %v28244_v10 }
0x186e   :  { %v12303_v37 = vsel %vm948_vm3, %v12302_v56, %v11783_v38  ;;  %v12304_v27 = vrot.slane %v11927_v1, 6  ;;  %v27369_v32 = vpop.f32.mrb[147].mxu0  ;;  %v12521_v38 = vld [vmem:[%s31746_s10 + $0x10] sm:$0xff]  ;;  %28247 = vmatpush3.bf16.msra.mxu0 %v28244_v10 }
0x186f   :  { %v11999_v46 = vpop.f32.mrb[144].mxu1  ;;  %v28248_v56 = vpack.c.bf16 %v12522_v54, %v12521_v38 }
0x1870   :  { %v12305_v48 = vsel %vm951_vm4, %v12304_v27, %v12303_v37  ;;  %v12306_v49 = vrot.slane %v11999_v46, 5  ;;  %v27374_v19 = vpop.f32.mrb[145].mxu1 }
0x1871   :  { %v12071_v0 = vpop.f32.mrb[148].mxu0  ;;  %28249 = vmatprep.subr.bf16.mxu0 %v28248_v56  ;;  %v12630_v19 = vld [vmem:[%s31748_s12 + $0x8] sm:$0xff] }
0x1872   :  { %v12307_v51 = vsel %vm954_vm5, %v12306_v49, %v12305_v48  ;;  %v12308_v36 = vrot.slane %v12071_v0, 4  ;;  %v27379_v52 = vpop.f32.mrb[149].mxu0  ;;  %28251 = vmatpush3.bf16.msra.mxu0 %v28248_v56  ;;  %v12629_v49 = vld [vmem:[%s31748_s12] sm:$0xff]  ;;  %v12631_v0 = vld [vmem:[%s31748_s12 + $0x10] sm:$0xff] }
0x1873   :  { %v12143_v41 = vpop.f32.mrb[146].mxu1 }
0x1874   :  { %v12309_v58 = vsel %vm957_vm6, %v12308_v36, %v12307_v51  ;;  %v12310_v60 = vrot.slane %v12143_v41, 3  ;;  %v27384_v63 = vpop.f32.mrb[147].mxu1  ;;  %v28252_v51 = vpack.c.bf16 %v12630_v19, %v12629_v49  ;;  %v12632_v36 = vld [vmem:[%s31748_s12 + $0x18] sm:$0xff]  ;;  %v12633_v41 = vld [vmem:[%s31748_s12 + $0x20] sm:$0xff] }
0x1875   :  { %v12215_v4 = vpop.f32.mrb[150].mxu0  ;;  %v28256_v52 = vpack.c.bf16 %v12632_v36, %v12631_v0  ;;  %v12635_v63 = vld [vmem:[%s31748_s12 + $0x30] sm:$0xff] }
0x1876   :  { %v12311_v5 = vsel %vm960_vm7, %v12310_v60, %v12309_v58  ;;  %v12312_v16 = vrot.slane %v12215_v4, 2  ;;  %v27389_v13 = vpop.f32.mrb[151].mxu0  ;;  %v12634_v58 = vld [vmem:[%s31748_s12 + $0x28] sm:$0xff]  ;;  %28253 = vmatprep.subr.bf16.mxu1 %v28252_v51  ;;  %v12636_v4 = vld [vmem:[%s31748_s12 + $0x38] sm:$0xff] }
0x1877   :  { %v12287_v12 = vpop.f32.mrb[148].mxu1  ;;  %v28260_v60 = vpack.c.bf16 %v12634_v58, %v12633_v41  ;;  %v25711_v41 = vld [vmem:[%s31750_s14] ss:$0 sm:$0xff] }
0x1878   :  { %v12314_v9 = vrot.slane %v12287_v12, 1  ;;  %v27394_v22 = vpop.f32.mrb[149].mxu1  ;;  %v12313_v34 = vsel %vm963_vm8, %v12312_v16, %v12311_v5  ;;  %v28264_v5 = vpack.c.bf16 %v12636_v4, %v12635_v63  ;;  %v25705_v16 = vld [vmem:[%s31747_s11] ss:$0 sm:$0xff] }
0x1879   :  { %v12385_v7 = vpop.f32.mrb[152].mxu0 }
0x187a   :  { %v12315_v59 = vsel %vm966_vm9, %v12314_v9, %v12313_v34  ;;  %v27399_v33 = vpop.f32.mrb[153].mxu0 }
0x187b   :  { %v12386_v50 = vadd.f32 %v12385_v7, %v12315_v59 }
0x187d   :  { %27403 = vmatmul.mubr.msk.f32.vlgmr.msra.gmra.mrb[150].mxu1 %vm214_vm1, %v12386_v50 }
0x187e   :  { %28255 = vmatpush3.bf16.msra.mxu1 %v28252_v51 }
0x187f   :  { %28257 = vmatprep.subr.bf16.mxu1 %v28256_v52 }
0x1882   :  { %28259 = vmatpush3.bf16.msra.mxu1 %v28256_v52 }
0x1883   :  { %28261 = vmatprep.subr.bf16.mxu1 %v28260_v60 }
0x1886   :  { %28263 = vmatpush3.bf16.msra.mxu1 %v28260_v60  ;;  %v25712_v60 = vld [vmem:[%s31751_s15] ss:$0 sm:$0xff] }
0x1887   :  { %28265 = vmatprep.subr.bf16.mxu1 %v28264_v5 }
0x188a   :  { %28267 = vmatpush3.bf16.msra.mxu1 %v28264_v5 }
0x188b   :  { %27451 = vmatprep.subr.mxu1 %v28581_v8 }
0x1950   :  { %v12458_v15 = vpop.f32.mrb[150].mxu1 }
0x1951   :  { %v12462_v23 = vadd.f32 %v12458_v15, %v30082_v47  ;;  %v27404_v25 = vpop.f32.mrb[151].mxu1 }
0x1953   :  { %v12471_v39 = vadd.f32 %v30092_v57, %v12462_v23 }
0x1955   :  { %v12473_v11 = vadd.f32 %v28445_v44, %v12471_v39 }
0x1957   :  { %v12479_v35 = vsel %vm112_vm0, %v12473_v11, 0.0 }
0x1958   :  { %12480 = vadd.xlane.f32.xlu1 %v12479_v35 }
0x195c   :  { %12490 = vadd.xlane.f32.xlu1 %v12489_v18 }
0x19e5   :  { %v12481_v30 = vpop.xlane.xlu1 %12480 }
0x19e6   :  { %v12484_v40 = vmul.f32 0.03125, %v12481_v30 }
0x19e8   :  { %v12486_v31 = vsub.f32 %v12473_v11, %v12484_v40  ;;  %v25708_v40 = vld [vmem:[%s31749_s13] ss:$0 sm:$0xff] }
0x19e9   :  { %v12491_v53 = vpop.xlane.xlu1 %12490 }
0x19ea   :  { %v12495_v55 = vmul.f32 0.03125, %v12491_v53  ;;  %v12488_v47 = vmul.f32 %v12486_v31, %v12486_v31 }
0x19ec   :  { %v12497_v62 = vadd.f32 1e-12, %v12495_v55  ;;  %v12492_v45 = vsel %vm112_vm0, %v12488_v47, 0.0 }
0x19ed   :  { %12493 = vadd.xlane.f32.xlu1 %v12492_v45 }
0x19ee   :  { %28352 = vrsqrt.f32 %v12497_v62 }
0x19f8   :  { %v28353_v57 = vpop.eup %28352 }
0x19f9   :  { %v12501_v29 = vmul.f32 %v28353_v57, %v12485_v26 }
0x19fb   :  { %v12509_v42 = vmul.f32 %v25703_v2, %v12501_v29 }
0x19fd   :  { %v30169_v28 = vadd.f32 %v25704_v43, %v12509_v42 }
0x19ff   :  { %27413 = vmatprep.mubr.msk.f32.mxu0 %vm112_vm0, %v30169_v28 }
0x1a7a   :  { %v12494_v61 = vpop.xlane.xlu1 %12493 }
0x1a7b   :  { %v12496_v1 = vmul.f32 0.03125, %v12494_v61  ;;  %v25717_v61 = vld [vmem:[%s31740_s4 + $0x20] sm:$0xff] }
0x1a7d   :  { %v12498_v37 = vadd.f32 1e-12, %v12496_v1  ;;  %v25718_v1 = vld [vmem:[%s31740_s4 + $0x28] sm:$0xff] }
0x1a7f   :  { %28354 = vrsqrt.f32 %v12498_v37  ;;  %v25719_v37 = vld [vmem:[%s31740_s4 + $0x30] sm:$0xff] }
0x1a89   :  { %v28355_v27 = vpop.eup %28354 }
0x1a8a   :  { %v12502_v32 = vmul.f32 %v28355_v27, %v12486_v31  ;;  %v28268_v27 = vpack.c.bf16 %v25718_v1, %v25717_v61 }
0x1a8c   :  { %v12510_v46 = vmul.f32 %v25703_v2, %v12502_v32  ;;  %v25720_v32 = vld [vmem:[%s31740_s4 + $0x38] sm:$0xff]  ;;  %28269 = vmatprep.subr.bf16.mxu0 %v28268_v27  ;;  %s31768_s4 = smov 48  }
0x1a8e   :  { %v12518_v48 = vadd.f32 %v25704_v43, %v12510_v46  ;;  %v28272_v46 = vpack.c.bf16 %v25720_v32, %v25719_v37 }
0x1a90   :  { %27414 = vmatmul.mubr.msk.f32.vlgmr.msra.gmra.mrb[154].mxu0 %vm112_vm0, %v12518_v48 }
0x1a91   :  { %28271 = vmatpush3.bf16.msra.mxu0 %v28268_v27 }
0x1a92   :  { %28273 = vmatprep.subr.bf16.mxu0 %v28272_v46 }
0x1a95   :  { %28275 = vmatpush3.bf16.msra.mxu0 %v28272_v46 }
0x1a96   :  { %27446 = vmatprep.subr.mxu0 %v28581_v8 }
0x1b63   :  { %v27415_v13 = vpop.f32.mrb[154].mxu0 }
0x1b64   :  { %v12608_v12 = vadd.f32 %v27415_v13, %v25705_v16  ;;  %v12602_v9 = vpop.f32.mrb[155].mxu0 }
0x1b65   :  { %v12603_v22 = vadd.f32 %v25705_v16, %v12602_v9  ;;  %v30259_v9 = vld [vmem:[#allocation5 + $0x80] sm:$0xff] }
0x1b66   :  { %v12614_v34 = vmul.f32 0.044715, %v12608_v12  ;;  %v12612_v3 = vmul.f32 0.5, %v12608_v12 }
0x1b67   :  { %v12613_v7 = vmul.f32 0.044715, %v12603_v22  ;;  %v12611_v11 = vmul.f32 0.5, %v12603_v22 }
0x1b68   :  { %v12616_v59 = vmul.f32 %v12614_v34, %v12608_v12 }
0x1b69   :  { %v12615_v33 = vmul.f32 %v12613_v7, %v12603_v22 }
0x1b6a   :  { %v12618_v50 = vmul.f32 %v12616_v59, %v12608_v12 }
0x1b6b   :  { %v12617_v6 = vmul.f32 %v12615_v33, %v12603_v22 }
0x1b6c   :  { %v12620_v24 = vadd.f32 %v12618_v50, %v12608_v12 }
0x1b6d   :  { %v12619_v15 = vadd.f32 %v12617_v6, %v12603_v22  ;;  %v25722_v22 = vld [vmem:[%s31741_s5 + $0x1] ss:$0 sm:$0xff] }
0x1b6e   :  { %v12622_v23 = vmul.f32 0.7978846, %v12620_v24  ;;  %v30278_v24 = vld [vmem:[#allocation5 + $0x90] sm:$0xff] }
0x1b6f   :  { %v12621_v25 = vmul.f32 0.7978846, %v12619_v15 }
0x1b70   :  { %28356 = vtanh.f32 %v12622_v23 }
0x1b71   :  { %28358 = vtanh.f32 %v12621_v25  ;;  %v30293_v25 = vld [vmem:[#allocation5 + $0xa0] sm:$0xff] }
0x1b7a   :  { %v28357_v26 = vpop.eup %28356 }
0x1b7b   :  { %v28359_v39 = vpop.eup %28358  ;;  %v12626_v44 = vadd.f32 1.0, %v28357_v26 }
0x1b7c   :  { %v12625_v35 = vadd.f32 1.0, %v28359_v39 }
0x1b7d   :  { %v12628_v30 = vmul.f32 %v12626_v44, %v12612_v3  ;;  %v30306_v44 = vld [vmem:[#allocation5 + $0xb0] sm:$0xff]  ;;  %v30325_v3 = vld [vmem:[#allocation5 + $0x88] sm:$0xff] }
0x1b7e   :  { %v12627_v18 = vmul.f32 %v12625_v35, %v12611_v11 }
0x1b80   :  { %27432 = vmatprep.mubr.msk.f32.mxu1 %vm12644_vm10, %v12627_v18 }
0x1b81   :  { %27433 = vmatmul.mubr.msk.f32.vlgmr.msra.gmra.mrb[152].mxu1 %vm12644_vm10, %v12628_v30 }
0x1b82   :  { %27453 = vmatprep.mubr.msk.f32.mxu1 %vm28582_vm2, %v28581_v8  ;;  %27452 = vmatpush3.xpose.msk.msra.mxu1 %vm214_vm1, %v30259_v9 }
0x1b83   :  { %27461 = vmatprep.subr.mxu1 %v28581_v8 }
0x1c54   :  { %v27434_v31 = vpop.f32.mrb[152].mxu1 }
0x1c55   :  { %v12717_v53 = vpop.f32.mrb[153].mxu1  ;;  %v12723_v55 = vadd.f32 %v27434_v31, %v25708_v40 }
0x1c56   :  { %v12718_v47 = vadd.f32 %v25708_v40, %v12717_v53  ;;  %v30337_v40 = vld [vmem:[#allocation5 + $0x98] sm:$0xff]  ;;  %v30350_v53 = vld [vmem:[#allocation5 + $0xa8] sm:$0xff] }
0x1c57   :  { %v12727_v45 = vadd.f32 %v12723_v55, %v12518_v48 }
0x1c58   :  { %v12726_v62 = vadd.f32 %v12718_v47, %v30169_v28 }
0x1c59   :  { %v12733_v2 = vsel %vm112_vm0, %v12727_v45, 0.0 }
0x1c5a   :  { %v12730_v57 = vsel %vm112_vm0, %v12726_v62, 0.0 }
0x1c5b   :  { %12731 = vadd.xlane.f32.xlu1 %v12730_v57 }
0x1c5f   :  { %12734 = vadd.xlane.f32.xlu1 %v12733_v2 }
0x1ce8   :  { %v12732_v29 = vpop.xlane.xlu1 %12731 }
0x1ce9   :  { %v12736_v43 = vmul.f32 0.03125, %v12732_v29 }
0x1ceb   :  { %v12738_v42 = vsub.f32 %v12726_v62, %v12736_v43  ;;  %v30360_v62 = vld [vmem:[#allocation5 + $0xb8] sm:$0xff] }
0x1cec   :  { %v12735_v14 = vpop.xlane.xlu1 %12734 }
0x1ced   :  { %v12737_v20 = vmul.f32 0.03125, %v12735_v14  ;;  %v12740_v38 = vmul.f32 %v12738_v42, %v12738_v42 }
0x1cef   :  { %v12739_v10 = vsub.f32 %v12727_v45, %v12737_v20  ;;  %v12742_v54 = vsel %vm112_vm0, %v12740_v38, 0.0 }
0x1cf0   :  { %12743 = vadd.xlane.f32.xlu0 %v12742_v54 }
0x1cf1   :  { %v12741_v56 = vmul.f32 %v12739_v10, %v12739_v10 }
0x1cf3   :  { %v12745_v28 = vsel %vm112_vm0, %v12741_v56, 0.0 }
0x1cf4   :  { %12746 = vadd.xlane.f32.xlu1 %v12745_v28 }
0x1d7d   :  { %v12744_v48 = vpop.xlane.xlu0 %12743 }
0x1d7e   :  { %v12748_v49 = vmul.f32 0.03125, %v12744_v48 }
0x1d80   :  { %v12750_v19 = vadd.f32 1e-12, %v12748_v49 }
0x1d81   :  { %v12747_v0 = vpop.xlane.xlu1 %12746 }
0x1d82   :  { %28360 = vrsqrt.f32 %v12750_v19  ;;  %v12749_v51 = vmul.f32 0.03125, %v12747_v0 }
0x1d84   :  { %v12751_v36 = vadd.f32 1e-12, %v12749_v51 }
0x1d86   :  { %28362 = vrsqrt.f32 %v12751_v36 }
0x1d8c   :  { %v28361_v52 = vpop.eup %28360 }
0x1d8d   :  { %v12754_v58 = vmul.f32 %v28361_v52, %v12738_v42 }
0x1d8f   :  { %v12762_v63 = vmul.f32 %v25711_v41, %v12754_v58 }
0x1d90   :  { %v28363_v4 = vpop.eup %28362 }
0x1d91   :  { %v12755_v5 = vmul.f32 %v28363_v4, %v12739_v10  ;;  %v30245_v16 = vadd.f32 %v25712_v60, %v12762_v63 }
0x1d93   :  { %v12763_v13 = vmul.f32 %v25711_v41, %v12755_v5  ;;  %27443 = vmatprep.mubr.msk.f32.mxu0 %vm112_vm0, %v30245_v16  ;;  %12772 = vst.msk [vmem:[#allocation8] sm:$0xff] %vm112_vm0, %v30245_v16 }
0x1d95   :  { %v30251_v12 = vadd.f32 %v25712_v60, %v12763_v13 }
0x1d97   :  { %12773 = vst.msk [vmem:[#allocation8 + $0x8] sm:$0xff] %vm112_vm0, %v30251_v12  ;;  %27444 = vmatmul.mubr.msk.f32.vlgmr.msra.gmra.mrb[156].mxu0 %vm112_vm0, %v30251_v12 }
0x1d98   :  { %27448 = vmatprep.mubr.msk.f32.mxu0 %vm28582_vm2, %v28581_v8 }
0x1e6a   :  { %v27445_v34 = vpop.f32.mrb[156].mxu0 }
0x1e6b   :  { %v30267_v7 = vadd.f32 %v27445_v34, %v25722_v22  ;;  %v12864_v59 = vpop.f32.mrb[157].mxu0  ;;  %v30381_v34 = vld [vmem:[%s31737_s1] ss:$0 sm:$0xff] }
0x1e6c   :  { %v30269_v33 = vadd.f32 %v25722_v22, %v12864_v59 }
0x1e6e   :  { %12893 = vrot.lane.b32.xlu1 %v30269_v33, %s28585_s0  ;;  %v12977_v50 = vrot.slane %v30269_v33, %v28764_v17  ;;  %v12970_v15 = vcombine.high %v30269_v33, %v30269_v33 }
0x1e70   :  { %v30276_v6 = vrot.slane %v12977_v50, %v28764_v17  ;;  %v12984_v26 = vrot.slane %v12970_v15, %v28764_v17  ;;  %v12985_v18 = vcombine.high %v12977_v50, %v12977_v50 }
0x1e72   :  { %27454 = vmatmul.mubr.msk.f32.vlgmr.msra.gmra.mrb[154].mxu1 %vm214_vm1, %v30276_v6  ;;  %v30290_v23 = vcombine.high %v30276_v6, %v30276_v6  ;;  %v30303_v39 = vrot.slane %v12984_v26, %v28764_v17  ;;  %v30334_v30 = vrot.slane %v12985_v18, %v28764_v17  ;;  %v12986_v55 = vcombine.high %v12984_v26, %v12984_v26 }
0x1e73   :  { %27462 = vmatpush3.xpose.msk.msra.mxu1 %vm214_vm1, %v30278_v24  ;;  %27463 = vmatprep.mubr.msk.f32.mxu1 %vm28582_vm2, %v28581_v8 }
0x1e74   :  { %27471 = vmatprep.subr.mxu1 %v28581_v8  ;;  %v30316_v11 = vcombine.high %v30303_v39, %v30303_v39  ;;  %v30347_v31 = vcombine.high %v30334_v30, %v30334_v30  ;;  %v13014_v47 = vrot.slane %v12986_v55, %v28764_v17 }
0x1e76   :  { %27464 = vmatmul.mubr.msk.f32.vlgmr.msra.gmra.mrb[156].mxu1 %vm214_vm1, %v30290_v23  ;;  %v13018_v45 = vcombine.high %v13014_v47, %v13014_v47  ;;  %v30388_v26 = vrot.slane %v13014_v47, %v28895_v21 }
0x1e77   :  { %27472 = vmatpush3.xpose.msk.msra.mxu1 %vm214_vm1, %v30293_v25  ;;  %27473 = vmatprep.mubr.msk.f32.mxu1 %vm28582_vm2, %v28581_v8 }
0x1e78   :  { %27481 = vmatprep.subr.mxu1 %v28581_v8 }
0x1e7a   :  { %27474 = vmatmul.mubr.msk.f32.vlgmr.msra.gmra.mrb[158].mxu1 %vm214_vm1, %v30303_v39 }
0x1e7b   :  { %27482 = vmatpush3.xpose.msk.msra.mxu1 %vm214_vm1, %v30306_v44  ;;  %27483 = vmatprep.mubr.msk.f32.mxu1 %vm28582_vm2, %v28581_v8 }
0x1e7c   :  { %27491 = vmatprep.subr.mxu1 %v28581_v8 }
0x1e7e   :  { %27484 = vmatmul.mubr.msk.f32.vlgmr.msra.gmra.mrb[160].mxu1 %vm214_vm1, %v30316_v11 }
0x1e7f   :  { %27493 = vmatprep.mubr.msk.f32.mxu1 %vm28582_vm2, %v28581_v8 }
0x1ee0   :  { %v12894_v35 = vpop.permute.xlu1 %12893 }
0x1ee1   :  { %27447 = vmatpush3.xpose.msk.msra.mxu0 %vm214_vm1, %v12894_v35  ;;  %v30393_v35 = vrot.slane %v13018_v45, %v28895_v21 }
0x1ee2   :  { %27456 = vmatprep.subr.mxu0 %v28581_v8 }
0x1ee4   :  { %27449 = vmatmul.mubr.msk.f32.vlgmr.msra.gmra.mrb[158].mxu0 %vm214_vm1, %v30269_v33 }
0x1ee5   :  { %27457 = vmatpush3.xpose.msk.msra.mxu0 %vm214_vm1, %v30325_v3  ;;  %27458 = vmatprep.mubr.msk.f32.mxu0 %vm28582_vm2, %v28581_v8 }
0x1ee6   :  { %27466 = vmatprep.subr.mxu0 %v28581_v8 }
0x1ee8   :  { %27459 = vmatmul.mubr.msk.f32.vlgmr.msra.gmra.mrb[160].mxu0 %vm214_vm1, %v30334_v30 }
0x1ee9   :  { %27467 = vmatpush3.xpose.msk.msra.mxu0 %vm214_vm1, %v30337_v40  ;;  %27468 = vmatprep.mubr.msk.f32.mxu0 %vm28582_vm2, %v28581_v8 }
0x1eea   :  { %27476 = vmatprep.subr.mxu0 %v28581_v8 }
0x1eec   :  { %27469 = vmatmul.mubr.msk.f32.vlgmr.msra.gmra.mrb[162].mxu0 %vm214_vm1, %v30347_v31 }
0x1eed   :  { %27477 = vmatpush3.xpose.msk.msra.mxu0 %vm214_vm1, %v30350_v53  ;;  %27478 = vmatprep.mubr.msk.f32.mxu0 %vm28582_vm2, %v28581_v8 }
0x1eee   :  { %27486 = vmatprep.subr.mxu0 %v28581_v8 }
0x1ef0   :  { %27479 = vmatmul.mubr.msk.f32.vlgmr.msra.gmra.mrb[164].mxu0 %vm214_vm1, %v13014_v47  ;;  %v30400_v47 = vld [vmem:[#allocation7 + $0x80] sm:$0xff] }
0x1ef1   :  { %27487 = vmatpush3.xpose.msk.msra.mxu0 %vm214_vm1, %v30360_v62  ;;  %27488 = vmatprep.mubr.msk.f32.mxu0 %vm28582_vm2, %v28581_v8 }
0x1ef2   :  { %27496 = vmatprep.subr.mxu0 %v28581_v8  ;;  %27492 = vmatpush3.msra.mxu1 %v30400_v47 }
0x1ef3   :  { %27501 = vmatprep.subr.mxu1 %v28581_v8 }
0x1ef4   :  { %27489 = vmatmul.mubr.msk.f32.vlgmr.msra.gmra.mrb[166].mxu0 %vm214_vm1, %v13018_v45  ;;  %v30408_v45 = vrot.slane %v30276_v6, %v28895_v21  ;;  %v30424_v6 = vrot.slane %v30290_v23, %v28895_v21  ;;  %v30442_v23 = vrot.slane %v30316_v11, %v28895_v21 }
0x1ef5   :  { %27498 = vmatprep.mubr.msk.f32.mxu0 %vm28582_vm2, %v28581_v8 }
0x1f45   :  { %v13090_v57 = vpop.f32.mrb[154].mxu1 }
0x1f46   :  { %v27455_v2 = vpop.f32.mrb[155].mxu1 }
0x1f49   :  { %v13240_v29 = vpop.f32.mrb[156].mxu1 }
0x1f4a   :  { %v27465_v43 = vpop.f32.mrb[157].mxu1  ;;  %v13629_v1 = vrot.slane %v13240_v29, 6 }
0x1f4b   :  { %v30410_v43 = vld [vmem:[#allocation7 + $0x88] sm:$0xff] }
0x1f4c   :  { %27497 = vmatpush3.msra.mxu0 %v30410_v43 }
0x1f4d   :  { %v13390_v42 = vpop.f32.mrb[158].mxu1  ;;  %27506 = vmatprep.subr.mxu0 %v28581_v8 }
0x1f4e   :  { %v27475_v14 = vpop.f32.mrb[159].mxu1  ;;  %v13633_v49 = vrot.slane %v13390_v42, 4  ;;  %v30418_v42 = vrot.slane %v30334_v30, %v28895_v21  ;;  %v30436_v30 = vrot.slane %v30303_v39, %v28895_v21 }
0x1f4f   :  { %v30430_v14 = vrot.slane %v30347_v31, %v28895_v21 }
0x1f51   :  { %v13540_v20 = vpop.f32.mrb[160].mxu1 }
0x1f52   :  { %v27485_v38 = vpop.f32.mrb[161].mxu1  ;;  %v13637_v41 = vrot.slane %v13540_v20, 2 }
0x1fb7   :  { %v12965_v10 = vpop.f32.mrb[158].mxu0 }
0x1fb8   :  { %v27450_v54 = vpop.f32.mrb[159].mxu0  ;;  %v12969_v13 = vmul.f32 0.35355338, %v12965_v10 }
0x1fbb   :  { %v13165_v56 = vpop.f32.mrb[160].mxu0 }
0x1fbc   :  { %v13627_v28 = vrot.slane %v13165_v56, 7  ;;  %v27460_v61 = vpop.f32.mrb[161].mxu0 }
0x1fbe   :  { %v13628_v37 = vsel %vm948_vm3, %v13627_v28, %v13090_v57 }
0x1fbf   :  { %v13315_v27 = vpop.f32.mrb[162].mxu0  ;;  %v13630_v32 = vsel %vm951_vm4, %v13629_v1, %v13628_v37  ;;  %v30448_v1 = vld [vmem:[#allocation7 + $0x90] sm:$0xff]  ;;  %v30452_v37 = vld [vmem:[#allocation7 + $0x98] sm:$0xff] }
0x1fc0   :  { %v13631_v46 = vrot.slane %v13315_v27, 5  ;;  %v27470_v48 = vpop.f32.mrb[163].mxu0 }
0x1fc2   :  { %v13632_v19 = vsel %vm954_vm5, %v13631_v46, %v13630_v32  ;;  %v30460_v46 = vld [vmem:[#allocation7 + $0xa0] sm:$0xff] }
0x1fc3   :  { %v13465_v0 = vpop.f32.mrb[164].mxu0  ;;  %v13634_v51 = vsel %vm957_vm6, %v13633_v49, %v13632_v19  ;;  %v30467_v19 = vld [vmem:[#allocation7 + $0xa8] sm:$0xff] }
0x1fc4   :  { %v13635_v36 = vrot.slane %v13465_v0, 3  ;;  %v27480_v52 = vpop.f32.mrb[165].mxu0 }
0x1fc6   :  { %v13636_v58 = vsel %vm960_vm7, %v13635_v36, %v13634_v51  ;;  %v30475_v36 = vld [vmem:[#allocation7 + $0xb0] sm:$0xff] }
0x1fc7   :  { %v13615_v60 = vpop.f32.mrb[166].mxu0  ;;  %v13638_v63 = vsel %vm963_vm8, %v13637_v41, %v13636_v58  ;;  %v30483_v41 = vld [vmem:[#allocation7 + $0xb8] sm:$0xff] }
0x1fc8   :  { %v13639_v4 = vrot.slane %v13615_v60, 1  ;;  %v27490_v5 = vpop.f32.mrb[167].mxu0 }
0x1fca   :  { %v13640_v22 = vsel %vm966_vm9, %v13639_v4, %v13638_v63 }
0x1fcb   :  { %v13642_v59 = vadd.f32 %v13640_v22, %v12969_v13 }
0x1fcd   :  { %v13649_v50 = vadd.f32 %v30381_v34, %v13642_v59 }
0x1fcf   :  { %v13650_v15 = vsel %vm214_vm1, %v13649_v50, -inf }
0x1fd0   :  { %13651 = vmax.xlane.f32.xlu1 %v13650_v15 }
0x1fe1   :  { %14385 = vrot.lane.b32.xlu1 %v30269_v33, %s28586_s26 }
0x1fe5   :  { %14858 = vrot.lane.b32.xlu1 %v30388_v26, %s28586_s26 }
0x1fe9   :  { %15014 = vrot.lane.b32.xlu1 %v30393_v35, %s28586_s26 }
0x205d   :  { %v13652_v18 = vpop.xlane.xlu1 %13651 }
0x205e   :  { %v13653_v55 = vsub.f32 %v13649_v50, %v13652_v18 }
0x2060   :  { %v13654_v57 = vmul.f32 1.442695, %v13653_v55 }
0x2061   :  { %v14386_v5 = vpop.permute.xlu1 %14385 }
0x2062   :  { %28364 = vpow2.f32 %v13654_v57 }
0x2065   :  { %v14859_v59 = vpop.permute.xlu1 %14858 }
0x2069   :  { %v15015_v15 = vpop.permute.xlu1 %15014 }
0x206c   :  { %v28365_v2 = vpop.eup %28364 }
0x206d   :  { %v13656_v29 = vsel %vm214_vm1, %v28365_v2, 0.0 }
0x206e   :  { %13657 = vadd.xlane.f32.xlu0 %v13656_v29 }
0x2084   :  { %14287 = vrot.lane.b32.xlu0 %v30269_v33, %s28584_s30 }
0x2088   :  { %14387 = vrot.lane.b32.xlu0 %v30269_v33, %s28587_s2 }
0x208c   :  { %14468 = vrot.lane.b32.xlu0 %v30408_v45, %s28586_s26 }
0x2090   :  { %14546 = vrot.lane.b32.xlu0 %v30418_v42, %s28586_s26 }
0x2094   :  { %14624 = vrot.lane.b32.xlu0 %v30424_v6, %s28586_s26 }
0x2098   :  { %14702 = vrot.lane.b32.xlu0 %v30430_v14, %s28586_s26 }
0x209c   :  { %14780 = vrot.lane.b32.xlu0 %v30436_v30, %s28586_s26 }
0x20a0   :  { %14936 = vrot.lane.b32.xlu0 %v30442_v23, %s28586_s26 }
0x20fb   :  { %v13658_v20 = vpop.xlane.xlu0 %13657 }
0x20fc   :  { %28366 = vrcp.f32 %v13658_v20 }
0x20ff   :  { %v14288_v31 = vpop.permute.xlu0 %14287 }
0x2103   :  { %v14388_v39 = vpop.permute.xlu0 %14387 }
0x2106   :  { %v28367_v38 = vpop.eup %28366 }
0x2107   :  { %v13660_v10 = vmul.f32 %v28367_v38, %v28365_v2  ;;  %v14469_v48 = vpop.permute.xlu0 %14468 }
0x2109   :  { %v13669_v54 = vrot.slane %v13660_v10, %v28764_v17  ;;  %v13662_v56 = vcombine.high %v13660_v10, %v13660_v10 }
0x210b   :  { %v13685_v28 = vrot.slane %v13669_v54, %v28764_v17  ;;  %v13677_v61 = vcombine.high %v13669_v54, %v13669_v54  ;;  %v13676_v27 = vrot.slane %v13662_v56, %v28764_v17  ;;  %v14547_v58 = vpop.permute.xlu0 %14546 }
0x210d   :  { %27494 = vmatmul.mubr.msk.f32.vlgmr.msra.gmra.mrb[162].mxu1 %vm214_vm1, %v13685_v28  ;;  %v13699_v11 = vrot.slane %v13677_v61, %v28764_v17  ;;  %v13707_v32 = vcombine.high %v13685_v28, %v13685_v28  ;;  %v13678_v0 = vcombine.high %v13676_v27, %v13676_v27  ;;  %v13692_v51 = vrot.slane %v13676_v27, %v28764_v17 }
0x210e   :  { %27502 = vmatpush3.msra.mxu1 %v30448_v1  ;;  %27503 = vmatprep.mubr.msk.f32.mxu1 %vm28582_vm2, %v28581_v8 }
0x210f   :  { %27499 = vmatmul.mubr.msk.f32.vlgmr.msra.gmra.mrb[168].mxu0 %vm214_vm1, %v13699_v11  ;;  %27511 = vmatprep.subr.mxu1 %v28581_v8  ;;  %v13709_v49 = vcombine.high %v13699_v11, %v13699_v11  ;;  %v13706_v52 = vrot.slane %v13678_v0, %v28764_v17  ;;  %v13708_v60 = vcombine.high %v13692_v51, %v13692_v51  ;;  %v14625_v4 = vpop.permute.xlu0 %14624 }
0x2110   :  { %27507 = vmatpush3.msra.mxu0 %v30452_v37  ;;  %27508 = vmatprep.mubr.msk.f32.mxu0 %vm28582_vm2, %v28581_v8 }
0x2111   :  { %27504 = vmatmul.mubr.msk.f32.vlgmr.msra.gmra.mrb[164].mxu1 %vm214_vm1, %v13707_v32  ;;  %27516 = vmatprep.subr.mxu0 %v28581_v8  ;;  %v13710_v63 = vcombine.high %v13706_v52, %v13706_v52 }
0x2112   :  { %27512 = vmatpush3.msra.mxu1 %v30460_v46  ;;  %27513 = vmatprep.mubr.msk.f32.mxu1 %vm28582_vm2, %v28581_v8 }
0x2113   :  { %27509 = vmatmul.mubr.msk.f32.vlgmr.msra.gmra.mrb[170].mxu0 %vm214_vm1, %v13709_v49  ;;  %27521 = vmatprep.subr.mxu1 %v28581_v8  ;;  %v14703_v13 = vpop.permute.xlu0 %14702 }
0x2114   :  { %27517 = vmatpush3.msra.mxu0 %v30467_v19  ;;  %27518 = vmatprep.mubr.msk.f32.mxu0 %vm28582_vm2, %v28581_v8 }
0x2115   :  { %27514 = vmatmul.mubr.msk.f32.vlgmr.msra.gmra.mrb[166].mxu1 %vm214_vm1, %v13692_v51  ;;  %27526 = vmatprep.subr.mxu0 %v28581_v8 }
0x2116   :  { %27522 = vmatpush3.msra.mxu1 %v30475_v36  ;;  %27523 = vmatprep.mubr.msk.f32.mxu1 %vm28582_vm2, %v28581_v8 }
0x2117   :  { %27519 = vmatmul.mubr.msk.f32.vlgmr.msra.gmra.mrb[172].mxu0 %vm214_vm1, %v13706_v52  ;;  %27531 = vmatprep.subr.mxu1 %v28581_v8  ;;  %v14781_v22 = vpop.permute.xlu0 %14780 }
0x2118   :  { %27527 = vmatpush3.msra.mxu0 %v30483_v41  ;;  %27528 = vmatprep.mubr.msk.f32.mxu0 %vm28582_vm2, %v28581_v8 }
0x2119   :  { %27524 = vmatmul.mubr.msk.f32.vlgmr.msra.gmra.mrb[168].mxu1 %vm214_vm1, %v13708_v60  ;;  %27536 = vmatprep.subr.mxu0 %v28581_v8 }
0x211a   :  { %27532 = vmatpush3.msra.mxu1 %v14288_v31  ;;  %27533 = vmatprep.mubr.msk.f32.mxu1 %vm28582_vm2, %v28581_v8 }
0x211b   :  { %27529 = vmatmul.mubr.msk.f32.vlgmr.msra.gmra.mrb[174].mxu0 %vm214_vm1, %v13710_v63  ;;  %27541 = vmatprep.subr.mxu1 %v28581_v8  ;;  %v14937_v50 = vpop.permute.xlu0 %14936 }
0x211c   :  { %27538 = vmatprep.mubr.msk.f32.mxu0 %vm28582_vm2, %v28581_v8 }
0x211d   :  { %27534 = vmatmul.mubr.msk.f32.vlgmr.msra.gmra.mrb[170].mxu1 %vm214_vm1, %v13660_v10 }
0x211e   :  { %27543 = vmatprep.mubr.msk.f32.mxu1 %vm28582_vm2, %v28581_v8 }
0x211f   :  { %27537 = vmatpush3.xpose.msk.msra.mxu0 %vm214_vm1, %v14388_v39 }
0x2120   :  { %27546 = vmatprep.subr.mxu0 %v28581_v8 }
0x2121   :  { %27542 = vmatpush3.xpose.msk.msra.mxu1 %vm214_vm1, %v30259_v9 }
0x2122   :  { %27539 = vmatmul.mubr.msk.f32.vlgmr.msra.gmra.mrb[176].mxu0 %vm214_vm1, %v14386_v5  ;;  %27551 = vmatprep.subr.mxu1 %v28581_v8 }
0x2123   :  { %27547 = vmatpush3.xpose.msk.msra.mxu0 %vm214_vm1, %v30325_v3  ;;  %27548 = vmatprep.mubr.msk.f32.mxu0 %vm28582_vm2, %v28581_v8 }
0x2124   :  { %27544 = vmatmul.mubr.msk.f32.vlgmr.msra.gmra.mrb[172].mxu1 %vm214_vm1, %v14469_v48  ;;  %27556 = vmatprep.subr.mxu0 %v28581_v8 }
0x2125   :  { %27552 = vmatpush3.xpose.msk.msra.mxu1 %vm214_vm1, %v30278_v24  ;;  %27553 = vmatprep.mubr.msk.f32.mxu1 %vm28582_vm2, %v28581_v8 }
0x2126   :  { %27549 = vmatmul.mubr.msk.f32.vlgmr.msra.gmra.mrb[178].mxu0 %vm214_vm1, %v14547_v58  ;;  %27561 = vmatprep.subr.mxu1 %v28581_v8 }
0x2127   :  { %27557 = vmatpush3.xpose.msk.msra.mxu0 %vm214_vm1, %v30337_v40  ;;  %27558 = vmatprep.mubr.msk.f32.mxu0 %vm28582_vm2, %v28581_v8 }
0x2128   :  { %27554 = vmatmul.mubr.msk.f32.vlgmr.msra.gmra.mrb[174].mxu1 %vm214_vm1, %v14625_v4  ;;  %27566 = vmatprep.subr.mxu0 %v28581_v8 }
0x2129   :  { %27562 = vmatpush3.xpose.msk.msra.mxu1 %vm214_vm1, %v30293_v25  ;;  %27563 = vmatprep.mubr.msk.f32.mxu1 %vm28582_vm2, %v28581_v8 }
0x212a   :  { %27559 = vmatmul.mubr.msk.f32.vlgmr.msra.gmra.mrb[180].mxu0 %vm214_vm1, %v14703_v13  ;;  %27571 = vmatprep.subr.mxu1 %v28581_v8 }
0x212b   :  { %27567 = vmatpush3.xpose.msk.msra.mxu0 %vm214_vm1, %v30350_v53  ;;  %27568 = vmatprep.mubr.msk.f32.mxu0 %vm28582_vm2, %v28581_v8 }
0x212c   :  { %27564 = vmatmul.mubr.msk.f32.vlgmr.msra.gmra.mrb[176].mxu1 %vm214_vm1, %v14781_v22  ;;  %27576 = vmatprep.subr.mxu0 %v28581_v8 }
0x212d   :  { %27572 = vmatpush3.xpose.msk.msra.mxu1 %vm214_vm1, %v30306_v44  ;;  %27573 = vmatprep.mubr.msk.f32.mxu1 %vm28582_vm2, %v28581_v8 }
0x212e   :  { %27569 = vmatmul.mubr.msk.f32.vlgmr.msra.gmra.mrb[182].mxu0 %vm214_vm1, %v14859_v59  ;;  %27581 = vmatprep.subr.mxu1 %v28581_v8 }
0x212f   :  { %27577 = vmatpush3.xpose.msk.msra.mxu0 %vm214_vm1, %v30360_v62  ;;  %27578 = vmatprep.mubr.msk.f32.mxu0 %vm28582_vm2, %v28581_v8 }
0x2130   :  { %27574 = vmatmul.mubr.msk.f32.vlgmr.msra.gmra.mrb[178].mxu1 %vm214_vm1, %v14937_v50  ;;  %27586 = vmatprep.subr.mxu0 %v28581_v8 }
0x2131   :  { %27582 = vmatpush3.msra.mxu1 %v30400_v47  ;;  %27583 = vmatprep.mubr.msk.f32.mxu1 %vm28582_vm2, %v28581_v8 }
0x2132   :  { %27579 = vmatmul.mubr.msk.f32.vlgmr.msra.gmra.mrb[184].mxu0 %vm214_vm1, %v15015_v15  ;;  %27591 = vmatprep.subr.mxu1 %v28581_v8 }
0x2133   :  { %27587 = vmatpush3.msra.mxu0 %v30410_v43  ;;  %27588 = vmatprep.mubr.msk.f32.mxu0 %vm28582_vm2, %v28581_v8 }
0x2134   :  { %27596 = vmatprep.subr.mxu0 %v28581_v8 }
0x21e0   :  { %v13779_v18 = vpop.f32.mrb[162].mxu1 }
0x21e1   :  { %v27495_v55 = vpop.f32.mrb[163].mxu1 }
0x21e2   :  { %v13851_v57 = vpop.f32.mrb[168].mxu0 }
0x21e3   :  { %v14298_v2 = vrot.slane %v13851_v57, 7  ;;  %v27500_v29 = vpop.f32.mrb[169].mxu0 }
0x21e4   :  { %v13923_v20 = vpop.f32.mrb[164].mxu1 }
0x21e5   :  { %v14299_v31 = vsel %vm948_vm3, %v14298_v2, %v13779_v18  ;;  %v14300_v38 = vrot.slane %v13923_v20, 6  ;;  %v27505_v10 = vpop.f32.mrb[165].mxu1 }
0x21e6   :  { %v13995_v54 = vpop.f32.mrb[170].mxu0 }
0x21e7   :  { %v14301_v56 = vsel %vm951_vm4, %v14300_v38, %v14299_v31  ;;  %v14302_v39 = vrot.slane %v13995_v54, 5  ;;  %v27510_v28 = vpop.f32.mrb[171].mxu0 }
0x21e8   :  { %v14067_v61 = vpop.f32.mrb[166].mxu1 }
0x21e9   :  { %v14303_v11 = vsel %vm954_vm5, %v14302_v39, %v14301_v56  ;;  %v14304_v27 = vrot.slane %v14067_v61, 4  ;;  %v27515_v32 = vpop.f32.mrb[167].mxu1 }
0x21ea   :  { %v14139_v48 = vpop.f32.mrb[172].mxu0 }
0x21eb   :  { %v14305_v49 = vsel %vm957_vm6, %v14304_v27, %v14303_v11  ;;  %v14306_v0 = vrot.slane %v14139_v48, 3  ;;  %v27520_v51 = vpop.f32.mrb[173].mxu0 }
0x21ec   :  { %v14211_v52 = vpop.f32.mrb[168].mxu1 }
0x21ed   :  { %v14307_v58 = vsel %vm960_vm7, %v14306_v0, %v14305_v49  ;;  %v14308_v60 = vrot.slane %v14211_v52, 2  ;;  %v27525_v63 = vpop.f32.mrb[169].mxu1 }
0x21ee   :  { %v14283_v4 = vpop.f32.mrb[174].mxu0 }
0x21ef   :  { %v14310_v5 = vrot.slane %v14283_v4, 1  ;;  %v27530_v13 = vpop.f32.mrb[175].mxu0  ;;  %v14309_v22 = vsel %vm963_vm8, %v14308_v60, %v14307_v58 }
0x21f0   :  { %v14381_v59 = vpop.f32.mrb[170].mxu1 }
0x21f1   :  { %v14311_v50 = vsel %vm966_vm9, %v14310_v5, %v14309_v22  ;;  %v27535_v15 = vpop.f32.mrb[171].mxu1 }
0x21f2   :  { %v30568_v18 = vadd.f32 %v14381_v59, %v14311_v50 }
0x21f5   :  { %v14459_v55 = vpop.f32.mrb[176].mxu0 }
0x21f6   :  { %v27540_v57 = vpop.f32.mrb[177].mxu0 }
0x21f7   :  { %v14538_v2 = vpop.f32.mrb[172].mxu1  ;;  %v14463_v57 = vmul.f32 0.35355338, %v14459_v55 }
0x21f8   :  { %v27545_v29 = vpop.f32.mrb[173].mxu1 }
0x21f9   :  { %v14616_v20 = vpop.f32.mrb[178].mxu0 }
0x21fa   :  { %v15096_v31 = vrot.slane %v14616_v20, 7  ;;  %v27550_v38 = vpop.f32.mrb[179].mxu0 }
0x21fb   :  { %v14694_v10 = vpop.f32.mrb[174].mxu1 }
0x21fc   :  { %v15097_v54 = vsel %vm948_vm3, %v15096_v31, %v14538_v2  ;;  %v15098_v56 = vrot.slane %v14694_v10, 6  ;;  %v27555_v39 = vpop.f32.mrb[175].mxu1 }
0x21fd   :  { %v14772_v28 = vpop.f32.mrb[180].mxu0 }
0x21fe   :  { %v15099_v61 = vsel %vm951_vm4, %v15098_v56, %v15097_v54  ;;  %v15100_v11 = vrot.slane %v14772_v28, 5  ;;  %v27560_v27 = vpop.f32.mrb[181].mxu0 }
0x21ff   :  { %v14850_v32 = vpop.f32.mrb[176].mxu1 }
0x2200   :  { %v15101_v48 = vsel %vm954_vm5, %v15100_v11, %v15099_v61  ;;  %v15102_v49 = vrot.slane %v14850_v32, 4  ;;  %v27565_v0 = vpop.f32.mrb[177].mxu1 }
0x2201   :  { %v14928_v51 = vpop.f32.mrb[182].mxu0 }
0x2202   :  { %v15103_v52 = vsel %vm957_vm6, %v15102_v49, %v15101_v48  ;;  %v15104_v58 = vrot.slane %v14928_v51, 3  ;;  %v27570_v60 = vpop.f32.mrb[183].mxu0 }
0x2203   :  { %v15006_v63 = vpop.f32.mrb[178].mxu1 }
0x2204   :  { %v15105_v4 = vsel %vm960_vm7, %v15104_v58, %v15103_v52  ;;  %v15106_v5 = vrot.slane %v15006_v63, 2  ;;  %v27575_v13 = vpop.f32.mrb[179].mxu1 }
0x2205   :  { %v15084_v22 = vpop.f32.mrb[184].mxu0 }
0x2206   :  { %v15107_v59 = vsel %vm963_vm8, %v15106_v5, %v15105_v4  ;;  %v15108_v50 = vrot.slane %v15084_v22, 1  ;;  %v27580_v15 = vpop.f32.mrb[185].mxu0 }
0x2208   :  { %v15109_v2 = vsel %vm966_vm9, %v15108_v50, %v15107_v59  ;;  %v25713_v59 = vld [vmem:[%s31742_s6 + $0x20] sm:$0xff] }
0x2209   :  { %v15111_v29 = vadd.f32 %v15109_v2, %v14463_v57 }
0x220b   :  { %v15112_v20 = vadd.f32 %v30381_v34, %v15111_v29 }
0x220d   :  { %v15113_v31 = vsel %vm214_vm1, %v15112_v20, -inf }
0x220e   :  { %15114 = vmax.xlane.f32.xlu0 %v15113_v31 }
0x2224   :  { %15750 = vrot.lane.b32.xlu0 %v30269_v33, %s28588_s22 }
0x2228   :  { %15994 = vrot.lane.b32.xlu0 %v30269_v33, %s28589_s20 }
0x222c   :  { %16147 = vrot.lane.b32.xlu0 %v30418_v42, %s28589_s20 }
0x2230   :  { %16295 = vrot.lane.b32.xlu0 %v30430_v14, %s28589_s20 }
0x2234   :  { %16443 = vrot.lane.b32.xlu0 %v30388_v26, %s28589_s20 }
0x2238   :  { %16591 = vrot.lane.b32.xlu0 %v30393_v35, %s28589_s20 }
0x229b   :  { %v15115_v55 = vpop.xlane.xlu0 %15114 }
0x229c   :  { %v15116_v38 = vsub.f32 %v15112_v20, %v15115_v55 }
0x229e   :  { %v15117_v10 = vmul.f32 1.442695, %v15116_v38 }
0x229f   :  { %v15751_v5 = vpop.permute.xlu0 %15750 }
0x22a0   :  { %28368 = vpow2.f32 %v15117_v10 }
0x22aa   :  { %v28369_v54 = vpop.eup %28368 }
0x22ab   :  { %v15119_v56 = vsel %vm214_vm1, %v28369_v54, 0.0 }
0x22ac   :  { %15120 = vadd.xlane.f32.xlu1 %v15119_v56 }
0x22bd   :  { %15996 = vrot.lane.b32.xlu1 %v30269_v33, %s28590_s23 }
0x22c1   :  { %16073 = vrot.lane.b32.xlu1 %v30408_v45, %s28589_s20 }
0x22c5   :  { %16221 = vrot.lane.b32.xlu1 %v30424_v6, %s28589_s20 }
0x22c9   :  { %16369 = vrot.lane.b32.xlu1 %v30436_v30, %s28589_s20 }
0x22cd   :  { %16517 = vrot.lane.b32.xlu1 %v30442_v23, %s28589_s20 }
0x2339   :  { %v15121_v39 = vpop.xlane.xlu1 %15120 }
0x233a   :  { %28370 = vrcp.f32 %v15121_v39 }
0x233d   :  { %v30641_v22 = vpop.permute.xlu1 %15996 }
0x2341   :  { %v16074_v50 = vpop.permute.xlu1 %16073 }
0x2344   :  { %v28371_v28 = vpop.eup %28370 }
0x2345   :  { %v15123_v61 = vmul.f32 %v28371_v28, %v28369_v54  ;;  %v16222_v15 = vpop.permute.xlu1 %16221 }
0x2347   :  { %v15132_v11 = vrot.slane %v15123_v61, %v28764_v17  ;;  %v15125_v27 = vcombine.high %v15123_v61, %v15123_v61 }
0x2349   :  { %v15148_v32 = vrot.slane %v15132_v11, %v28764_v17  ;;  %v15140_v48 = vcombine.high %v15132_v11, %v15132_v11  ;;  %v15139_v0 = vrot.slane %v15125_v27, %v28764_v17 }
0x234b   :  { %27584 = vmatmul.mubr.msk.f32.vlgmr.msra.gmra.mrb[180].mxu1 %vm214_vm1, %v15148_v32  ;;  %v15162_v49 = vrot.slane %v15140_v48, %v28764_v17  ;;  %v15170_v51 = vcombine.high %v15148_v32, %v15148_v32  ;;  %v15141_v58 = vcombine.high %v15139_v0, %v15139_v0  ;;  %v15155_v60 = vrot.slane %v15139_v0, %v28764_v17 }
0x234c   :  { %27592 = vmatpush3.msra.mxu1 %v30448_v1  ;;  %27593 = vmatprep.mubr.msk.f32.mxu1 %vm28582_vm2, %v28581_v8 }
0x234d   :  { %27589 = vmatmul.mubr.msk.f32.vlgmr.msra.gmra.mrb[186].mxu0 %vm214_vm1, %v15162_v49  ;;  %27601 = vmatprep.subr.mxu1 %v28581_v8  ;;  %v15172_v52 = vcombine.high %v15162_v49, %v15162_v49  ;;  %v15169_v63 = vrot.slane %v15141_v58, %v28764_v17  ;;  %v15171_v4 = vcombine.high %v15155_v60, %v15155_v60 }
0x234e   :  { %27597 = vmatpush3.msra.mxu0 %v30452_v37  ;;  %27598 = vmatprep.mubr.msk.f32.mxu0 %vm28582_vm2, %v28581_v8 }
0x234f   :  { %27594 = vmatmul.mubr.msk.f32.vlgmr.msra.gmra.mrb[182].mxu1 %vm214_vm1, %v15170_v51  ;;  %27606 = vmatprep.subr.mxu0 %v28581_v8  ;;  %v15173_v13 = vcombine.high %v15169_v63, %v15169_v63 }
0x2350   :  { %27602 = vmatpush3.msra.mxu1 %v30460_v46  ;;  %27603 = vmatprep.mubr.msk.f32.mxu1 %vm28582_vm2, %v28581_v8 }
0x2351   :  { %27599 = vmatmul.mubr.msk.f32.vlgmr.msra.gmra.mrb[188].mxu0 %vm214_vm1, %v15172_v52  ;;  %27611 = vmatprep.subr.mxu1 %v28581_v8 }
0x2352   :  { %27607 = vmatpush3.msra.mxu0 %v30467_v19  ;;  %27608 = vmatprep.mubr.msk.f32.mxu0 %vm28582_vm2, %v28581_v8 }
0x2353   :  { %27604 = vmatmul.mubr.msk.f32.vlgmr.msra.gmra.mrb[184].mxu1 %vm214_vm1, %v15155_v60  ;;  %27616 = vmatprep.subr.mxu0 %v28581_v8 }
0x2354   :  { %27612 = vmatpush3.msra.mxu1 %v30475_v36  ;;  %27613 = vmatprep.mubr.msk.f32.mxu1 %vm28582_vm2, %v28581_v8 }
0x2355   :  { %27609 = vmatmul.mubr.msk.f32.vlgmr.msra.gmra.mrb[190].mxu0 %vm214_vm1, %v15169_v63  ;;  %27621 = vmatprep.subr.mxu1 %v28581_v8  ;;  %v15995_v63 = vpop.permute.xlu0 %15994 }
0x2356   :  { %27617 = vmatpush3.msra.mxu0 %v30483_v41  ;;  %27618 = vmatprep.mubr.msk.f32.mxu0 %vm28582_vm2, %v28581_v8 }
0x2357   :  { %27614 = vmatmul.mubr.msk.f32.vlgmr.msra.gmra.mrb[186].mxu1 %vm214_vm1, %v15171_v4  ;;  %27626 = vmatprep.subr.mxu0 %v28581_v8 }
0x2358   :  { %27622 = vmatpush3.msra.mxu1 %v15751_v5  ;;  %27623 = vmatprep.mubr.msk.f32.mxu1 %vm28582_vm2, %v28581_v8 }
0x2359   :  { %27619 = vmatmul.mubr.msk.f32.vlgmr.msra.gmra.mrb[192].mxu0 %vm214_vm1, %v15173_v13  ;;  %27631 = vmatprep.subr.mxu1 %v28581_v8 }
0x235a   :  { %27628 = vmatprep.mubr.msk.f32.mxu0 %vm28582_vm2, %v28581_v8 }
0x235b   :  { %27624 = vmatmul.mubr.msk.f32.vlgmr.msra.gmra.mrb[188].mxu1 %vm214_vm1, %v15123_v61 }
0x235c   :  { %27632 = vmatpush3.msra.mxu1 %v25713_v59  ;;  %27633 = vmatprep.mubr.msk.f32.mxu1 %vm28582_vm2, %v28581_v8 }
0x235d   :  { %27641 = vmatprep.subr.mxu1 %v28581_v8 }
0x235f   :  { %27634 = vmatmul.mubr.msk.f32.vlgmr.msra.gmra.mrb[190].mxu1 %vm214_vm1, %v30568_v18  ;;  %v16370_v18 = vpop.permute.xlu1 %16369 }
0x2360   :  { %27643 = vmatprep.mubr.msk.f32.mxu1 %vm28582_vm2, %v28581_v8 }
0x2363   :  { %27642 = vmatpush3.xpose.msk.msra.mxu1 %vm214_vm1, %v30259_v9  ;;  %v16518_v9 = vpop.permute.xlu1 %16517 }
0x2364   :  { %27651 = vmatprep.subr.mxu1 %v28581_v8 }
0x2366   :  { %27644 = vmatmul.mubr.msk.f32.vlgmr.msra.gmra.mrb[192].mxu1 %vm214_vm1, %v16074_v50 }
0x2367   :  { %27652 = vmatpush3.xpose.msk.msra.mxu1 %vm214_vm1, %v30278_v24  ;;  %27653 = vmatprep.mubr.msk.f32.mxu1 %vm28582_vm2, %v28581_v8  ;;  %v25714_v24 = vld [vmem:[%s31742_s6 + $0x28] sm:$0xff] }
0x2368   :  { %27661 = vmatprep.subr.mxu1 %v28581_v8  ;;  %27627 = vmatpush3.msra.mxu0 %v25714_v24  ;;  %v16148_v24 = vpop.permute.xlu0 %16147 }
0x2369   :  { %27636 = vmatprep.subr.mxu0 %v28581_v8 }
0x236a   :  { %27654 = vmatmul.mubr.msk.f32.vlgmr.msra.gmra.mrb[194].mxu1 %vm214_vm1, %v16222_v15 }
0x236b   :  { %27662 = vmatpush3.xpose.msk.msra.mxu1 %vm214_vm1, %v30293_v25  ;;  %27663 = vmatprep.mubr.msk.f32.mxu1 %vm28582_vm2, %v28581_v8 }
0x236c   :  { %27671 = vmatprep.subr.mxu1 %v28581_v8 }
0x236e   :  { %27664 = vmatmul.mubr.msk.f32.vlgmr.msra.gmra.mrb[196].mxu1 %vm214_vm1, %v16370_v18 }
0x236f   :  { %27672 = vmatpush3.xpose.msk.msra.mxu1 %vm214_vm1, %v30306_v44  ;;  %27673 = vmatprep.mubr.msk.f32.mxu1 %vm28582_vm2, %v28581_v8 }
0x2370   :  { %27681 = vmatprep.subr.mxu1 %v28581_v8 }
0x2372   :  { %27674 = vmatmul.mubr.msk.f32.vlgmr.msra.gmra.mrb[198].mxu1 %vm214_vm1, %v16518_v9 }
0x2373   :  { %27682 = vmatpush3.msra.mxu1 %v30400_v47  ;;  %27683 = vmatprep.mubr.msk.f32.mxu1 %vm28582_vm2, %v28581_v8 }
0x2374   :  { %27691 = vmatprep.subr.mxu1 %v28581_v8 }
0x241e   :  { %v15242_v25 = vpop.f32.mrb[180].mxu1 }
0x241f   :  { %v27585_v44 = vpop.f32.mrb[181].mxu1 }
0x2420   :  { %v15314_v57 = vpop.f32.mrb[186].mxu0  ;;  %v16296_v44 = vpop.permute.xlu0 %16295 }
0x2421   :  { %v15761_v2 = vrot.slane %v15314_v57, 7  ;;  %v27590_v29 = vpop.f32.mrb[187].mxu0 }
0x2422   :  { %v15386_v20 = vpop.f32.mrb[182].mxu1 }
0x2423   :  { %v15762_v47 = vsel %vm948_vm3, %v15761_v2, %v15242_v25  ;;  %v15763_v31 = vrot.slane %v15386_v20, 6  ;;  %v27595_v55 = vpop.f32.mrb[183].mxu1 }
0x2424   :  { %v15458_v38 = vpop.f32.mrb[188].mxu0  ;;  %v16444_v29 = vpop.permute.xlu0 %16443 }
0x2425   :  { %v15764_v10 = vsel %vm951_vm4, %v15763_v31, %v15762_v47  ;;  %v15765_v54 = vrot.slane %v15458_v38, 5  ;;  %v27600_v56 = vpop.f32.mrb[189].mxu0 }
0x2426   :  { %v15530_v39 = vpop.f32.mrb[184].mxu1 }
0x2427   :  { %v15766_v28 = vsel %vm954_vm5, %v15765_v54, %v15764_v10  ;;  %v15767_v61 = vrot.slane %v15530_v39, 4  ;;  %v27605_v11 = vpop.f32.mrb[185].mxu1 }
0x2428   :  { %v15602_v27 = vpop.f32.mrb[190].mxu0  ;;  %v16592_v47 = vpop.permute.xlu0 %16591 }
0x2429   :  { %v15768_v32 = vsel %vm957_vm6, %v15767_v61, %v15766_v28  ;;  %v15769_v48 = vrot.slane %v15602_v27, 3  ;;  %v27610_v49 = vpop.f32.mrb[191].mxu0 }
0x242a   :  { %v15674_v0 = vpop.f32.mrb[186].mxu1 }
0x242b   :  { %v15770_v51 = vsel %vm960_vm7, %v15769_v48, %v15768_v32  ;;  %v15771_v52 = vrot.slane %v15674_v0, 2  ;;  %v27615_v58 = vpop.f32.mrb[187].mxu1 }
0x242c   :  { %v15746_v60 = vpop.f32.mrb[192].mxu0 }
0x242d   :  { %v15773_v4 = vrot.slane %v15746_v60, 1  ;;  %v27620_v5 = vpop.f32.mrb[193].mxu0  ;;  %v15772_v13 = vsel %vm963_vm8, %v15771_v52, %v15770_v51 }
0x242e   :  { %v15844_v59 = vpop.f32.mrb[188].mxu1 }
0x242f   :  { %v15774_v50 = vsel %vm966_vm9, %v15773_v4, %v15772_v13  ;;  %v27625_v15 = vpop.f32.mrb[189].mxu1 }
0x2430   :  { %v15845_v18 = vadd.f32 %v15844_v59, %v15774_v50 }
0x2432   :  { %27629 = vmatmul.mubr.msk.f32.vlgmr.msra.gmra.mrb[194].mxu0 %vm214_vm1, %v15845_v18  ;;  %v15990_v9 = vpop.f32.mrb[190].mxu1 }
0x2433   :  { %27637 = vmatpush3.xpose.msk.msra.mxu0 %vm214_vm1, %v30641_v22  ;;  %v27635_v25 = vpop.f32.mrb[191].mxu1  ;;  %27638 = vmatprep.mubr.msk.f32.mxu0 %vm28582_vm2, %v28581_v8 }
0x2434   :  { %27646 = vmatprep.subr.mxu0 %v28581_v8 }
0x2436   :  { %27639 = vmatmul.mubr.msk.f32.vlgmr.msra.gmra.mrb[196].mxu0 %vm214_vm1, %v15995_v63 }
0x2437   :  { %27647 = vmatpush3.xpose.msk.msra.mxu0 %vm214_vm1, %v30325_v3  ;;  %27648 = vmatprep.mubr.msk.f32.mxu0 %vm28582_vm2, %v28581_v8 }
0x2438   :  { %27656 = vmatprep.subr.mxu0 %v28581_v8 }
0x2439   :  { %v16143_v57 = vpop.f32.mrb[192].mxu1 }
0x243a   :  { %v27645_v2 = vpop.f32.mrb[193].mxu1  ;;  %27649 = vmatmul.mubr.msk.f32.vlgmr.msra.gmra.mrb[198].mxu0 %vm214_vm1, %v16148_v24 }
0x243b   :  { %27657 = vmatpush3.xpose.msk.msra.mxu0 %vm214_vm1, %v30337_v40  ;;  %27658 = vmatprep.mubr.msk.f32.mxu0 %vm28582_vm2, %v28581_v8 }
0x243c   :  { %27666 = vmatprep.subr.mxu0 %v28581_v8 }
0x243d   :  { %v16291_v22 = vpop.f32.mrb[194].mxu1 }
0x243e   :  { %v27655_v3 = vpop.f32.mrb[195].mxu1  ;;  %27659 = vmatmul.mubr.msk.f32.vlgmr.msra.gmra.mrb[200].mxu0 %vm214_vm1, %v16296_v44  ;;  %v16675_v61 = vrot.slane %v16291_v22, 6 }
0x243f   :  { %27667 = vmatpush3.xpose.msk.msra.mxu0 %vm214_vm1, %v30350_v53  ;;  %27668 = vmatprep.mubr.msk.f32.mxu0 %vm28582_vm2, %v28581_v8 }
0x2440   :  { %27676 = vmatprep.subr.mxu0 %v28581_v8 }
0x2441   :  { %v16439_v20 = vpop.f32.mrb[196].mxu1 }
0x2442   :  { %v27665_v40 = vpop.f32.mrb[197].mxu1  ;;  %27669 = vmatmul.mubr.msk.f32.vlgmr.msra.gmra.mrb[202].mxu0 %vm214_vm1, %v16444_v29  ;;  %v16679_v0 = vrot.slane %v16439_v20, 4 }
0x2443   :  { %27677 = vmatpush3.xpose.msk.msra.mxu0 %vm214_vm1, %v30360_v62  ;;  %27678 = vmatprep.mubr.msk.f32.mxu0 %vm28582_vm2, %v28581_v8 }
0x2444   :  { %27686 = vmatprep.subr.mxu0 %v28581_v8 }
0x2445   :  { %v16587_v31 = vpop.f32.mrb[198].mxu1 }
0x2446   :  { %v27675_v53 = vpop.f32.mrb[199].mxu1  ;;  %27679 = vmatmul.mubr.msk.f32.vlgmr.msra.gmra.mrb[204].mxu0 %vm214_vm1, %v16592_v47  ;;  %v16683_v4 = vrot.slane %v16587_v31, 2 }
0x2447   :  { %27687 = vmatpush3.msra.mxu0 %v30410_v43  ;;  %27688 = vmatprep.mubr.msk.f32.mxu0 %vm28582_vm2, %v28581_v8 }
0x2448   :  { %27696 = vmatprep.subr.mxu0 %v28581_v8 }
0x2505   :  { %v15917_v55 = vpop.f32.mrb[194].mxu0 }
0x2506   :  { %v30730_v38 = vadd.f32 %v15990_v9, %v15917_v55  ;;  %v27630_v62 = vpop.f32.mrb[195].mxu0  ;;  %v28446_v55 = vld [vmem:[#allocation5 + $0x88] sm:$0xff] }
0x2509   :  { %v16068_v10 = vpop.f32.mrb[196].mxu0 }
0x250a   :  { %v27640_v54 = vpop.f32.mrb[197].mxu0  ;;  %v16072_v18 = vmul.f32 0.35355338, %v16068_v10  ;;  %v28447_v10 = vld [vmem:[#allocation5 + $0x98] sm:$0xff] }
0x250d   :  { %v16217_v56 = vpop.f32.mrb[198].mxu0 }
0x250e   :  { %v16673_v39 = vrot.slane %v16217_v56, 7  ;;  %v27650_v28 = vpop.f32.mrb[199].mxu0  ;;  %v28448_v56 = vld [vmem:[#allocation5 + $0xa8] sm:$0xff] }
0x2510   :  { %v16674_v11 = vsel %vm948_vm3, %v16673_v39, %v16143_v57  ;;  %v28449_v39 = vld [vmem:[#allocation5 + $0xb8] sm:$0xff] }
0x2511   :  { %v16365_v27 = vpop.f32.mrb[200].mxu0  ;;  %v16676_v32 = vsel %vm951_vm4, %v16675_v61, %v16674_v11  ;;  %v25715_v61 = vld [vmem:[%s31742_s6 + $0x30] sm:$0xff] }
0x2512   :  { %v16677_v48 = vrot.slane %v16365_v27, 5  ;;  %v27660_v49 = vpop.f32.mrb[201].mxu0 }
0x2514   :  { %v16678_v51 = vsel %vm954_vm5, %v16677_v48, %v16676_v32 }
0x2515   :  { %v16513_v52 = vpop.f32.mrb[202].mxu0  ;;  %v16680_v58 = vsel %vm957_vm6, %v16679_v0, %v16678_v51 }
0x2516   :  { %v16681_v60 = vrot.slane %v16513_v52, 3  ;;  %v27670_v63 = vpop.f32.mrb[203].mxu0 }
0x2518   :  { %v16682_v5 = vsel %vm960_vm7, %v16681_v60, %v16680_v58 }
0x2519   :  { %v16661_v13 = vpop.f32.mrb[204].mxu0  ;;  %v16684_v59 = vsel %vm963_vm8, %v16683_v4, %v16682_v5 }
0x251a   :  { %v16685_v50 = vrot.slane %v16661_v13, 1  ;;  %v27680_v15 = vpop.f32.mrb[205].mxu0 }
0x251c   :  { %v16686_v9 = vsel %vm966_vm9, %v16685_v50, %v16684_v59 }
0x251d   :  { %v16688_v24 = vadd.f32 %v16686_v9, %v16072_v18 }
0x251f   :  { %v16689_v25 = vadd.f32 %v30381_v34, %v16688_v24 }
0x2521   :  { %v16690_v44 = vsel %vm214_vm1, %v16689_v25, -inf }
0x2522   :  { %16691 = vmax.xlane.f32.xlu1 %v16690_v44 }
0x2533   :  { %17501 = vrot.lane.b32.xlu1 %v30269_v33, %s31766_s27 }
0x2537   :  { %17499 = vrot.lane.b32.xlu1 %v30269_v33, %s31767_s28 }
0x253b   :  { %17652 = vrot.lane.b32.xlu1 %v30418_v42, %s31767_s28 }
0x253f   :  { %17800 = vrot.lane.b32.xlu1 %v30430_v14, %s31767_s28 }
0x2543   :  { %17948 = vrot.lane.b32.xlu1 %v30388_v26, %s31767_s28 }
0x2547   :  { %18096 = vrot.lane.b32.xlu1 %v30393_v35, %s31767_s28 }
0x25af   :  { %v16692_v34 = vpop.xlane.xlu1 %16691 }
0x25b0   :  { %v16693_v57 = vsub.f32 %v16689_v25, %v16692_v34 }
0x25b2   :  { %v16694_v2 = vmul.f32 1.442695, %v16693_v57 }
0x25b4   :  { %28372 = vpow2.f32 %v16694_v2 }
0x25be   :  { %v28373_v22 = vpop.eup %28372 }
0x25bf   :  { %v16696_v3 = vsel %vm214_vm1, %v28373_v22, 0.0 }
0x25c0   :  { %16697 = vadd.xlane.f32.xlu0 %v16696_v3 }
0x25d6   :  { %17327 = vrot.lane.b32.xlu0 %v30269_v33, %s31768_s4 }
0x25da   :  { %17578 = vrot.lane.b32.xlu0 %v30408_v45, %s31767_s28 }
0x25de   :  { %17726 = vrot.lane.b32.xlu0 %v30424_v6, %s31767_s28 }
0x25e2   :  { %17874 = vrot.lane.b32.xlu0 %v30436_v30, %s31767_s28 }
0x25e6   :  { %18022 = vrot.lane.b32.xlu0 %v30442_v23, %s31767_s28 }
0x264d   :  { %v16698_v26 = vpop.xlane.xlu0 %16697 }
0x264e   :  { %28374 = vrcp.f32 %v16698_v26 }
0x2658   :  { %v28375_v35 = vpop.eup %28374 }
0x2659   :  { %v16700_v42 = vmul.f32 %v28375_v35, %v28373_v22 }
0x265b   :  { %v16709_v14 = vrot.slane %v16700_v42, %v28764_v17  ;;  %v16702_v29 = vcombine.high %v16700_v42, %v16700_v42 }
0x265d   :  { %v16725_v20 = vrot.slane %v16709_v14, %v28764_v17  ;;  %v16717_v40 = vcombine.high %v16709_v14, %v16709_v14  ;;  %v16716_v6 = vrot.slane %v16702_v29, %v28764_v17 }
0x265f   :  { %27684 = vmatmul.mubr.msk.f32.vlgmr.msra.gmra.mrb[200].mxu1 %vm214_vm1, %v16725_v20  ;;  %v16739_v45 = vrot.slane %v16717_v40, %v28764_v17  ;;  %v16747_v30 = vcombine.high %v16725_v20, %v16725_v20  ;;  %v16718_v47 = vcombine.high %v16716_v6, %v16716_v6  ;;  %v28450_v40 = vld [vmem:[#allocation5 + $0x80] sm:$0xff] }
0x2660   :  { %27692 = vmatpush3.msra.mxu1 %v30448_v1  ;;  %27693 = vmatprep.mubr.msk.f32.mxu1 %vm28582_vm2, %v28581_v8  ;;  %v16732_v1 = vrot.slane %v16716_v6, %v28764_v17 }
0x2661   :  { %27689 = vmatmul.mubr.msk.f32.vlgmr.msra.gmra.mrb[206].mxu0 %vm214_vm1, %v16739_v45  ;;  %27701 = vmatprep.subr.mxu1 %v28581_v8  ;;  %v16749_v23 = vcombine.high %v16739_v45, %v16739_v45  ;;  %v16746_v31 = vrot.slane %v16718_v47, %v28764_v17 }
0x2662   :  { %27697 = vmatpush3.msra.mxu0 %v30452_v37  ;;  %27698 = vmatprep.mubr.msk.f32.mxu0 %vm28582_vm2, %v28581_v8  ;;  %v17502_v37 = vpop.permute.xlu1 %17501 }
0x2663   :  { %27694 = vmatmul.mubr.msk.f32.vlgmr.msra.gmra.mrb[202].mxu1 %vm214_vm1, %v16747_v30  ;;  %27706 = vmatprep.subr.mxu0 %v28581_v8  ;;  %v16750_v53 = vcombine.high %v16746_v31, %v16746_v31 }
0x2664   :  { %27702 = vmatpush3.msra.mxu1 %v30460_v46  ;;  %27703 = vmatprep.mubr.msk.f32.mxu1 %vm28582_vm2, %v28581_v8  ;;  %v16748_v46 = vcombine.high %v16732_v1, %v16732_v1 }
0x2665   :  { %27699 = vmatmul.mubr.msk.f32.vlgmr.msra.gmra.mrb[208].mxu0 %vm214_vm1, %v16749_v23  ;;  %27711 = vmatprep.subr.mxu1 %v28581_v8  ;;  %v28451_v23 = vld [vmem:[#allocation5 + $0x90] sm:$0xff] }
0x2666   :  { %27707 = vmatpush3.msra.mxu0 %v30467_v19  ;;  %27708 = vmatprep.mubr.msk.f32.mxu0 %vm28582_vm2, %v28581_v8  ;;  %v17328_v19 = vpop.permute.xlu0 %17327 }
0x2667   :  { %27704 = vmatmul.mubr.msk.f32.vlgmr.msra.gmra.mrb[204].mxu1 %vm214_vm1, %v16732_v1  ;;  %27716 = vmatprep.subr.mxu0 %v28581_v8 }
0x2668   :  { %27712 = vmatpush3.msra.mxu1 %v30475_v36  ;;  %27713 = vmatprep.mubr.msk.f32.mxu1 %vm28582_vm2, %v28581_v8  ;;  %v17500_v36 = vpop.permute.xlu1 %17499 }
0x2669   :  { %27709 = vmatmul.mubr.msk.f32.vlgmr.msra.gmra.mrb[210].mxu0 %vm214_vm1, %v16746_v31  ;;  %27721 = vmatprep.subr.mxu1 %v28581_v8  ;;  %v28452_v31 = vld [vmem:[#allocation5 + $0xa0] sm:$0xff] }
0x266a   :  { %27717 = vmatpush3.msra.mxu0 %v30483_v41  ;;  %27718 = vmatprep.mubr.msk.f32.mxu0 %vm28582_vm2, %v28581_v8 }
0x266b   :  { %27714 = vmatmul.mubr.msk.f32.vlgmr.msra.gmra.mrb[206].mxu1 %vm214_vm1, %v16748_v46  ;;  %27726 = vmatprep.subr.mxu0 %v28581_v8 }
0x266c   :  { %27722 = vmatpush3.msra.mxu1 %v17328_v19  ;;  %27723 = vmatprep.mubr.msk.f32.mxu1 %vm28582_vm2, %v28581_v8  ;;  %v17653_v41 = vpop.permute.xlu1 %17652 }
0x266d   :  { %27719 = vmatmul.mubr.msk.f32.vlgmr.msra.gmra.mrb[212].mxu0 %vm214_vm1, %v16750_v53  ;;  %27731 = vmatprep.subr.mxu1 %v28581_v8  ;;  %v28453_v53 = vld [vmem:[#allocation5 + $0xb0] sm:$0xff] }
0x266e   :  { %27728 = vmatprep.mubr.msk.f32.mxu0 %vm28582_vm2, %v28581_v8  ;;  %27727 = vmatpush3.msra.mxu0 %v25715_v61 }
0x266f   :  { %27724 = vmatmul.mubr.msk.f32.vlgmr.msra.gmra.mrb[208].mxu1 %vm214_vm1, %v16700_v42  ;;  %27736 = vmatprep.subr.mxu0 %v28581_v8  ;;  %v17579_v42 = vpop.permute.xlu0 %17578 }
0x2670   :  { %27733 = vmatprep.mubr.msk.f32.mxu1 %vm28582_vm2, %v28581_v8  ;;  %v17801_v62 = vpop.permute.xlu1 %17800 }
0x2673   :  { %27732 = vmatpush3.xpose.msk.msra.mxu1 %vm214_vm1, %v17502_v37  ;;  %v17727_v45 = vpop.permute.xlu0 %17726 }
0x2674   :  { %27741 = vmatprep.subr.mxu1 %v28581_v8  ;;  %v17949_v54 = vpop.permute.xlu1 %17948 }
0x2676   :  { %27734 = vmatmul.mubr.msk.f32.vlgmr.msra.gmra.mrb[210].mxu1 %vm214_vm1, %v17500_v36 }
0x2677   :  { %27742 = vmatpush3.xpose.msk.msra.mxu1 %vm214_vm1, %v28446_v55  ;;  %27743 = vmatprep.mubr.msk.f32.mxu1 %vm28582_vm2, %v28581_v8  ;;  %v17875_v37 = vpop.permute.xlu0 %17874 }
0x2678   :  { %27751 = vmatprep.subr.mxu1 %v28581_v8  ;;  %v18097_v28 = vpop.permute.xlu1 %18096 }
0x267a   :  { %27744 = vmatmul.mubr.msk.f32.vlgmr.msra.gmra.mrb[212].mxu1 %vm214_vm1, %v17653_v41 }
0x267b   :  { %27752 = vmatpush3.xpose.msk.msra.mxu1 %vm214_vm1, %v28447_v10  ;;  %27753 = vmatprep.mubr.msk.f32.mxu1 %vm28582_vm2, %v28581_v8  ;;  %v18023_v36 = vpop.permute.xlu0 %18022 }
0x267c   :  { %27761 = vmatprep.subr.mxu1 %v28581_v8 }
0x267e   :  { %27754 = vmatmul.mubr.msk.f32.vlgmr.msra.gmra.mrb[214].mxu1 %vm214_vm1, %v17801_v62  ;;  %v28454_v62 = vld [vmem:[#allocation7 + $0x80] sm:$0xff] }
0x267f   :  { %27762 = vmatpush3.xpose.msk.msra.mxu1 %vm214_vm1, %v28448_v56  ;;  %27763 = vmatprep.mubr.msk.f32.mxu1 %vm28582_vm2, %v28581_v8 }
0x2680   :  { %27771 = vmatprep.subr.mxu1 %v28581_v8 }
0x2682   :  { %27764 = vmatmul.mubr.msk.f32.vlgmr.msra.gmra.mrb[216].mxu1 %vm214_vm1, %v17949_v54 }
0x2683   :  { %27772 = vmatpush3.xpose.msk.msra.mxu1 %vm214_vm1, %v28449_v39  ;;  %27773 = vmatprep.mubr.msk.f32.mxu1 %vm28582_vm2, %v28581_v8 }
0x2684   :  { %27781 = vmatprep.subr.mxu1 %v28581_v8 }
0x2686   :  { %27774 = vmatmul.mubr.msk.f32.vlgmr.msra.gmra.mrb[218].mxu1 %vm214_vm1, %v18097_v28 }
0x2687   :  { %27782 = vmatpush3.msra.mxu1 %v30410_v43  ;;  %27783 = vmatprep.mubr.msk.f32.mxu1 %vm28582_vm2, %v28581_v8 }
0x2688   :  { %27791 = vmatprep.subr.mxu1 %v28581_v8 }
0x2732   :  { %v16819_v11 = vpop.f32.mrb[200].mxu1 }
0x2733   :  { %v27685_v27 = vpop.f32.mrb[201].mxu1 }
0x2734   :  { %v16891_v32 = vpop.f32.mrb[206].mxu0 }
0x2735   :  { %v17338_v48 = vrot.slane %v16891_v32, 7  ;;  %v27690_v49 = vpop.f32.mrb[207].mxu0 }
0x2736   :  { %v16963_v0 = vpop.f32.mrb[202].mxu1 }
0x2737   :  { %v17339_v43 = vsel %vm948_vm3, %v17338_v48, %v16819_v11  ;;  %v17340_v51 = vrot.slane %v16963_v0, 6  ;;  %v27695_v52 = vpop.f32.mrb[203].mxu1 }
0x2738   :  { %v17035_v58 = vpop.f32.mrb[208].mxu0 }
0x2739   :  { %v17341_v60 = vsel %vm951_vm4, %v17340_v51, %v17339_v43  ;;  %v17342_v63 = vrot.slane %v17035_v58, 5  ;;  %v27700_v4 = vpop.f32.mrb[209].mxu0 }
0x273a   :  { %v17107_v5 = vpop.f32.mrb[204].mxu1 }
0x273b   :  { %v17343_v13 = vsel %vm954_vm5, %v17342_v63, %v17341_v60  ;;  %v17344_v59 = vrot.slane %v17107_v5, 4  ;;  %v27705_v50 = vpop.f32.mrb[205].mxu1 }
0x273c   :  { %v17179_v15 = vpop.f32.mrb[210].mxu0 }
0x273d   :  { %v17345_v18 = vsel %vm957_vm6, %v17344_v59, %v17343_v13  ;;  %v17346_v9 = vrot.slane %v17179_v15, 3  ;;  %v27710_v24 = vpop.f32.mrb[211].mxu0 }
0x273e   :  { %v17251_v25 = vpop.f32.mrb[206].mxu1 }
0x273f   :  { %v17347_v44 = vsel %vm960_vm7, %v17346_v9, %v17345_v18  ;;  %v17348_v34 = vrot.slane %v17251_v25, 2  ;;  %v27715_v57 = vpop.f32.mrb[207].mxu1 }
0x2740   :  { %v17323_v2 = vpop.f32.mrb[212].mxu0 }
0x2741   :  { %v17350_v22 = vrot.slane %v17323_v2, 1  ;;  %v27720_v3 = vpop.f32.mrb[213].mxu0  ;;  %v17349_v26 = vsel %vm963_vm8, %v17348_v34, %v17347_v44  ;;  %v28455_v44 = vld [vmem:[%s31737_s1] ss:$0 sm:$0xff] }
0x2742   :  { %v17421_v35 = vpop.f32.mrb[208].mxu1 }
0x2743   :  { %v17351_v14 = vsel %vm966_vm9, %v17350_v22, %v17349_v26  ;;  %v27725_v29 = vpop.f32.mrb[209].mxu1 }
0x2744   :  { %v17422_v20 = vadd.f32 %v17421_v35, %v17351_v14 }
0x2746   :  { %27729 = vmatmul.mubr.msk.f32.vlgmr.msra.gmra.mrb[214].mxu0 %vm214_vm1, %v17422_v20 }
0x2747   :  { %27737 = vmatpush3.xpose.msk.msra.mxu0 %vm214_vm1, %v28450_v40  ;;  %27738 = vmatprep.mubr.msk.f32.mxu0 %vm28582_vm2, %v28581_v8 }
0x2748   :  { %27746 = vmatprep.subr.mxu0 %v28581_v8 }
0x2749   :  { %v17573_v6 = vpop.f32.mrb[210].mxu1 }
0x274a   :  { %v27735_v30 = vpop.f32.mrb[211].mxu1  ;;  %27739 = vmatmul.mubr.msk.f32.vlgmr.msra.gmra.mrb[216].mxu0 %vm214_vm1, %v17579_v42  ;;  %v17577_v18 = vmul.f32 0.35355338, %v17573_v6 }
0x274b   :  { %27747 = vmatpush3.xpose.msk.msra.mxu0 %vm214_vm1, %v28451_v23  ;;  %27748 = vmatprep.mubr.msk.f32.mxu0 %vm28582_vm2, %v28581_v8  ;;  %v28456_v23 = vld [vmem:[#allocation7 + $0x90] sm:$0xff] }
0x274c   :  { %27756 = vmatprep.subr.mxu0 %v28581_v8 }
0x274d   :  { %v17722_v47 = vpop.f32.mrb[212].mxu1 }
0x274e   :  { %v27745_v1 = vpop.f32.mrb[213].mxu1  ;;  %27749 = vmatmul.mubr.msk.f32.vlgmr.msra.gmra.mrb[218].mxu0 %vm214_vm1, %v17727_v45  ;;  %v18178_v61 = vrot.slane %v17722_v47, 7 }
0x274f   :  { %27757 = vmatpush3.xpose.msk.msra.mxu0 %vm214_vm1, %v28452_v31  ;;  %27758 = vmatprep.mubr.msk.f32.mxu0 %vm28582_vm2, %v28581_v8  ;;  %v28457_v1 = vld [vmem:[#allocation7 + $0x98] sm:$0xff] }
0x2750   :  { %27766 = vmatprep.subr.mxu0 %v28581_v8 }
0x2751   :  { %v17870_v46 = vpop.f32.mrb[214].mxu1 }
0x2752   :  { %v27755_v19 = vpop.f32.mrb[215].mxu1  ;;  %27759 = vmatmul.mubr.msk.f32.vlgmr.msra.gmra.mrb[220].mxu0 %vm214_vm1, %v17875_v37  ;;  %v18182_v43 = vrot.slane %v17870_v46, 5  ;;  %v28458_v46 = vld [vmem:[#allocation7 + $0xa0] sm:$0xff] }
0x2753   :  { %27767 = vmatpush3.xpose.msk.msra.mxu0 %vm214_vm1, %v28453_v53  ;;  %27768 = vmatprep.mubr.msk.f32.mxu0 %vm28582_vm2, %v28581_v8  ;;  %v28459_v53 = vld [vmem:[#allocation7 + $0xa8] sm:$0xff] }
0x2754   :  { %27776 = vmatprep.subr.mxu0 %v28581_v8 }
0x2755   :  { %v18018_v41 = vpop.f32.mrb[216].mxu1 }
0x2756   :  { %v27765_v55 = vpop.f32.mrb[217].mxu1  ;;  %27769 = vmatmul.mubr.msk.f32.vlgmr.msra.gmra.mrb[222].mxu0 %vm214_vm1, %v18023_v36  ;;  %v18186_v4 = vrot.slane %v18018_v41, 3  ;;  %v28460_v41 = vld [vmem:[#allocation7 + $0xb0] sm:$0xff] }
0x2757   :  { %27777 = vmatpush3.msra.mxu0 %v28454_v62  ;;  %27778 = vmatprep.mubr.msk.f32.mxu0 %vm28582_vm2, %v28581_v8  ;;  %v28461_v62 = vld [vmem:[#allocation7 + $0xb8] sm:$0xff] }
0x2758   :  { %27786 = vmatprep.subr.mxu0 %v28581_v8 }
0x2759   :  { %v18166_v10 = vpop.f32.mrb[218].mxu1 }
0x275a   :  { %v27775_v54 = vpop.f32.mrb[219].mxu1  ;;  %v18190_v15 = vrot.slane %v18166_v10, 1 }
0x2819   :  { %v17494_v56 = vpop.f32.mrb[214].mxu0 }
0x281a   :  { %v30873_v39 = vadd.f32 %v17494_v56, %v30730_v38  ;;  %v27730_v28 = vpop.f32.mrb[215].mxu0  ;;  %v30933_v56 = vrot.slane %v30267_v7, %v28764_v17 }
0x281d   :  { %v17648_v11 = vpop.f32.mrb[216].mxu0 }
0x281e   :  { %v18179_v27 = vsel %vm948_vm3, %v18178_v61, %v17648_v11  ;;  %v27740_v32 = vpop.f32.mrb[217].mxu0  ;;  %v30937_v61 = vld [vmem:[#allocation5 + $0xc8] sm:$0xff]  ;;  %v19116_v11 = vcombine.high %v30933_v56, %v30933_v56 }
0x2820   :  { %v30950_v32 = vrot.slane %v19116_v11, %v28764_v17 }
0x2821   :  { %v17796_v48 = vpop.f32.mrb[218].mxu0 }
0x2822   :  { %v18180_v49 = vrot.slane %v17796_v48, 6  ;;  %v27750_v0 = vpop.f32.mrb[219].mxu0  ;;  %v30953_v48 = vld [vmem:[#allocation5 + $0xd8] sm:$0xff] }
0x2823   :  { %v30966_v0 = vcombine.high %v30950_v32, %v30950_v32 }
0x2824   :  { %v18181_v51 = vsel %vm951_vm4, %v18180_v49, %v18179_v27  ;;  %v19101_v27 = vcombine.high %v30267_v7, %v30267_v7 }
0x2825   :  { %v17944_v52 = vpop.f32.mrb[220].mxu0  ;;  %v18183_v58 = vsel %vm954_vm5, %v18182_v43, %v18181_v51  ;;  %v30969_v43 = vld [vmem:[#allocation5 + $0xe8] sm:$0xff] }
0x2826   :  { %v18184_v60 = vrot.slane %v17944_v52, 4  ;;  %v27760_v63 = vpop.f32.mrb[221].mxu0  ;;  %v30956_v49 = vrot.slane %v19101_v27, %v28764_v17 }
0x2827   :  { %v25716_v63 = vld [vmem:[%s31742_s6 + $0x38] sm:$0xff] }
0x2828   :  { %v18185_v38 = vsel %vm957_vm6, %v18184_v60, %v18183_v58  ;;  %v19117_v51 = vcombine.high %v30956_v49, %v30956_v49  ;;  %v30983_v58 = vld [vmem:[#allocation5 + $0xf8] sm:$0xff] }
0x2829   :  { %v18092_v5 = vpop.f32.mrb[222].mxu0  ;;  %v18187_v13 = vsel %vm960_vm7, %v18186_v4, %v18185_v38 }
0x282a   :  { %v18188_v59 = vrot.slane %v18092_v5, 2  ;;  %v27770_v50 = vpop.f32.mrb[223].mxu0  ;;  %v30980_v52 = vrot.slane %v19117_v51, %v28764_v17 }
0x282c   :  { %v18189_v9 = vsel %vm963_vm8, %v18188_v59, %v18187_v13  ;;  %v30993_v60 = vcombine.high %v30980_v52, %v30980_v52 }
0x282d   :  { %v18191_v24 = vsel %vm966_vm9, %v18190_v15, %v18189_v9 }
0x282e   :  { %v18193_v25 = vadd.f32 %v18191_v24, %v17577_v18 }
0x2830   :  { %v18194_v34 = vadd.f32 %v28455_v44, %v18193_v25 }
0x2832   :  { %v18195_v57 = vsel %vm214_vm1, %v18194_v34, -inf }
0x2833   :  { %18196 = vmax.xlane.f32.xlu0 %v18195_v57 }
0x2849   :  { %18832 = vrot.lane.b32.xlu0 %v30269_v33, %s31769_s3 }
0x28c0   :  { %v18197_v2 = vpop.xlane.xlu0 %18196 }
0x28c1   :  { %v18198_v22 = vsub.f32 %v18194_v34, %v18197_v2 }
0x28c3   :  { %v18199_v3 = vmul.f32 1.442695, %v18198_v22 }
0x28c4   :  { %v18833_v10 = vpop.permute.xlu0 %18832 }
0x28c5   :  { %28376 = vpow2.f32 %v18199_v3 }
0x28cf   :  { %v28377_v26 = vpop.eup %28376 }
0x28d0   :  { %v18201_v35 = vsel %vm214_vm1, %v28377_v26, 0.0 }
0x28d1   :  { %18202 = vadd.xlane.f32.xlu1 %v18201_v35 }
0x28e2   :  { %19024 = vrot.lane.b32.xlu1 %v30267_v7, %s28585_s0 }
0x295e   :  { %v18203_v42 = vpop.xlane.xlu1 %18202 }
0x295f   :  { %28378 = vrcp.f32 %v18203_v42 }
0x2962   :  { %v19025_v28 = vpop.permute.xlu1 %19024 }
0x2969   :  { %v28379_v14 = vpop.eup %28378 }
0x296a   :  { %v18205_v29 = vmul.f32 %v28379_v14, %v28377_v26 }
0x296c   :  { %v18214_v20 = vrot.slane %v18205_v29, %v28764_v17  ;;  %v18207_v40 = vcombine.high %v18205_v29, %v18205_v29 }
0x296e   :  { %v18230_v33 = vrot.slane %v18214_v20, %v28764_v17  ;;  %v18222_v45 = vcombine.high %v18214_v20, %v18214_v20  ;;  %v18221_v30 = vrot.slane %v18207_v40, %v28764_v17 }
0x2970   :  { %27779 = vmatmul.mubr.msk.f32.vlgmr.msra.gmra.mrb[224].mxu0 %vm214_vm1, %v18230_v33  ;;  %v18244_v6 = vrot.slane %v18222_v45, %v28764_v17  ;;  %v18252_v47 = vcombine.high %v18230_v33, %v18230_v33  ;;  %v18223_v31 = vcombine.high %v18221_v30, %v18221_v30  ;;  %v18237_v19 = vrot.slane %v18221_v30, %v28764_v17 }
0x2971   :  { %27787 = vmatpush3.msra.mxu0 %v28456_v23  ;;  %27788 = vmatprep.mubr.msk.f32.mxu0 %vm28582_vm2, %v28581_v8 }
0x2972   :  { %27784 = vmatmul.mubr.msk.f32.vlgmr.msra.gmra.mrb[220].mxu1 %vm214_vm1, %v18244_v6  ;;  %27796 = vmatprep.subr.mxu0 %v28581_v8  ;;  %v18254_v37 = vcombine.high %v18244_v6, %v18244_v6  ;;  %v18251_v36 = vrot.slane %v18223_v31, %v28764_v17  ;;  %v18253_v55 = vcombine.high %v18237_v19, %v18237_v19 }
0x2973   :  { %27792 = vmatpush3.msra.mxu1 %v28457_v1  ;;  %27793 = vmatprep.mubr.msk.f32.mxu1 %vm28582_vm2, %v28581_v8 }
0x2974   :  { %27789 = vmatmul.mubr.msk.f32.vlgmr.msra.gmra.mrb[226].mxu0 %vm214_vm1, %v18252_v47  ;;  %27801 = vmatprep.subr.mxu1 %v28581_v8  ;;  %v18255_v54 = vcombine.high %v18251_v36, %v18251_v36 }
0x2975   :  { %27797 = vmatpush3.msra.mxu0 %v28458_v46  ;;  %27798 = vmatprep.mubr.msk.f32.mxu0 %vm28582_vm2, %v28581_v8  ;;  %v31011_v46 = vld [vmem:[#allocation5 + $0xc0] sm:$0xff] }
0x2976   :  { %27794 = vmatmul.mubr.msk.f32.vlgmr.msra.gmra.mrb[222].mxu1 %vm214_vm1, %v18254_v37  ;;  %27806 = vmatprep.subr.mxu0 %v28581_v8 }
0x2977   :  { %27802 = vmatpush3.msra.mxu1 %v28459_v53  ;;  %27803 = vmatprep.mubr.msk.f32.mxu1 %vm28582_vm2, %v28581_v8  ;;  %v31023_v53 = vld [vmem:[#allocation5 + $0xd0] sm:$0xff] }
0x2978   :  { %27799 = vmatmul.mubr.msk.f32.vlgmr.msra.gmra.mrb[228].mxu0 %vm214_vm1, %v18237_v19  ;;  %27811 = vmatprep.subr.mxu1 %v28581_v8  ;;  %v31020_v19 = vrot.slane %v30933_v56, %v28764_v17  ;;  %v31046_v56 = vrot.slane %v30956_v49, %v28764_v17 }
0x2979   :  { %27807 = vmatpush3.msra.mxu0 %v28460_v41  ;;  %27808 = vmatprep.mubr.msk.f32.mxu0 %vm28582_vm2, %v28581_v8 }
0x297a   :  { %27804 = vmatmul.mubr.msk.f32.vlgmr.msra.gmra.mrb[224].mxu1 %vm214_vm1, %v18251_v36  ;;  %27816 = vmatprep.subr.mxu0 %v28581_v8  ;;  %v31059_v51 = vcombine.high %v31046_v56, %v31046_v56 }
0x297b   :  { %27812 = vmatpush3.msra.mxu1 %v28461_v62  ;;  %27813 = vmatprep.mubr.msk.f32.mxu1 %vm28582_vm2, %v28581_v8  ;;  %v31036_v62 = vld [vmem:[#allocation5 + $0xe0] sm:$0xff] }
0x297c   :  { %27809 = vmatmul.mubr.msk.f32.vlgmr.msra.gmra.mrb[230].mxu0 %vm214_vm1, %v18253_v55  ;;  %27821 = vmatprep.subr.mxu1 %v28581_v8  ;;  %v31033_v55 = vcombine.high %v31020_v19, %v31020_v19 }
0x297d   :  { %27817 = vmatpush3.msra.mxu0 %v18833_v10  ;;  %27818 = vmatprep.mubr.msk.f32.mxu0 %vm28582_vm2, %v28581_v8 }
0x297e   :  { %27814 = vmatmul.mubr.msk.f32.vlgmr.msra.gmra.mrb[226].mxu1 %vm214_vm1, %v18255_v54  ;;  %27826 = vmatprep.subr.mxu0 %v28581_v8 }
0x297f   :  { %27823 = vmatprep.mubr.msk.f32.mxu1 %vm28582_vm2, %v28581_v8  ;;  %27822 = vmatpush3.msra.mxu1 %v25716_v63 }
0x2980   :  { %27819 = vmatmul.mubr.msk.f32.vlgmr.msra.gmra.mrb[232].mxu0 %vm214_vm1, %v18205_v29  ;;  %27831 = vmatprep.subr.mxu1 %v28581_v8 }
0x2981   :  { %27828 = vmatprep.mubr.msk.f32.mxu0 %vm28582_vm2, %v28581_v8 }
0x2984   :  { %27827 = vmatpush3.xpose.msk.msra.mxu0 %vm214_vm1, %v19025_v28  ;;  %v31049_v28 = vld [vmem:[#allocation5 + $0xf0] sm:$0xff] }
0x2985   :  { %27836 = vmatprep.subr.mxu0 %v28581_v8 }
0x2987   :  { %27829 = vmatmul.mubr.msk.f32.vlgmr.msra.gmra.mrb[234].mxu0 %vm214_vm1, %v30267_v7 }
0x2988   :  { %27837 = vmatpush3.xpose.msk.msra.mxu0 %vm214_vm1, %v30937_v61  ;;  %27838 = vmatprep.mubr.msk.f32.mxu0 %vm28582_vm2, %v28581_v8 }
0x2989   :  { %27846 = vmatprep.subr.mxu0 %v28581_v8 }
0x298b   :  { %27839 = vmatmul.mubr.msk.f32.vlgmr.msra.gmra.mrb[236].mxu0 %vm214_vm1, %v30950_v32 }
0x298c   :  { %27847 = vmatpush3.xpose.msk.msra.mxu0 %vm214_vm1, %v30953_v48  ;;  %27848 = vmatprep.mubr.msk.f32.mxu0 %vm28582_vm2, %v28581_v8 }
0x298d   :  { %27856 = vmatprep.subr.mxu0 %v28581_v8 }
0x298f   :  { %27849 = vmatmul.mubr.msk.f32.vlgmr.msra.gmra.mrb[238].mxu0 %vm214_vm1, %v30966_v0 }
0x2990   :  { %27857 = vmatpush3.xpose.msk.msra.mxu0 %vm214_vm1, %v30969_v43  ;;  %27858 = vmatprep.mubr.msk.f32.mxu0 %vm28582_vm2, %v28581_v8 }
0x2991   :  { %27866 = vmatprep.subr.mxu0 %v28581_v8 }
0x2993   :  { %27859 = vmatmul.mubr.msk.f32.vlgmr.msra.gmra.mrb[240].mxu0 %vm214_vm1, %v30980_v52 }
0x2994   :  { %27867 = vmatpush3.xpose.msk.msra.mxu0 %vm214_vm1, %v30983_v58  ;;  %27868 = vmatprep.mubr.msk.f32.mxu0 %vm28582_vm2, %v28581_v8 }
0x2995   :  { %27876 = vmatprep.subr.mxu0 %v28581_v8 }
0x2997   :  { %27869 = vmatmul.mubr.msk.f32.vlgmr.msra.gmra.mrb[242].mxu0 %vm214_vm1, %v30993_v60 }
0x2998   :  { %27878 = vmatprep.mubr.msk.f32.mxu0 %vm28582_vm2, %v28581_v8 }
0x2a43   :  { %v18324_v4 = vpop.f32.mrb[224].mxu0 }
0x2a44   :  { %v27780_v38 = vpop.f32.mrb[225].mxu0 }
0x2a45   :  { %v18396_v5 = vpop.f32.mrb[220].mxu1 }
0x2a46   :  { %v18843_v13 = vrot.slane %v18396_v5, 7  ;;  %v27785_v59 = vpop.f32.mrb[221].mxu1 }
0x2a47   :  { %v18468_v50 = vpop.f32.mrb[226].mxu0 }
0x2a48   :  { %v18844_v15 = vsel %vm948_vm3, %v18843_v13, %v18324_v4  ;;  %v18845_v18 = vrot.slane %v18468_v50, 6  ;;  %v27790_v9 = vpop.f32.mrb[227].mxu0 }
0x2a49   :  { %v18540_v24 = vpop.f32.mrb[222].mxu1 }
0x2a4a   :  { %v18846_v25 = vsel %vm951_vm4, %v18845_v18, %v18844_v15  ;;  %v18847_v44 = vrot.slane %v18540_v24, 5  ;;  %v27795_v34 = vpop.f32.mrb[223].mxu1 }
0x2a4b   :  { %v18612_v57 = vpop.f32.mrb[228].mxu0 }
0x2a4c   :  { %v18848_v2 = vsel %vm954_vm5, %v18847_v44, %v18846_v25  ;;  %v18849_v22 = vrot.slane %v18612_v57, 4  ;;  %v27800_v3 = vpop.f32.mrb[229].mxu0 }
0x2a4d   :  { %v18684_v26 = vpop.f32.mrb[224].mxu1 }
0x2a4e   :  { %v18850_v35 = vsel %vm957_vm6, %v18849_v22, %v18848_v2  ;;  %v18851_v42 = vrot.slane %v18684_v26, 3  ;;  %v27805_v14 = vpop.f32.mrb[225].mxu1 }
0x2a4f   :  { %v18756_v29 = vpop.f32.mrb[230].mxu0 }
0x2a50   :  { %v18852_v20 = vsel %vm960_vm7, %v18851_v42, %v18850_v35  ;;  %v18853_v40 = vrot.slane %v18756_v29, 2  ;;  %v27810_v33 = vpop.f32.mrb[231].mxu0 }
0x2a51   :  { %v18828_v45 = vpop.f32.mrb[226].mxu1 }
0x2a52   :  { %v18855_v6 = vrot.slane %v18828_v45, 1  ;;  %v27815_v30 = vpop.f32.mrb[227].mxu1  ;;  %v18854_v23 = vsel %vm963_vm8, %v18853_v40, %v18852_v20 }
0x2a53   :  { %v18926_v47 = vpop.f32.mrb[232].mxu0 }
0x2a54   :  { %v18856_v1 = vsel %vm966_vm9, %v18855_v6, %v18854_v23  ;;  %v27820_v37 = vpop.f32.mrb[233].mxu0  ;;  %v31078_v6 = vld [vmem:[%s31737_s1 + $0x1] ss:$0 sm:$0xff] }
0x2a55   :  { %v18927_v31 = vadd.f32 %v18926_v47, %v18856_v1  ;;  %v31089_v37 = vrot.slane %v30950_v32, %v28895_v21  ;;  %v31107_v32 = vrot.slane %v30993_v60, %v28895_v21  ;;  %v31122_v60 = vrot.slane %v31033_v55, %v28895_v21 }
0x2a57   :  { %27824 = vmatmul.mubr.msk.f32.vlgmr.msra.gmra.mrb[228].mxu1 %vm214_vm1, %v18927_v31  ;;  %v31095_v31 = vrot.slane %v30966_v0, %v28895_v21 }
0x2a58   :  { %27832 = vmatpush3.xpose.msk.msra.mxu1 %vm214_vm1, %v31011_v46  ;;  %27833 = vmatprep.mubr.msk.f32.mxu1 %vm28582_vm2, %v28581_v8 }
0x2a59   :  { %27841 = vmatprep.subr.mxu1 %v28581_v8 }
0x2a5a   :  { %v19096_v36 = vpop.f32.mrb[234].mxu0 }
0x2a5b   :  { %v27830_v41 = vpop.f32.mrb[235].mxu0  ;;  %27834 = vmatmul.mubr.msk.f32.vlgmr.msra.gmra.mrb[230].mxu1 %vm214_vm1, %v31020_v19  ;;  %v19100_v33 = vmul.f32 0.35355338, %v19096_v36  ;;  %v31101_v36 = vrot.slane %v30980_v52, %v28895_v21  ;;  %v31116_v52 = vrot.slane %v31020_v19, %v28895_v21  ;;  %v31136_v19 = vld [vmem:[#allocation7 + $0xc8] sm:$0xff] }
0x2a5c   :  { %27842 = vmatpush3.xpose.msk.msra.mxu1 %vm214_vm1, %v31023_v53  ;;  %27843 = vmatprep.mubr.msk.f32.mxu1 %vm28582_vm2, %v28581_v8 }
0x2a5d   :  { %27851 = vmatprep.subr.mxu1 %v28581_v8  ;;  %27877 = vmatpush3.msra.mxu0 %v31136_v19 }
0x2a5e   :  { %v19296_v10 = vpop.f32.mrb[236].mxu0  ;;  %27886 = vmatprep.subr.mxu0 %v28581_v8 }
0x2a5f   :  { %v27840_v54 = vpop.f32.mrb[237].mxu0  ;;  %27844 = vmatmul.mubr.msk.f32.vlgmr.msra.gmra.mrb[232].mxu1 %vm214_vm1, %v31033_v55  ;;  %v19758_v50 = vrot.slane %v19296_v10, 7  ;;  %v31141_v55 = vrot.slane %v31059_v51, %v28895_v21 }
0x2a60   :  { %27852 = vmatpush3.xpose.msk.msra.mxu1 %vm214_vm1, %v31036_v62  ;;  %27853 = vmatprep.mubr.msk.f32.mxu1 %vm28582_vm2, %v28581_v8 }
0x2a61   :  { %27861 = vmatprep.subr.mxu1 %v28581_v8 }
0x2a62   :  { %v19446_v11 = vpop.f32.mrb[238].mxu0 }
0x2a63   :  { %v27850_v27 = vpop.f32.mrb[239].mxu0  ;;  %27854 = vmatmul.mubr.msk.f32.vlgmr.msra.gmra.mrb[234].mxu1 %vm214_vm1, %v31046_v56  ;;  %v19762_v34 = vrot.slane %v19446_v11, 5 }
0x2a64   :  { %27862 = vmatpush3.xpose.msk.msra.mxu1 %vm214_vm1, %v31049_v28  ;;  %27863 = vmatprep.mubr.msk.f32.mxu1 %vm28582_vm2, %v28581_v8  ;;  %v31126_v27 = vld [vmem:[#allocation7 + $0xc0] sm:$0xff] }
0x2a65   :  { %27871 = vmatprep.subr.mxu1 %v28581_v8 }
0x2a66   :  { %v19596_v49 = vpop.f32.mrb[240].mxu0 }
0x2a67   :  { %v27860_v63 = vpop.f32.mrb[241].mxu0  ;;  %27864 = vmatmul.mubr.msk.f32.vlgmr.msra.gmra.mrb[236].mxu1 %vm214_vm1, %v31059_v51  ;;  %v19766_v35 = vrot.slane %v19596_v49, 3  ;;  %v31131_v49 = vrot.slane %v31046_v56, %v28895_v21  ;;  %v31152_v51 = vld [vmem:[#allocation7 + $0xd8] sm:$0xff] }
0x2a68   :  { %27873 = vmatprep.mubr.msk.f32.mxu1 %vm28582_vm2, %v28581_v8  ;;  %27872 = vmatpush3.msra.mxu1 %v31126_v27 }
0x2a69   :  { %27881 = vmatprep.subr.mxu1 %v28581_v8 }
0x2a6a   :  { %v19746_v4 = vpop.f32.mrb[242].mxu0 }
0x2a6b   :  { %v27870_v38 = vpop.f32.mrb[243].mxu0  ;;  %v19770_v40 = vrot.slane %v19746_v4, 1 }
0x2b2a   :  { %v18999_v5 = vpop.f32.mrb[228].mxu1 }
0x2b2b   :  { %v31067_v13 = vadd.f32 %v18999_v5, %v30873_v39  ;;  %v27825_v59 = vpop.f32.mrb[229].mxu1 }
0x2b2e   :  { %v19221_v15 = vpop.f32.mrb[230].mxu1 }
0x2b2f   :  { %v19759_v18 = vsel %vm948_vm3, %v19758_v50, %v19221_v15  ;;  %v27835_v9 = vpop.f32.mrb[231].mxu1  ;;  %v31148_v15 = vld [vmem:[#allocation7 + $0xd0] sm:$0xff] }
0x2b32   :  { %v19371_v24 = vpop.f32.mrb[232].mxu1 }
0x2b33   :  { %v19760_v25 = vrot.slane %v19371_v24, 6  ;;  %v27845_v44 = vpop.f32.mrb[233].mxu1  ;;  %v31160_v24 = vld [vmem:[#allocation7 + $0xe0] sm:$0xff] }
0x2b34   :  { %v31167_v44 = vld [vmem:[#allocation7 + $0xe8] sm:$0xff] }
0x2b35   :  { %v19761_v57 = vsel %vm951_vm4, %v19760_v25, %v19759_v18 }
0x2b36   :  { %v19521_v2 = vpop.f32.mrb[234].mxu1  ;;  %v19763_v22 = vsel %vm954_vm5, %v19762_v34, %v19761_v57 }
0x2b37   :  { %v19764_v3 = vrot.slane %v19521_v2, 4  ;;  %v27855_v26 = vpop.f32.mrb[235].mxu1 }
0x2b38   :  { %v31183_v26 = vld [vmem:[#allocation7 + $0xf8] sm:$0xff] }
0x2b39   :  { %v19765_v39 = vsel %vm957_vm6, %v19764_v3, %v19763_v22  ;;  %v31175_v22 = vld [vmem:[#allocation7 + $0xf0] sm:$0xff] }
0x2b3a   :  { %v19671_v42 = vpop.f32.mrb[236].mxu1  ;;  %v19767_v14 = vsel %vm960_vm7, %v19766_v35, %v19765_v39 }
0x2b3b   :  { %v19768_v29 = vrot.slane %v19671_v42, 2  ;;  %v27865_v20 = vpop.f32.mrb[237].mxu1 }
0x2b3d   :  { %v19769_v45 = vsel %vm963_vm8, %v19768_v29, %v19767_v14 }
0x2b3e   :  { %v19771_v30 = vsel %vm966_vm9, %v19770_v40, %v19769_v45 }
0x2b3f   :  { %v19773_v23 = vadd.f32 %v19771_v30, %v19100_v33 }
0x2b41   :  { %v19780_v47 = vadd.f32 %v31078_v6, %v19773_v23 }
0x2b43   :  { %v19781_v1 = vsel %vm214_vm1, %v19780_v47, -inf }
0x2b44   :  { %19782 = vmax.xlane.f32.xlu0 %v19781_v1 }
0x2b5a   :  { %20418 = vrot.lane.b32.xlu0 %v30267_v7, %s28584_s30 }
0x2b5e   :  { %20516 = vrot.lane.b32.xlu0 %v30267_v7, %s28586_s26 }
0x2b62   :  { %20677 = vrot.lane.b32.xlu0 %v31089_v37, %s28586_s26 }
0x2b66   :  { %20833 = vrot.lane.b32.xlu0 %v31095_v31, %s28586_s26 }
0x2b6a   :  { %20989 = vrot.lane.b32.xlu0 %v31101_v36, %s28586_s26 }
0x2b6e   :  { %21145 = vrot.lane.b32.xlu0 %v31107_v32, %s28586_s26 }
0x2bd1   :  { %v19783_v41 = vpop.xlane.xlu0 %19782 }
0x2bd2   :  { %v19784_v0 = vsub.f32 %v19780_v47, %v19783_v41 }
0x2bd4   :  { %v19785_v10 = vmul.f32 1.442695, %v19784_v0 }
0x2bd5   :  { %v20419_v57 = vpop.permute.xlu0 %20418 }
0x2bd6   :  { %28380 = vpow2.f32 %v19785_v10 }
0x2bd9   :  { %v20517_v42 = vpop.permute.xlu0 %20516 }
0x2bdd   :  { %v20678_v20 = vpop.permute.xlu0 %20677 }
0x2be0   :  { %v28381_v54 = vpop.eup %28380 }
0x2be1   :  { %v19787_v11 = vsel %vm214_vm1, %v28381_v54, 0.0  ;;  %v20834_v33 = vpop.permute.xlu0 %20833 }
0x2be2   :  { %19788 = vadd.xlane.f32.xlu1 %v19787_v11 }
0x2be5   :  { %v20990_v30 = vpop.permute.xlu0 %20989 }
0x2be9   :  { %v21146_v47 = vpop.permute.xlu0 %21145 }
0x2bf3   :  { %20518 = vrot.lane.b32.xlu1 %v30267_v7, %s28587_s2 }
0x2bf7   :  { %20599 = vrot.lane.b32.xlu1 %v31116_v52, %s28586_s26 }
0x2bfb   :  { %20755 = vrot.lane.b32.xlu1 %v31122_v60, %s28586_s26 }
0x2bff   :  { %20911 = vrot.lane.b32.xlu1 %v31131_v49, %s28586_s26 }
0x2c03   :  { %21067 = vrot.lane.b32.xlu1 %v31141_v55, %s28586_s26 }
0x2c6f   :  { %v19789_v56 = vpop.xlane.xlu1 %19788 }
0x2c70   :  { %28382 = vrcp.f32 %v19789_v56 }
0x2c73   :  { %v20519_v35 = vpop.permute.xlu1 %20518 }
0x2c77   :  { %v20600_v29 = vpop.permute.xlu1 %20599 }
0x2c7a   :  { %v28383_v63 = vpop.eup %28382 }
0x2c7b   :  { %v19791_v4 = vmul.f32 %v28383_v63, %v28381_v54  ;;  %v20756_v40 = vpop.permute.xlu1 %20755 }
0x2c7d   :  { %v19800_v38 = vrot.slane %v19791_v4, %v28764_v17  ;;  %v19793_v5 = vcombine.high %v19791_v4, %v19791_v4 }
0x2c7f   :  { %v19816_v59 = vrot.slane %v19800_v38, %v28764_v17  ;;  %v19808_v50 = vcombine.high %v19800_v38, %v19800_v38  ;;  %v19807_v18 = vrot.slane %v19793_v5, %v28764_v17  ;;  %v20912_v45 = vpop.permute.xlu1 %20911 }
0x2c81   :  { %27874 = vmatmul.mubr.msk.f32.vlgmr.msra.gmra.mrb[238].mxu1 %vm214_vm1, %v19816_v59  ;;  %v19830_v21 = vrot.slane %v19808_v50, %v28764_v17  ;;  %v19838_v9 = vcombine.high %v19816_v59, %v19816_v59  ;;  %v19809_v34 = vcombine.high %v19807_v18, %v19807_v18  ;;  %v19823_v2 = vrot.slane %v19807_v18, %v28764_v17 }
0x2c82   :  { %27882 = vmatpush3.msra.mxu1 %v31148_v15  ;;  %27883 = vmatprep.mubr.msk.f32.mxu1 %vm28582_vm2, %v28581_v8 }
0x2c83   :  { %27879 = vmatmul.mubr.msk.f32.vlgmr.msra.gmra.mrb[244].mxu0 %vm214_vm1, %v19830_v21  ;;  %27891 = vmatprep.subr.mxu1 %v28581_v8  ;;  %v19840_v25 = vcombine.high %v19830_v21, %v19830_v21  ;;  %v19837_v3 = vrot.slane %v19809_v34, %v28764_v17  ;;  %v19839_v39 = vcombine.high %v19823_v2, %v19823_v2  ;;  %v21068_v23 = vpop.permute.xlu1 %21067 }
0x2c84   :  { %27887 = vmatpush3.msra.mxu0 %v31152_v51  ;;  %27888 = vmatprep.mubr.msk.f32.mxu0 %vm28582_vm2, %v28581_v8 }
0x2c85   :  { %27884 = vmatmul.mubr.msk.f32.vlgmr.msra.gmra.mrb[240].mxu1 %vm214_vm1, %v19838_v9  ;;  %27896 = vmatprep.subr.mxu0 %v28581_v8  ;;  %v19841_v14 = vcombine.high %v19837_v3, %v19837_v3 }
0x2c86   :  { %27892 = vmatpush3.msra.mxu1 %v31160_v24  ;;  %27893 = vmatprep.mubr.msk.f32.mxu1 %vm28582_vm2, %v28581_v8 }
0x2c87   :  { %27889 = vmatmul.mubr.msk.f32.vlgmr.msra.gmra.mrb[246].mxu0 %vm214_vm1, %v19840_v25  ;;  %27901 = vmatprep.subr.mxu1 %v28581_v8 }
0x2c88   :  { %27897 = vmatpush3.msra.mxu0 %v31167_v44  ;;  %27898 = vmatprep.mubr.msk.f32.mxu0 %vm28582_vm2, %v28581_v8 }
0x2c89   :  { %27894 = vmatmul.mubr.msk.f32.vlgmr.msra.gmra.mrb[242].mxu1 %vm214_vm1, %v19823_v2  ;;  %27906 = vmatprep.subr.mxu0 %v28581_v8 }
0x2c8a   :  { %27902 = vmatpush3.msra.mxu1 %v31175_v22  ;;  %27903 = vmatprep.mubr.msk.f32.mxu1 %vm28582_vm2, %v28581_v8 }
0x2c8b   :  { %27899 = vmatmul.mubr.msk.f32.vlgmr.msra.gmra.mrb[248].mxu0 %vm214_vm1, %v19837_v3  ;;  %27911 = vmatprep.subr.mxu1 %v28581_v8 }
0x2c8c   :  { %27907 = vmatpush3.msra.mxu0 %v31183_v26  ;;  %27908 = vmatprep.mubr.msk.f32.mxu0 %vm28582_vm2, %v28581_v8 }
0x2c8d   :  { %27904 = vmatmul.mubr.msk.f32.vlgmr.msra.gmra.mrb[244].mxu1 %vm214_vm1, %v19839_v39  ;;  %27916 = vmatprep.subr.mxu0 %v28581_v8 }
0x2c8e   :  { %27912 = vmatpush3.msra.mxu1 %v20419_v57  ;;  %27913 = vmatprep.mubr.msk.f32.mxu1 %vm28582_vm2, %v28581_v8 }
0x2c8f   :  { %27909 = vmatmul.mubr.msk.f32.vlgmr.msra.gmra.mrb[250].mxu0 %vm214_vm1, %v19841_v14  ;;  %27921 = vmatprep.subr.mxu1 %v28581_v8 }
0x2c90   :  { %27918 = vmatprep.mubr.msk.f32.mxu0 %vm28582_vm2, %v28581_v8 }
0x2c91   :  { %27914 = vmatmul.mubr.msk.f32.vlgmr.msra.gmra.mrb[246].mxu1 %vm214_vm1, %v19791_v4 }
0x2c92   :  { %27923 = vmatprep.mubr.msk.f32.mxu1 %vm28582_vm2, %v28581_v8 }
0x2c93   :  { %27917 = vmatpush3.xpose.msk.msra.mxu0 %vm214_vm1, %v20519_v35 }
0x2c94   :  { %27926 = vmatprep.subr.mxu0 %v28581_v8 }
0x2c95   :  { %27922 = vmatpush3.xpose.msk.msra.mxu1 %vm214_vm1, %v31011_v46 }
0x2c96   :  { %27919 = vmatmul.mubr.msk.f32.vlgmr.msra.gmra.mrb[252].mxu0 %vm214_vm1, %v20517_v42  ;;  %27931 = vmatprep.subr.mxu1 %v28581_v8 }
0x2c97   :  { %27927 = vmatpush3.xpose.msk.msra.mxu0 %vm214_vm1, %v30937_v61  ;;  %27928 = vmatprep.mubr.msk.f32.mxu0 %vm28582_vm2, %v28581_v8 }
0x2c98   :  { %27924 = vmatmul.mubr.msk.f32.vlgmr.msra.gmra.mrb[248].mxu1 %vm214_vm1, %v20600_v29  ;;  %27936 = vmatprep.subr.mxu0 %v28581_v8 }
0x2c99   :  { %27932 = vmatpush3.xpose.msk.msra.mxu1 %vm214_vm1, %v31023_v53  ;;  %27933 = vmatprep.mubr.msk.f32.mxu1 %vm28582_vm2, %v28581_v8 }
0x2c9a   :  { %27929 = vmatmul.mubr.msk.f32.vlgmr.msra.gmra.mrb[254].mxu0 %vm214_vm1, %v20678_v20  ;;  %27941 = vmatprep.subr.mxu1 %v28581_v8 }
0x2c9b   :  { %27937 = vmatpush3.xpose.msk.msra.mxu0 %vm214_vm1, %v30953_v48  ;;  %27938 = vmatprep.mubr.msk.f32.mxu0 %vm28582_vm2, %v28581_v8 }
0x2c9c   :  { %27934 = vmatmul.mubr.msk.f32.vlgmr.msra.gmra.mrb[250].mxu1 %vm214_vm1, %v20756_v40  ;;  %27946 = vmatprep.subr.mxu0 %v28581_v8 }
0x2c9d   :  { %27942 = vmatpush3.xpose.msk.msra.mxu1 %vm214_vm1, %v31036_v62  ;;  %27943 = vmatprep.mubr.msk.f32.mxu1 %vm28582_vm2, %v28581_v8 }
0x2c9e   :  { %27939 = vmatmul.mubr.msk.f32.vlgmr.msra.gmra.mrb[0].mxu0 %vm214_vm1, %v20834_v33  ;;  %27951 = vmatprep.subr.mxu1 %v28581_v8 }
0x2c9f   :  { %27947 = vmatpush3.xpose.msk.msra.mxu0 %vm214_vm1, %v30969_v43  ;;  %27948 = vmatprep.mubr.msk.f32.mxu0 %vm28582_vm2, %v28581_v8 }
0x2ca0   :  { %27944 = vmatmul.mubr.msk.f32.vlgmr.msra.gmra.mrb[252].mxu1 %vm214_vm1, %v20912_v45  ;;  %27956 = vmatprep.subr.mxu0 %v28581_v8 }
0x2ca1   :  { %27952 = vmatpush3.xpose.msk.msra.mxu1 %vm214_vm1, %v31049_v28  ;;  %27953 = vmatprep.mubr.msk.f32.mxu1 %vm28582_vm2, %v28581_v8 }
0x2ca2   :  { %27949 = vmatmul.mubr.msk.f32.vlgmr.msra.gmra.mrb[2].mxu0 %vm214_vm1, %v20990_v30  ;;  %27961 = vmatprep.subr.mxu1 %v28581_v8 }
0x2ca3   :  { %27957 = vmatpush3.xpose.msk.msra.mxu0 %vm214_vm1, %v30983_v58  ;;  %27958 = vmatprep.mubr.msk.f32.mxu0 %vm28582_vm2, %v28581_v8 }
0x2ca4   :  { %27954 = vmatmul.mubr.msk.f32.vlgmr.msra.gmra.mrb[254].mxu1 %vm214_vm1, %v21068_v23  ;;  %27966 = vmatprep.subr.mxu0 %v28581_v8 }
0x2ca5   :  { %27962 = vmatpush3.msra.mxu1 %v31126_v27  ;;  %27963 = vmatprep.mubr.msk.f32.mxu1 %vm28582_vm2, %v28581_v8 }
0x2ca6   :  { %27959 = vmatmul.mubr.msk.f32.vlgmr.msra.gmra.mrb[4].mxu0 %vm214_vm1, %v21146_v47  ;;  %27971 = vmatprep.subr.mxu1 %v28581_v8 }
0x2ca7   :  { %27967 = vmatpush3.msra.mxu0 %v31136_v19  ;;  %27968 = vmatprep.mubr.msk.f32.mxu0 %vm28582_vm2, %v28581_v8 }
0x2ca8   :  { %27976 = vmatprep.subr.mxu0 %v28581_v8 }
0x2d54   :  { %v19910_v1 = vpop.f32.mrb[238].mxu1 }
0x2d55   :  { %v27875_v41 = vpop.f32.mrb[239].mxu1 }
0x2d56   :  { %v19982_v0 = vpop.f32.mrb[244].mxu0 }
0x2d57   :  { %v20429_v10 = vrot.slane %v19982_v0, 7  ;;  %v27880_v54 = vpop.f32.mrb[245].mxu0 }
0x2d58   :  { %v20054_v11 = vpop.f32.mrb[240].mxu1 }
0x2d59   :  { %v20430_v56 = vsel %vm948_vm3, %v20429_v10, %v19910_v1  ;;  %v20431_v63 = vrot.slane %v20054_v11, 6  ;;  %v27885_v4 = vpop.f32.mrb[241].mxu1 }
0x2d5a   :  { %v20126_v38 = vpop.f32.mrb[246].mxu0 }
0x2d5b   :  { %v20432_v5 = vsel %vm951_vm4, %v20431_v63, %v20430_v56  ;;  %v20433_v59 = vrot.slane %v20126_v38, 5  ;;  %v27890_v50 = vpop.f32.mrb[247].mxu0 }
0x2d5c   :  { %v20198_v21 = vpop.f32.mrb[242].mxu1 }
0x2d5d   :  { %v20434_v18 = vsel %vm954_vm5, %v20433_v59, %v20432_v5  ;;  %v20435_v9 = vrot.slane %v20198_v21, 4  ;;  %v27895_v25 = vpop.f32.mrb[243].mxu1 }
0x2d5e   :  { %v20270_v34 = vpop.f32.mrb[248].mxu0 }
0x2d5f   :  { %v20436_v57 = vsel %vm957_vm6, %v20435_v9, %v20434_v18  ;;  %v20437_v2 = vrot.slane %v20270_v34, 3  ;;  %v27900_v3 = vpop.f32.mrb[249].mxu0 }
0x2d60   :  { %v20342_v35 = vpop.f32.mrb[244].mxu1 }
0x2d61   :  { %v20438_v39 = vsel %vm960_vm7, %v20437_v2, %v20436_v57  ;;  %v20439_v42 = vrot.slane %v20342_v35, 2  ;;  %v27905_v14 = vpop.f32.mrb[245].mxu1 }
0x2d62   :  { %v20414_v29 = vpop.f32.mrb[250].mxu0 }
0x2d63   :  { %v20441_v20 = vrot.slane %v20414_v29, 1  ;;  %v27910_v40 = vpop.f32.mrb[251].mxu0  ;;  %v20440_v33 = vsel %vm963_vm8, %v20439_v42, %v20438_v39 }
0x2d64   :  { %v20512_v45 = vpop.f32.mrb[246].mxu1 }
0x2d65   :  { %v20442_v30 = vsel %vm966_vm9, %v20441_v20, %v20440_v33  ;;  %v27915_v23 = vpop.f32.mrb[247].mxu1 }
0x2d66   :  { %v31268_v47 = vadd.f32 %v20512_v45, %v20442_v30 }
0x2d69   :  { %v20590_v1 = vpop.f32.mrb[252].mxu0 }
0x2d6a   :  { %v27920_v41 = vpop.f32.mrb[253].mxu0  ;;  %v20594_v23 = vmul.f32 0.35355338, %v20590_v1 }
0x2d6b   :  { %v20669_v0 = vpop.f32.mrb[248].mxu1 }
0x2d6c   :  { %v27925_v10 = vpop.f32.mrb[249].mxu1 }
0x2d6d   :  { %v20747_v54 = vpop.f32.mrb[254].mxu0 }
0x2d6e   :  { %v21227_v11 = vrot.slane %v20747_v54, 7  ;;  %v27930_v56 = vpop.f32.mrb[255].mxu0 }
0x2d6f   :  { %v20825_v63 = vpop.f32.mrb[250].mxu1 }
0x2d70   :  { %v21228_v4 = vsel %vm948_vm3, %v21227_v11, %v20669_v0  ;;  %v21229_v38 = vrot.slane %v20825_v63, 6  ;;  %v27935_v5 = vpop.f32.mrb[251].mxu1 }
0x2d71   :  { %v20903_v59 = vpop.f32.mrb[0].mxu0 }
0x2d72   :  { %v21230_v50 = vsel %vm951_vm4, %v21229_v38, %v21228_v4  ;;  %v21231_v21 = vrot.slane %v20903_v59, 5  ;;  %v27940_v18 = vpop.f32.mrb[1].mxu0 }
0x2d73   :  { %v20981_v9 = vpop.f32.mrb[252].mxu1 }
0x2d74   :  { %v21232_v25 = vsel %vm954_vm5, %v21231_v21, %v21230_v50  ;;  %v21233_v34 = vrot.slane %v20981_v9, 4  ;;  %v27945_v57 = vpop.f32.mrb[253].mxu1 }
0x2d75   :  { %v21059_v2 = vpop.f32.mrb[2].mxu0 }
0x2d76   :  { %v21234_v3 = vsel %vm957_vm6, %v21233_v34, %v21232_v25  ;;  %v21235_v35 = vrot.slane %v21059_v2, 3  ;;  %v27950_v39 = vpop.f32.mrb[3].mxu0 }
0x2d77   :  { %v21137_v42 = vpop.f32.mrb[254].mxu1 }
0x2d78   :  { %v21236_v14 = vsel %vm960_vm7, %v21235_v35, %v21234_v3  ;;  %v21237_v29 = vrot.slane %v21137_v42, 2  ;;  %v27955_v20 = vpop.f32.mrb[255].mxu1 }
0x2d79   :  { %v21215_v40 = vpop.f32.mrb[4].mxu0  ;;  %v28462_v20 = vld [vmem:[%s31742_s6 + $0x28] sm:$0xff] }
0x2d7a   :  { %v21238_v33 = vsel %vm963_vm8, %v21237_v29, %v21236_v14  ;;  %v21239_v45 = vrot.slane %v21215_v40, 1  ;;  %v27960_v30 = vpop.f32.mrb[5].mxu0  ;;  %v28463_v40 = vld [vmem:[%s31742_s6 + $0x20] sm:$0xff] }
0x2d7c   :  { %v21240_v41 = vsel %vm966_vm9, %v21239_v45, %v21238_v33 }
0x2d7d   :  { %v21242_v0 = vadd.f32 %v21240_v41, %v20594_v23 }
0x2d7f   :  { %v21243_v10 = vadd.f32 %v31078_v6, %v21242_v0 }
0x2d81   :  { %v21244_v54 = vsel %vm214_vm1, %v21243_v10, -inf }
0x2d82   :  { %21245 = vmax.xlane.f32.xlu1 %v21244_v54 }
0x2d93   :  { %22127 = vrot.lane.b32.xlu1 %v30267_v7, %s28590_s23 }
0x2d97   :  { %22125 = vrot.lane.b32.xlu1 %v30267_v7, %s28589_s20 }
0x2d9b   :  { %22278 = vrot.lane.b32.xlu1 %v31089_v37, %s28589_s20 }
0x2d9f   :  { %22426 = vrot.lane.b32.xlu1 %v31095_v31, %s28589_s20 }
0x2da3   :  { %22574 = vrot.lane.b32.xlu1 %v31101_v36, %s28589_s20 }
0x2da7   :  { %22722 = vrot.lane.b32.xlu1 %v31107_v32, %s28589_s20 }
0x2e0f   :  { %v21246_v1 = vpop.xlane.xlu1 %21245 }
0x2e10   :  { %v21247_v11 = vsub.f32 %v21243_v10, %v21246_v1 }
0x2e12   :  { %v21248_v56 = vmul.f32 1.442695, %v21247_v11 }
0x2e14   :  { %28384 = vpow2.f32 %v21248_v56 }
0x2e1e   :  { %v28385_v63 = vpop.eup %28384 }
0x2e1f   :  { %v21250_v4 = vsel %vm214_vm1, %v28385_v63, 0.0 }
0x2e20   :  { %21251 = vadd.xlane.f32.xlu0 %v21250_v4  ;;  %v22128_v4 = vpop.permute.xlu1 %22127 }
0x2e36   :  { %21881 = vrot.lane.b32.xlu0 %v30267_v7, %s28588_s22 }
0x2e3a   :  { %22204 = vrot.lane.b32.xlu0 %v31116_v52, %s28589_s20 }
0x2e3e   :  { %22352 = vrot.lane.b32.xlu0 %v31122_v60, %s28589_s20 }
0x2e42   :  { %22500 = vrot.lane.b32.xlu0 %v31131_v49, %s28589_s20 }
0x2e46   :  { %22648 = vrot.lane.b32.xlu0 %v31141_v55, %s28589_s20 }
0x2ead   :  { %v21252_v38 = vpop.xlane.xlu0 %21251 }
0x2eae   :  { %28386 = vrcp.f32 %v21252_v38 }
0x2eb1   :  { %v21882_v14 = vpop.permute.xlu0 %21881 }
0x2eb5   :  { %v22205_v33 = vpop.permute.xlu0 %22204 }
0x2eb8   :  { %v28387_v5 = vpop.eup %28386 }
0x2eb9   :  { %v21254_v59 = vmul.f32 %v28387_v5, %v28385_v63  ;;  %v22353_v45 = vpop.permute.xlu0 %22352 }
0x2ebb   :  { %v21256_v50 = vcombine.high %v21254_v59, %v21254_v59  ;;  %v21263_v21 = vrot.slane %v21254_v59, %v28764_v17 }
0x2ebd   :  { %v21271_v18 = vcombine.high %v21263_v21, %v21263_v21  ;;  %v21279_v9 = vrot.slane %v21263_v21, %v28764_v17  ;;  %v21270_v25 = vrot.slane %v21256_v50, %v28764_v17 }
0x2ebf   :  { %v21293_v34 = vrot.slane %v21271_v18, %v28764_v17  ;;  %27964 = vmatmul.mubr.msk.f32.vlgmr.msra.gmra.mrb[0].mxu1 %vm214_vm1, %v21279_v9  ;;  %v21301_v57 = vcombine.high %v21279_v9, %v21279_v9  ;;  %v21272_v2 = vcombine.high %v21270_v25, %v21270_v25  ;;  %v21286_v35 = vrot.slane %v21270_v25, %v28764_v17 }
0x2ec0   :  { %27972 = vmatpush3.msra.mxu1 %v31148_v15  ;;  %27973 = vmatprep.mubr.msk.f32.mxu1 %vm28582_vm2, %v28581_v8 }
0x2ec1   :  { %27969 = vmatmul.mubr.msk.f32.vlgmr.msra.gmra.mrb[6].mxu0 %vm214_vm1, %v21293_v34  ;;  %27981 = vmatprep.subr.mxu1 %v28581_v8  ;;  %v21303_v3 = vcombine.high %v21293_v34, %v21293_v34  ;;  %v21300_v39 = vrot.slane %v21272_v2, %v28764_v17  ;;  %v21302_v42 = vcombine.high %v21286_v35, %v21286_v35 }
0x2ec2   :  { %27977 = vmatpush3.msra.mxu0 %v31152_v51  ;;  %27978 = vmatprep.mubr.msk.f32.mxu0 %vm28582_vm2, %v28581_v8 }
0x2ec3   :  { %27974 = vmatmul.mubr.msk.f32.vlgmr.msra.gmra.mrb[2].mxu1 %vm214_vm1, %v21301_v57  ;;  %27986 = vmatprep.subr.mxu0 %v28581_v8  ;;  %v21304_v29 = vcombine.high %v21300_v39, %v21300_v39 }
0x2ec4   :  { %27982 = vmatpush3.msra.mxu1 %v31160_v24  ;;  %27983 = vmatprep.mubr.msk.f32.mxu1 %vm28582_vm2, %v28581_v8 }
0x2ec5   :  { %27979 = vmatmul.mubr.msk.f32.vlgmr.msra.gmra.mrb[8].mxu0 %vm214_vm1, %v21303_v3  ;;  %27991 = vmatprep.subr.mxu1 %v28581_v8 }
0x2ec6   :  { %27987 = vmatpush3.msra.mxu0 %v31167_v44  ;;  %27988 = vmatprep.mubr.msk.f32.mxu0 %vm28582_vm2, %v28581_v8 }
0x2ec7   :  { %27984 = vmatmul.mubr.msk.f32.vlgmr.msra.gmra.mrb[4].mxu1 %vm214_vm1, %v21286_v35  ;;  %27996 = vmatprep.subr.mxu0 %v28581_v8  ;;  %v22126_v35 = vpop.permute.xlu1 %22125 }
0x2ec8   :  { %27992 = vmatpush3.msra.mxu1 %v31175_v22  ;;  %27993 = vmatprep.mubr.msk.f32.mxu1 %vm28582_vm2, %v28581_v8 }
0x2ec9   :  { %27989 = vmatmul.mubr.msk.f32.vlgmr.msra.gmra.mrb[10].mxu0 %vm214_vm1, %v21300_v39  ;;  %28001 = vmatprep.subr.mxu1 %v28581_v8 }
0x2eca   :  { %27997 = vmatpush3.msra.mxu0 %v31183_v26  ;;  %27998 = vmatprep.mubr.msk.f32.mxu0 %vm28582_vm2, %v28581_v8 }
0x2ecb   :  { %27994 = vmatmul.mubr.msk.f32.vlgmr.msra.gmra.mrb[6].mxu1 %vm214_vm1, %v21302_v42  ;;  %28006 = vmatprep.subr.mxu0 %v28581_v8 }
0x2ecc   :  { %28002 = vmatpush3.msra.mxu1 %v21882_v14  ;;  %28003 = vmatprep.mubr.msk.f32.mxu1 %vm28582_vm2, %v28581_v8 }
0x2ecd   :  { %27999 = vmatmul.mubr.msk.f32.vlgmr.msra.gmra.mrb[12].mxu0 %vm214_vm1, %v21304_v29  ;;  %28011 = vmatprep.subr.mxu1 %v28581_v8 }
0x2ece   :  { %28007 = vmatpush3.msra.mxu0 %v28462_v20  ;;  %28008 = vmatprep.mubr.msk.f32.mxu0 %vm28582_vm2, %v28581_v8 }
0x2ecf   :  { %28004 = vmatmul.mubr.msk.f32.vlgmr.msra.gmra.mrb[8].mxu1 %vm214_vm1, %v21254_v59  ;;  %28016 = vmatprep.subr.mxu0 %v28581_v8 }
0x2ed0   :  { %28012 = vmatpush3.msra.mxu1 %v28463_v40  ;;  %28013 = vmatprep.mubr.msk.f32.mxu1 %vm28582_vm2, %v28581_v8 }
0x2ed1   :  { %28021 = vmatprep.subr.mxu1 %v28581_v8 }
0x2ed3   :  { %28014 = vmatmul.mubr.msk.f32.vlgmr.msra.gmra.mrb[10].mxu1 %vm214_vm1, %v31268_v47  ;;  %v22501_v47 = vpop.permute.xlu0 %22500 }
0x2ed4   :  { %28023 = vmatprep.mubr.msk.f32.mxu1 %vm28582_vm2, %v28581_v8 }
0x2ed7   :  { %28022 = vmatpush3.xpose.msk.msra.mxu1 %vm214_vm1, %v31011_v46  ;;  %v22649_v46 = vpop.permute.xlu0 %22648 }
0x2ed8   :  { %28031 = vmatprep.subr.mxu1 %v28581_v8 }
0x2eda   :  { %28024 = vmatmul.mubr.msk.f32.vlgmr.msra.gmra.mrb[12].mxu1 %vm214_vm1, %v22205_v33 }
0x2edb   :  { %28032 = vmatpush3.xpose.msk.msra.mxu1 %vm214_vm1, %v31023_v53  ;;  %28033 = vmatprep.mubr.msk.f32.mxu1 %vm28582_vm2, %v28581_v8 }
0x2edc   :  { %28041 = vmatprep.subr.mxu1 %v28581_v8 }
0x2ede   :  { %28034 = vmatmul.mubr.msk.f32.vlgmr.msra.gmra.mrb[14].mxu1 %vm214_vm1, %v22353_v45 }
0x2edf   :  { %28042 = vmatpush3.xpose.msk.msra.mxu1 %vm214_vm1, %v31036_v62  ;;  %28043 = vmatprep.mubr.msk.f32.mxu1 %vm28582_vm2, %v28581_v8 }
0x2ee0   :  { %28051 = vmatprep.subr.mxu1 %v28581_v8 }
0x2ee2   :  { %28044 = vmatmul.mubr.msk.f32.vlgmr.msra.gmra.mrb[16].mxu1 %vm214_vm1, %v22501_v47  ;;  %v22279_v47 = vpop.permute.xlu1 %22278 }
0x2ee3   :  { %28052 = vmatpush3.xpose.msk.msra.mxu1 %vm214_vm1, %v31049_v28  ;;  %28053 = vmatprep.mubr.msk.f32.mxu1 %vm28582_vm2, %v28581_v8 }
0x2ee4   :  { %28061 = vmatprep.subr.mxu1 %v28581_v8 }
0x2ee6   :  { %28054 = vmatmul.mubr.msk.f32.vlgmr.msra.gmra.mrb[18].mxu1 %vm214_vm1, %v22649_v46 }
0x2ee7   :  { %28062 = vmatpush3.msra.mxu1 %v31126_v27  ;;  %28063 = vmatprep.mubr.msk.f32.mxu1 %vm28582_vm2, %v28581_v8 }
0x2ee8   :  { %28071 = vmatprep.subr.mxu1 %v28581_v8 }
0x2f92   :  { %v21373_v53 = vpop.f32.mrb[0].mxu1 }
0x2f93   :  { %v27965_v62 = vpop.f32.mrb[1].mxu1 }
0x2f94   :  { %v21445_v30 = vpop.f32.mrb[6].mxu0 }
0x2f95   :  { %v21892_v23 = vrot.slane %v21445_v30, 7  ;;  %v27970_v28 = vpop.f32.mrb[7].mxu0 }
0x2f96   :  { %v21517_v41 = vpop.f32.mrb[2].mxu1 }
0x2f97   :  { %v21893_v0 = vsel %vm948_vm3, %v21892_v23, %v21373_v53  ;;  %v21894_v10 = vrot.slane %v21517_v41, 6  ;;  %v27975_v54 = vpop.f32.mrb[3].mxu1  ;;  %v22427_v53 = vpop.permute.xlu1 %22426 }
0x2f98   :  { %v21589_v1 = vpop.f32.mrb[8].mxu0 }
0x2f99   :  { %v21895_v11 = vsel %vm951_vm4, %v21894_v10, %v21893_v0  ;;  %v21896_v56 = vrot.slane %v21589_v1, 5  ;;  %v27980_v27 = vpop.f32.mrb[9].mxu0 }
0x2f9a   :  { %v21661_v63 = vpop.f32.mrb[4].mxu1 }
0x2f9b   :  { %v21897_v38 = vsel %vm954_vm5, %v21896_v56, %v21895_v11  ;;  %v21898_v5 = vrot.slane %v21661_v63, 4  ;;  %v27985_v59 = vpop.f32.mrb[5].mxu1  ;;  %v22575_v28 = vpop.permute.xlu1 %22574 }
0x2f9c   :  { %v21733_v50 = vpop.f32.mrb[10].mxu0 }
0x2f9d   :  { %v21899_v21 = vsel %vm957_vm6, %v21898_v5, %v21897_v38  ;;  %v21900_v18 = vrot.slane %v21733_v50, 3  ;;  %v27990_v9 = vpop.f32.mrb[11].mxu0 }
0x2f9e   :  { %v21805_v25 = vpop.f32.mrb[6].mxu1 }
0x2f9f   :  { %v21901_v34 = vsel %vm960_vm7, %v21900_v18, %v21899_v21  ;;  %v21902_v57 = vrot.slane %v21805_v25, 2  ;;  %v27995_v2 = vpop.f32.mrb[7].mxu1  ;;  %v22723_v0 = vpop.permute.xlu1 %22722 }
0x2fa0   :  { %v21877_v3 = vpop.f32.mrb[12].mxu0 }
0x2fa1   :  { %v21904_v39 = vrot.slane %v21877_v3, 1  ;;  %v28000_v42 = vpop.f32.mrb[13].mxu0  ;;  %v21903_v14 = vsel %vm963_vm8, %v21902_v57, %v21901_v34 }
0x2fa2   :  { %v21975_v29 = vpop.f32.mrb[8].mxu1 }
0x2fa3   :  { %v21905_v20 = vsel %vm966_vm9, %v21904_v39, %v21903_v14  ;;  %v28005_v40 = vpop.f32.mrb[9].mxu1 }
0x2fa4   :  { %v21976_v33 = vadd.f32 %v21975_v29, %v21905_v20 }
0x2fa6   :  { %28009 = vmatmul.mubr.msk.f32.vlgmr.msra.gmra.mrb[14].mxu0 %vm214_vm1, %v21976_v33  ;;  %v22121_v45 = vpop.f32.mrb[10].mxu1 }
0x2fa7   :  { %28017 = vmatpush3.xpose.msk.msra.mxu0 %vm214_vm1, %v22128_v4  ;;  %v28015_v46 = vpop.f32.mrb[11].mxu1  ;;  %28018 = vmatprep.mubr.msk.f32.mxu0 %vm28582_vm2, %v28581_v8 }
0x2fa8   :  { %28026 = vmatprep.subr.mxu0 %v28581_v8 }
0x2faa   :  { %28019 = vmatmul.mubr.msk.f32.vlgmr.msra.gmra.mrb[16].mxu0 %vm214_vm1, %v22126_v35 }
0x2fab   :  { %28027 = vmatpush3.xpose.msk.msra.mxu0 %vm214_vm1, %v30937_v61  ;;  %28028 = vmatprep.mubr.msk.f32.mxu0 %vm28582_vm2, %v28581_v8 }
0x2fac   :  { %28036 = vmatprep.subr.mxu0 %v28581_v8 }
0x2fad   :  { %v22274_v62 = vpop.f32.mrb[12].mxu1 }
0x2fae   :  { %v28025_v30 = vpop.f32.mrb[13].mxu1  ;;  %28029 = vmatmul.mubr.msk.f32.vlgmr.msra.gmra.mrb[18].mxu0 %vm214_vm1, %v22279_v47 }
0x2faf   :  { %28037 = vmatpush3.xpose.msk.msra.mxu0 %vm214_vm1, %v30953_v48  ;;  %28038 = vmatprep.mubr.msk.f32.mxu0 %vm28582_vm2, %v28581_v8 }
0x2fb0   :  { %28046 = vmatprep.subr.mxu0 %v28581_v8 }
0x2fb1   :  { %v22422_v23 = vpop.f32.mrb[14].mxu1 }
0x2fb2   :  { %v28035_v61 = vpop.f32.mrb[15].mxu1  ;;  %28039 = vmatmul.mubr.msk.f32.vlgmr.msra.gmra.mrb[20].mxu0 %vm214_vm1, %v22427_v53  ;;  %v22806_v38 = vrot.slane %v22422_v23, 6 }
0x2fb3   :  { %28047 = vmatpush3.xpose.msk.msra.mxu0 %vm214_vm1, %v30969_v43  ;;  %28048 = vmatprep.mubr.msk.f32.mxu0 %vm28582_vm2, %v28581_v8 }
0x2fb4   :  { %28056 = vmatprep.subr.mxu0 %v28581_v8 }
0x2fb5   :  { %v22570_v41 = vpop.f32.mrb[16].mxu1 }
0x2fb6   :  { %v28045_v48 = vpop.f32.mrb[17].mxu1  ;;  %28049 = vmatmul.mubr.msk.f32.vlgmr.msra.gmra.mrb[22].mxu0 %vm214_vm1, %v22575_v28  ;;  %v22810_v9 = vrot.slane %v22570_v41, 4 }
0x2fb7   :  { %28057 = vmatpush3.xpose.msk.msra.mxu0 %vm214_vm1, %v30983_v58  ;;  %28058 = vmatprep.mubr.msk.f32.mxu0 %vm28582_vm2, %v28581_v8 }
0x2fb8   :  { %28066 = vmatprep.subr.mxu0 %v28581_v8 }
0x2fb9   :  { %v22718_v10 = vpop.f32.mrb[18].mxu1 }
0x2fba   :  { %v28055_v43 = vpop.f32.mrb[19].mxu1  ;;  %28059 = vmatmul.mubr.msk.f32.vlgmr.msra.gmra.mrb[24].mxu0 %vm214_vm1, %v22723_v0  ;;  %v22814_v35 = vrot.slane %v22718_v10, 2 }
0x2fbb   :  { %28067 = vmatpush3.msra.mxu0 %v31136_v19  ;;  %28068 = vmatprep.mubr.msk.f32.mxu0 %vm28582_vm2, %v28581_v8 }
0x2fbc   :  { %28076 = vmatprep.subr.mxu0 %v28581_v8 }
0x3079   :  { %v22048_v54 = vpop.f32.mrb[14].mxu0 }
0x307a   :  { %v31427_v1 = vadd.f32 %v22121_v45, %v22048_v54  ;;  %v28010_v58 = vpop.f32.mrb[15].mxu0  ;;  %v28465_v54 = vld [vmem:[#allocation5 + $0xc8] sm:$0xff] }
0x307d   :  { %v22199_v11 = vpop.f32.mrb[16].mxu0 }
0x307e   :  { %v28020_v56 = vpop.f32.mrb[17].mxu0  ;;  %v22203_v40 = vmul.f32 0.35355338, %v22199_v11  ;;  %v28466_v11 = vld [vmem:[#allocation5 + $0xd8] sm:$0xff] }
0x3081   :  { %v22348_v27 = vpop.f32.mrb[18].mxu0 }
0x3082   :  { %v22804_v63 = vrot.slane %v22348_v27, 7  ;;  %v28030_v4 = vpop.f32.mrb[19].mxu0  ;;  %v28467_v27 = vld [vmem:[#allocation5 + $0xe8] sm:$0xff] }
0x3084   :  { %v22805_v5 = vsel %vm948_vm3, %v22804_v63, %v22274_v62  ;;  %v28468_v63 = vld [vmem:[#allocation5 + $0xf8] sm:$0xff] }
0x3085   :  { %v22496_v59 = vpop.f32.mrb[20].mxu0  ;;  %v22807_v50 = vsel %vm951_vm4, %v22806_v38, %v22805_v5 }
0x3086   :  { %v22808_v21 = vrot.slane %v22496_v59, 5  ;;  %v28040_v18 = vpop.f32.mrb[21].mxu0 }
0x3088   :  { %v22809_v25 = vsel %vm954_vm5, %v22808_v21, %v22807_v50 }
0x3089   :  { %v22644_v34 = vpop.f32.mrb[22].mxu0  ;;  %v22811_v57 = vsel %vm957_vm6, %v22810_v9, %v22809_v25 }
0x308a   :  { %v22812_v2 = vrot.slane %v22644_v34, 3  ;;  %v28050_v3 = vpop.f32.mrb[23].mxu0 }
0x308c   :  { %v22813_v39 = vsel %vm960_vm7, %v22812_v2, %v22811_v57 }
0x308d   :  { %v22792_v42 = vpop.f32.mrb[24].mxu0  ;;  %v22815_v14 = vsel %vm963_vm8, %v22814_v35, %v22813_v39 }
0x308e   :  { %v22816_v29 = vrot.slane %v22792_v42, 1  ;;  %v28060_v20 = vpop.f32.mrb[25].mxu0 }
0x3090   :  { %v22817_v33 = vsel %vm966_vm9, %v22816_v29, %v22815_v14 }
0x3091   :  { %v22819_v45 = vadd.f32 %v22817_v33, %v22203_v40 }
0x3093   :  { %v22820_v47 = vadd.f32 %v31078_v6, %v22819_v45 }
0x3095   :  { %v22821_v46 = vsel %vm214_vm1, %v22820_v47, -inf }
0x3096   :  { %22822 = vmax.xlane.f32.xlu0 %v22821_v46 }
0x30ac   :  { %23458 = vrot.lane.b32.xlu0 %v30267_v7, %s31768_s4 }
0x30b0   :  { %23630 = vrot.lane.b32.xlu0 %v30267_v7, %s31767_s28 }
0x30b4   :  { %23783 = vrot.lane.b32.xlu0 %v31089_v37, %s31767_s28 }
0x30b8   :  { %23931 = vrot.lane.b32.xlu0 %v31095_v31, %s31767_s28 }
0x30bc   :  { %24079 = vrot.lane.b32.xlu0 %v31101_v36, %s31767_s28 }
0x30c0   :  { %24227 = vrot.lane.b32.xlu0 %v31107_v32, %s31767_s28 }
0x3123   :  { %v22823_v6 = vpop.xlane.xlu0 %22822 }
0x3124   :  { %v22824_v53 = vsub.f32 %v22820_v47, %v22823_v6 }
0x3126   :  { %v22825_v62 = vmul.f32 1.442695, %v22824_v53 }
0x3128   :  { %28388 = vpow2.f32 %v22825_v62 }
0x3132   :  { %v28389_v30 = vpop.eup %28388 }
0x3133   :  { %v22827_v23 = vsel %vm214_vm1, %v28389_v30, 0.0 }
0x3134   :  { %22828 = vadd.xlane.f32.xlu1 %v22827_v23 }
0x3145   :  { %23632 = vrot.lane.b32.xlu1 %v30267_v7, %s31766_s27 }
0x3149   :  { %23709 = vrot.lane.b32.xlu1 %v31116_v52, %s31767_s28 }
0x314d   :  { %23857 = vrot.lane.b32.xlu1 %v31122_v60, %s31767_s28 }
0x3151   :  { %24005 = vrot.lane.b32.xlu1 %v31131_v49, %s31767_s28 }
0x3155   :  { %24153 = vrot.lane.b32.xlu1 %v31141_v55, %s31767_s28 }
0x31c1   :  { %v22829_v37 = vpop.xlane.xlu1 %22828 }
0x31c2   :  { %28390 = vrcp.f32 %v22829_v37 }
0x31c5   :  { %v23633_v10 = vpop.permute.xlu1 %23632 }
0x31cc   :  { %v28391_v31 = vpop.eup %28390 }
0x31cd   :  { %v22831_v36 = vmul.f32 %v28391_v31, %v28389_v30  ;;  %v23710_v31 = vpop.permute.xlu1 %23709 }
0x31cf   :  { %v22833_v32 = vcombine.high %v22831_v36, %v22831_v36  ;;  %v22840_v61 = vrot.slane %v22831_v36, %v28764_v17 }
0x31d1   :  { %v22848_v28 = vcombine.high %v22840_v61, %v22840_v61  ;;  %v22856_v41 = vrot.slane %v22840_v61, %v28764_v17  ;;  %v22847_v52 = vrot.slane %v22833_v32, %v28764_v17 }
0x31d3   :  { %v22870_v60 = vrot.slane %v22848_v28, %v28764_v17  ;;  %28064 = vmatmul.mubr.msk.f32.vlgmr.msra.gmra.mrb[20].mxu1 %vm214_vm1, %v22856_v41  ;;  %v22878_v49 = vcombine.high %v22856_v41, %v22856_v41  ;;  %v22849_v55 = vcombine.high %v22847_v52, %v22847_v52  ;;  %v28469_v28 = vld [vmem:[#allocation5 + $0xc0] sm:$0xff]  ;;  %v23858_v41 = vpop.permute.xlu1 %23857 }
0x31d4   :  { %28072 = vmatpush3.msra.mxu1 %v31148_v15  ;;  %28073 = vmatprep.mubr.msk.f32.mxu1 %vm28582_vm2, %v28581_v8  ;;  %v22863_v15 = vrot.slane %v22847_v52, %v28764_v17 }
0x31d5   :  { %28069 = vmatmul.mubr.msk.f32.vlgmr.msra.gmra.mrb[26].mxu0 %vm214_vm1, %v22870_v60  ;;  %28081 = vmatprep.subr.mxu1 %v28581_v8  ;;  %v22880_v48 = vcombine.high %v22870_v60, %v22870_v60  ;;  %v22877_v0 = vrot.slane %v22849_v55, %v28764_v17 }
0x31d6   :  { %28077 = vmatpush3.msra.mxu0 %v31152_v51  ;;  %28078 = vmatprep.mubr.msk.f32.mxu0 %vm28582_vm2, %v28581_v8  ;;  %v23459_v51 = vpop.permute.xlu0 %23458 }
0x31d7   :  { %28074 = vmatmul.mubr.msk.f32.vlgmr.msra.gmra.mrb[22].mxu1 %vm214_vm1, %v22878_v49  ;;  %28086 = vmatprep.subr.mxu0 %v28581_v8  ;;  %v28470_v49 = vld [vmem:[#allocation5 + $0xd0] sm:$0xff] }
0x31d8   :  { %28082 = vmatpush3.msra.mxu1 %v31160_v24  ;;  %28083 = vmatprep.mubr.msk.f32.mxu1 %vm28582_vm2, %v28581_v8  ;;  %v22879_v24 = vcombine.high %v22863_v15, %v22863_v15 }
0x31d9   :  { %28079 = vmatmul.mubr.msk.f32.vlgmr.msra.gmra.mrb[28].mxu0 %vm214_vm1, %v22880_v48  ;;  %28091 = vmatprep.subr.mxu1 %v28581_v8 }
0x31da   :  { %28087 = vmatpush3.msra.mxu0 %v31167_v44  ;;  %28088 = vmatprep.mubr.msk.f32.mxu0 %vm28582_vm2, %v28581_v8  ;;  %v22881_v44 = vcombine.high %v22877_v0, %v22877_v0 }
0x31db   :  { %28084 = vmatmul.mubr.msk.f32.vlgmr.msra.gmra.mrb[24].mxu1 %vm214_vm1, %v22863_v15  ;;  %28096 = vmatprep.subr.mxu0 %v28581_v8  ;;  %v24006_v15 = vpop.permute.xlu1 %24005 }
0x31dc   :  { %28092 = vmatpush3.msra.mxu1 %v31175_v22  ;;  %28093 = vmatprep.mubr.msk.f32.mxu1 %vm28582_vm2, %v28581_v8  ;;  %v23631_v22 = vpop.permute.xlu0 %23630 }
0x31dd   :  { %28089 = vmatmul.mubr.msk.f32.vlgmr.msra.gmra.mrb[30].mxu0 %vm214_vm1, %v22877_v0  ;;  %28101 = vmatprep.subr.mxu1 %v28581_v8 }
0x31de   :  { %28097 = vmatpush3.msra.mxu0 %v31183_v26  ;;  %28098 = vmatprep.mubr.msk.f32.mxu0 %vm28582_vm2, %v28581_v8  ;;  %v28464_v26 = vld [vmem:[%s31742_s6 + $0x30] sm:$0xff] }
0x31df   :  { %28094 = vmatmul.mubr.msk.f32.vlgmr.msra.gmra.mrb[26].mxu1 %vm214_vm1, %v22879_v24  ;;  %28106 = vmatprep.subr.mxu0 %v28581_v8 }
0x31e0   :  { %28102 = vmatpush3.msra.mxu1 %v23459_v51  ;;  %28103 = vmatprep.mubr.msk.f32.mxu1 %vm28582_vm2, %v28581_v8  ;;  %v23784_v43 = vpop.permute.xlu0 %23783  ;;  %v28471_v51 = vld [vmem:[#allocation5 + $0xe0] sm:$0xff] }
0x31e1   :  { %28099 = vmatmul.mubr.msk.f32.vlgmr.msra.gmra.mrb[32].mxu0 %vm214_vm1, %v22881_v44  ;;  %28111 = vmatprep.subr.mxu1 %v28581_v8  ;;  %v28472_v44 = vld [vmem:[#allocation5 + $0xf0] sm:$0xff] }
0x31e2   :  { %28107 = vmatpush3.msra.mxu0 %v28464_v26  ;;  %28108 = vmatprep.mubr.msk.f32.mxu0 %vm28582_vm2, %v28581_v8 }
0x31e3   :  { %28104 = vmatmul.mubr.msk.f32.vlgmr.msra.gmra.mrb[28].mxu1 %vm214_vm1, %v22831_v36  ;;  %28116 = vmatprep.subr.mxu0 %v28581_v8 }
0x31e4   :  { %28113 = vmatprep.mubr.msk.f32.mxu1 %vm28582_vm2, %v28581_v8  ;;  %v23932_v58 = vpop.permute.xlu0 %23931 }
0x31e7   :  { %28112 = vmatpush3.xpose.msk.msra.mxu1 %vm214_vm1, %v23633_v10 }
0x31e8   :  { %28121 = vmatprep.subr.mxu1 %v28581_v8  ;;  %v24080_v56 = vpop.permute.xlu0 %24079 }
0x31ea   :  { %28114 = vmatmul.mubr.msk.f32.vlgmr.msra.gmra.mrb[30].mxu1 %vm214_vm1, %v23631_v22  ;;  %v24154_v22 = vpop.permute.xlu1 %24153 }
0x31eb   :  { %28122 = vmatpush3.xpose.msk.msra.mxu1 %vm214_vm1, %v28465_v54  ;;  %28123 = vmatprep.mubr.msk.f32.mxu1 %vm28582_vm2, %v28581_v8 }
0x31ec   :  { %28131 = vmatprep.subr.mxu1 %v28581_v8  ;;  %v24228_v4 = vpop.permute.xlu0 %24227 }
0x31ee   :  { %28124 = vmatmul.mubr.msk.f32.vlgmr.msra.gmra.mrb[32].mxu1 %vm214_vm1, %v23784_v43  ;;  %v28473_v43 = vld [vmem:[#allocation7 + $0xc0] sm:$0xff] }
0x31ef   :  { %28132 = vmatpush3.xpose.msk.msra.mxu1 %vm214_vm1, %v28466_v11  ;;  %28133 = vmatprep.mubr.msk.f32.mxu1 %vm28582_vm2, %v28581_v8 }
0x31f0   :  { %28141 = vmatprep.subr.mxu1 %v28581_v8 }
0x31f2   :  { %28134 = vmatmul.mubr.msk.f32.vlgmr.msra.gmra.mrb[34].mxu1 %vm214_vm1, %v23932_v58 }
0x31f3   :  { %28142 = vmatpush3.xpose.msk.msra.mxu1 %vm214_vm1, %v28467_v27  ;;  %28143 = vmatprep.mubr.msk.f32.mxu1 %vm28582_vm2, %v28581_v8 }
0x31f4   :  { %28151 = vmatprep.subr.mxu1 %v28581_v8 }
0x31f6   :  { %28144 = vmatmul.mubr.msk.f32.vlgmr.msra.gmra.mrb[36].mxu1 %vm214_vm1, %v24080_v56 }
0x31f7   :  { %28152 = vmatpush3.xpose.msk.msra.mxu1 %vm214_vm1, %v28468_v63  ;;  %28153 = vmatprep.mubr.msk.f32.mxu1 %vm28582_vm2, %v28581_v8 }
0x31f8   :  { %28161 = vmatprep.subr.mxu1 %v28581_v8 }
0x31fa   :  { %28154 = vmatmul.mubr.msk.f32.vlgmr.msra.gmra.mrb[38].mxu1 %vm214_vm1, %v24228_v4 }
0x31fb   :  { %28162 = vmatpush3.msra.mxu1 %v31136_v19  ;;  %28163 = vmatprep.mubr.msk.f32.mxu1 %vm28582_vm2, %v28581_v8 }
0x31fc   :  { %28171 = vmatprep.subr.mxu1 %v28581_v8 }
0x32a6   :  { %v22950_v38 = vpop.f32.mrb[20].mxu1 }
0x32a7   :  { %v28065_v5 = vpop.f32.mrb[21].mxu1 }
0x32a8   :  { %v23022_v59 = vpop.f32.mrb[26].mxu0 }
0x32a9   :  { %v23469_v50 = vrot.slane %v23022_v59, 7  ;;  %v28070_v21 = vpop.f32.mrb[27].mxu0 }
0x32aa   :  { %v23094_v18 = vpop.f32.mrb[22].mxu1 }
0x32ab   :  { %v23470_v9 = vsel %vm948_vm3, %v23469_v50, %v22950_v38  ;;  %v23471_v25 = vrot.slane %v23094_v18, 6  ;;  %v28075_v34 = vpop.f32.mrb[23].mxu1 }
0x32ac   :  { %v23166_v57 = vpop.f32.mrb[28].mxu0 }
0x32ad   :  { %v23472_v2 = vsel %vm951_vm4, %v23471_v25, %v23470_v9  ;;  %v23473_v3 = vrot.slane %v23166_v57, 5  ;;  %v28080_v19 = vpop.f32.mrb[29].mxu0 }
0x32ae   :  { %v23238_v35 = vpop.f32.mrb[24].mxu1 }
0x32af   :  { %v23474_v39 = vsel %vm954_vm5, %v23473_v3, %v23472_v2  ;;  %v23475_v42 = vrot.slane %v23238_v35, 4  ;;  %v28085_v14 = vpop.f32.mrb[25].mxu1 }
0x32b0   :  { %v23310_v29 = vpop.f32.mrb[30].mxu0  ;;  %v31580_v14 = vld [vmem:[%s31743_s7 + $0x1] ss:$0 sm:$0xff] }
0x32b1   :  { %v23476_v20 = vsel %vm957_vm6, %v23475_v42, %v23474_v39  ;;  %v23477_v40 = vrot.slane %v23310_v29, 3  ;;  %v28090_v33 = vpop.f32.mrb[31].mxu0 }
0x32b2   :  { %v23382_v45 = vpop.f32.mrb[26].mxu1 }
0x32b3   :  { %v23478_v47 = vsel %vm960_vm7, %v23477_v40, %v23476_v20  ;;  %v23479_v46 = vrot.slane %v23382_v45, 2  ;;  %v28095_v6 = vpop.f32.mrb[27].mxu1  ;;  %v25143_v45 = vadd.f32 %v31580_v14, %v31067_v13 }
0x32b4   :  { %v23454_v53 = vpop.f32.mrb[32].mxu0 }
0x32b5   :  { %v23481_v62 = vrot.slane %v23454_v53, 1  ;;  %v28100_v30 = vpop.f32.mrb[33].mxu0  ;;  %v23480_v23 = vsel %vm963_vm8, %v23479_v46, %v23478_v47  ;;  %v28474_v46 = vld [vmem:[%s31737_s1 + $0x1] ss:$0 sm:$0xff] }
0x32b6   :  { %v23552_v37 = vpop.f32.mrb[28].mxu1 }
0x32b7   :  { %v23482_v36 = vsel %vm966_vm9, %v23481_v62, %v23480_v23  ;;  %v28105_v32 = vpop.f32.mrb[29].mxu1  ;;  %v31591_v62 = vadd.f32 %v25143_v45, %v30245_v16 }
0x32b8   :  { %v23553_v61 = vadd.f32 %v23552_v37, %v23482_v36 }
0x32b9   :  { %v25151_v30 = vsel %vm112_vm0, %v31591_v62, 0.0 }
0x32ba   :  { %28109 = vmatmul.mubr.msk.f32.vlgmr.msra.gmra.mrb[34].mxu0 %vm214_vm1, %v23553_v61 }
0x32bb   :  { %28117 = vmatpush3.xpose.msk.msra.mxu0 %vm214_vm1, %v28469_v28  ;;  %28118 = vmatprep.mubr.msk.f32.mxu0 %vm28582_vm2, %v28581_v8 }
0x32bc   :  { %28126 = vmatprep.subr.mxu0 %v28581_v8 }
0x32bd   :  { %v23704_v52 = vpop.f32.mrb[30].mxu1 }
0x32be   :  { %v28115_v60 = vpop.f32.mrb[31].mxu1  ;;  %28119 = vmatmul.mubr.msk.f32.vlgmr.msra.gmra.mrb[36].mxu0 %vm214_vm1, %v23710_v31  ;;  %v23708_v20 = vmul.f32 0.35355338, %v23704_v52 }
0x32bf   :  { %28127 = vmatpush3.xpose.msk.msra.mxu0 %vm214_vm1, %v28470_v49  ;;  %28128 = vmatprep.mubr.msk.f32.mxu0 %vm28582_vm2, %v28581_v8 }
0x32c0   :  { %28136 = vmatprep.subr.mxu0 %v28581_v8 }
0x32c1   :  { %v23853_v55 = vpop.f32.mrb[32].mxu1 }
0x32c2   :  { %v28125_v48 = vpop.f32.mrb[33].mxu1  ;;  %28129 = vmatmul.mubr.msk.f32.vlgmr.msra.gmra.mrb[38].mxu0 %vm214_vm1, %v23858_v41  ;;  %v24309_v63 = vrot.slane %v23853_v55, 7 }
0x32c3   :  { %28137 = vmatpush3.xpose.msk.msra.mxu0 %vm214_vm1, %v28471_v51  ;;  %28138 = vmatprep.mubr.msk.f32.mxu0 %vm28582_vm2, %v28581_v8  ;;  %v28475_v48 = vld [vmem:[#allocation7 + $0xd0] sm:$0xff] }
0x32c4   :  { %28146 = vmatprep.subr.mxu0 %v28581_v8 }
0x32c5   :  { %v24001_v0 = vpop.f32.mrb[34].mxu1 }
0x32c6   :  { %v28135_v24 = vpop.f32.mrb[35].mxu1  ;;  %28139 = vmatmul.mubr.msk.f32.vlgmr.msra.gmra.mrb[40].mxu0 %vm214_vm1, %v24006_v15  ;;  %v24313_v18 = vrot.slane %v24001_v0, 5  ;;  %v28476_v15 = vld [vmem:[#allocation7 + $0xd8] sm:$0xff] }
0x32c7   :  { %28147 = vmatpush3.xpose.msk.msra.mxu0 %vm214_vm1, %v28472_v44  ;;  %28148 = vmatprep.mubr.msk.f32.mxu0 %vm28582_vm2, %v28581_v8  ;;  %v28477_v24 = vld [vmem:[#allocation7 + $0xe0] sm:$0xff] }
0x32c8   :  { %28156 = vmatprep.subr.mxu0 %v28581_v8 }
0x32c9   :  { %v24149_v26 = vpop.f32.mrb[36].mxu1 }
0x32ca   :  { %v28145_v10 = vpop.f32.mrb[37].mxu1  ;;  %28149 = vmatmul.mubr.msk.f32.vlgmr.msra.gmra.mrb[42].mxu0 %vm214_vm1, %v24154_v22  ;;  %v24317_v3 = vrot.slane %v24149_v26, 3  ;;  %v28478_v22 = vld [vmem:[#allocation7 + $0xe8] sm:$0xff] }
0x32cb   :  { %28157 = vmatpush3.msra.mxu0 %v28473_v43  ;;  %28158 = vmatprep.mubr.msk.f32.mxu0 %vm28582_vm2, %v28581_v8  ;;  %v28479_v10 = vld [vmem:[#allocation7 + $0xf0] sm:$0xff] }
0x32cc   :  { %28166 = vmatprep.subr.mxu0 %v28581_v8 }
0x32cd   :  { %v24297_v54 = vpop.f32.mrb[38].mxu1 }
0x32ce   :  { %v28155_v58 = vpop.f32.mrb[39].mxu1  ;;  %v24321_v29 = vrot.slane %v24297_v54, 1  ;;  %v28480_v54 = vld [vmem:[#allocation7 + $0xf8] sm:$0xff] }
0x338d   :  { %v23625_v11 = vpop.f32.mrb[34].mxu0 }
0x338e   :  { %v31570_v56 = vadd.f32 %v23625_v11, %v31427_v1  ;;  %v28110_v27 = vpop.f32.mrb[35].mxu0  ;;  %v28481_v11 = vld [vmem:[%s31742_s6 + $0x38] sm:$0xff] }
0x3391   :  { %v23779_v4 = vpop.f32.mrb[36].mxu0 }
0x3392   :  { %v24310_v38 = vsel %vm948_vm3, %v24309_v63, %v23779_v4  ;;  %v28120_v5 = vpop.f32.mrb[37].mxu0 }
0x3395   :  { %v23927_v59 = vpop.f32.mrb[38].mxu0 }
0x3396   :  { %v24311_v50 = vrot.slane %v23927_v59, 6  ;;  %v28130_v21 = vpop.f32.mrb[39].mxu0 }
0x3398   :  { %v24312_v9 = vsel %vm951_vm4, %v24311_v50, %v24310_v38 }
0x3399   :  { %v24075_v25 = vpop.f32.mrb[40].mxu0  ;;  %v24314_v34 = vsel %vm954_vm5, %v24313_v18, %v24312_v9 }
0x339a   :  { %v24315_v57 = vrot.slane %v24075_v25, 4  ;;  %v28140_v2 = vpop.f32.mrb[41].mxu0 }
0x339c   :  { %v24316_v1 = vsel %vm957_vm6, %v24315_v57, %v24314_v34 }
0x339d   :  { %v24223_v19 = vpop.f32.mrb[42].mxu0  ;;  %v24318_v35 = vsel %vm960_vm7, %v24317_v3, %v24316_v1 }
0x339e   :  { %v24319_v39 = vrot.slane %v24223_v19, 2  ;;  %v28150_v42 = vpop.f32.mrb[43].mxu0 }
0x33a0   :  { %v24320_v40 = vsel %vm963_vm8, %v24319_v39, %v24318_v35 }
0x33a1   :  { %v24322_v33 = vsel %vm966_vm9, %v24321_v29, %v24320_v40 }
0x33a2   :  { %v24324_v47 = vadd.f32 %v24322_v33, %v23708_v20 }
0x33a4   :  { %v24325_v6 = vadd.f32 %v28474_v46, %v24324_v47 }
0x33a6   :  { %v24326_v53 = vsel %vm214_vm1, %v24325_v6, -inf }
0x33a7   :  { %24327 = vmax.xlane.f32.xlu1 %v24326_v53 }
0x33ab   :  { %25152 = vadd.xlane.f32.xlu1 %v25151_v30 }
0x3434   :  { %v24328_v23 = vpop.xlane.xlu1 %24327 }
0x3435   :  { %v24329_v37 = vsub.f32 %v24325_v6, %v24328_v23 }
0x3437   :  { %v24330_v31 = vmul.f32 1.442695, %v24329_v37 }
0x3439   :  { %28392 = vpow2.f32 %v24330_v31  ;;  %v25153_v31 = vpop.xlane.xlu1 %25152 }
0x3443   :  { %v28393_v13 = vpop.eup %28392 }
0x3444   :  { %v24332_v36 = vsel %vm214_vm1, %v28393_v13, 0.0 }
0x3445   :  { %24333 = vadd.xlane.f32.xlu0 %v24332_v36 }
0x345b   :  { %24963 = vrot.lane.b32.xlu0 %v30267_v7, %s31769_s3 }
0x34d2   :  { %v24334_v32 = vpop.xlane.xlu0 %24333 }
0x34d3   :  { %28394 = vrcp.f32 %v24334_v32 }
0x34dd   :  { %v28395_v16 = vpop.eup %28394 }
0x34de   :  { %v24336_v61 = vmul.f32 %v28395_v16, %v28393_v13  ;;  %v25157_v13 = vmul.f32 0.03125, %v25153_v31 }
0x34e0   :  { %v24338_v28 = vcombine.high %v24336_v61, %v24336_v61  ;;  %v24345_v41 = vrot.slane %v24336_v61, %v28764_v17 }
0x34e2   :  { %v24353_v52 = vcombine.high %v24345_v41, %v24345_v41  ;;  %v24361_v60 = vrot.slane %v24345_v41, %v28764_v17  ;;  %v24352_v49 = vrot.slane %v24338_v28, %v28764_v17 }
0x34e4   :  { %v24375_v55 = vrot.slane %v24353_v52, %v28764_v17  ;;  %28159 = vmatmul.mubr.msk.f32.vlgmr.msra.gmra.mrb[44].mxu0 %vm214_vm1, %v24361_v60  ;;  %v24383_v7 = vcombine.high %v24361_v60, %v24361_v60  ;;  %v24354_v51 = vcombine.high %v24352_v49, %v24352_v49  ;;  %v24368_v44 = vrot.slane %v24352_v49, %v28764_v17 }
0x34e5   :  { %28167 = vmatpush3.msra.mxu0 %v28475_v48  ;;  %28168 = vmatprep.mubr.msk.f32.mxu0 %vm28582_vm2, %v28581_v8 }
0x34e6   :  { %28164 = vmatmul.mubr.msk.f32.vlgmr.msra.gmra.mrb[40].mxu1 %vm214_vm1, %v24375_v55  ;;  %28176 = vmatprep.subr.mxu0 %v28581_v8  ;;  %v24385_v0 = vcombine.high %v24375_v55, %v24375_v55  ;;  %v24382_v26 = vrot.slane %v24354_v51, %v28764_v17  ;;  %v24384_v43 = vcombine.high %v24368_v44, %v24368_v44  ;;  %v24964_v17 = vpop.permute.xlu0 %24963 }
0x34e7   :  { %28172 = vmatpush3.msra.mxu1 %v28476_v15  ;;  %28173 = vmatprep.mubr.msk.f32.mxu1 %vm28582_vm2, %v28581_v8 }
0x34e8   :  { %28169 = vmatmul.mubr.msk.f32.vlgmr.msra.gmra.mrb[46].mxu0 %vm214_vm1, %v24383_v7  ;;  %28181 = vmatprep.subr.mxu1 %v28581_v8  ;;  %v24386_v58 = vcombine.high %v24382_v26, %v24382_v26 }
0x34e9   :  { %28177 = vmatpush3.msra.mxu0 %v28477_v24  ;;  %28178 = vmatprep.mubr.msk.f32.mxu0 %vm28582_vm2, %v28581_v8 }
0x34ea   :  { %28174 = vmatmul.mubr.msk.f32.vlgmr.msra.gmra.mrb[42].mxu1 %vm214_vm1, %v24385_v0  ;;  %28186 = vmatprep.subr.mxu0 %v28581_v8 }
0x34eb   :  { %28182 = vmatpush3.msra.mxu1 %v28478_v22  ;;  %28183 = vmatprep.mubr.msk.f32.mxu1 %vm28582_vm2, %v28581_v8 }
0x34ec   :  { %28179 = vmatmul.mubr.msk.f32.vlgmr.msra.gmra.mrb[48].mxu0 %vm214_vm1, %v24368_v44  ;;  %28191 = vmatprep.subr.mxu1 %v28581_v8  ;;  %v25957_v44 = vld [vmem:[%s31745_s9 + $0x1] ss:$0 sm:$0xff] }
0x34ed   :  { %28187 = vmatpush3.msra.mxu0 %v28479_v10  ;;  %28188 = vmatprep.mubr.msk.f32.mxu0 %vm28582_vm2, %v28581_v8  ;;  %v25958_v10 = vld [vmem:[%s31746_s10 + $0x20] sm:$0xff] }
0x34ee   :  { %28184 = vmatmul.mubr.msk.f32.vlgmr.msra.gmra.mrb[44].mxu1 %vm214_vm1, %v24382_v26  ;;  %28196 = vmatprep.subr.mxu0 %v28581_v8 }
0x34ef   :  { %28192 = vmatpush3.msra.mxu1 %v28480_v54  ;;  %28193 = vmatprep.mubr.msk.f32.mxu1 %vm28582_vm2, %v28581_v8 }
0x34f0   :  { %28189 = vmatmul.mubr.msk.f32.vlgmr.msra.gmra.mrb[50].mxu0 %vm214_vm1, %v24384_v43  ;;  %28201 = vmatprep.subr.mxu1 %v28581_v8  ;;  %v25959_v43 = vld [vmem:[%s31746_s10 + $0x28] sm:$0xff] }
0x34f1   :  { %28197 = vmatpush3.msra.mxu0 %v24964_v17  ;;  %28198 = vmatprep.mubr.msk.f32.mxu0 %vm28582_vm2, %v28581_v8  ;;  %v28276_v54 = vpack.c.bf16 %v25959_v43, %v25958_v10  ;;  %v25960_v17 = vld [vmem:[%s31746_s10 + $0x30] sm:$0xff] }
0x34f2   :  { %28194 = vmatmul.mubr.msk.f32.vlgmr.msra.gmra.mrb[46].mxu1 %vm214_vm1, %v24386_v58  ;;  %v25961_v58 = vld [vmem:[%s31746_s10 + $0x38] sm:$0xff] }
0x34f3   :  { %28202 = vmatpush3.msra.mxu1 %v28481_v11  ;;  %28203 = vmatprep.mubr.msk.f32.mxu1 %vm28582_vm2, %v28581_v8  ;;  %v28280_v11 = vpack.c.bf16 %v25961_v58, %v25960_v17 }
0x34f4   :  { %28199 = vmatmul.mubr.msk.f32.vlgmr.msra.gmra.mrb[52].mxu0 %vm214_vm1, %v24336_v61  ;;  %v25159_v61 = vsub.f32 %v31591_v62, %v25157_v13  ;;  %28277 = vmatprep.subr.bf16.mxu0 %v28276_v54 }
0x34f5   :  { %28279 = vmatpush3.bf16.msra.mxu0 %v28276_v54 }
0x34f6   :  { %v25161_v60 = vmul.f32 %v25159_v61, %v25159_v61  ;;  %28281 = vmatprep.subr.bf16.mxu0 %v28280_v11 }
0x34f8   :  { %v25163_v49 = vsel %vm112_vm0, %v25161_v60, 0.0  ;;  %v25975_v60 = vld [vmem:[%s31749_s13 + $0x1] ss:$0 sm:$0xff] }
0x34f9   :  { %28283 = vmatpush3.bf16.msra.mxu0 %v28280_v11 }
0x35b7   :  { %v24455_v27 = vpop.f32.mrb[44].mxu0 }
0x35b8   :  { %v28160_v63 = vpop.f32.mrb[45].mxu0 }
0x35b9   :  { %v24527_v4 = vpop.f32.mrb[40].mxu1 }
0x35ba   :  { %v24974_v38 = vrot.slane %v24527_v4, 7  ;;  %v28165_v5 = vpop.f32.mrb[41].mxu1 }
0x35bb   :  { %v24599_v59 = vpop.f32.mrb[46].mxu0 }
0x35bc   :  { %v24975_v50 = vsel %vm948_vm3, %v24974_v38, %v24455_v27  ;;  %v24976_v21 = vrot.slane %v24599_v59, 6  ;;  %v28170_v18 = vpop.f32.mrb[47].mxu0 }
0x35bd   :  { %v24671_v9 = vpop.f32.mrb[42].mxu1  ;;  %v25967_v18 = vld [vmem:[%s31748_s12 + $0x48] sm:$0xff] }
0x35be   :  { %v24977_v25 = vsel %vm951_vm4, %v24976_v21, %v24975_v50  ;;  %v24978_v34 = vrot.slane %v24671_v9, 5  ;;  %v28175_v57 = vpop.f32.mrb[43].mxu1  ;;  %v25966_v21 = vld [vmem:[%s31748_s12 + $0x40] sm:$0xff] }
0x35bf   :  { %v24743_v2 = vpop.f32.mrb[48].mxu0  ;;  %v28284_v9 = vpack.c.bf16 %v25967_v18, %v25966_v21 }
0x35c0   :  { %v24979_v8 = vsel %vm954_vm5, %v24978_v34, %v24977_v25  ;;  %v24980_v3 = vrot.slane %v24743_v2, 4  ;;  %v28180_v1 = vpop.f32.mrb[49].mxu0  ;;  %v25968_v25 = vld [vmem:[%s31748_s12 + $0x50] sm:$0xff]  ;;  %v25969_v34 = vld [vmem:[%s31748_s12 + $0x58] sm:$0xff]  ;;  %v25970_v2 = vld [vmem:[%s31748_s12 + $0x60] sm:$0xff] }
0x35c1   :  { %v24815_v19 = vpop.f32.mrb[44].mxu1  ;;  %28285 = vmatprep.subr.bf16.mxu1 %v28284_v9  ;;  %v28288_v57 = vpack.c.bf16 %v25969_v34, %v25968_v25  ;;  %v25972_v1 = vld [vmem:[%s31748_s12 + $0x70] sm:$0xff] }
0x35c2   :  { %v24981_v35 = vsel %vm957_vm6, %v24980_v3, %v24979_v8  ;;  %v24982_v39 = vrot.slane %v24815_v19, 3  ;;  %v28185_v42 = vpop.f32.mrb[45].mxu1  ;;  %v25971_v8 = vld [vmem:[%s31748_s12 + $0x68] sm:$0xff]  ;;  %v25973_v19 = vld [vmem:[%s31748_s12 + $0x78] sm:$0xff] }
0x35c3   :  { %v24887_v29 = vpop.f32.mrb[50].mxu0  ;;  %v28292_v3 = vpack.c.bf16 %v25971_v8, %v25970_v2 }
0x35c4   :  { %v24983_v20 = vsel %vm960_vm7, %v24982_v39, %v24981_v35  ;;  %v24984_v40 = vrot.slane %v24887_v29, 2  ;;  %v28190_v33 = vpop.f32.mrb[51].mxu0  ;;  %v28296_v35 = vpack.c.bf16 %v25973_v19, %v25972_v1  ;;  %v25963_v39 = vld [vmem:[%s31747_s11 + $0x1] ss:$0 sm:$0xff] }
0x35c5   :  { %v24959_v45 = vpop.f32.mrb[46].mxu1 }
0x35c6   :  { %v24986_v47 = vrot.slane %v24959_v45, 1  ;;  %v28195_v46 = vpop.f32.mrb[47].mxu1  ;;  %v24985_v6 = vsel %vm963_vm8, %v24984_v40, %v24983_v20 }
0x35c7   :  { %v25057_v53 = vpop.f32.mrb[52].mxu0 }
0x35c8   :  { %v24987_v30 = vsel %vm966_vm9, %v24986_v47, %v24985_v6  ;;  %v28200_v23 = vpop.f32.mrb[53].mxu0 }
0x35c9   :  { %v25058_v37 = vadd.f32 %v25057_v53, %v24987_v30 }
0x35cb   :  { %28204 = vmatmul.mubr.msk.f32.vlgmr.msra.gmra.mrb[48].mxu1 %vm214_vm1, %v25058_v37 }
0x35cc   :  { %28287 = vmatpush3.bf16.msra.mxu1 %v28284_v9 }
0x35cd   :  { %28289 = vmatprep.subr.bf16.mxu1 %v28288_v57 }
0x35d0   :  { %28291 = vmatpush3.bf16.msra.mxu1 %v28288_v57 }
0x35d1   :  { %28293 = vmatprep.subr.bf16.mxu1 %v28292_v3 }
0x35d4   :  { %28295 = vmatpush3.bf16.msra.mxu1 %v28292_v3 }
0x35d5   :  { %28297 = vmatprep.subr.bf16.mxu1 %v28296_v35 }
0x35d8   :  { %28299 = vmatpush3.bf16.msra.mxu1 %v28296_v35 }
0x369e   :  { %v25130_v36 = vpop.f32.mrb[48].mxu1 }
0x369f   :  { %v25134_v32 = vadd.f32 %v25130_v36, %v31570_v56  ;;  %v28205_v16 = vpop.f32.mrb[49].mxu1 }
0x36a1   :  { %v25144_v28 = vadd.f32 %v31580_v14, %v25134_v32 }
0x36a3   :  { %v25146_v41 = vadd.f32 %v25144_v28, %v30251_v12  ;;  %v25956_v12 = vld [vmem:[%s31744_s8 + $0x1] ss:$0 sm:$0xff]  ;;  %s28595_s8 = smov [#allocation8]  }
0x36a4   :  { %s25459_s25 = sshll.u32 %s28595_s8, 4  ;;  %s25460_s25 = int_to_ptr.vmem [resolvable:$true] %s25459_s25 }
0x36a5   :  { %v25154_v52 = vsel %vm112_vm0, %v25146_v41, 0.0  ;;  %s28548_s9 = scalar_lea.vmem %s25460_s25, 512  ;;  %p28553_p11 = scmp.lt.s32.totalorder %s25460_s25, %s25460_s25 }
0x36a6   :  { %25155 = vadd.xlane.f32.xlu1 %v25154_v52  ;;  %p28549_p10 = scmp.ne.s32.totalorder %s25460_s25, %s28548_s9  ;;  %p28554_p12 = scmp.lt.s32.totalorder %s28548_s9, %s28548_s9 }
0x36a8   :  { %p28555_p13 = por %p28554_p12, %p28553_p11 }
0x36aa   :  { %25164 = vadd.xlane.f32.xlu1 %v25163_v49  ;;  %p28556_p0 = pnand %p28555_p13, %p28549_p10 }
0x3733   :  { %v25156_v55 = vpop.xlane.xlu1 %25155 }
0x3734   :  { %v25158_v48 = vmul.f32 0.03125, %v25156_v55 }
0x3736   :  { %v25160_v7 = vsub.f32 %v25146_v41, %v25158_v48 }
0x3737   :  { %v25165_v15 = vpop.xlane.xlu1 %25164 }
0x3738   :  { %v25169_v51 = vmul.f32 0.03125, %v25165_v15  ;;  %v25162_v56 = vmul.f32 %v25160_v7, %v25160_v7 }
0x373a   :  { %v25171_v0 = vadd.f32 1e-12, %v25169_v51  ;;  %v25166_v62 = vsel %vm112_vm0, %v25162_v56, 0.0 }
0x373b   :  { %25167 = vadd.xlane.f32.xlu1 %v25166_v62 }
0x373c   :  { %28396 = vrsqrt.f32 %v25171_v0 }
0x3746   :  { %v28397_v14 = vpop.eup %28396 }
0x3747   :  { %v25175_v24 = vmul.f32 %v28397_v14, %v25159_v61 }
0x3749   :  { %v25183_v22 = vmul.f32 %v25956_v12, %v25175_v24 }
0x374b   :  { %v31659_v26 = vadd.f32 %v25957_v44, %v25183_v22 }
0x374d   :  { %28214 = vmatprep.mubr.msk.f32.mxu0 %vm112_vm0, %v31659_v26 }
0x37c8   :  { %v25168_v27 = vpop.xlane.xlu1 %25167 }
0x37c9   :  { %v25170_v63 = vmul.f32 0.03125, %v25168_v27 }
0x37cb   :  { %v25172_v4 = vadd.f32 1e-12, %v25170_v63 }
0x37cd   :  { %28398 = vrsqrt.f32 %v25172_v4 }
0x37d7   :  { %v28399_v38 = vpop.eup %28398 }
0x37d8   :  { %v25176_v5 = vmul.f32 %v28399_v38, %v25160_v7 }
0x37da   :  { %v25184_v59 = vmul.f32 %v25956_v12, %v25176_v5  ;;  %v25980_v5 = vld [vmem:[%s31750_s14 + $0x1] ss:$0 sm:$0xff] }
0x37dc   :  { %v25192_v50 = vadd.f32 %v25957_v44, %v25184_v59 }
0x37de   :  { %28215 = vmatmul.mubr.msk.f32.vlgmr.msra.gmra.mrb[54].mxu0 %vm112_vm0, %v25192_v50 }
0x38b1   :  { %v28216_v42 = vpop.f32.mrb[54].mxu0 }
0x38b2   :  { %v25284_v29 = vadd.f32 %v28216_v42, %v25963_v39  ;;  %v25278_v20 = vpop.f32.mrb[55].mxu0 }
0x38b3   :  { %v25279_v40 = vadd.f32 %v25963_v39, %v25278_v20 }
0x38b4   :  { %v25290_v33 = vmul.f32 0.044715, %v25284_v29  ;;  %v25288_v28 = vmul.f32 0.5, %v25284_v29 }
0x38b5   :  { %v25289_v45 = vmul.f32 0.044715, %v25279_v40  ;;  %v25287_v16 = vmul.f32 0.5, %v25279_v40 }
0x38b6   :  { %v25292_v47 = vmul.f32 %v25290_v33, %v25284_v29 }
0x38b7   :  { %v25291_v46 = vmul.f32 %v25289_v45, %v25279_v40 }
0x38b8   :  { %v25294_v6 = vmul.f32 %v25292_v47, %v25284_v29 }
0x38b9   :  { %v25293_v53 = vmul.f32 %v25291_v46, %v25279_v40 }
0x38ba   :  { %v25296_v30 = vadd.f32 %v25294_v6, %v25284_v29 }
0x38bb   :  { %v25295_v23 = vadd.f32 %v25293_v53, %v25279_v40 }
0x38bc   :  { %v25298_v37 = vmul.f32 0.7978846, %v25296_v30 }
0x38bd   :  { %v25297_v31 = vmul.f32 0.7978846, %v25295_v23 }
0x38be   :  { %28400 = vtanh.f32 %v25298_v37 }
0x38bf   :  { %28402 = vtanh.f32 %v25297_v31 }
0x38c8   :  { %v28401_v13 = vpop.eup %28400 }
0x38c9   :  { %v28403_v36 = vpop.eup %28402  ;;  %v25302_v32 = vadd.f32 1.0, %v28401_v13 }
0x38ca   :  { %v25301_v61 = vadd.f32 1.0, %v28403_v36 }
0x38cb   :  { %v25304_v52 = vmul.f32 %v25302_v32, %v25288_v28 }
0x38cc   :  { %v25303_v41 = vmul.f32 %v25301_v61, %v25287_v16 }
0x38ce   :  { %28233 = vmatprep.mubr.msk.f32.mxu1 %vm12644_vm10, %v25303_v41 }
0x38cf   :  { %28234 = vmatmul.mubr.msk.f32.vlgmr.msra.gmra.mrb[50].mxu1 %vm12644_vm10, %v25304_v52 }
0x39a2   :  { %v28235_v49 = vpop.f32.mrb[50].mxu1 }
0x39a3   :  { %v25394_v55 = vpop.f32.mrb[51].mxu1  ;;  %v25400_v48 = vadd.f32 %v28235_v49, %v25975_v60 }
0x39a4   :  { %v25395_v7 = vadd.f32 %v25975_v60, %v25394_v55 }
0x39a5   :  { %v25404_v51 = vadd.f32 %v25400_v48, %v25192_v50  ;;  %v25981_v50 = vld [vmem:[%s31751_s15 + $0x1] ss:$0 sm:$0xff] }
0x39a6   :  { %v25403_v15 = vadd.f32 %v25395_v7, %v31659_v26 }
0x39a7   :  { %v25412_v0 = vsel %vm112_vm0, %v25404_v51, 0.0 }
0x39a8   :  { %v25409_v56 = vsel %vm112_vm0, %v25403_v15, 0.0 }
0x39a9   :  { %25410 = vadd.xlane.f32.xlu1 %v25409_v56 }
0x39ad   :  { %25413 = vadd.xlane.f32.xlu1 %v25412_v0 }
0x3a36   :  { %v25411_v62 = vpop.xlane.xlu1 %25410 }
0x3a37   :  { %v25415_v14 = vmul.f32 0.03125, %v25411_v62 }
0x3a39   :  { %v25417_v12 = vsub.f32 %v25403_v15, %v25415_v14 }
0x3a3a   :  { %v25414_v24 = vpop.xlane.xlu1 %25413 }
0x3a3b   :  { %v25416_v44 = vmul.f32 0.03125, %v25414_v24  ;;  %v25419_v22 = vmul.f32 %v25417_v12, %v25417_v12 }
0x3a3d   :  { %v25418_v10 = vsub.f32 %v25404_v51, %v25416_v44  ;;  %v25421_v43 = vsel %vm112_vm0, %v25419_v22, 0.0 }
0x3a3e   :  { %25422 = vadd.xlane.f32.xlu0 %v25421_v43 }
0x3a3f   :  { %v25420_v54 = vmul.f32 %v25418_v10, %v25418_v10 }
0x3a41   :  { %v25424_v26 = vsel %vm112_vm0, %v25420_v54, 0.0 }
0x3a42   :  { %25425 = vadd.xlane.f32.xlu1 %v25424_v26 }
0x3acb   :  { %v25423_v17 = vpop.xlane.xlu0 %25422 }
0x3acc   :  { %v25427_v58 = vmul.f32 0.03125, %v25423_v17 }
0x3ace   :  { %v25429_v11 = vadd.f32 1e-12, %v25427_v58 }
0x3acf   :  { %v25426_v27 = vpop.xlane.xlu1 %25425 }
0x3ad0   :  { %28404 = vrsqrt.f32 %v25429_v11  ;;  %v25428_v63 = vmul.f32 0.03125, %v25426_v27 }
0x3ad2   :  { %v25430_v4 = vadd.f32 1e-12, %v25428_v63 }
0x3ad4   :  { %28406 = vrsqrt.f32 %v25430_v4 }
0x3ada   :  { %v28405_v38 = vpop.eup %28404 }
0x3adb   :  { %v25433_v59 = vmul.f32 %v28405_v38, %v25417_v12 }
0x3add   :  { %v25441_v21 = vmul.f32 %v25980_v5, %v25433_v59 }
0x3ade   :  { %v28407_v18 = vpop.eup %28406 }
0x3adf   :  { %v25434_v9 = vmul.f32 %v28407_v18, %v25418_v10  ;;  %v25449_v25 = vadd.f32 %v25981_v50, %v25441_v21 }
0x3ae1   :  { %v25442_v34 = vmul.f32 %v25980_v5, %v25434_v9  ;;  %25452 = vst.msk [vmem:[#allocation8 + $0x10] sm:$0xff] %vm112_vm0, %v25449_v25 }
0x3ae3   :  { %v25450_v57 = vadd.f32 %v25981_v50, %v25442_v34 }
0x3ae5   :  { %25453 = vst.msk [vmem:[#allocation8 + $0x18] sm:$0xff] %vm112_vm0, %v25450_v57 }
0x3ae6   :  { %28559 = shalt.err (!%p28556_p0)
}
0x3ae7   :  { %s28560_s21 = scalar_lea.hbm %s31752_s16, 512 }
0x3ae8   :  { %p28561_p1 = scmp.ne.s32.totalorder %s31752_s16, %s28560_s21  ;;  %p28564_p2 = scmp.lt.u32.totalorder %s28560_s21, %s31752_s16 }
0x3aea   :  { %p28566_p3 = pnand %p28564_p2, %p28561_p1 }
0x3aec   :  { %28569 = shalt.err (!%p28566_p3)
}
0x3aed   :  { %s31770_s10 = smov 8   ;;  %s31771_s20 = smov 128  }
0x3aee   :  { %25465 = dma.vmem_to_hbm [thread:$0]  %s25460_s25, 512, %s31752_s16, [#allocation4], %s31771_s20, %s31771_s20, %s31770_s10  }
0x3aef   :  { %28574 = dma.done.wait [#allocation4], 512  }
0x3af0   :  { %28575 = vsyncadd [#allocation4], 4294966784 }
0x3af1   :  { %25469 = vsyncpa [#allocation3], 1 }
0x3af2   :  { %25470 = vsyncpa [#allocation6], 1 }
0x3af3   :  { %25471 = vsyncpa [#allocation4], 1 }

</bundles_post_ra>
